<compile_context>
chip_gen: v6e
topology: v6e:2x2x1
jax: 0.10.0
libtpu: 0.0.40
codegen_flags: <defaults>
</compile_context>

<pallas_src>
import functools

import jax
import jax.numpy as jnp
from jax.experimental import pallas as pl
from jax.experimental.pallas import tpu as pltpu


_KPAD = 8  # pad input_dim (3) up to 8 so the first encoder layer is one MXU matmul


# ----------------------------------------------------------------------------
# In-kernel helpers
# ----------------------------------------------------------------------------
def _layernorm(h, gamma, beta, eps=1e-5):
    mu = jnp.mean(h, axis=-1, keepdims=True)
    var = jnp.mean((h - mu) ** 2, axis=-1, keepdims=True)
    return (h - mu) * jax.lax.rsqrt(var + eps) * gamma + beta


def _dot(a, w):
    # Weights are stored bf16: cast the activation to the weight dtype so the
    # MXU runs its native bf16 x bf16 -> f32 path; accumulate in f32.
    return jnp.dot(a.astype(w.dtype), w, preferred_element_type=jnp.float32)


# ----------------------------------------------------------------------------
# Fully fused forward kernel (grid=(1,), everything resident in VMEM)
# ----------------------------------------------------------------------------
def fused_forward_kernel(
        # inputs
        x_ref,
        ew1, eb1, eg1, ebe1, ew2, eb2, eg2, ebe2, ew3, eb3,
        wih0, whh0, lb0, w1s, lb1,
        dw1, db1, dg1, dbe1, dw2, db2, dg2, dbe2, dw3, db3,
        # outputs
        lat_ref, rec_ref,
        *, B, T, N):
    f32 = jnp.float32

    # ---------------- encoder: D(->8) -> H -> 2H -> L over M = B*T*N points --
    h = _dot(x_ref[...], ew1[...]) + eb1[...]
    h = jnp.maximum(_layernorm(h, eg1[...], ebe1[...]), 0.0)
    h = _dot(h, ew2[...]) + eb2[...]
    h = jnp.maximum(_layernorm(h, eg2[...], ebe2[...]), 0.0)
    enc = _dot(h, ew3[...]) + eb3[...]                     # (M, L) f32

    # -------- per-frame mean over the N points of each (b, t) frame ---------
    # Point rows are flattened (b, t, n)-major; build the frame array directly
    # time-major (row = t*B + b) so the LSTM loop slices are contiguous.
    frames = jnp.concatenate(
        [jnp.mean(enc[(b * T + t) * N:(b * T + t + 1) * N, :],
                  axis=0, keepdims=True)
         for t in range(T) for b in range(B)], axis=0)     # (T*B, L)

    L = frames.shape[-1]

    # -------- 2-layer LSTM (gate order [i, f, g, o]) -------------------------
    whh0_v = whh0[...]                                     # hoisted ref reads
    w1s_v = w1s[...]                                       # stacked [wih1; whh1]
    # Layer-0 input projection for all timesteps batched into one matmul.
    x_proj = _dot(frames, wih0[...]) + lb0[...]            # (T*B, 4L)
    lb1_b = jnp.broadcast_to(lb1[...], (B, 4 * L))         # hoisted bias bcast

    zero = jnp.zeros((B, L), f32)
    h0 = c0 = h1 = c1 = zero
    outs = []
    for t in range(T):                                     # T static & tiny
        # layer 0: only the recurrent matmul is on the serial path
        g0 = x_proj[t * B:(t + 1) * B, :] + _dot(h0, whh0_v)
        sg = jax.nn.sigmoid(g0)
        th = jnp.tanh(g0)
        c0 = sg[:, L:2 * L] * c0 + sg[:, :L] * th[:, 2 * L:3 * L]
        h0 = sg[:, 3 * L:] * jnp.tanh(c0)
        # layer 1: single matmul of [h0_t, h1_{t-1}] against stacked weights
        g1 = _dot(jnp.concatenate([h0, h1], axis=1), w1s_v) + lb1_b
        sg = jax.nn.sigmoid(g1)
        th = jnp.tanh(g1)
        c1 = sg[:, L:2 * L] * c1 + sg[:, :L] * th[:, 2 * L:3 * L]
        h1 = sg[:, 3 * L:] * jnp.tanh(c1)
        outs.append(h1)                                    # kept in vregs

    lstm_tm = jnp.concatenate(outs, axis=0)                # (T*B, L) time-major
    lat_ref[...] = lstm_tm

    # -------- decoder on the T*B distinct frame latents only -----------------
    # (the repeat over the N identical points per frame is done by the wrapper)
    h = _dot(lstm_tm, dw1[...]) + db1[...]
    h = jnp.maximum(_layernorm(h, dg1[...], dbe1[...]), 0.0)
    h = _dot(h, dw2[...]) + db2[...]
    h = jnp.maximum(_layernorm(h, dg2[...], dbe2[...]), 0.0)
    rec_ref[...] = _dot(h, dw3[...]) + db3[...]            # (T*B, D)


# ----------------------------------------------------------------------------
# Wrapper
# ----------------------------------------------------------------------------
def _full_spec(shape):
    zeros = (0,) * len(shape)
    return pl.BlockSpec(shape, lambda i: zeros)


@jax.jit
def dpc_autoencoder_forward(x, params):
    B, T, N, D = x.shape
    M = B * T * N
    enc_p, lstm_p, dec_p = params["enc"], params["lstm"], params["dec"]
    L = lstm_p["wih0"].shape[0]
    Dout = dec_p["w3"].shape[1]
    kpad = max(_KPAD, D)
    bf16 = jnp.bfloat16

    # zero-pad input_dim to 8 so the first encoder layer runs on the MXU
    x_pad = jnp.pad(x.reshape(M, D).astype(jnp.float32), ((0, 0), (0, kpad - D)))
    ew1 = jnp.pad(enc_p["w1"], ((0, kpad - D), (0, 0))).astype(bf16)
    # stack LSTM layer-1 input & recurrent weights: [h0_t, h1_{t-1}] @ [wih1; whh1]
    w1s = jnp.concatenate([lstm_p["wih1"], lstm_p["whh1"]], axis=0).astype(bf16)

    inputs = [
        x_pad,
        ew1, enc_p["b1"], enc_p["g1"], enc_p["be1"],
        enc_p["w2"].astype(bf16), enc_p["b2"], enc_p["g2"], enc_p["be2"],
        enc_p["w3"].astype(bf16), enc_p["b3"],
        lstm_p["wih0"].astype(bf16), lstm_p["whh0"].astype(bf16), lstm_p["b0"],
        w1s, lstm_p["b1"],
        dec_p["w1"].astype(bf16), dec_p["b1"], dec_p["g1"], dec_p["be1"],
        dec_p["w2"].astype(bf16), dec_p["b2"], dec_p["g2"], dec_p["be2"],
        dec_p["w3"].astype(bf16), dec_p["b3"],
    ]

    in_specs = [_full_spec(a.shape) for a in inputs]
    out_shapes = (jax.ShapeDtypeStruct((T * B, L), jnp.float32),
                  jax.ShapeDtypeStruct((T * B, Dout), jnp.float32))
    out_specs = [_full_spec((T * B, L)), _full_spec((T * B, Dout))]

    kernel = functools.partial(fused_forward_kernel, B=B, T=T, N=N)

    lat_tm, rec_tm = pl.pallas_call(
        kernel,
        out_shape=out_shapes,
        grid_spec=pltpu.PrefetchScalarGridSpec(
            num_scalar_prefetch=0,
            grid=(1,),
            in_specs=in_specs,
            out_specs=out_specs,
        ),
        compiler_params=pltpu.CompilerParams(
            dimension_semantics=("arbitrary",)),
    )(*inputs)

    # Broadcast the per-frame latent / reconstruction back over the N identical
    # points of each frame (cheap XLA broadcast, fused under jit).
    lat_bt = lat_tm.reshape(T, B, L).transpose(1, 0, 2)            # (B, T, L)
    latent = jnp.broadcast_to(lat_bt[:, :, None, :], (B, T, N, L)).reshape(M, L)
    rec_bt = rec_tm.reshape(T, B, Dout).transpose(1, 0, 2)         # (B, T, D)
    recon = jnp.broadcast_to(rec_bt[:, :, None, :], (B, T, N, Dout))
    return latent, recon


# ----------------------------------------------------------------------------
# Pure-JAX reference (mirrors the PyTorch module, f32) for verification
# ----------------------------------------------------------------------------
def _mlp3_ref(h, p):
    def ln(z, g, b):
        mu = z.mean(-1, keepdims=True)
        var = ((z - mu) ** 2).mean(-1, keepdims=True)
        return (z - mu) * jax.lax.rsqrt(var + 1e-5) * g + b
    z = h @ p["w1"] + p["b1"]
    z = jnp.maximum(ln(z, p["g1"], p["be1"]), 0.0)
    z = z @ p["w2"] + p["b2"]
    z = jnp.maximum(ln(z, p["g2"], p["be2"]), 0.0)
    return z @ p["w3"] + p["b3"]


def _lstm2_ref(x_bth, lp):
    B, T, H = x_bth.shape

    def cell(x, h, c, wih, whh, b):
        g = x @ wih + h @ whh + b
        i_g, f_g, g_g, o_g = jnp.split(g, 4, axis=-1)
        c2 = jax.nn.sigmoid(f_g) * c + jax.nn.sigmoid(i_g) * jnp.tanh(g_g)
        h2 = jax.nn.sigmoid(o_g) * jnp.tanh(c2)
        return h2, c2

    def step(carry, x_t):
        h0, c0, h1, c1 = carry
        h0, c0 = cell(x_t, h0, c0, lp["wih0"], lp["whh0"], lp["b0"])
        h1, c1 = cell(h0, h1, c1, lp["wih1"], lp["whh1"], lp["b1"])
        return (h0, c0, h1, c1), h1

    z = jnp.zeros((B, H), jnp.float32)
    _, ys = jax.lax.scan(step, (z, z, z, z), jnp.transpose(x_bth, (1, 0, 2)))
    return jnp.transpose(ys, (1, 0, 2))


def _reference_forward(x, params):
    B, T, N, D = x.shape
    enc = _mlp3_ref(x.reshape(-1, D), params["enc"])
    L = enc.shape[-1]
    lat = enc.reshape(B, T, N, L).mean(axis=2)
    lstm_out = _lstm2_ref(lat, params["lstm"])
    lat_rep = jnp.broadcast_to(lstm_out[:, :, None, :], (B, T, N, L)).reshape(-1, L)
    recon = _mlp3_ref(lat_rep, params["dec"]).reshape(B, T, N, D)
    return lat_rep, recon


# ----------------------------------------------------------------------------
# Deterministic parameter init (weights stored pre-transposed for x @ W)
# ----------------------------------------------------------------------------
def init_params(key, D=3, H=64, L=32):
    keys = iter(jax.random.split(key, 32))

    def rn(shape, scale=0.1):
        return scale * jax.random.normal(next(keys), shape, jnp.float32)

    enc = dict(
        w1=rn((D, H)), b1=rn((1, H)), g1=1.0 + rn((1, H), 0.05), be1=rn((1, H)),
        w2=rn((H, 2 * H)), b2=rn((1, 2 * H)), g2=1.0 + rn((1, 2 * H), 0.05),
        be2=rn((1, 2 * H)),
        w3=rn((2 * H, L)), b3=rn((1, L)),
    )
    lstm = dict(
        wih0=rn((L, 4 * L)), whh0=rn((L, 4 * L)), b0=rn((1, 4 * L)),
        wih1=rn((L, 4 * L)), whh1=rn((L, 4 * L)), b1=rn((1, 4 * L)),
    )
    dec = dict(
        w1=rn((L, 2 * H)), b1=rn((1, 2 * H)), g1=1.0 + rn((1, 2 * H), 0.05),
        be1=rn((1, 2 * H)),
        w2=rn((2 * H, H)), b2=rn((1, H)), g2=1.0 + rn((1, H), 0.05), be2=rn((1, H)),
        w3=rn((H, D)), b3=rn((1, D)),
    )
    return dict(enc=enc, lstm=lstm, dec=dec)


if __name__ == "__main__":
    key = jax.random.PRNGKey(0)
    k_param, k_x = jax.random.split(key)

    B, T, N, D = 2, 5, 64, 3          # batch, sequence_length, num_points, input_dim
    H, L = 64, 32                      # hidden_dim, latent_dim (module defaults)

    params = init_params(k_param, D=D, H=H, L=L)
    x = jax.random.normal(k_x, (B, T, N, D), jnp.float32)

    latent, reconstructed = dpc_autoencoder_forward(x, params)
    jax.block_until_ready((latent, reconstructed))

    assert latent.shape == (B * T * N, L)
    assert reconstructed.shape == (B, T, N, D)

    # f32 reference; kernel uses bf16 weights on the MXU -> loosened tolerance
    # (real structural bugs would produce errors >> 3e-2).
    lat_ref, rec_ref = _reference_forward(x, params)
    assert jnp.allclose(latent, lat_ref, atol=3e-2, rtol=3e-2)
    assert jnp.allclose(reconstructed, rec_ref, atol=3e-2, rtol=3e-2)

    print("KERNEL_OK")
</pallas_src>

<mosaic_0001>
module attributes {stable_mosaic.version = 11 : i64} {
  func.func @fused_forward_kernel(%arg0: i32, %arg1: memref<640x8xf32, #tpu.memory_space<vmem>>, %arg2: memref<8x64xbf16, #tpu.memory_space<vmem>>, %arg3: memref<1x64xf32, #tpu.memory_space<vmem>>, %arg4: memref<1x64xf32, #tpu.memory_space<vmem>>, %arg5: memref<1x64xf32, #tpu.memory_space<vmem>>, %arg6: memref<64x128xbf16, #tpu.memory_space<vmem>>, %arg7: memref<1x128xf32, #tpu.memory_space<vmem>>, %arg8: memref<1x128xf32, #tpu.memory_space<vmem>>, %arg9: memref<1x128xf32, #tpu.memory_space<vmem>>, %arg10: memref<128x32xbf16, #tpu.memory_space<vmem>>, %arg11: memref<1x32xf32, #tpu.memory_space<vmem>>, %arg12: memref<32x128xbf16, #tpu.memory_space<vmem>>, %arg13: memref<32x128xbf16, #tpu.memory_space<vmem>>, %arg14: memref<1x128xf32, #tpu.memory_space<vmem>>, %arg15: memref<64x128xbf16, #tpu.memory_space<vmem>>, %arg16: memref<1x128xf32, #tpu.memory_space<vmem>>, %arg17: memref<32x128xbf16, #tpu.memory_space<vmem>>, %arg18: memref<1x128xf32, #tpu.memory_space<vmem>>, %arg19: memref<1x128xf32, #tpu.memory_space<vmem>>, %arg20: memref<1x128xf32, #tpu.memory_space<vmem>>, %arg21: memref<128x64xbf16, #tpu.memory_space<vmem>>, %arg22: memref<1x64xf32, #tpu.memory_space<vmem>>, %arg23: memref<1x64xf32, #tpu.memory_space<vmem>>, %arg24: memref<1x64xf32, #tpu.memory_space<vmem>>, %arg25: memref<64x3xbf16, #tpu.memory_space<vmem>>, %arg26: memref<1x3xf32, #tpu.memory_space<vmem>>, %arg27: memref<10x32xf32, #tpu.memory_space<vmem>>, %arg28: memref<10x3xf32, #tpu.memory_space<vmem>>) attributes {dimension_semantics = [#tpu.dimension_semantics<arbitrary>], iteration_bounds = array<i64: 1>, scalar_prefetch = 0 : i64, scratch_operands = 0 : i64, tpu.core_type = #tpu.core_type<tc>, window_params = [{pipeline_mode = #tpu.pipeline_mode<synchronous>, transform_indices = @transform_0, window_bounds = array<i64: 640, 8>}, {pipeline_mode = #tpu.pipeline_mode<synchronous>, transform_indices = @transform_1, window_bounds = array<i64: 8, 64>}, {pipeline_mode = #tpu.pipeline_mode<synchronous>, transform_indices = @transform_2, window_bounds = array<i64: 1, 64>}, {pipeline_mode = #tpu.pipeline_mode<synchronous>, transform_indices = @transform_3, window_bounds = array<i64: 1, 64>}, {pipeline_mode = #tpu.pipeline_mode<synchronous>, transform_indices = @transform_4, window_bounds = array<i64: 1, 64>}, {pipeline_mode = #tpu.pipeline_mode<synchronous>, transform_indices = @transform_5, window_bounds = array<i64: 64, 128>}, {pipeline_mode = #tpu.pipeline_mode<synchronous>, transform_indices = @transform_6, window_bounds = array<i64: 1, 128>}, {pipeline_mode = #tpu.pipeline_mode<synchronous>, transform_indices = @transform_7, window_bounds = array<i64: 1, 128>}, {pipeline_mode = #tpu.pipeline_mode<synchronous>, transform_indices = @transform_8, window_bounds = array<i64: 1, 128>}, {pipeline_mode = #tpu.pipeline_mode<synchronous>, transform_indices = @transform_9, window_bounds = array<i64: 128, 32>}, {pipeline_mode = #tpu.pipeline_mode<synchronous>, transform_indices = @transform_10, window_bounds = array<i64: 1, 32>}, {pipeline_mode = #tpu.pipeline_mode<synchronous>, transform_indices = @transform_11, window_bounds = array<i64: 32, 128>}, {pipeline_mode = #tpu.pipeline_mode<synchronous>, transform_indices = @transform_12, window_bounds = array<i64: 32, 128>}, {pipeline_mode = #tpu.pipeline_mode<synchronous>, transform_indices = @transform_13, window_bounds = array<i64: 1, 128>}, {pipeline_mode = #tpu.pipeline_mode<synchronous>, transform_indices = @transform_14, window_bounds = array<i64: 64, 128>}, {pipeline_mode = #tpu.pipeline_mode<synchronous>, transform_indices = @transform_15, window_bounds = array<i64: 1, 128>}, {pipeline_mode = #tpu.pipeline_mode<synchronous>, transform_indices = @transform_16, window_bounds = array<i64: 32, 128>}, {pipeline_mode = #tpu.pipeline_mode<synchronous>, transform_indices = @transform_17, window_bounds = array<i64: 1, 128>}, {pipeline_mode = #tpu.pipeline_mode<synchronous>, transform_indices = @transform_18, window_bounds = array<i64: 1, 128>}, {pipeline_mode = #tpu.pipeline_mode<synchronous>, transform_indices = @transform_19, window_bounds = array<i64: 1, 128>}, {pipeline_mode = #tpu.pipeline_mode<synchronous>, transform_indices = @transform_20, window_bounds = array<i64: 128, 64>}, {pipeline_mode = #tpu.pipeline_mode<synchronous>, transform_indices = @transform_21, window_bounds = array<i64: 1, 64>}, {pipeline_mode = #tpu.pipeline_mode<synchronous>, transform_indices = @transform_22, window_bounds = array<i64: 1, 64>}, {pipeline_mode = #tpu.pipeline_mode<synchronous>, transform_indices = @transform_23, window_bounds = array<i64: 1, 64>}, {pipeline_mode = #tpu.pipeline_mode<synchronous>, transform_indices = @transform_24, window_bounds = array<i64: 64, 3>}, {pipeline_mode = #tpu.pipeline_mode<synchronous>, transform_indices = @transform_25, window_bounds = array<i64: 1, 3>}, {pipeline_mode = #tpu.pipeline_mode<synchronous>, transform_indices = @transform_26, window_bounds = array<i64: 10, 32>}, {pipeline_mode = #tpu.pipeline_mode<synchronous>, transform_indices = @transform_27, window_bounds = array<i64: 10, 3>}]} {
    %c0 = arith.constant 0 : index
    %c0_0 = arith.constant 0 : index
    %0 = vector.load %arg1[%c0, %c0_0] : memref<640x8xf32, #tpu.memory_space<vmem>>, vector<640x8xf32>
    %c0_1 = arith.constant 0 : index
    %c0_2 = arith.constant 0 : index
    %1 = vector.load %arg2[%c0_1, %c0_2] : memref<8x64xbf16, #tpu.memory_space<vmem>>, vector<8x64xbf16>
    %2 = arith.truncf %0 : vector<640x8xf32> to vector<640x8xbf16>
    %cst = arith.constant dense<0.000000e+00> : vector<640x64xf32>
    %3 = tpu.matmul %2, %1, %cst {dimension_numbers = #tpu.dot_dimension_numbers<[1], [0], [0], [1], [0, 0, 1, 1], [], []>} : vector<640x8xbf16>, vector<8x64xbf16>, vector<640x64xf32> -> vector<640x64xf32>
    %c0_3 = arith.constant 0 : index
    %c0_4 = arith.constant 0 : index
    %4 = vector.load %arg3[%c0_3, %c0_4] : memref<1x64xf32, #tpu.memory_space<vmem>>, vector<1x64xf32>
    %5 = vector.broadcast %4 : vector<1x64xf32> to vector<640x64xf32>
    %6 = arith.addf %3, %5 : vector<640x64xf32>
    %c0_5 = arith.constant 0 : index
    %c0_6 = arith.constant 0 : index
    %7 = vector.load %arg4[%c0_5, %c0_6] : memref<1x64xf32, #tpu.memory_space<vmem>>, vector<1x64xf32>
    %c0_7 = arith.constant 0 : index
    %c0_8 = arith.constant 0 : index
    %8 = vector.load %arg5[%c0_7, %c0_8] : memref<1x64xf32, #tpu.memory_space<vmem>>, vector<1x64xf32>
    %cst_9 = arith.constant dense<0.000000e+00> : vector<640xf32>
    %9 = vector.multi_reduction <add>, %6, %cst_9 [1] : vector<640x64xf32> to vector<640xf32>
    %10 = vector.shape_cast %9 : vector<640xf32> to vector<640x1xf32>
    %cst_10 = arith.constant 6.400000e+01 : f32
    %11 = vector.broadcast %cst_10 : f32 to vector<640x1xf32>
    %12 = arith.divf %10, %11 : vector<640x1xf32>
    %13 = vector.broadcast %12 : vector<640x1xf32> to vector<640x64xf32>
    %14 = arith.subf %6, %13 : vector<640x64xf32>
    %15 = arith.mulf %14, %14 : vector<640x64xf32>
    %cst_11 = arith.constant dense<0.000000e+00> : vector<640xf32>
    %16 = vector.multi_reduction <add>, %15, %cst_11 [1] : vector<640x64xf32> to vector<640xf32>
    %17 = vector.shape_cast %16 : vector<640xf32> to vector<640x1xf32>
    %cst_12 = arith.constant 6.400000e+01 : f32
    %18 = vector.broadcast %cst_12 : f32 to vector<640x1xf32>
    %19 = arith.divf %17, %18 : vector<640x1xf32>
    %20 = vector.broadcast %12 : vector<640x1xf32> to vector<640x64xf32>
    %21 = arith.subf %6, %20 : vector<640x64xf32>
    %cst_13 = arith.constant 9.99999974E-6 : f32
    %22 = vector.broadcast %cst_13 : f32 to vector<640x1xf32>
    %23 = arith.addf %19, %22 : vector<640x1xf32>
    %24 = math.rsqrt %23 : vector<640x1xf32>
    %25 = vector.broadcast %24 : vector<640x1xf32> to vector<640x64xf32>
    %26 = arith.mulf %21, %25 : vector<640x64xf32>
    %27 = vector.broadcast %7 : vector<1x64xf32> to vector<640x64xf32>
    %28 = arith.mulf %26, %27 : vector<640x64xf32>
    %29 = vector.broadcast %8 : vector<1x64xf32> to vector<640x64xf32>
    %30 = arith.addf %28, %29 : vector<640x64xf32>
    %cst_14 = arith.constant 0.000000e+00 : f32
    %31 = vector.broadcast %cst_14 : f32 to vector<640x64xf32>
    %32 = arith.maximumf %30, %31 : vector<640x64xf32>
    %c0_15 = arith.constant 0 : index
    %c0_16 = arith.constant 0 : index
    %33 = vector.load %arg6[%c0_15, %c0_16] : memref<64x128xbf16, #tpu.memory_space<vmem>>, vector<64x128xbf16>
    %34 = arith.truncf %32 : vector<640x64xf32> to vector<640x64xbf16>
    %cst_17 = arith.constant dense<0.000000e+00> : vector<640x128xf32>
    %35 = tpu.matmul %34, %33, %cst_17 {dimension_numbers = #tpu.dot_dimension_numbers<[1], [0], [0], [1], [0, 0, 1, 1], [], []>} : vector<640x64xbf16>, vector<64x128xbf16>, vector<640x128xf32> -> vector<640x128xf32>
    %c0_18 = arith.constant 0 : index
    %c0_19 = arith.constant 0 : index
    %36 = vector.load %arg7[%c0_18, %c0_19] : memref<1x128xf32, #tpu.memory_space<vmem>>, vector<1x128xf32>
    %37 = vector.broadcast %36 : vector<1x128xf32> to vector<640x128xf32>
    %38 = arith.addf %35, %37 : vector<640x128xf32>
    %c0_20 = arith.constant 0 : index
    %c0_21 = arith.constant 0 : index
    %39 = vector.load %arg8[%c0_20, %c0_21] : memref<1x128xf32, #tpu.memory_space<vmem>>, vector<1x128xf32>
    %c0_22 = arith.constant 0 : index
    %c0_23 = arith.constant 0 : index
    %40 = vector.load %arg9[%c0_22, %c0_23] : memref<1x128xf32, #tpu.memory_space<vmem>>, vector<1x128xf32>
    %cst_24 = arith.constant dense<0.000000e+00> : vector<640xf32>
    %41 = vector.multi_reduction <add>, %38, %cst_24 [1] : vector<640x128xf32> to vector<640xf32>
    %42 = vector.shape_cast %41 : vector<640xf32> to vector<640x1xf32>
    %cst_25 = arith.constant 1.280000e+02 : f32
    %43 = vector.broadcast %cst_25 : f32 to vector<640x1xf32>
    %44 = arith.divf %42, %43 : vector<640x1xf32>
    %45 = vector.broadcast %44 : vector<640x1xf32> to vector<640x128xf32>
    %46 = arith.subf %38, %45 : vector<640x128xf32>
    %47 = arith.mulf %46, %46 : vector<640x128xf32>
    %cst_26 = arith.constant dense<0.000000e+00> : vector<640xf32>
    %48 = vector.multi_reduction <add>, %47, %cst_26 [1] : vector<640x128xf32> to vector<640xf32>
    %49 = vector.shape_cast %48 : vector<640xf32> to vector<640x1xf32>
    %cst_27 = arith.constant 1.280000e+02 : f32
    %50 = vector.broadcast %cst_27 : f32 to vector<640x1xf32>
    %51 = arith.divf %49, %50 : vector<640x1xf32>
    %52 = vector.broadcast %44 : vector<640x1xf32> to vector<640x128xf32>
    %53 = arith.subf %38, %52 : vector<640x128xf32>
    %cst_28 = arith.constant 9.99999974E-6 : f32
    %54 = vector.broadcast %cst_28 : f32 to vector<640x1xf32>
    %55 = arith.addf %51, %54 : vector<640x1xf32>
    %56 = math.rsqrt %55 : vector<640x1xf32>
    %57 = vector.broadcast %56 : vector<640x1xf32> to vector<640x128xf32>
    %58 = arith.mulf %53, %57 : vector<640x128xf32>
    %59 = vector.broadcast %39 : vector<1x128xf32> to vector<640x128xf32>
    %60 = arith.mulf %58, %59 : vector<640x128xf32>
    %61 = vector.broadcast %40 : vector<1x128xf32> to vector<640x128xf32>
    %62 = arith.addf %60, %61 : vector<640x128xf32>
    %cst_29 = arith.constant 0.000000e+00 : f32
    %63 = vector.broadcast %cst_29 : f32 to vector<640x128xf32>
    %64 = arith.maximumf %62, %63 : vector<640x128xf32>
    %c0_30 = arith.constant 0 : index
    %c0_31 = arith.constant 0 : index
    %65 = vector.load %arg10[%c0_30, %c0_31] : memref<128x32xbf16, #tpu.memory_space<vmem>>, vector<128x32xbf16>
    %66 = arith.truncf %64 : vector<640x128xf32> to vector<640x128xbf16>
    %cst_32 = arith.constant dense<0.000000e+00> : vector<640x32xf32>
    %67 = tpu.matmul %66, %65, %cst_32 {dimension_numbers = #tpu.dot_dimension_numbers<[1], [0], [0], [1], [0, 0, 1, 1], [], []>} : vector<640x128xbf16>, vector<128x32xbf16>, vector<640x32xf32> -> vector<640x32xf32>
    %c0_33 = arith.constant 0 : index
    %c0_34 = arith.constant 0 : index
    %68 = vector.load %arg11[%c0_33, %c0_34] : memref<1x32xf32, #tpu.memory_space<vmem>>, vector<1x32xf32>
    %69 = vector.broadcast %68 : vector<1x32xf32> to vector<640x32xf32>
    %70 = arith.addf %67, %69 : vector<640x32xf32>
    %71 = vector.extract_strided_slice %70 {offsets = [0, 0], sizes = [64, 32], strides = [1, 1]} : vector<640x32xf32> to vector<64x32xf32>
    %cst_35 = arith.constant dense<0.000000e+00> : vector<32xf32>
    %72 = vector.multi_reduction <add>, %71, %cst_35 [0] : vector<64x32xf32> to vector<32xf32>
    %73 = vector.shape_cast %72 : vector<32xf32> to vector<1x32xf32>
    %cst_36 = arith.constant 6.400000e+01 : f32
    %74 = vector.broadcast %cst_36 : f32 to vector<1x32xf32>
    %75 = arith.divf %73, %74 : vector<1x32xf32>
    %76 = vector.extract_strided_slice %70 {offsets = [320, 0], sizes = [64, 32], strides = [1, 1]} : vector<640x32xf32> to vector<64x32xf32>
    %cst_37 = arith.constant dense<0.000000e+00> : vector<32xf32>
    %77 = vector.multi_reduction <add>, %76, %cst_37 [0] : vector<64x32xf32> to vector<32xf32>
    %78 = vector.shape_cast %77 : vector<32xf32> to vector<1x32xf32>
    %cst_38 = arith.constant 6.400000e+01 : f32
    %79 = vector.broadcast %cst_38 : f32 to vector<1x32xf32>
    %80 = arith.divf %78, %79 : vector<1x32xf32>
    %81 = vector.extract_strided_slice %70 {offsets = [64, 0], sizes = [64, 32], strides = [1, 1]} : vector<640x32xf32> to vector<64x32xf32>
    %cst_39 = arith.constant dense<0.000000e+00> : vector<32xf32>
    %82 = vector.multi_reduction <add>, %81, %cst_39 [0] : vector<64x32xf32> to vector<32xf32>
    %83 = vector.shape_cast %82 : vector<32xf32> to vector<1x32xf32>
    %cst_40 = arith.constant 6.400000e+01 : f32
    %84 = vector.broadcast %cst_40 : f32 to vector<1x32xf32>
    %85 = arith.divf %83, %84 : vector<1x32xf32>
    %86 = vector.extract_strided_slice %70 {offsets = [384, 0], sizes = [64, 32], strides = [1, 1]} : vector<640x32xf32> to vector<64x32xf32>
    %cst_41 = arith.constant dense<0.000000e+00> : vector<32xf32>
    %87 = vector.multi_reduction <add>, %86, %cst_41 [0] : vector<64x32xf32> to vector<32xf32>
    %88 = vector.shape_cast %87 : vector<32xf32> to vector<1x32xf32>
    %cst_42 = arith.constant 6.400000e+01 : f32
    %89 = vector.broadcast %cst_42 : f32 to vector<1x32xf32>
    %90 = arith.divf %88, %89 : vector<1x32xf32>
    %91 = vector.extract_strided_slice %70 {offsets = [128, 0], sizes = [64, 32], strides = [1, 1]} : vector<640x32xf32> to vector<64x32xf32>
    %cst_43 = arith.constant dense<0.000000e+00> : vector<32xf32>
    %92 = vector.multi_reduction <add>, %91, %cst_43 [0] : vector<64x32xf32> to vector<32xf32>
    %93 = vector.shape_cast %92 : vector<32xf32> to vector<1x32xf32>
    %cst_44 = arith.constant 6.400000e+01 : f32
    %94 = vector.broadcast %cst_44 : f32 to vector<1x32xf32>
    %95 = arith.divf %93, %94 : vector<1x32xf32>
    %96 = vector.extract_strided_slice %70 {offsets = [448, 0], sizes = [64, 32], strides = [1, 1]} : vector<640x32xf32> to vector<64x32xf32>
    %cst_45 = arith.constant dense<0.000000e+00> : vector<32xf32>
    %97 = vector.multi_reduction <add>, %96, %cst_45 [0] : vector<64x32xf32> to vector<32xf32>
    %98 = vector.shape_cast %97 : vector<32xf32> to vector<1x32xf32>
    %cst_46 = arith.constant 6.400000e+01 : f32
    %99 = vector.broadcast %cst_46 : f32 to vector<1x32xf32>
    %100 = arith.divf %98, %99 : vector<1x32xf32>
    %101 = vector.extract_strided_slice %70 {offsets = [192, 0], sizes = [64, 32], strides = [1, 1]} : vector<640x32xf32> to vector<64x32xf32>
    %cst_47 = arith.constant dense<0.000000e+00> : vector<32xf32>
    %102 = vector.multi_reduction <add>, %101, %cst_47 [0] : vector<64x32xf32> to vector<32xf32>
    %103 = vector.shape_cast %102 : vector<32xf32> to vector<1x32xf32>
    %cst_48 = arith.constant 6.400000e+01 : f32
    %104 = vector.broadcast %cst_48 : f32 to vector<1x32xf32>
    %105 = arith.divf %103, %104 : vector<1x32xf32>
    %106 = vector.extract_strided_slice %70 {offsets = [512, 0], sizes = [64, 32], strides = [1, 1]} : vector<640x32xf32> to vector<64x32xf32>
    %cst_49 = arith.constant dense<0.000000e+00> : vector<32xf32>
    %107 = vector.multi_reduction <add>, %106, %cst_49 [0] : vector<64x32xf32> to vector<32xf32>
    %108 = vector.shape_cast %107 : vector<32xf32> to vector<1x32xf32>
    %cst_50 = arith.constant 6.400000e+01 : f32
    %109 = vector.broadcast %cst_50 : f32 to vector<1x32xf32>
    %110 = arith.divf %108, %109 : vector<1x32xf32>
    %111 = vector.extract_strided_slice %70 {offsets = [256, 0], sizes = [64, 32], strides = [1, 1]} : vector<640x32xf32> to vector<64x32xf32>
    %cst_51 = arith.constant dense<0.000000e+00> : vector<32xf32>
    %112 = vector.multi_reduction <add>, %111, %cst_51 [0] : vector<64x32xf32> to vector<32xf32>
    %113 = vector.shape_cast %112 : vector<32xf32> to vector<1x32xf32>
    %cst_52 = arith.constant 6.400000e+01 : f32
    %114 = vector.broadcast %cst_52 : f32 to vector<1x32xf32>
    %115 = arith.divf %113, %114 : vector<1x32xf32>
    %116 = vector.extract_strided_slice %70 {offsets = [576, 0], sizes = [64, 32], strides = [1, 1]} : vector<640x32xf32> to vector<64x32xf32>
    %cst_53 = arith.constant dense<0.000000e+00> : vector<32xf32>
    %117 = vector.multi_reduction <add>, %116, %cst_53 [0] : vector<64x32xf32> to vector<32xf32>
    %118 = vector.shape_cast %117 : vector<32xf32> to vector<1x32xf32>
    %cst_54 = arith.constant 6.400000e+01 : f32
    %119 = vector.broadcast %cst_54 : f32 to vector<1x32xf32>
    %120 = arith.divf %118, %119 : vector<1x32xf32>
    %121 = tpu.concatenate %75, %80, %85, %90, %95, %100, %105, %110, %115, %120 in 0 : vector<1x32xf32>, vector<1x32xf32>, vector<1x32xf32>, vector<1x32xf32>, vector<1x32xf32>, vector<1x32xf32>, vector<1x32xf32>, vector<1x32xf32>, vector<1x32xf32>, vector<1x32xf32> -> vector<10x32xf32>
    %c0_55 = arith.constant 0 : index
    %c0_56 = arith.constant 0 : index
    %122 = vector.load %arg13[%c0_55, %c0_56] : memref<32x128xbf16, #tpu.memory_space<vmem>>, vector<32x128xbf16>
    %c0_57 = arith.constant 0 : index
    %c0_58 = arith.constant 0 : index
    %123 = vector.load %arg15[%c0_57, %c0_58] : memref<64x128xbf16, #tpu.memory_space<vmem>>, vector<64x128xbf16>
    %c0_59 = arith.constant 0 : index
    %c0_60 = arith.constant 0 : index
    %124 = vector.load %arg12[%c0_59, %c0_60] : memref<32x128xbf16, #tpu.memory_space<vmem>>, vector<32x128xbf16>
    %125 = arith.truncf %121 : vector<10x32xf32> to vector<10x32xbf16>
    %cst_61 = arith.constant dense<0.000000e+00> : vector<10x128xf32>
    %126 = tpu.matmul %125, %124, %cst_61 {dimension_numbers = #tpu.dot_dimension_numbers<[1], [0], [0], [1], [0, 0, 1, 1], [], []>} : vector<10x32xbf16>, vector<32x128xbf16>, vector<10x128xf32> -> vector<10x128xf32>
    %c0_62 = arith.constant 0 : index
    %c0_63 = arith.constant 0 : index
    %127 = vector.load %arg14[%c0_62, %c0_63] : memref<1x128xf32, #tpu.memory_space<vmem>>, vector<1x128xf32>
    %128 = vector.broadcast %127 : vector<1x128xf32> to vector<10x128xf32>
    %129 = arith.addf %126, %128 : vector<10x128xf32>
    %c0_64 = arith.constant 0 : index
    %c0_65 = arith.constant 0 : index
    %130 = vector.load %arg16[%c0_64, %c0_65] : memref<1x128xf32, #tpu.memory_space<vmem>>, vector<1x128xf32>
    %131 = vector.shape_cast %130 : vector<1x128xf32> to vector<1x128xf32>
    %132 = vector.broadcast %131 : vector<1x128xf32> to vector<2x128xf32>
    %cst_66 = arith.constant 0.000000e+00 : f32
    %133 = vector.broadcast %cst_66 : f32 to vector<2x32xf32>
    %134 = vector.extract_strided_slice %129 {offsets = [0, 0], sizes = [2, 128], strides = [1, 1]} : vector<10x128xf32> to vector<2x128xf32>
    %135 = arith.truncf %133 : vector<2x32xf32> to vector<2x32xbf16>
    %cst_67 = arith.constant dense<0.000000e+00> : vector<2x128xf32>
    %136 = tpu.matmul %135, %122, %cst_67 {dimension_numbers = #tpu.dot_dimension_numbers<[1], [0], [0], [1], [0, 0, 1, 1], [], []>} : vector<2x32xbf16>, vector<32x128xbf16>, vector<2x128xf32> -> vector<2x128xf32>
    %137 = arith.addf %134, %136 : vector<2x128xf32>
    %138 = arith.negf %137 : vector<2x128xf32>
    %139 = math.exp %138 : vector<2x128xf32>
    %cst_68 = arith.constant 1.000000e+00 : f32
    %140 = vector.broadcast %cst_68 : f32 to vector<2x128xf32>
    %141 = arith.addf %140, %139 : vector<2x128xf32>
    %142 = arith.divf %140, %141 : vector<2x128xf32>
    %143 = math.tanh %137 : vector<2x128xf32>
    %144 = vector.extract_strided_slice %142 {offsets = [0, 32], sizes = [2, 32], strides = [1, 1]} : vector<2x128xf32> to vector<2x32xf32>
    %145 = arith.mulf %144, %133 : vector<2x32xf32>
    %146 = vector.extract_strided_slice %142 {offsets = [0, 0], sizes = [2, 32], strides = [1, 1]} : vector<2x128xf32> to vector<2x32xf32>
    %147 = vector.extract_strided_slice %143 {offsets = [0, 64], sizes = [2, 32], strides = [1, 1]} : vector<2x128xf32> to vector<2x32xf32>
    %148 = arith.mulf %146, %147 : vector<2x32xf32>
    %149 = arith.addf %145, %148 : vector<2x32xf32>
    %150 = vector.extract_strided_slice %142 {offsets = [0, 96], sizes = [2, 32], strides = [1, 1]} : vector<2x128xf32> to vector<2x32xf32>
    %151 = math.tanh %149 : vector<2x32xf32>
    %152 = arith.mulf %150, %151 : vector<2x32xf32>
    %153 = tpu.concatenate %152, %133 in 1 : vector<2x32xf32>, vector<2x32xf32> -> vector<2x64xf32>
    %154 = arith.truncf %153 : vector<2x64xf32> to vector<2x64xbf16>
    %cst_69 = arith.constant dense<0.000000e+00> : vector<2x128xf32>
    %155 = tpu.matmul %154, %123, %cst_69 {dimension_numbers = #tpu.dot_dimension_numbers<[1], [0], [0], [1], [0, 0, 1, 1], [], []>} : vector<2x64xbf16>, vector<64x128xbf16>, vector<2x128xf32> -> vector<2x128xf32>
    %156 = arith.addf %155, %132 : vector<2x128xf32>
    %157 = arith.negf %156 : vector<2x128xf32>
    %158 = math.exp %157 : vector<2x128xf32>
    %cst_70 = arith.constant 1.000000e+00 : f32
    %159 = vector.broadcast %cst_70 : f32 to vector<2x128xf32>
    %160 = arith.addf %159, %158 : vector<2x128xf32>
    %161 = arith.divf %159, %160 : vector<2x128xf32>
    %162 = math.tanh %156 : vector<2x128xf32>
    %163 = vector.extract_strided_slice %161 {offsets = [0, 32], sizes = [2, 32], strides = [1, 1]} : vector<2x128xf32> to vector<2x32xf32>
    %164 = arith.mulf %163, %133 : vector<2x32xf32>
    %165 = vector.extract_strided_slice %161 {offsets = [0, 0], sizes = [2, 32], strides = [1, 1]} : vector<2x128xf32> to vector<2x32xf32>
    %166 = vector.extract_strided_slice %162 {offsets = [0, 64], sizes = [2, 32], strides = [1, 1]} : vector<2x128xf32> to vector<2x32xf32>
    %167 = arith.mulf %165, %166 : vector<2x32xf32>
    %168 = arith.addf %164, %167 : vector<2x32xf32>
    %169 = vector.extract_strided_slice %161 {offsets = [0, 96], sizes = [2, 32], strides = [1, 1]} : vector<2x128xf32> to vector<2x32xf32>
    %170 = math.tanh %168 : vector<2x32xf32>
    %171 = arith.mulf %169, %170 : vector<2x32xf32>
    %172 = vector.extract_strided_slice %129 {offsets = [2, 0], sizes = [2, 128], strides = [1, 1]} : vector<10x128xf32> to vector<2x128xf32>
    %173 = arith.truncf %152 : vector<2x32xf32> to vector<2x32xbf16>
    %cst_71 = arith.constant dense<0.000000e+00> : vector<2x128xf32>
    %174 = tpu.matmul %173, %122, %cst_71 {dimension_numbers = #tpu.dot_dimension_numbers<[1], [0], [0], [1], [0, 0, 1, 1], [], []>} : vector<2x32xbf16>, vector<32x128xbf16>, vector<2x128xf32> -> vector<2x128xf32>
    %175 = arith.addf %172, %174 : vector<2x128xf32>
    %176 = arith.negf %175 : vector<2x128xf32>
    %177 = math.exp %176 : vector<2x128xf32>
    %cst_72 = arith.constant 1.000000e+00 : f32
    %178 = vector.broadcast %cst_72 : f32 to vector<2x128xf32>
    %179 = arith.addf %178, %177 : vector<2x128xf32>
    %180 = arith.divf %178, %179 : vector<2x128xf32>
    %181 = math.tanh %175 : vector<2x128xf32>
    %182 = vector.extract_strided_slice %180 {offsets = [0, 32], sizes = [2, 32], strides = [1, 1]} : vector<2x128xf32> to vector<2x32xf32>
    %183 = arith.mulf %182, %149 : vector<2x32xf32>
    %184 = vector.extract_strided_slice %180 {offsets = [0, 0], sizes = [2, 32], strides = [1, 1]} : vector<2x128xf32> to vector<2x32xf32>
    %185 = vector.extract_strided_slice %181 {offsets = [0, 64], sizes = [2, 32], strides = [1, 1]} : vector<2x128xf32> to vector<2x32xf32>
    %186 = arith.mulf %184, %185 : vector<2x32xf32>
    %187 = arith.addf %183, %186 : vector<2x32xf32>
    %188 = vector.extract_strided_slice %180 {offsets = [0, 96], sizes = [2, 32], strides = [1, 1]} : vector<2x128xf32> to vector<2x32xf32>
    %189 = math.tanh %187 : vector<2x32xf32>
    %190 = arith.mulf %188, %189 : vector<2x32xf32>
    %191 = tpu.concatenate %190, %171 in 1 : vector<2x32xf32>, vector<2x32xf32> -> vector<2x64xf32>
    %192 = arith.truncf %191 : vector<2x64xf32> to vector<2x64xbf16>
    %cst_73 = arith.constant dense<0.000000e+00> : vector<2x128xf32>
    %193 = tpu.matmul %192, %123, %cst_73 {dimension_numbers = #tpu.dot_dimension_numbers<[1], [0], [0], [1], [0, 0, 1, 1], [], []>} : vector<2x64xbf16>, vector<64x128xbf16>, vector<2x128xf32> -> vector<2x128xf32>
    %194 = arith.addf %193, %132 : vector<2x128xf32>
    %195 = arith.negf %194 : vector<2x128xf32>
    %196 = math.exp %195 : vector<2x128xf32>
    %cst_74 = arith.constant 1.000000e+00 : f32
    %197 = vector.broadcast %cst_74 : f32 to vector<2x128xf32>
    %198 = arith.addf %197, %196 : vector<2x128xf32>
    %199 = arith.divf %197, %198 : vector<2x128xf32>
    %200 = math.tanh %194 : vector<2x128xf32>
    %201 = vector.extract_strided_slice %199 {offsets = [0, 32], sizes = [2, 32], strides = [1, 1]} : vector<2x128xf32> to vector<2x32xf32>
    %202 = arith.mulf %201, %168 : vector<2x32xf32>
    %203 = vector.extract_strided_slice %199 {offsets = [0, 0], sizes = [2, 32], strides = [1, 1]} : vector<2x128xf32> to vector<2x32xf32>
    %204 = vector.extract_strided_slice %200 {offsets = [0, 64], sizes = [2, 32], strides = [1, 1]} : vector<2x128xf32> to vector<2x32xf32>
    %205 = arith.mulf %203, %204 : vector<2x32xf32>
    %206 = arith.addf %202, %205 : vector<2x32xf32>
    %207 = vector.extract_strided_slice %199 {offsets = [0, 96], sizes = [2, 32], strides = [1, 1]} : vector<2x128xf32> to vector<2x32xf32>
    %208 = math.tanh %206 : vector<2x32xf32>
    %209 = arith.mulf %207, %208 : vector<2x32xf32>
    %210 = vector.extract_strided_slice %129 {offsets = [4, 0], sizes = [2, 128], strides = [1, 1]} : vector<10x128xf32> to vector<2x128xf32>
    %211 = arith.truncf %190 : vector<2x32xf32> to vector<2x32xbf16>
    %cst_75 = arith.constant dense<0.000000e+00> : vector<2x128xf32>
    %212 = tpu.matmul %211, %122, %cst_75 {dimension_numbers = #tpu.dot_dimension_numbers<[1], [0], [0], [1], [0, 0, 1, 1], [], []>} : vector<2x32xbf16>, vector<32x128xbf16>, vector<2x128xf32> -> vector<2x128xf32>
    %213 = arith.addf %210, %212 : vector<2x128xf32>
    %214 = arith.negf %213 : vector<2x128xf32>
    %215 = math.exp %214 : vector<2x128xf32>
    %cst_76 = arith.constant 1.000000e+00 : f32
    %216 = vector.broadcast %cst_76 : f32 to vector<2x128xf32>
    %217 = arith.addf %216, %215 : vector<2x128xf32>
    %218 = arith.divf %216, %217 : vector<2x128xf32>
    %219 = math.tanh %213 : vector<2x128xf32>
    %220 = vector.extract_strided_slice %218 {offsets = [0, 32], sizes = [2, 32], strides = [1, 1]} : vector<2x128xf32> to vector<2x32xf32>
    %221 = arith.mulf %220, %187 : vector<2x32xf32>
    %222 = vector.extract_strided_slice %218 {offsets = [0, 0], sizes = [2, 32], strides = [1, 1]} : vector<2x128xf32> to vector<2x32xf32>
    %223 = vector.extract_strided_slice %219 {offsets = [0, 64], sizes = [2, 32], strides = [1, 1]} : vector<2x128xf32> to vector<2x32xf32>
    %224 = arith.mulf %222, %223 : vector<2x32xf32>
    %225 = arith.addf %221, %224 : vector<2x32xf32>
    %226 = vector.extract_strided_slice %218 {offsets = [0, 96], sizes = [2, 32], strides = [1, 1]} : vector<2x128xf32> to vector<2x32xf32>
    %227 = math.tanh %225 : vector<2x32xf32>
    %228 = arith.mulf %226, %227 : vector<2x32xf32>
    %229 = tpu.concatenate %228, %209 in 1 : vector<2x32xf32>, vector<2x32xf32> -> vector<2x64xf32>
    %230 = arith.truncf %229 : vector<2x64xf32> to vector<2x64xbf16>
    %cst_77 = arith.constant dense<0.000000e+00> : vector<2x128xf32>
    %231 = tpu.matmul %230, %123, %cst_77 {dimension_numbers = #tpu.dot_dimension_numbers<[1], [0], [0], [1], [0, 0, 1, 1], [], []>} : vector<2x64xbf16>, vector<64x128xbf16>, vector<2x128xf32> -> vector<2x128xf32>
    %232 = arith.addf %231, %132 : vector<2x128xf32>
    %233 = arith.negf %232 : vector<2x128xf32>
    %234 = math.exp %233 : vector<2x128xf32>
    %cst_78 = arith.constant 1.000000e+00 : f32
    %235 = vector.broadcast %cst_78 : f32 to vector<2x128xf32>
    %236 = arith.addf %235, %234 : vector<2x128xf32>
    %237 = arith.divf %235, %236 : vector<2x128xf32>
    %238 = math.tanh %232 : vector<2x128xf32>
    %239 = vector.extract_strided_slice %237 {offsets = [0, 32], sizes = [2, 32], strides = [1, 1]} : vector<2x128xf32> to vector<2x32xf32>
    %240 = arith.mulf %239, %206 : vector<2x32xf32>
    %241 = vector.extract_strided_slice %237 {offsets = [0, 0], sizes = [2, 32], strides = [1, 1]} : vector<2x128xf32> to vector<2x32xf32>
    %242 = vector.extract_strided_slice %238 {offsets = [0, 64], sizes = [2, 32], strides = [1, 1]} : vector<2x128xf32> to vector<2x32xf32>
    %243 = arith.mulf %241, %242 : vector<2x32xf32>
    %244 = arith.addf %240, %243 : vector<2x32xf32>
    %245 = vector.extract_strided_slice %237 {offsets = [0, 96], sizes = [2, 32], strides = [1, 1]} : vector<2x128xf32> to vector<2x32xf32>
    %246 = math.tanh %244 : vector<2x32xf32>
    %247 = arith.mulf %245, %246 : vector<2x32xf32>
    %248 = vector.extract_strided_slice %129 {offsets = [6, 0], sizes = [2, 128], strides = [1, 1]} : vector<10x128xf32> to vector<2x128xf32>
    %249 = arith.truncf %228 : vector<2x32xf32> to vector<2x32xbf16>
    %cst_79 = arith.constant dense<0.000000e+00> : vector<2x128xf32>
    %250 = tpu.matmul %249, %122, %cst_79 {dimension_numbers = #tpu.dot_dimension_numbers<[1], [0], [0], [1], [0, 0, 1, 1], [], []>} : vector<2x32xbf16>, vector<32x128xbf16>, vector<2x128xf32> -> vector<2x128xf32>
    %251 = arith.addf %248, %250 : vector<2x128xf32>
    %252 = arith.negf %251 : vector<2x128xf32>
    %253 = math.exp %252 : vector<2x128xf32>
    %cst_80 = arith.constant 1.000000e+00 : f32
    %254 = vector.broadcast %cst_80 : f32 to vector<2x128xf32>
    %255 = arith.addf %254, %253 : vector<2x128xf32>
    %256 = arith.divf %254, %255 : vector<2x128xf32>
    %257 = math.tanh %251 : vector<2x128xf32>
    %258 = vector.extract_strided_slice %256 {offsets = [0, 32], sizes = [2, 32], strides = [1, 1]} : vector<2x128xf32> to vector<2x32xf32>
    %259 = arith.mulf %258, %225 : vector<2x32xf32>
    %260 = vector.extract_strided_slice %256 {offsets = [0, 0], sizes = [2, 32], strides = [1, 1]} : vector<2x128xf32> to vector<2x32xf32>
    %261 = vector.extract_strided_slice %257 {offsets = [0, 64], sizes = [2, 32], strides = [1, 1]} : vector<2x128xf32> to vector<2x32xf32>
    %262 = arith.mulf %260, %261 : vector<2x32xf32>
    %263 = arith.addf %259, %262 : vector<2x32xf32>
    %264 = vector.extract_strided_slice %256 {offsets = [0, 96], sizes = [2, 32], strides = [1, 1]} : vector<2x128xf32> to vector<2x32xf32>
    %265 = math.tanh %263 : vector<2x32xf32>
    %266 = arith.mulf %264, %265 : vector<2x32xf32>
    %267 = tpu.concatenate %266, %247 in 1 : vector<2x32xf32>, vector<2x32xf32> -> vector<2x64xf32>
    %268 = arith.truncf %267 : vector<2x64xf32> to vector<2x64xbf16>
    %cst_81 = arith.constant dense<0.000000e+00> : vector<2x128xf32>
    %269 = tpu.matmul %268, %123, %cst_81 {dimension_numbers = #tpu.dot_dimension_numbers<[1], [0], [0], [1], [0, 0, 1, 1], [], []>} : vector<2x64xbf16>, vector<64x128xbf16>, vector<2x128xf32> -> vector<2x128xf32>
    %270 = arith.addf %269, %132 : vector<2x128xf32>
    %271 = arith.negf %270 : vector<2x128xf32>
    %272 = math.exp %271 : vector<2x128xf32>
    %cst_82 = arith.constant 1.000000e+00 : f32
    %273 = vector.broadcast %cst_82 : f32 to vector<2x128xf32>
    %274 = arith.addf %273, %272 : vector<2x128xf32>
    %275 = arith.divf %273, %274 : vector<2x128xf32>
    %276 = math.tanh %270 : vector<2x128xf32>
    %277 = vector.extract_strided_slice %275 {offsets = [0, 32], sizes = [2, 32], strides = [1, 1]} : vector<2x128xf32> to vector<2x32xf32>
    %278 = arith.mulf %277, %244 : vector<2x32xf32>
    %279 = vector.extract_strided_slice %275 {offsets = [0, 0], sizes = [2, 32], strides = [1, 1]} : vector<2x128xf32> to vector<2x32xf32>
    %280 = vector.extract_strided_slice %276 {offsets = [0, 64], sizes = [2, 32], strides = [1, 1]} : vector<2x128xf32> to vector<2x32xf32>
    %281 = arith.mulf %279, %280 : vector<2x32xf32>
    %282 = arith.addf %278, %281 : vector<2x32xf32>
    %283 = vector.extract_strided_slice %275 {offsets = [0, 96], sizes = [2, 32], strides = [1, 1]} : vector<2x128xf32> to vector<2x32xf32>
    %284 = math.tanh %282 : vector<2x32xf32>
    %285 = arith.mulf %283, %284 : vector<2x32xf32>
    %286 = vector.extract_strided_slice %129 {offsets = [8, 0], sizes = [2, 128], strides = [1, 1]} : vector<10x128xf32> to vector<2x128xf32>
    %287 = arith.truncf %266 : vector<2x32xf32> to vector<2x32xbf16>
    %cst_83 = arith.constant dense<0.000000e+00> : vector<2x128xf32>
    %288 = tpu.matmul %287, %122, %cst_83 {dimension_numbers = #tpu.dot_dimension_numbers<[1], [0], [0], [1], [0, 0, 1, 1], [], []>} : vector<2x32xbf16>, vector<32x128xbf16>, vector<2x128xf32> -> vector<2x128xf32>
    %289 = arith.addf %286, %288 : vector<2x128xf32>
    %290 = arith.negf %289 : vector<2x128xf32>
    %291 = math.exp %290 : vector<2x128xf32>
    %cst_84 = arith.constant 1.000000e+00 : f32
    %292 = vector.broadcast %cst_84 : f32 to vector<2x128xf32>
    %293 = arith.addf %292, %291 : vector<2x128xf32>
    %294 = arith.divf %292, %293 : vector<2x128xf32>
    %295 = math.tanh %289 : vector<2x128xf32>
    %296 = vector.extract_strided_slice %294 {offsets = [0, 32], sizes = [2, 32], strides = [1, 1]} : vector<2x128xf32> to vector<2x32xf32>
    %297 = arith.mulf %296, %263 : vector<2x32xf32>
    %298 = vector.extract_strided_slice %294 {offsets = [0, 0], sizes = [2, 32], strides = [1, 1]} : vector<2x128xf32> to vector<2x32xf32>
    %299 = vector.extract_strided_slice %295 {offsets = [0, 64], sizes = [2, 32], strides = [1, 1]} : vector<2x128xf32> to vector<2x32xf32>
    %300 = arith.mulf %298, %299 : vector<2x32xf32>
    %301 = arith.addf %297, %300 : vector<2x32xf32>
    %302 = vector.extract_strided_slice %294 {offsets = [0, 96], sizes = [2, 32], strides = [1, 1]} : vector<2x128xf32> to vector<2x32xf32>
    %303 = math.tanh %301 : vector<2x32xf32>
    %304 = arith.mulf %302, %303 : vector<2x32xf32>
    %305 = tpu.concatenate %304, %285 in 1 : vector<2x32xf32>, vector<2x32xf32> -> vector<2x64xf32>
    %306 = arith.truncf %305 : vector<2x64xf32> to vector<2x64xbf16>
    %cst_85 = arith.constant dense<0.000000e+00> : vector<2x128xf32>
    %307 = tpu.matmul %306, %123, %cst_85 {dimension_numbers = #tpu.dot_dimension_numbers<[1], [0], [0], [1], [0, 0, 1, 1], [], []>} : vector<2x64xbf16>, vector<64x128xbf16>, vector<2x128xf32> -> vector<2x128xf32>
    %308 = arith.addf %307, %132 : vector<2x128xf32>
    %309 = arith.negf %308 : vector<2x128xf32>
    %310 = math.exp %309 : vector<2x128xf32>
    %cst_86 = arith.constant 1.000000e+00 : f32
    %311 = vector.broadcast %cst_86 : f32 to vector<2x128xf32>
    %312 = arith.addf %311, %310 : vector<2x128xf32>
    %313 = arith.divf %311, %312 : vector<2x128xf32>
    %314 = math.tanh %308 : vector<2x128xf32>
    %315 = vector.extract_strided_slice %313 {offsets = [0, 32], sizes = [2, 32], strides = [1, 1]} : vector<2x128xf32> to vector<2x32xf32>
    %316 = arith.mulf %315, %282 : vector<2x32xf32>
    %317 = vector.extract_strided_slice %313 {offsets = [0, 0], sizes = [2, 32], strides = [1, 1]} : vector<2x128xf32> to vector<2x32xf32>
    %318 = vector.extract_strided_slice %314 {offsets = [0, 64], sizes = [2, 32], strides = [1, 1]} : vector<2x128xf32> to vector<2x32xf32>
    %319 = arith.mulf %317, %318 : vector<2x32xf32>
    %320 = arith.addf %316, %319 : vector<2x32xf32>
    %321 = vector.extract_strided_slice %313 {offsets = [0, 96], sizes = [2, 32], strides = [1, 1]} : vector<2x128xf32> to vector<2x32xf32>
    %322 = math.tanh %320 : vector<2x32xf32>
    %323 = arith.mulf %321, %322 : vector<2x32xf32>
    %324 = tpu.concatenate %171, %209, %247, %285, %323 in 0 : vector<2x32xf32>, vector<2x32xf32>, vector<2x32xf32>, vector<2x32xf32>, vector<2x32xf32> -> vector<10x32xf32>
    %c0_87 = arith.constant 0 : index
    %c0_88 = arith.constant 0 : index
    %325 = vector.load %arg27[%c0_87, %c0_88] : memref<10x32xf32, #tpu.memory_space<vmem>>, vector<10x32xf32>
    tpu.vector_store %arg27[%c0_87, %c0_88], %324 {strides = array<i32>} : memref<10x32xf32, #tpu.memory_space<vmem>>, vector<10x32xf32>,
    %c0_89 = arith.constant 0 : index
    %c0_90 = arith.constant 0 : index
    %326 = vector.load %arg17[%c0_89, %c0_90] : memref<32x128xbf16, #tpu.memory_space<vmem>>, vector<32x128xbf16>
    %327 = arith.truncf %324 : vector<10x32xf32> to vector<10x32xbf16>
    %cst_91 = arith.constant dense<0.000000e+00> : vector<10x128xf32>
    %328 = tpu.matmul %327, %326, %cst_91 {dimension_numbers = #tpu.dot_dimension_numbers<[1], [0], [0], [1], [0, 0, 1, 1], [], []>} : vector<10x32xbf16>, vector<32x128xbf16>, vector<10x128xf32> -> vector<10x128xf32>
    %c0_92 = arith.constant 0 : index
    %c0_93 = arith.constant 0 : index
    %329 = vector.load %arg18[%c0_92, %c0_93] : memref<1x128xf32, #tpu.memory_space<vmem>>, vector<1x128xf32>
    %330 = vector.broadcast %329 : vector<1x128xf32> to vector<10x128xf32>
    %331 = arith.addf %328, %330 : vector<10x128xf32>
    %c0_94 = arith.constant 0 : index
    %c0_95 = arith.constant 0 : index
    %332 = vector.load %arg19[%c0_94, %c0_95] : memref<1x128xf32, #tpu.memory_space<vmem>>, vector<1x128xf32>
    %c0_96 = arith.constant 0 : index
    %c0_97 = arith.constant 0 : index
    %333 = vector.load %arg20[%c0_96, %c0_97] : memref<1x128xf32, #tpu.memory_space<vmem>>, vector<1x128xf32>
    %cst_98 = arith.constant dense<0.000000e+00> : vector<10xf32>
    %334 = vector.multi_reduction <add>, %331, %cst_98 [1] : vector<10x128xf32> to vector<10xf32>
    %335 = vector.shape_cast %334 : vector<10xf32> to vector<10x1xf32>
    %cst_99 = arith.constant 1.280000e+02 : f32
    %336 = vector.broadcast %cst_99 : f32 to vector<10x1xf32>
    %337 = arith.divf %335, %336 : vector<10x1xf32>
    %338 = vector.broadcast %337 : vector<10x1xf32> to vector<10x128xf32>
    %339 = arith.subf %331, %338 : vector<10x128xf32>
    %340 = arith.mulf %339, %339 : vector<10x128xf32>
    %cst_100 = arith.constant dense<0.000000e+00> : vector<10xf32>
    %341 = vector.multi_reduction <add>, %340, %cst_100 [1] : vector<10x128xf32> to vector<10xf32>
    %342 = vector.shape_cast %341 : vector<10xf32> to vector<10x1xf32>
    %cst_101 = arith.constant 1.280000e+02 : f32
    %343 = vector.broadcast %cst_101 : f32 to vector<10x1xf32>
    %344 = arith.divf %342, %343 : vector<10x1xf32>
    %345 = vector.broadcast %337 : vector<10x1xf32> to vector<10x128xf32>
    %346 = arith.subf %331, %345 : vector<10x128xf32>
    %cst_102 = arith.constant 9.99999974E-6 : f32
    %347 = vector.broadcast %cst_102 : f32 to vector<10x1xf32>
    %348 = arith.addf %344, %347 : vector<10x1xf32>
    %349 = math.rsqrt %348 : vector<10x1xf32>
    %350 = vector.broadcast %349 : vector<10x1xf32> to vector<10x128xf32>
    %351 = arith.mulf %346, %350 : vector<10x128xf32>
    %352 = vector.broadcast %332 : vector<1x128xf32> to vector<10x128xf32>
    %353 = arith.mulf %351, %352 : vector<10x128xf32>
    %354 = vector.broadcast %333 : vector<1x128xf32> to vector<10x128xf32>
    %355 = arith.addf %353, %354 : vector<10x128xf32>
    %cst_103 = arith.constant 0.000000e+00 : f32
    %356 = vector.broadcast %cst_103 : f32 to vector<10x128xf32>
    %357 = arith.maximumf %355, %356 : vector<10x128xf32>
    %c0_104 = arith.constant 0 : index
    %c0_105 = arith.constant 0 : index
    %358 = vector.load %arg21[%c0_104, %c0_105] : memref<128x64xbf16, #tpu.memory_space<vmem>>, vector<128x64xbf16>
    %359 = arith.truncf %357 : vector<10x128xf32> to vector<10x128xbf16>
    %cst_106 = arith.constant dense<0.000000e+00> : vector<10x64xf32>
    %360 = tpu.matmul %359, %358, %cst_106 {dimension_numbers = #tpu.dot_dimension_numbers<[1], [0], [0], [1], [0, 0, 1, 1], [], []>} : vector<10x128xbf16>, vector<128x64xbf16>, vector<10x64xf32> -> vector<10x64xf32>
    %c0_107 = arith.constant 0 : index
    %c0_108 = arith.constant 0 : index
    %361 = vector.load %arg22[%c0_107, %c0_108] : memref<1x64xf32, #tpu.memory_space<vmem>>, vector<1x64xf32>
    %362 = vector.broadcast %361 : vector<1x64xf32> to vector<10x64xf32>
    %363 = arith.addf %360, %362 : vector<10x64xf32>
    %c0_109 = arith.constant 0 : index
    %c0_110 = arith.constant 0 : index
    %364 = vector.load %arg23[%c0_109, %c0_110] : memref<1x64xf32, #tpu.memory_space<vmem>>, vector<1x64xf32>
    %c0_111 = arith.constant 0 : index
    %c0_112 = arith.constant 0 : index
    %365 = vector.load %arg24[%c0_111, %c0_112] : memref<1x64xf32, #tpu.memory_space<vmem>>, vector<1x64xf32>
    %cst_113 = arith.constant dense<0.000000e+00> : vector<10xf32>
    %366 = vector.multi_reduction <add>, %363, %cst_113 [1] : vector<10x64xf32> to vector<10xf32>
    %367 = vector.shape_cast %366 : vector<10xf32> to vector<10x1xf32>
    %cst_114 = arith.constant 6.400000e+01 : f32
    %368 = vector.broadcast %cst_114 : f32 to vector<10x1xf32>
    %369 = arith.divf %367, %368 : vector<10x1xf32>
    %370 = vector.broadcast %369 : vector<10x1xf32> to vector<10x64xf32>
    %371 = arith.subf %363, %370 : vector<10x64xf32>
    %372 = arith.mulf %371, %371 : vector<10x64xf32>
    %cst_115 = arith.constant dense<0.000000e+00> : vector<10xf32>
    %373 = vector.multi_reduction <add>, %372, %cst_115 [1] : vector<10x64xf32> to vector<10xf32>
    %374 = vector.shape_cast %373 : vector<10xf32> to vector<10x1xf32>
    %cst_116 = arith.constant 6.400000e+01 : f32
    %375 = vector.broadcast %cst_116 : f32 to vector<10x1xf32>
    %376 = arith.divf %374, %375 : vector<10x1xf32>
    %377 = vector.broadcast %369 : vector<10x1xf32> to vector<10x64xf32>
    %378 = arith.subf %363, %377 : vector<10x64xf32>
    %cst_117 = arith.constant 9.99999974E-6 : f32
    %379 = vector.broadcast %cst_117 : f32 to vector<10x1xf32>
    %380 = arith.addf %376, %379 : vector<10x1xf32>
    %381 = math.rsqrt %380 : vector<10x1xf32>
    %382 = vector.broadcast %381 : vector<10x1xf32> to vector<10x64xf32>
    %383 = arith.mulf %378, %382 : vector<10x64xf32>
    %384 = vector.broadcast %364 : vector<1x64xf32> to vector<10x64xf32>
    %385 = arith.mulf %383, %384 : vector<10x64xf32>
    %386 = vector.broadcast %365 : vector<1x64xf32> to vector<10x64xf32>
    %387 = arith.addf %385, %386 : vector<10x64xf32>
    %cst_118 = arith.constant 0.000000e+00 : f32
    %388 = vector.broadcast %cst_118 : f32 to vector<10x64xf32>
    %389 = arith.maximumf %387, %388 : vector<10x64xf32>
    %c0_119 = arith.constant 0 : index
    %c0_120 = arith.constant 0 : index
    %390 = vector.load %arg25[%c0_119, %c0_120] : memref<64x3xbf16, #tpu.memory_space<vmem>>, vector<64x3xbf16>
    %391 = arith.truncf %389 : vector<10x64xf32> to vector<10x64xbf16>
    %cst_121 = arith.constant dense<0.000000e+00> : vector<10x3xf32>
    %392 = tpu.matmul %391, %390, %cst_121 {dimension_numbers = #tpu.dot_dimension_numbers<[1], [0], [0], [1], [0, 0, 1, 1], [], []>} : vector<10x64xbf16>, vector<64x3xbf16>, vector<10x3xf32> -> vector<10x3xf32>
    %c0_122 = arith.constant 0 : index
    %c0_123 = arith.constant 0 : index
    %393 = vector.load %arg26[%c0_122, %c0_123] : memref<1x3xf32, #tpu.memory_space<vmem>>, vector<1x3xf32>
    %394 = vector.broadcast %393 : vector<1x3xf32> to vector<10x3xf32>
    %395 = arith.addf %392, %394 : vector<10x3xf32>
    %c0_124 = arith.constant 0 : index
    %c0_125 = arith.constant 0 : index
    %396 = vector.load %arg28[%c0_124, %c0_125] : memref<10x3xf32, #tpu.memory_space<vmem>>, vector<10x3xf32>
    tpu.vector_store %arg28[%c0_124, %c0_125], %395 {strides = array<i32>} : memref<10x3xf32, #tpu.memory_space<vmem>>, vector<10x3xf32>,
    return
  }
  func.func @transform_0(%arg0: i32) -> (i32, i32) {
    %c0_i32 = arith.constant 0 : i32
    %c0_i32_0 = arith.constant 0 : i32
    %c0_i32_1 = arith.constant 0 : i32
    return %c0_i32, %c0_i32_0 : i32, i32
  }
  func.func @transform_1(%arg0: i32) -> (i32, i32) {
    %c0_i32 = arith.constant 0 : i32
    %c0_i32_0 = arith.constant 0 : i32
    %c0_i32_1 = arith.constant 0 : i32
    return %c0_i32, %c0_i32_0 : i32, i32
  }
  func.func @transform_2(%arg0: i32) -> (i32, i32) {
    %c0_i32 = arith.constant 0 : i32
    %c0_i32_0 = arith.constant 0 : i32
    %c0_i32_1 = arith.constant 0 : i32
    return %c0_i32, %c0_i32_0 : i32, i32
  }
  func.func @transform_3(%arg0: i32) -> (i32, i32) {
    %c0_i32 = arith.constant 0 : i32
    %c0_i32_0 = arith.constant 0 : i32
    %c0_i32_1 = arith.constant 0 : i32
    return %c0_i32, %c0_i32_0 : i32, i32
  }
  func.func @transform_4(%arg0: i32) -> (i32, i32) {
    %c0_i32 = arith.constant 0 : i32
    %c0_i32_0 = arith.constant 0 : i32
    %c0_i32_1 = arith.constant 0 : i32
    return %c0_i32, %c0_i32_0 : i32, i32
  }
  func.func @transform_5(%arg0: i32) -> (i32, i32) {
    %c0_i32 = arith.constant 0 : i32
    %c0_i32_0 = arith.constant 0 : i32
    %c0_i32_1 = arith.constant 0 : i32
    return %c0_i32, %c0_i32_0 : i32, i32
  }
  func.func @transform_6(%arg0: i32) -> (i32, i32) {
    %c0_i32 = arith.constant 0 : i32
    %c0_i32_0 = arith.constant 0 : i32
    %c0_i32_1 = arith.constant 0 : i32
    return %c0_i32, %c0_i32_0 : i32, i32
  }
  func.func @transform_7(%arg0: i32) -> (i32, i32) {
    %c0_i32 = arith.constant 0 : i32
    %c0_i32_0 = arith.constant 0 : i32
    %c0_i32_1 = arith.constant 0 : i32
    return %c0_i32, %c0_i32_0 : i32, i32
  }
  func.func @transform_8(%arg0: i32) -> (i32, i32) {
    %c0_i32 = arith.constant 0 : i32
    %c0_i32_0 = arith.constant 0 : i32
    %c0_i32_1 = arith.constant 0 : i32
    return %c0_i32, %c0_i32_0 : i32, i32
  }
  func.func @transform_9(%arg0: i32) -> (i32, i32) {
    %c0_i32 = arith.constant 0 : i32
    %c0_i32_0 = arith.constant 0 : i32
    %c0_i32_1 = arith.constant 0 : i32
    return %c0_i32, %c0_i32_0 : i32, i32
  }
  func.func @transform_10(%arg0: i32) -> (i32, i32) {
    %c0_i32 = arith.constant 0 : i32
    %c0_i32_0 = arith.constant 0 : i32
    %c0_i32_1 = arith.constant 0 : i32
    return %c0_i32, %c0_i32_0 : i32, i32
  }
  func.func @transform_11(%arg0: i32) -> (i32, i32) {
    %c0_i32 = arith.constant 0 : i32
    %c0_i32_0 = arith.constant 0 : i32
    %c0_i32_1 = arith.constant 0 : i32
    return %c0_i32, %c0_i32_0 : i32, i32
  }
  func.func @transform_12(%arg0: i32) -> (i32, i32) {
    %c0_i32 = arith.constant 0 : i32
    %c0_i32_0 = arith.constant 0 : i32
    %c0_i32_1 = arith.constant 0 : i32
    return %c0_i32, %c0_i32_0 : i32, i32
  }
  func.func @transform_13(%arg0: i32) -> (i32, i32) {
    %c0_i32 = arith.constant 0 : i32
    %c0_i32_0 = arith.constant 0 : i32
    %c0_i32_1 = arith.constant 0 : i32
    return %c0_i32, %c0_i32_0 : i32, i32
  }
  func.func @transform_14(%arg0: i32) -> (i32, i32) {
    %c0_i32 = arith.constant 0 : i32
    %c0_i32_0 = arith.constant 0 : i32
    %c0_i32_1 = arith.constant 0 : i32
    return %c0_i32, %c0_i32_0 : i32, i32
  }
  func.func @transform_15(%arg0: i32) -> (i32, i32) {
    %c0_i32 = arith.constant 0 : i32
    %c0_i32_0 = arith.constant 0 : i32
    %c0_i32_1 = arith.constant 0 : i32
    return %c0_i32, %c0_i32_0 : i32, i32
  }
  func.func @transform_16(%arg0: i32) -> (i32, i32) {
    %c0_i32 = arith.constant 0 : i32
    %c0_i32_0 = arith.constant 0 : i32
    %c0_i32_1 = arith.constant 0 : i32
    return %c0_i32, %c0_i32_0 : i32, i32
  }
  func.func @transform_17(%arg0: i32) -> (i32, i32) {
    %c0_i32 = arith.constant 0 : i32
    %c0_i32_0 = arith.constant 0 : i32
    %c0_i32_1 = arith.constant 0 : i32
    return %c0_i32, %c0_i32_0 : i32, i32
  }
  func.func @transform_18(%arg0: i32) -> (i32, i32) {
    %c0_i32 = arith.constant 0 : i32
    %c0_i32_0 = arith.constant 0 : i32
    %c0_i32_1 = arith.constant 0 : i32
    return %c0_i32, %c0_i32_0 : i32, i32
  }
  func.func @transform_19(%arg0: i32) -> (i32, i32) {
    %c0_i32 = arith.constant 0 : i32
    %c0_i32_0 = arith.constant 0 : i32
    %c0_i32_1 = arith.constant 0 : i32
    return %c0_i32, %c0_i32_0 : i32, i32
  }
  func.func @transform_20(%arg0: i32) -> (i32, i32) {
    %c0_i32 = arith.constant 0 : i32
    %c0_i32_0 = arith.constant 0 : i32
    %c0_i32_1 = arith.constant 0 : i32
    return %c0_i32, %c0_i32_0 : i32, i32
  }
  func.func @transform_21(%arg0: i32) -> (i32, i32) {
    %c0_i32 = arith.constant 0 : i32
    %c0_i32_0 = arith.constant 0 : i32
    %c0_i32_1 = arith.constant 0 : i32
    return %c0_i32, %c0_i32_0 : i32, i32
  }
  func.func @transform_22(%arg0: i32) -> (i32, i32) {
    %c0_i32 = arith.constant 0 : i32
    %c0_i32_0 = arith.constant 0 : i32
    %c0_i32_1 = arith.constant 0 : i32
    return %c0_i32, %c0_i32_0 : i32, i32
  }
  func.func @transform_23(%arg0: i32) -> (i32, i32) {
    %c0_i32 = arith.constant 0 : i32
    %c0_i32_0 = arith.constant 0 : i32
    %c0_i32_1 = arith.constant 0 : i32
    return %c0_i32, %c0_i32_0 : i32, i32
  }
  func.func @transform_24(%arg0: i32) -> (i32, i32) {
    %c0_i32 = arith.constant 0 : i32
    %c0_i32_0 = arith.constant 0 : i32
    %c0_i32_1 = arith.constant 0 : i32
    return %c0_i32, %c0_i32_0 : i32, i32
  }
  func.func @transform_25(%arg0: i32) -> (i32, i32) {
    %c0_i32 = arith.constant 0 : i32
    %c0_i32_0 = arith.constant 0 : i32
    %c0_i32_1 = arith.constant 0 : i32
    return %c0_i32, %c0_i32_0 : i32, i32
  }
  func.func @transform_26(%arg0: i32) -> (i32, i32) {
    %c0_i32 = arith.constant 0 : i32
    %c0_i32_0 = arith.constant 0 : i32
    %c0_i32_1 = arith.constant 0 : i32
    return %c0_i32, %c0_i32_0 : i32, i32
  }
  func.func @transform_27(%arg0: i32) -> (i32, i32) {
    %c0_i32 = arith.constant 0 : i32
    %c0_i32_0 = arith.constant 0 : i32
    %c0_i32_1 = arith.constant 0 : i32
    return %c0_i32, %c0_i32_0 : i32, i32
  }
}

</mosaic_0001>

<bundles_post_ra>
// kernel: dpc_autoencoder_forward.1
= control target key start
LH: loop header
LB: loop body
LE: loop exit
PB: predicated region body
PF: predicated region fallthrough
CT: control target
= control target key end

     0   :  { %vm335_vm0 = vcmask 1043456   ;;  %vm214_vm1 = vcmask 64512   ;;  %vm694_vm2 = vcmask 523264   ;;  %vm4139_vm3 = vcmask 261120   ;;  %s10273_s1 = inlined_call_operand.vmem [shape: bf16[8,64], index: 1, kind: input, shape index: {}]   ;;  %s10274_s0 = inlined_call_operand.vmem [shape: f32[640,8], index: 0, kind: input, shape index: {}]   ;;  %s10275_s2 = inlined_call_operand.vmem [shape: f32[1,64], index: 2, kind: input, shape index: {}]   ;;  %s10276_s5 = inlined_call_operand.vmem [shape: bf16[64,128], index: 5, kind: input, shape index: {}]   ;;  %s10277_s3 = inlined_call_operand.vmem [shape: f32[1,64], index: 3, kind: input, shape index: {}]   ;;  %s10278_s4 = inlined_call_operand.vmem [shape: f32[1,64], index: 4, kind: input, shape index: {}]   ;;  %s10279_s6 = inlined_call_operand.vmem [shape: f32[1,128], index: 6, kind: input, shape index: {}]   ;;  %s10280_s9 = inlined_call_operand.vmem [shape: bf16[128,32], index: 9, kind: input, shape index: {}]   ;;  %s10281_s7 = inlined_call_operand.vmem [shape: f32[1,128], index: 7, kind: input, shape index: {}]   ;;  %s10282_s8 = inlined_call_operand.vmem [shape: f32[1,128], index: 8, kind: input, shape index: {}]   ;;  %s10283_s10 = inlined_call_operand.vmem [shape: f32[1,32], index: 10, kind: input, shape index: {}]   ;;  %s10284_s11 = inlined_call_operand.vmem [shape: bf16[32,128], index: 11, kind: input, shape index: {}]   ;;  %s10285_s12 = inlined_call_operand.vmem [shape: bf16[32,128], index: 12, kind: input, shape index: {}]   ;;  %s10286_s13 = inlined_call_operand.vmem [shape: f32[1,128], index: 13, kind: input, shape index: {}]   ;;  %s10287_s14 = inlined_call_operand.vmem [shape: bf16[64,128], index: 14, kind: input, shape index: {}]   ;;  %s10288_s15 = inlined_call_operand.vmem [shape: f32[1,128], index: 15, kind: input, shape index: {}]   ;;  %s10289_s16 = inlined_call_operand.vmem [shape: bf16[32,128], index: 16, kind: input, shape index: {}]   ;;  %s10290_s17 = inlined_call_operand.vmem [shape: f32[1,128], index: 17, kind: input, shape index: {}]   ;;  %s10291_s20 = inlined_call_operand.vmem [shape: bf16[128,64], index: 20, kind: input, shape index: {}]   ;;  %s10292_s18 = inlined_call_operand.vmem [shape: f32[1,128], index: 18, kind: input, shape index: {}]   ;;  %s10293_s19 = inlined_call_operand.vmem [shape: f32[1,128], index: 19, kind: input, shape index: {}]   ;;  %s10294_s21 = inlined_call_operand.vmem [shape: f32[1,64], index: 21, kind: input, shape index: {}]   ;;  %s10295_s24 = inlined_call_operand.vmem [shape: bf16[64,3], index: 24, kind: input, shape index: {}]   ;;  %s10296_s26 = inlined_call_operand.vmem [shape: f32[10,32], index: 26, kind: output, shape index: {0}]   ;;  %s10297_s22 = inlined_call_operand.vmem [shape: f32[1,64], index: 22, kind: input, shape index: {}]   ;;  %s10298_s23 = inlined_call_operand.vmem [shape: f32[1,64], index: 23, kind: input, shape index: {}]   ;;  %s10299_s25 = inlined_call_operand.vmem [shape: f32[1,3], index: 25, kind: input, shape index: {}]   ;;  %s10300_s27 = inlined_call_operand.vmem [shape: f32[10,3], index: 27, kind: output, shape index: {1}]  }
   0x1   :  { %10466 = sst [smem:[#allocation71_spill]] %s10273_s1  ;;  %vm4360_vm4 = vcmask 1040384   ;;  %vm4362_vm5 = vcmask 1041408   ;;  %vm6872_vm6 = vmmov 0   ;;  %vm4364_vm7 = vcmask 1042432  }
   0x2   :  { %10467 = sst [smem:[#allocation72_spill]] %s10274_s0  ;;  %vm4367_vm8 = vcmask 1044480   ;;  %vm4369_vm9 = vcmask 1045504   ;;  %vm4371_vm10 = vcmask 1046528   ;;  %vm5520_vm11 = vcmask 517120  }
   0x3   :  { %10468 = sst [smem:[#allocation73_spill]] %s10275_s2  ;;  %vm5285_vm12 = vcmask 254976   ;;  %vm5646_vm13 = vcmask 23552   ;;  %vm5648_vm14 = vcmask 17408  }
   0x4   :  { %10469 = sst [smem:[#allocation74_spill]] %s10276_s5 }
   0x5   :  { %10470 = sst [smem:[#allocation75_spill]] %s10277_s3 }
   0x6   :  { %10471 = sst [smem:[#allocation76_spill]] %s10278_s4 }
   0x7   :  { %10472 = sst [smem:[#allocation77_spill]] %s10279_s6 }
   0x8   :  { %10473 = sst [smem:[#allocation78_spill]] %s10280_s9 }
   0x9   :  { %10474 = sst [smem:[#allocation79_spill]] %s10281_s7 }
   0xa   :  { %10475 = sst [smem:[#allocation80_spill]] %s10282_s8 }
   0xb   :  { %10476 = sst [smem:[#allocation81_spill]] %s10283_s10 }
   0xc   :  { %10477 = sst [smem:[#allocation82_spill]] %s10284_s11 }
   0xd   :  { %s10478_s7 = sld [smem:[#allocation71_spill]] }
   0xe   :  { %s10479_s4 = sld [smem:[#allocation72_spill]] }
   0xf   :  { %s10480_s11 = sld [smem:[#allocation73_spill]] }
  0x10   :  { %s10515_s5 = sld [smem:[#allocation74_spill]] }
  0x11   :  { %s10584_s6 = sld [smem:[#allocation75_spill]] }
  0x12   :  { %s10586_s2 = sld [smem:[#allocation76_spill]] }
  0x13   :  { %v166_v0 = vld [vmem:[%s10478_s7] sm:$0xf]  ;;  %s10628_s28 = sld [smem:[#allocation77_spill]] }
  0x14   :  { %v86_v1 = vld [vmem:[%s10479_s4] sm:$0xff]  ;;  %v87_v2 = vld [vmem:[%s10479_s4 + $0x8] sm:$0xff]  ;;  %6417 = vmatprep.subr.msk.bf16.mxu0 %vm335_vm0, %v166_v0  ;;  %v337_v3 = vsel %vm335_vm0, %v166_v0, 0  ;;  %v88_v5 = vld [vmem:[%s10479_s4 + $0x10] sm:$0xff]  ;;  %s10680_s29 = sld [smem:[#allocation78_spill]] }
  0x15   :  { %v167_v4 = vpack.c.bf16 %v87_v2, %v86_v1  ;;  %v89_v6 = vld [vmem:[%s10479_s4 + $0x18] sm:$0xff]  ;;  %v90_v7 = vld [vmem:[%s10479_s4 + $0x20] sm:$0xff]  ;;  %6004 = vmatpush3.bf16.msra.mxu0 %v337_v3  ;;  %v91_v9 = vld [vmem:[%s10479_s4 + $0x28] sm:$0xff]  ;;  %s10749_s9 = sld [smem:[#allocation80_spill]] }
  0x16   :  { %v168_v8 = vpack.c.bf16 %v89_v6, %v88_v5  ;;  %v169_v10 = vpack.c.bf16 %v91_v9, %v90_v7  ;;  %v92_v11 = vld [vmem:[%s10479_s4 + $0x30] sm:$0xff]  ;;  %v93_v12 = vld [vmem:[%s10479_s4 + $0x38] sm:$0xff]  ;;  %v94_v13 = vld [vmem:[%s10479_s4 + $0x40] sm:$0xff]  ;;  %s10808_s1 = sld [smem:[#allocation81_spill]] }
  0x17   :  { %6005 = vmatprep.mubr.msk.bf16.mxu0 %vm214_vm1, %v167_v4  ;;  %v95_v14 = vld [vmem:[%s10479_s4 + $0x48] sm:$0xff]  ;;  %v170_v15 = vpack.c.bf16 %v93_v12, %v92_v11  ;;  %v96_v17 = vld [vmem:[%s10479_s4 + $0x50] sm:$0xff]  ;;  %v97_v18 = vld [vmem:[%s10479_s4 + $0x58] sm:$0xff] }
  0x18   :  { %6006 = vmatmul.mubr.msk.bf16.vlgmr.msra.gmra.mxu0 %vm214_vm1, %v168_v8  ;;  %v171_v16 = vpack.c.bf16 %v95_v14, %v94_v13  ;;  %v98_v19 = vld [vmem:[%s10479_s4 + $0x60] sm:$0xff]  ;;  %v99_v20 = vld [vmem:[%s10479_s4 + $0x68] sm:$0xff]  ;;  %v172_v21 = vpack.c.bf16 %v97_v18, %v96_v17  ;;  %v100_v23 = vld [vmem:[%s10479_s4 + $0x70] sm:$0xff] }
  0x19   :  { %6009 = vmatprep.mubr.msk.bf16.mxu0 %vm214_vm1, %v169_v10  ;;  %v173_v22 = vpack.c.bf16 %v99_v20, %v98_v19  ;;  %v101_v24 = vld [vmem:[%s10479_s4 + $0x78] sm:$0xff]  ;;  %v102_v25 = vld [vmem:[%s10479_s4 + $0x80] sm:$0xff]  ;;  %v103_v26 = vld [vmem:[%s10479_s4 + $0x88] sm:$0xff] }
  0x1a   :  { %v174_v27 = vpack.c.bf16 %v101_v24, %v100_v23  ;;  %v175_v28 = vpack.c.bf16 %v103_v26, %v102_v25  ;;  %v104_v29 = vld [vmem:[%s10479_s4 + $0x90] sm:$0xff]  ;;  %v105_v30 = vld [vmem:[%s10479_s4 + $0x98] sm:$0xff]  ;;  %v106_v31 = vld [vmem:[%s10479_s4 + $0xa0] sm:$0xff] }
  0x1b   :  { %v107_v32 = vld [vmem:[%s10479_s4 + $0xa8] sm:$0xff]  ;;  %v176_v33 = vpack.c.bf16 %v105_v30, %v104_v29  ;;  %v108_v35 = vld [vmem:[%s10479_s4 + $0xb0] sm:$0xff]  ;;  %v109_v36 = vld [vmem:[%s10479_s4 + $0xb8] sm:$0xff] }
  0x1c   :  { %v177_v34 = vpack.c.bf16 %v107_v32, %v106_v31  ;;  %v110_v37 = vld [vmem:[%s10479_s4 + $0xc0] sm:$0xff]  ;;  %v111_v38 = vld [vmem:[%s10479_s4 + $0xc8] sm:$0xff]  ;;  %v178_v39 = vpack.c.bf16 %v109_v36, %v108_v35  ;;  %v112_v41 = vld [vmem:[%s10479_s4 + $0xd0] sm:$0xff] }
  0x1d   :  { %v179_v40 = vpack.c.bf16 %v111_v38, %v110_v37  ;;  %v113_v42 = vld [vmem:[%s10479_s4 + $0xd8] sm:$0xff]  ;;  %v114_v43 = vld [vmem:[%s10479_s4 + $0xe0] sm:$0xff]  ;;  %v115_v44 = vld [vmem:[%s10479_s4 + $0xe8] sm:$0xff] }
  0x1e   :  { %v180_v45 = vpack.c.bf16 %v113_v42, %v112_v41  ;;  %v181_v46 = vpack.c.bf16 %v115_v44, %v114_v43  ;;  %v116_v47 = vld [vmem:[%s10479_s4 + $0xf0] sm:$0xff]  ;;  %v117_v48 = vld [vmem:[%s10479_s4 + $0xf8] sm:$0xff]  ;;  %v118_v49 = vld [vmem:[%s10479_s4 + $0x100] sm:$0xff] }
  0x1f   :  { %v119_v50 = vld [vmem:[%s10479_s4 + $0x108] sm:$0xff]  ;;  %v182_v51 = vpack.c.bf16 %v117_v48, %v116_v47  ;;  %v120_v53 = vld [vmem:[%s10479_s4 + $0x110] sm:$0xff]  ;;  %v121_v54 = vld [vmem:[%s10479_s4 + $0x118] sm:$0xff] }
  0x20   :  { %6010 = vmatmul.mubr.msk.bf16.gmra.mxu0 %vm214_vm1, %v170_v15  ;;  %v183_v52 = vpack.c.bf16 %v119_v50, %v118_v49  ;;  %v122_v55 = vld [vmem:[%s10479_s4 + $0x120] sm:$0xff]  ;;  %v123_v56 = vld [vmem:[%s10479_s4 + $0x128] sm:$0xff]  ;;  %v184_v57 = vpack.c.bf16 %v121_v54, %v120_v53  ;;  %v124_v59 = vld [vmem:[%s10479_s4 + $0x130] sm:$0xff] }
  0x21   :  { %6013 = vmatprep.mubr.msk.bf16.mxu0 %vm214_vm1, %v171_v16  ;;  %v185_v58 = vpack.c.bf16 %v123_v56, %v122_v55  ;;  %v125_v60 = vld [vmem:[%s10479_s4 + $0x138] sm:$0xff]  ;;  %v126_v61 = vld [vmem:[%s10479_s4 + $0x140] sm:$0xff]  ;;  %v127_v62 = vld [vmem:[%s10479_s4 + $0x148] sm:$0xff] }
  0x22   :  { %v186_v63 = vpack.c.bf16 %v125_v60, %v124_v59  ;;  %v187_v0 = vpack.c.bf16 %v127_v62, %v126_v61  ;;  %v128_v1 = vld [vmem:[%s10479_s4 + $0x150] sm:$0xff]  ;;  %v129_v2 = vld [vmem:[%s10479_s4 + $0x158] sm:$0xff]  ;;  %v130_v3 = vld [vmem:[%s10479_s4 + $0x160] sm:$0xff] }
  0x23   :  { %v131_v4 = vld [vmem:[%s10479_s4 + $0x168] sm:$0xff]  ;;  %v188_v5 = vpack.c.bf16 %v129_v2, %v128_v1  ;;  %v132_v7 = vld [vmem:[%s10479_s4 + $0x170] sm:$0xff]  ;;  %v133_v8 = vld [vmem:[%s10479_s4 + $0x178] sm:$0xff] }
  0x24   :  { %v189_v6 = vpack.c.bf16 %v131_v4, %v130_v3  ;;  %v134_v9 = vld [vmem:[%s10479_s4 + $0x180] sm:$0xff]  ;;  %v135_v10 = vld [vmem:[%s10479_s4 + $0x188] sm:$0xff]  ;;  %v190_v11 = vpack.c.bf16 %v133_v8, %v132_v7  ;;  %v136_v13 = vld [vmem:[%s10479_s4 + $0x190] sm:$0xff] }
  0x25   :  { %v191_v12 = vpack.c.bf16 %v135_v10, %v134_v9  ;;  %v137_v14 = vld [vmem:[%s10479_s4 + $0x198] sm:$0xff]  ;;  %v138_v15 = vld [vmem:[%s10479_s4 + $0x1a0] sm:$0xff]  ;;  %v139_v16 = vld [vmem:[%s10479_s4 + $0x1a8] sm:$0xff] }
  0x26   :  { %v192_v17 = vpack.c.bf16 %v137_v14, %v136_v13  ;;  %v193_v18 = vpack.c.bf16 %v139_v16, %v138_v15  ;;  %v140_v19 = vld [vmem:[%s10479_s4 + $0x1b0] sm:$0xff]  ;;  %v141_v20 = vld [vmem:[%s10479_s4 + $0x1b8] sm:$0xff] }
  0x27   :  { %v194_v23 = vpack.c.bf16 %v141_v20, %v140_v19  ;;  %v144_v25 = vld [vmem:[%s10479_s4 + $0x1d0] sm:$0xff]  ;;  %v145_v26 = vld [vmem:[%s10479_s4 + $0x1d8] sm:$0xff] }
  0x28   :  { %6014 = vmatmul.mubr.msk.bf16.gmra.mxu0 %vm214_vm1, %v172_v21  ;;  %v142_v21 = vld [vmem:[%s10479_s4 + $0x1c0] sm:$0xff]  ;;  %v196_v29 = vpack.c.bf16 %v145_v26, %v144_v25  ;;  %v148_v31 = vld [vmem:[%s10479_s4 + $0x1f0] sm:$0xff]  ;;  %v149_v32 = vld [vmem:[%s10479_s4 + $0x1f8] sm:$0xff] }
  0x29   :  { %6017 = vmatprep.mubr.msk.bf16.mxu0 %vm214_vm1, %v173_v22  ;;  %v143_v22 = vld [vmem:[%s10479_s4 + $0x1c8] sm:$0xff]  ;;  %v198_v35 = vpack.c.bf16 %v149_v32, %v148_v31  ;;  %v152_v37 = vld [vmem:[%s10479_s4 + $0x210] sm:$0xff]  ;;  %v153_v38 = vld [vmem:[%s10479_s4 + $0x218] sm:$0xff] }
  0x2a   :  { %v195_v24 = vpack.c.bf16 %v143_v22, %v142_v21  ;;  %v200_v41 = vpack.c.bf16 %v153_v38, %v152_v37  ;;  %v156_v43 = vld [vmem:[%s10479_s4 + $0x230] sm:$0xff]  ;;  %v157_v44 = vld [vmem:[%s10479_s4 + $0x238] sm:$0xff] }
  0x2b   :  { %v202_v47 = vpack.c.bf16 %v157_v44, %v156_v43  ;;  %v160_v49 = vld [vmem:[%s10479_s4 + $0x250] sm:$0xff]  ;;  %v161_v50 = vld [vmem:[%s10479_s4 + $0x258] sm:$0xff] }
  0x2c   :  { %v204_v53 = vpack.c.bf16 %v161_v50, %v160_v49  ;;  %v164_v55 = vld [vmem:[%s10479_s4 + $0x270] sm:$0xff]  ;;  %v165_v56 = vld [vmem:[%s10479_s4 + $0x278] sm:$0xff] }
  0x30   :  { %6018 = vmatmul.mubr.msk.bf16.gmra.mxu0 %vm214_vm1, %v174_v27  ;;  %v146_v27 = vld [vmem:[%s10479_s4 + $0x1e0] sm:$0xff] }
  0x31   :  { %6021 = vmatprep.mubr.msk.bf16.mxu0 %vm214_vm1, %v175_v28  ;;  %v147_v28 = vld [vmem:[%s10479_s4 + $0x1e8] sm:$0xff] }
  0x32   :  { %v197_v30 = vpack.c.bf16 %v147_v28, %v146_v27 }
  0x38   :  { %6022 = vmatmul.mubr.msk.bf16.gmra.mxu0 %vm214_vm1, %v176_v33  ;;  %v150_v33 = vld [vmem:[%s10479_s4 + $0x200] sm:$0xff] }
  0x39   :  { %6025 = vmatprep.mubr.msk.bf16.mxu0 %vm214_vm1, %v177_v34  ;;  %v151_v34 = vld [vmem:[%s10479_s4 + $0x208] sm:$0xff] }
  0x3a   :  { %v199_v36 = vpack.c.bf16 %v151_v34, %v150_v33 }
  0x40   :  { %6026 = vmatmul.mubr.msk.bf16.gmra.mxu0 %vm214_vm1, %v178_v39  ;;  %v154_v39 = vld [vmem:[%s10479_s4 + $0x220] sm:$0xff] }
  0x41   :  { %6029 = vmatprep.mubr.msk.bf16.mxu0 %vm214_vm1, %v179_v40  ;;  %v155_v40 = vld [vmem:[%s10479_s4 + $0x228] sm:$0xff] }
  0x42   :  { %v201_v42 = vpack.c.bf16 %v155_v40, %v154_v39 }
  0x48   :  { %6030 = vmatmul.mubr.msk.bf16.gmra.mxu0 %vm214_vm1, %v180_v45  ;;  %v158_v45 = vld [vmem:[%s10479_s4 + $0x240] sm:$0xff] }
  0x49   :  { %6033 = vmatprep.mubr.msk.bf16.mxu0 %vm214_vm1, %v181_v46  ;;  %v159_v46 = vld [vmem:[%s10479_s4 + $0x248] sm:$0xff] }
  0x4a   :  { %v203_v48 = vpack.c.bf16 %v159_v46, %v158_v45 }
  0x50   :  { %6034 = vmatmul.mubr.msk.bf16.gmra.mxu0 %vm214_vm1, %v182_v51  ;;  %v162_v51 = vld [vmem:[%s10479_s4 + $0x260] sm:$0xff] }
  0x51   :  { %6037 = vmatprep.mubr.msk.bf16.mxu0 %vm214_vm1, %v183_v52  ;;  %v163_v52 = vld [vmem:[%s10479_s4 + $0x268] sm:$0xff]  ;;  %s10743_s4 = sld [smem:[#allocation79_spill]] }
  0x52   :  { %v205_v54 = vpack.c.bf16 %v163_v52, %v162_v51 }
  0x58   :  { %6038 = vmatmul.mubr.msk.bf16.gmra.mxu0 %vm214_vm1, %v184_v57  ;;  %v206_v57 = vpack.c.bf16 %v165_v56, %v164_v55 }
  0x59   :  { %6041 = vmatprep.mubr.msk.bf16.mxu0 %vm214_vm1, %v185_v58  ;;  %v7304_v58 = vld [vmem:[%s10480_s11] ss:$0 sm:$0xff] }
  0x60   :  { %6042 = vmatmul.mubr.msk.bf16.gmra.mxu0 %vm214_vm1, %v186_v63 }
  0x61   :  { %6045 = vmatprep.mubr.msk.bf16.mxu0 %vm214_vm1, %v187_v0 }
  0x68   :  { %6046 = vmatmul.mubr.msk.bf16.gmra.mxu0 %vm214_vm1, %v188_v5 }
  0x69   :  { %6049 = vmatprep.mubr.msk.bf16.mxu0 %vm214_vm1, %v189_v6 }
  0x70   :  { %6050 = vmatmul.mubr.msk.bf16.gmra.mxu0 %vm214_vm1, %v190_v11 }
  0x71   :  { %6053 = vmatprep.mubr.msk.bf16.mxu0 %vm214_vm1, %v191_v12 }
  0x78   :  { %6054 = vmatmul.mubr.msk.bf16.gmra.mxu0 %vm214_vm1, %v192_v17 }
  0x79   :  { %6057 = vmatprep.mubr.msk.bf16.mxu0 %vm214_vm1, %v193_v18 }
  0x80   :  { %6058 = vmatmul.mubr.msk.bf16.gmra.mxu0 %vm214_vm1, %v194_v23 }
  0x81   :  { %6061 = vmatprep.mubr.msk.bf16.mxu0 %vm214_vm1, %v195_v24 }
  0x88   :  { %6062 = vmatmul.mubr.msk.bf16.gmra.mxu0 %vm214_vm1, %v196_v29 }
  0x89   :  { %6065 = vmatprep.mubr.msk.bf16.mxu0 %vm214_vm1, %v197_v30 }
  0x90   :  { %6066 = vmatmul.mubr.msk.bf16.gmra.mxu0 %vm214_vm1, %v198_v35 }
  0x91   :  { %6069 = vmatprep.mubr.msk.bf16.mxu0 %vm214_vm1, %v199_v36 }
  0x98   :  { %6070 = vmatmul.mubr.msk.bf16.gmra.mxu0 %vm214_vm1, %v200_v41 }
  0x99   :  { %6073 = vmatprep.mubr.msk.bf16.mxu0 %vm214_vm1, %v201_v42 }
  0xa0   :  { %6074 = vmatmul.mubr.msk.bf16.gmra.mxu0 %vm214_vm1, %v202_v47 }
  0xa1   :  { %6077 = vmatprep.mubr.msk.bf16.mxu0 %vm214_vm1, %v203_v48 }
  0xa8   :  { %6078 = vmatmul.mubr.msk.bf16.gmra.mxu0 %vm214_vm1, %v204_v53 }
  0xa9   :  { %6081 = vmatprep.mubr.msk.bf16.mxu0 %vm214_vm1, %v205_v54 }
  0xb0   :  { %6082 = vmatmul.mubr.msk.bf16.gmra.mxu0 %vm214_vm1, %v206_v57 }
  0xd8   :  { %v6007_v59 = vpop.f32.mrf.mxu0 }
  0xd9   :  { %v7307_v60 = vadd.f32 %v6007_v59, %v7304_v58 }
  0xda   :  { %v373_v61 = vpop.f32.mrf.mxu0 }
  0xdb   :  { %v7310_v62 = vadd.f32 %v7304_v58, %v373_v61  ;;  %v701_v63 = vsel %vm694_vm2, %v7307_v60, 0.0 }
  0xdc   :  { %702 = vadd.xlane.f32.xlu1 %v701_v63  ;;  %v6008_v0 = vpop.f32.mrf.mxu0 }
  0xdd   :  { %v7315_v1 = vadd.f32 %v6008_v0, %v7304_v58  ;;  %v695_v2 = vsel %vm694_vm2, %v7310_v62, 0.0 }
  0xde   :  { %v376_v3 = vpop.f32.mrf.mxu0  ;;  %696 = vadd.xlane.f32.xlu0 %v695_v2 }
  0xdf   :  { %v7320_v4 = vadd.f32 %v7304_v58, %v376_v3  ;;  %v704_v5 = vsel %vm694_vm2, %v7315_v1, 0.0 }
  0xe0   :  { %705 = vadd.xlane.f32.xlu1 %v704_v5  ;;  %v6011_v6 = vpop.f32.mrf.mxu0 }
  0xe1   :  { %v7325_v7 = vadd.f32 %v6011_v6, %v7304_v58  ;;  %v698_v8 = vsel %vm694_vm2, %v7320_v4, 0.0 }
  0xe2   :  { %v389_v9 = vpop.f32.mrf.mxu0  ;;  %699 = vadd.xlane.f32.xlu0 %v698_v8 }
  0xe3   :  { %v7330_v11 = vadd.f32 %v7304_v58, %v389_v9  ;;  %v713_v13 = vsel %vm694_vm2, %v7325_v7, 0.0 }
  0xe4   :  { %v6012_v10 = vpop.f32.mrf.mxu0 }
  0xe5   :  { %v7333_v12 = vadd.f32 %v6012_v10, %v7304_v58  ;;  %v707_v19 = vsel %vm694_vm2, %v7330_v11, 0.0 }
  0xe6   :  { %v392_v14 = vpop.f32.mrf.mxu0  ;;  %714 = vadd.xlane.f32.xlu0 %v713_v13 }
  0xe7   :  { %v7338_v15 = vadd.f32 %v7304_v58, %v392_v14  ;;  %v716_v16 = vsel %vm694_vm2, %v7333_v12, 0.0 }
  0xe8   :  { %717 = vadd.xlane.f32.xlu1 %v716_v16  ;;  %v6015_v17 = vpop.f32.mrf.mxu0 }
  0xe9   :  { %v7343_v18 = vadd.f32 %v6015_v17, %v7304_v58  ;;  %v710_v21 = vsel %vm694_vm2, %v7338_v15, 0.0 }
  0xea   :  { %v405_v20 = vpop.f32.mrf.mxu0  ;;  %708 = vadd.xlane.f32.xlu0 %v707_v19 }
  0xeb   :  { %v7350_v23 = vadd.f32 %v7304_v58, %v405_v20  ;;  %v725_v25 = vsel %vm694_vm2, %v7343_v18, 0.0 }
  0xec   :  { %v6016_v22 = vpop.f32.mrf.mxu0  ;;  %711 = vadd.xlane.f32.xlu1 %v710_v21 }
  0xed   :  { %v7353_v24 = vadd.f32 %v6016_v22, %v7304_v58  ;;  %v719_v31 = vsel %vm694_vm2, %v7350_v23, 0.0 }
  0xee   :  { %v408_v26 = vpop.f32.mrf.mxu0  ;;  %726 = vadd.xlane.f32.xlu0 %v725_v25 }
  0xef   :  { %v7358_v27 = vadd.f32 %v7304_v58, %v408_v26  ;;  %v728_v28 = vsel %vm694_vm2, %v7353_v24, 0.0 }
  0xf0   :  { %v6019_v29 = vpop.f32.mrf.mxu0  ;;  %729 = vadd.xlane.f32.xlu1 %v728_v28 }
  0xf1   :  { %v7363_v30 = vadd.f32 %v6019_v29, %v7304_v58  ;;  %v722_v33 = vsel %vm694_vm2, %v7358_v27, 0.0 }
  0xf2   :  { %v421_v32 = vpop.f32.mrf.mxu0  ;;  %720 = vadd.xlane.f32.xlu0 %v719_v31 }
  0xf3   :  { %v7370_v35 = vadd.f32 %v7304_v58, %v421_v32  ;;  %v737_v37 = vsel %vm694_vm2, %v7363_v30, 0.0 }
  0xf4   :  { %v6020_v34 = vpop.f32.mrf.mxu0  ;;  %723 = vadd.xlane.f32.xlu1 %v722_v33 }
  0xf5   :  { %v7373_v36 = vadd.f32 %v6020_v34, %v7304_v58  ;;  %v731_v43 = vsel %vm694_vm2, %v7370_v35, 0.0 }
  0xf6   :  { %v424_v38 = vpop.f32.mrf.mxu0  ;;  %738 = vadd.xlane.f32.xlu0 %v737_v37 }
  0xf7   :  { %v7378_v39 = vadd.f32 %v7304_v58, %v424_v38  ;;  %v740_v40 = vsel %vm694_vm2, %v7373_v36, 0.0 }
  0xf8   :  { %v6023_v41 = vpop.f32.mrf.mxu0  ;;  %741 = vadd.xlane.f32.xlu1 %v740_v40 }
  0xf9   :  { %v7383_v42 = vadd.f32 %v6023_v41, %v7304_v58  ;;  %v734_v45 = vsel %vm694_vm2, %v7378_v39, 0.0 }
  0xfa   :  { %v437_v44 = vpop.f32.mrf.mxu0  ;;  %732 = vadd.xlane.f32.xlu0 %v731_v43 }
  0xfb   :  { %v7390_v47 = vadd.f32 %v7304_v58, %v437_v44  ;;  %v749_v49 = vsel %vm694_vm2, %v7383_v42, 0.0 }
  0xfc   :  { %v6024_v46 = vpop.f32.mrf.mxu0  ;;  %735 = vadd.xlane.f32.xlu1 %v734_v45 }
  0xfd   :  { %v7393_v48 = vadd.f32 %v6024_v46, %v7304_v58  ;;  %v743_v55 = vsel %vm694_vm2, %v7390_v47, 0.0 }
  0xfe   :  { %v440_v50 = vpop.f32.mrf.mxu0  ;;  %750 = vadd.xlane.f32.xlu0 %v749_v49 }
  0xff   :  { %v7398_v51 = vadd.f32 %v7304_v58, %v440_v50  ;;  %v752_v52 = vsel %vm694_vm2, %v7393_v48, 0.0 }
 0x100   :  { %v6027_v53 = vpop.f32.mrf.mxu0  ;;  %753 = vadd.xlane.f32.xlu1 %v752_v52 }
 0x101   :  { %v7403_v54 = vadd.f32 %v6027_v53, %v7304_v58  ;;  %v746_v57 = vsel %vm694_vm2, %v7398_v51, 0.0 }
 0x102   :  { %v453_v56 = vpop.f32.mrf.mxu0  ;;  %744 = vadd.xlane.f32.xlu0 %v743_v55 }
 0x103   :  { %v7410_v61 = vadd.f32 %v7304_v58, %v453_v56  ;;  %v761_v0 = vsel %vm694_vm2, %v7403_v54, 0.0 }
 0x104   :  { %v6028_v59 = vpop.f32.mrf.mxu0  ;;  %747 = vadd.xlane.f32.xlu1 %v746_v57 }
 0x105   :  { %v7413_v63 = vadd.f32 %v6028_v59, %v7304_v58  ;;  %v755_v9 = vsel %vm694_vm2, %v7410_v61, 0.0 }
 0x106   :  { %v456_v2 = vpop.f32.mrf.mxu0  ;;  %762 = vadd.xlane.f32.xlu0 %v761_v0 }
 0x107   :  { %v7418_v3 = vadd.f32 %v7304_v58, %v456_v2  ;;  %v764_v5 = vsel %vm694_vm2, %v7413_v63, 0.0 }
 0x108   :  { %v6031_v6 = vpop.f32.mrf.mxu0  ;;  %765 = vadd.xlane.f32.xlu1 %v764_v5 }
 0x109   :  { %v7423_v8 = vadd.f32 %v6031_v6, %v7304_v58  ;;  %v758_v13 = vsel %vm694_vm2, %v7418_v3, 0.0 }
 0x10a   :  { %v469_v10 = vpop.f32.mrf.mxu0  ;;  %756 = vadd.xlane.f32.xlu0 %v755_v9 }
 0x10b   :  { %v7430_v16 = vadd.f32 %v7304_v58, %v469_v10  ;;  %v773_v19 = vsel %vm694_vm2, %v7423_v8, 0.0 }
 0x10c   :  { %v6032_v14 = vpop.f32.mrf.mxu0  ;;  %759 = vadd.xlane.f32.xlu1 %v758_v13 }
 0x10d   :  { %v7433_v17 = vadd.f32 %v6032_v14, %v7304_v58  ;;  %v767_v28 = vsel %vm694_vm2, %v7430_v16, 0.0 }
 0x10e   :  { %v472_v20 = vpop.f32.mrf.mxu0  ;;  %774 = vadd.xlane.f32.xlu0 %v773_v19 }
 0x10f   :  { %v7438_v21 = vadd.f32 %v7304_v58, %v472_v20  ;;  %v776_v22 = vsel %vm694_vm2, %v7433_v17, 0.0 }
 0x110   :  { %v6035_v25 = vpop.f32.mrf.mxu0  ;;  %777 = vadd.xlane.f32.xlu1 %v776_v22 }
 0x111   :  { %v7443_v26 = vadd.f32 %v6035_v25, %v7304_v58  ;;  %v770_v31 = vsel %vm694_vm2, %v7438_v21, 0.0 }
 0x112   :  { %v485_v29 = vpop.f32.mrf.mxu0  ;;  %768 = vadd.xlane.f32.xlu0 %v767_v28 }
 0x113   :  { %v7450_v33 = vadd.f32 %v7304_v58, %v485_v29  ;;  %v785_v37 = vsel %vm694_vm2, %v7443_v26, 0.0 }
 0x114   :  { %v6036_v32 = vpop.f32.mrf.mxu0  ;;  %771 = vadd.xlane.f32.xlu1 %v770_v31 }
 0x115   :  { %v7453_v34 = vadd.f32 %v6036_v32, %v7304_v58  ;;  %v779_v45 = vsel %vm694_vm2, %v7450_v33, 0.0 }
 0x116   :  { %v488_v38 = vpop.f32.mrf.mxu0  ;;  %786 = vadd.xlane.f32.xlu0 %v785_v37 }
 0x117   :  { %v7458_v40 = vadd.f32 %v7304_v58, %v488_v38  ;;  %v788_v41 = vsel %vm694_vm2, %v7453_v34, 0.0 }
 0x118   :  { %v6039_v43 = vpop.f32.mrf.mxu0  ;;  %789 = vadd.xlane.f32.xlu1 %v788_v41 }
 0x119   :  { %v7463_v44 = vadd.f32 %v6039_v43, %v7304_v58  ;;  %v782_v49 = vsel %vm694_vm2, %v7458_v40, 0.0 }
 0x11a   :  { %v501_v46 = vpop.f32.mrf.mxu0  ;;  %780 = vadd.xlane.f32.xlu0 %v779_v45 }
 0x11b   :  { %v7470_v52 = vadd.f32 %v7304_v58, %v501_v46  ;;  %v797_v55 = vsel %vm694_vm2, %v7463_v44, 0.0 }
 0x11c   :  { %v6040_v50 = vpop.f32.mrf.mxu0  ;;  %783 = vadd.xlane.f32.xlu1 %v782_v49 }
 0x11d   :  { %v7473_v53 = vadd.f32 %v6040_v50, %v7304_v58  ;;  %v791_v5 = vsel %vm694_vm2, %v7470_v52, 0.0 }
 0x11e   :  { %v504_v56 = vpop.f32.mrf.mxu0  ;;  %798 = vadd.xlane.f32.xlu0 %v797_v55 }
 0x11f   :  { %v7478_v57 = vadd.f32 %v7304_v58, %v504_v56  ;;  %v800_v59 = vsel %vm694_vm2, %v7473_v53, 0.0 }
 0x120   :  { %v6043_v0 = vpop.f32.mrf.mxu0  ;;  %801 = vadd.xlane.f32.xlu1 %v800_v59 }
 0x121   :  { %v7483_v2 = vadd.f32 %v6043_v0, %v7304_v58  ;;  %v794_v9 = vsel %vm694_vm2, %v7478_v57, 0.0 }
 0x122   :  { %v517_v6 = vpop.f32.mrf.mxu0  ;;  %792 = vadd.xlane.f32.xlu0 %v791_v5 }
 0x123   :  { %v7490_v13 = vadd.f32 %v7304_v58, %v517_v6  ;;  %v809_v19 = vsel %vm694_vm2, %v7483_v2, 0.0 }
 0x124   :  { %v6044_v10 = vpop.f32.mrf.mxu0  ;;  %795 = vadd.xlane.f32.xlu1 %v794_v9 }
 0x125   :  { %v7493_v14 = vadd.f32 %v6044_v10, %v7304_v58  ;;  %v803_v31 = vsel %vm694_vm2, %v7490_v13, 0.0 }
 0x126   :  { %v520_v20 = vpop.f32.mrf.mxu0  ;;  %810 = vadd.xlane.f32.xlu0 %v809_v19 }
 0x127   :  { %v7498_v22 = vadd.f32 %v7304_v58, %v520_v20  ;;  %v812_v25 = vsel %vm694_vm2, %v7493_v14, 0.0 }
 0x128   :  { %v6047_v28 = vpop.f32.mrf.mxu0  ;;  %813 = vadd.xlane.f32.xlu1 %v812_v25 }
 0x129   :  { %v7503_v29 = vadd.f32 %v6047_v28, %v7304_v58  ;;  %v806_v37 = vsel %vm694_vm2, %v7498_v22, 0.0 }
 0x12a   :  { %v533_v32 = vpop.f32.mrf.mxu0  ;;  %804 = vadd.xlane.f32.xlu0 %v803_v31 }
 0x12b   :  { %v7510_v41 = vadd.f32 %v7304_v58, %v533_v32  ;;  %v821_v45 = vsel %vm694_vm2, %v7503_v29, 0.0 }
 0x12c   :  { %v6048_v38 = vpop.f32.mrf.mxu0  ;;  %807 = vadd.xlane.f32.xlu1 %v806_v37 }
 0x12d   :  { %v7513_v43 = vadd.f32 %v6048_v38, %v7304_v58  ;;  %v815_v59 = vsel %vm694_vm2, %v7510_v41, 0.0 }
 0x12e   :  { %v536_v46 = vpop.f32.mrf.mxu0  ;;  %822 = vadd.xlane.f32.xlu0 %v821_v45 }
 0x12f   :  { %v7518_v49 = vadd.f32 %v7304_v58, %v536_v46  ;;  %v824_v50 = vsel %vm694_vm2, %v7513_v43, 0.0 }
 0x130   :  { %v6051_v55 = vpop.f32.mrf.mxu0  ;;  %825 = vadd.xlane.f32.xlu1 %v824_v50 }
 0x131   :  { %v7523_v56 = vadd.f32 %v6051_v55, %v7304_v58  ;;  %v818_v5 = vsel %vm694_vm2, %v7518_v49, 0.0 }
 0x132   :  { %v549_v0 = vpop.f32.mrf.mxu0  ;;  %816 = vadd.xlane.f32.xlu0 %v815_v59 }
 0x133   :  { %v7530_v9 = vadd.f32 %v7304_v58, %v549_v0  ;;  %v833_v19 = vsel %vm694_vm2, %v7523_v56, 0.0 }
 0x134   :  { %v6052_v6 = vpop.f32.mrf.mxu0  ;;  %819 = vadd.xlane.f32.xlu1 %v818_v5 }
 0x135   :  { %v7533_v10 = vadd.f32 %v6052_v6, %v7304_v58  ;;  %v827_v37 = vsel %vm694_vm2, %v7530_v9, 0.0 }
 0x136   :  { %v552_v20 = vpop.f32.mrf.mxu0  ;;  %834 = vadd.xlane.f32.xlu0 %v833_v19 }
 0x137   :  { %10481 = vst [vmem:[#allocation2_spill] sm:$0xff] %v7533_v10  ;;  %v7538_v25 = vadd.f32 %v7304_v58, %v552_v20  ;;  %v836_v28 = vsel %vm694_vm2, %v7533_v10, 0.0 }
 0x138   :  { %v6055_v31 = vpop.f32.mrf.mxu0  ;;  %837 = vadd.xlane.f32.xlu1 %v836_v28 }
 0x139   :  { %v7543_v32 = vadd.f32 %v6055_v31, %v7304_v58  ;;  %v830_v45 = vsel %vm694_vm2, %v7538_v25, 0.0 }
 0x13a   :  { %v565_v38 = vpop.f32.mrf.mxu0  ;;  %828 = vadd.xlane.f32.xlu0 %v827_v37 }
 0x13b   :  { %10482 = vst [vmem:[#allocation3_spill] sm:$0xff] %v7543_v32  ;;  %v7550_v50 = vadd.f32 %v7304_v58, %v565_v38  ;;  %v845_v59 = vsel %vm694_vm2, %v7543_v32, 0.0 }
 0x13c   :  { %v6056_v46 = vpop.f32.mrf.mxu0  ;;  %831 = vadd.xlane.f32.xlu1 %v830_v45 }
 0x13d   :  { %10483 = vst [vmem:[#allocation4_spill] sm:$0xff] %v7550_v50  ;;  %v7553_v55 = vadd.f32 %v6056_v46, %v7304_v58  ;;  %v839_v28 = vsel %vm694_vm2, %v7550_v50, 0.0 }
 0x13e   :  { %v568_v0 = vpop.f32.mrf.mxu0  ;;  %846 = vadd.xlane.f32.xlu0 %v845_v59 }
 0x13f   :  { %10484 = vst [vmem:[#allocation5_spill] sm:$0xff] %v7553_v55  ;;  %v7558_v5 = vadd.f32 %v7304_v58, %v568_v0  ;;  %v848_v6 = vsel %vm694_vm2, %v7553_v55, 0.0 }
 0x140   :  { %v6059_v19 = vpop.f32.mrf.mxu0  ;;  %849 = vadd.xlane.f32.xlu1 %v848_v6 }
 0x141   :  { %10485 = vst [vmem:[#allocation6_spill] sm:$0xff] %v7558_v5  ;;  %v7563_v20 = vadd.f32 %v6059_v19, %v7304_v58  ;;  %v842_v37 = vsel %vm694_vm2, %v7558_v5, 0.0 }
 0x142   :  { %v581_v31 = vpop.f32.mrf.mxu0  ;;  %840 = vadd.xlane.f32.xlu0 %v839_v28 }
 0x143   :  { %10486 = vst [vmem:[#allocation7_spill] sm:$0xff] %v7563_v20  ;;  %v7570_v45 = vadd.f32 %v7304_v58, %v581_v31  ;;  %v857_v59 = vsel %vm694_vm2, %v7563_v20, 0.0 }
 0x144   :  { %v6060_v38 = vpop.f32.mrf.mxu0  ;;  %843 = vadd.xlane.f32.xlu1 %v842_v37 }
 0x145   :  { %10487 = vst [vmem:[#allocation8_spill] sm:$0xff] %v7570_v45  ;;  %v7573_v46 = vadd.f32 %v6060_v38, %v7304_v58  ;;  %v851_v31 = vsel %vm694_vm2, %v7570_v45, 0.0 }
 0x146   :  { %v584_v0 = vpop.f32.mrf.mxu0  ;;  %858 = vadd.xlane.f32.xlu0 %v857_v59 }
 0x147   :  { %10488 = vst [vmem:[#allocation9_spill] sm:$0xff] %v7573_v46  ;;  %v7578_v6 = vadd.f32 %v7304_v58, %v584_v0  ;;  %v860_v19 = vsel %vm694_vm2, %v7573_v46, 0.0 }
 0x148   :  { %v6063_v28 = vpop.f32.mrf.mxu0  ;;  %861 = vadd.xlane.f32.xlu1 %v860_v19 }
 0x149   :  { %10489 = vst [vmem:[#allocation10_spill] sm:$0xff] %v7578_v6  ;;  %v7583_v37 = vadd.f32 %v6063_v28, %v7304_v58  ;;  %v854_v20 = vsel %vm694_vm2, %v7578_v6, 0.0 }
 0x14a   :  { %v597_v38 = vpop.f32.mrf.mxu0  ;;  %852 = vadd.xlane.f32.xlu0 %v851_v31 }
 0x14b   :  { %10490 = vst [vmem:[#allocation11_spill] sm:$0xff] %v7583_v37  ;;  %v7590_v0 = vadd.f32 %v7304_v58, %v597_v38  ;;  %v869_v19 = vsel %vm694_vm2, %v7583_v37, 0.0 }
 0x14c   :  { %v6064_v59 = vpop.f32.mrf.mxu0  ;;  %855 = vadd.xlane.f32.xlu1 %v854_v20 }
 0x14d   :  { %10491 = vst [vmem:[#allocation12_spill] sm:$0xff] %v7590_v0  ;;  %v7593_v46 = vadd.f32 %v6064_v59, %v7304_v58  ;;  %v863_v38 = vsel %vm694_vm2, %v7590_v0, 0.0 }
 0x14e   :  { %v600_v28 = vpop.f32.mrf.mxu0  ;;  %870 = vadd.xlane.f32.xlu0 %v869_v19 }
 0x14f   :  { %10492 = vst [vmem:[#allocation13_spill] sm:$0xff] %v7593_v46  ;;  %v7598_v45 = vadd.f32 %v7304_v58, %v600_v28  ;;  %v872_v31 = vsel %vm694_vm2, %v7593_v46, 0.0 }
 0x150   :  { %v6067_v6 = vpop.f32.mrf.mxu0  ;;  %873 = vadd.xlane.f32.xlu1 %v872_v31 }
 0x151   :  { %10493 = vst [vmem:[#allocation14_spill] sm:$0xff] %v7598_v45  ;;  %v7603_v20 = vadd.f32 %v6067_v6, %v7304_v58  ;;  %v866_v37 = vsel %vm694_vm2, %v7598_v45, 0.0 }
 0x152   :  { %v613_v59 = vpop.f32.mrf.mxu0  ;;  %864 = vadd.xlane.f32.xlu0 %v863_v38 }
 0x153   :  { %10494 = vst [vmem:[#allocation15_spill] sm:$0xff] %v7603_v20  ;;  %v7610_v28 = vadd.f32 %v7304_v58, %v613_v59  ;;  %v881_v6 = vsel %vm694_vm2, %v7603_v20, 0.0 }
 0x154   :  { %v6068_v19 = vpop.f32.mrf.mxu0  ;;  %867 = vadd.xlane.f32.xlu1 %v866_v37 }
 0x155   :  { %10495 = vst [vmem:[#allocation16_spill] sm:$0xff] %v7610_v28  ;;  %v7613_v46 = vadd.f32 %v6068_v19, %v7304_v58  ;;  %v875_v59 = vsel %vm694_vm2, %v7610_v28, 0.0 }
 0x156   :  { %v616_v31 = vpop.f32.mrf.mxu0  ;;  %882 = vadd.xlane.f32.xlu0 %v881_v6 }
 0x157   :  { %10496 = vst [vmem:[#allocation17_spill] sm:$0xff] %v7613_v46  ;;  %v7618_v0 = vadd.f32 %v7304_v58, %v616_v31  ;;  %v884_v38 = vsel %vm694_vm2, %v7613_v46, 0.0 }
 0x158   :  { %v6071_v45 = vpop.f32.mrf.mxu0  ;;  %885 = vadd.xlane.f32.xlu1 %v884_v38 }
 0x159   :  { %10497 = vst [vmem:[#allocation18_spill] sm:$0xff] %v7618_v0  ;;  %v7623_v37 = vadd.f32 %v6071_v45, %v7304_v58  ;;  %v878_v20 = vsel %vm694_vm2, %v7618_v0, 0.0 }
 0x15a   :  { %v629_v19 = vpop.f32.mrf.mxu0  ;;  %876 = vadd.xlane.f32.xlu0 %v875_v59 }
 0x15b   :  { %10498 = vst [vmem:[#allocation19_spill] sm:$0xff] %v7623_v37  ;;  %v7630_v31 = vadd.f32 %v7304_v58, %v629_v19  ;;  %v893_v45 = vsel %vm694_vm2, %v7623_v37, 0.0 }
 0x15c   :  { %v6072_v6 = vpop.f32.mrf.mxu0  ;;  %879 = vadd.xlane.f32.xlu1 %v878_v20 }
 0x15d   :  { %10499 = vst [vmem:[#allocation20_spill] sm:$0xff] %v7630_v31  ;;  %v7633_v46 = vadd.f32 %v6072_v6, %v7304_v58  ;;  %v887_v19 = vsel %vm694_vm2, %v7630_v31, 0.0 }
 0x15e   :  { %v632_v38 = vpop.f32.mrf.mxu0  ;;  %894 = vadd.xlane.f32.xlu0 %v893_v45 }
 0x15f   :  { %10500 = vst [vmem:[#allocation21_spill] sm:$0xff] %v7633_v46  ;;  %v7638_v28 = vadd.f32 %v7304_v58, %v632_v38  ;;  %v896_v59 = vsel %vm694_vm2, %v7633_v46, 0.0 }
 0x160   :  { %v6075_v0 = vpop.f32.mrf.mxu0  ;;  %897 = vadd.xlane.f32.xlu1 %v896_v59 }
 0x161   :  { %10501 = vst [vmem:[#allocation22_spill] sm:$0xff] %v7638_v28  ;;  %v7643_v20 = vadd.f32 %v6075_v0, %v7304_v58  ;;  %v890_v37 = vsel %vm694_vm2, %v7638_v28, 0.0 }
 0x162   :  { %v645_v6 = vpop.f32.mrf.mxu0  ;;  %888 = vadd.xlane.f32.xlu0 %v887_v19 }
 0x163   :  { %10502 = vst [vmem:[#allocation23_spill] sm:$0xff] %v7643_v20  ;;  %v7650_v38 = vadd.f32 %v7304_v58, %v645_v6  ;;  %v905_v0 = vsel %vm694_vm2, %v7643_v20, 0.0 }
 0x164   :  { %v6076_v45 = vpop.f32.mrf.mxu0  ;;  %891 = vadd.xlane.f32.xlu1 %v890_v37 }
 0x165   :  { %10503 = vst [vmem:[#allocation24_spill] sm:$0xff] %v7650_v38  ;;  %v7653_v46 = vadd.f32 %v6076_v45, %v7304_v58  ;;  %v703_v59 = vpop.xlane.xlu1 %702 }
 0x166   :  { %v938_v55 = vmul.f32 0.015625, %v703_v59  ;;  %v648_v32 = vpop.f32.mrf.mxu0  ;;  %906 = vadd.xlane.f32.xlu0 %v905_v0  ;;  %v899_v59 = vsel %vm694_vm2, %v7650_v38, 0.0 }
 0x167   :  { %10504 = vst [vmem:[#allocation25_spill] sm:$0xff] %v7653_v46  ;;  %v7658_v19 = vadd.f32 %v7304_v58, %v648_v32  ;;  %v697_v31 = vpop.xlane.xlu0 %696  ;;  %v908_v37 = vsel %vm694_vm2, %v7653_v46, 0.0 }
 0x168   :  { %v6079_v28 = vpop.f32.mrf.mxu0  ;;  %909 = vadd.xlane.f32.xlu1 %v908_v37  ;;  %v7663_v6 = vsub.f32 %v7307_v60, %v938_v55  ;;  %v936_v60 = vmul.f32 0.015625, %v697_v31 }
 0x169   :  { %10505 = vst [vmem:[#allocation26_spill] sm:$0xff] %v7658_v19  ;;  %v7666_v45 = vadd.f32 %v6079_v28, %v7304_v58  ;;  %v706_v5 = vpop.xlane.xlu1 %705  ;;  %v902_v50 = vsel %vm694_vm2, %v7658_v19, 0.0 }
 0x16a   :  { %10506 = vst [vmem:[#allocation27_spill] sm:$0xff] %v7663_v6  ;;  %v939_v0 = vmul.f32 0.015625, %v706_v5  ;;  %v661_v20 = vpop.f32.mrf.mxu0  ;;  %900 = vadd.xlane.f32.xlu0 %v899_v59  ;;  %v1098_v5 = vmul.f32 %v7663_v6, %v7663_v6 }
 0x16b   :  { %10507 = vst [vmem:[#allocation28_spill] sm:$0xff] %v7666_v45  ;;  %v700_v32 = vpop.xlane.xlu0 %699  ;;  %v917_v28 = vsel %vm694_vm2, %v7666_v45, 0.0 }
 0x16c   :  { %v7673_v46 = vsub.f32 %v7315_v1, %v939_v0  ;;  %v6080_v37 = vpop.f32.mrf.mxu0  ;;  %903 = vadd.xlane.f32.xlu1 %v902_v50  ;;  %v937_v38 = vmul.f32 0.015625, %v700_v32  ;;  %v7689_v0 = vsub.f32 %v7310_v62, %v936_v60  ;;  %v1182_v32 = vsel %vm694_vm2, %v1098_v5, 0.0 }
 0x16d   :  { %v7676_v55 = vadd.f32 %v6080_v37, %v7304_v58  ;;  %v7692_v37 = vadd.f32 %v7304_v58, %v661_v20 }
 0x16e   :  { %10508 = vst [vmem:[#allocation29_spill] sm:$0xff] %v7673_v46  ;;  %v664_v59 = vpop.f32.mrf.mxu0  ;;  %918 = vadd.xlane.f32.xlu0 %v917_v28  ;;  %v1099_v50 = vmul.f32 %v7673_v46, %v7673_v46  ;;  %10510 = vst [vmem:[#allocation31_spill] sm:$0xff] %v7689_v0  ;;  %v7696_v28 = vsub.f32 %v7320_v4, %v937_v38  ;;  %v1096_v4 = vmul.f32 %v7689_v0, %v7689_v0 }
 0x16f   :  { %10509 = vst [vmem:[#allocation30_spill] sm:$0xff] %v7676_v55  ;;  %v715_v10 = vpop.xlane.xlu0 %714  ;;  %v920_v1 = vsel %vm694_vm2, %v7676_v55, 0.0  ;;  %v7699_v55 = vadd.f32 %v7304_v58, %v664_v59  ;;  %v911_v60 = vsel %vm694_vm2, %v7692_v37, 0.0 }
 0x170   :  { %921 = vadd.xlane.f32.xlu1 %v920_v1  ;;  %v7686_v31 = vpop.f32.mrf.mxu0  ;;  %v942_v6 = vmul.f32 0.015625, %v715_v10  ;;  %10511 = vst [vmem:[#allocation32_spill] sm:$0xff] %v7696_v28  ;;  %v1185_v19 = vsel %vm694_vm2, %v1099_v50, 0.0  ;;  %v1176_v50 = vsel %vm694_vm2, %v1096_v4, 0.0 }
 0x171   :  { %v718_v45 = vpop.xlane.xlu1 %717  ;;  %10512 = vst [vmem:[#allocation33_spill] sm:$0xff] %v7699_v55  ;;  %v914_v5 = vsel %vm694_vm2, %v7699_v55, 0.0 }
 0x172   :  { %1183 = vadd.xlane.f32.xlu0 %v1182_v32  ;;  %v943_v1 = vmul.f32 0.015625, %v718_v45  ;;  %v677_v62 = vpop.f32.mrf.mxu0  ;;  %v7703_v20 = vsub.f32 %v7325_v7, %v942_v6 }
 0x173   :  { %v709_v46 = vpop.xlane.xlu0 %708 }
 0x174   :  { %1186 = vadd.xlane.f32.xlu1 %v1185_v19  ;;  %10513 = vst [vmem:[#allocation34_spill] sm:$0xff] %v7703_v20  ;;  %v7710_v38 = vsub.f32 %v7333_v12, %v943_v1  ;;  %v1097_v19 = vmul.f32 %v7696_v28, %v7696_v28  ;;  %v7716_v7 = vpop.f32.mrf.mxu0  ;;  %v940_v6 = vmul.f32 0.015625, %v709_v46  ;;  %v1102_v32 = vmul.f32 %v7703_v20, %v7703_v20 }
 0x175   :  { %v712_v10 = vpop.xlane.xlu1 %711  ;;  %v7728_v46 = vadd.f32 %v7304_v58, %v677_v62 }
 0x176   :  { %912 = vadd.xlane.f32.xlu0 %v911_v60  ;;  %10514 = vst [vmem:[#allocation35_spill] sm:$0xff] %v7710_v38  ;;  %v941_v12 = vmul.f32 0.015625, %v712_v10  ;;  %v1179_v60 = vsel %vm694_vm2, %v1097_v19, 0.0  ;;  %v1103_v0 = vmul.f32 %v7710_v38, %v7710_v38  ;;  %v680_v55 = vpop.f32.mrf.mxu0  ;;  %v7725_v28 = vsub.f32 %v7330_v11, %v940_v6 }
 0x177   :  { %v727_v45 = vpop.xlane.xlu0 %726  ;;  %v1194_v20 = vsel %vm694_vm2, %v1102_v32, 0.0  ;;  %v923_v6 = vsel %vm694_vm2, %v7728_v46, 0.0 }
 0x178   :  { %915 = vadd.xlane.f32.xlu1 %v914_v5  ;;  %v946_v4 = vmul.f32 0.015625, %v727_v45  ;;  %v7732_v10 = vsub.f32 %v7338_v15, %v941_v12  ;;  %v1100_v15 = vmul.f32 %v7725_v28, %v7725_v28 }
 0x179   :  { %v730_v59 = vpop.xlane.xlu1 %729 }
 0x17a   :  { %1177 = vadd.xlane.f32.xlu0 %v1176_v50  ;;  %v947_v19 = vmul.f32 0.015625, %v730_v59  ;;  %v7735_v50 = vadd.f32 %v7304_v58, %v680_v55  ;;  %v7739_v11 = vsub.f32 %v7343_v18, %v946_v4  ;;  %v1101_v18 = vmul.f32 %v7732_v10, %v7732_v10 }
 0x17b   :  { %v721_v1 = vpop.xlane.xlu0 %720 }
 0x17c   :  { %1180 = vadd.xlane.f32.xlu1 %v1179_v60  ;;  %v1197_v60 = vsel %vm694_vm2, %v1103_v0, 0.0  ;;  %v944_v62 = vmul.f32 0.015625, %v721_v1  ;;  %v926_v0 = vsel %vm694_vm2, %v7735_v50, 0.0  ;;  %v1188_v1 = vsel %vm694_vm2, %v1100_v15, 0.0 }
 0x17d   :  { %v724_v5 = vpop.xlane.xlu1 %723 }
 0x17e   :  { %1195 = vadd.xlane.f32.xlu0 %v1194_v20  ;;  %v7746_v20 = vsub.f32 %v7353_v24, %v947_v19  ;;  %v945_v58 = vmul.f32 0.015625, %v724_v5  ;;  %v7753_v32 = vsub.f32 %v7350_v23, %v944_v62  ;;  %v1106_v24 = vmul.f32 %v7739_v11, %v7739_v11 }
 0x17f   :  { %v739_v38 = vpop.xlane.xlu0 %738 }
 0x180   :  { %1198 = vadd.xlane.f32.xlu1 %v1197_v60  ;;  %v950_v59 = vmul.f32 0.015625, %v739_v38  ;;  %v7759_v5 = vsub.f32 %v7358_v27, %v945_v58  ;;  %v1191_v60 = vsel %vm694_vm2, %v1101_v18, 0.0  ;;  %v1107_v38 = vmul.f32 %v7746_v20, %v7746_v20 }
 0x181   :  { %v742_v45 = vpop.xlane.xlu1 %741  ;;  %v1206_v15 = vsel %vm694_vm2, %v1106_v24, 0.0 }
 0x182   :  { %924 = vadd.xlane.f32.xlu0 %v923_v6  ;;  %v951_v4 = vmul.f32 0.015625, %v742_v45  ;;  %v7765_v23 = vsub.f32 %v7363_v30, %v950_v59  ;;  %v1104_v45 = vmul.f32 %v7753_v32, %v7753_v32  ;;  %v1209_v18 = vsel %vm694_vm2, %v1107_v38, 0.0 }
 0x183   :  { %v733_v55 = vpop.xlane.xlu0 %732  ;;  %v1105_v30 = vmul.f32 %v7759_v5, %v7759_v5 }
 0x184   :  { %927 = vadd.xlane.f32.xlu1 %v926_v0  ;;  %v948_v62 = vmul.f32 0.015625, %v733_v55  ;;  %v7771_v27 = vsub.f32 %v7373_v36, %v951_v4  ;;  %v1110_v55 = vmul.f32 %v7765_v23, %v7765_v23  ;;  %v1200_v36 = vsel %vm694_vm2, %v1104_v45, 0.0 }
 0x185   :  { %v736_v12 = vpop.xlane.xlu1 %735 }
 0x186   :  { %1189 = vadd.xlane.f32.xlu0 %v1188_v1  ;;  %v949_v58 = vmul.f32 0.015625, %v736_v12  ;;  %v7779_v59 = vsub.f32 %v7370_v35, %v948_v62  ;;  %v1111_v12 = vmul.f32 %v7771_v27, %v7771_v27 }
 0x187   :  { %v751_v19 = vpop.xlane.xlu0 %750 }
 0x188   :  { %1192 = vadd.xlane.f32.xlu1 %v1191_v60  ;;  %v954_v1 = vmul.f32 0.015625, %v751_v19  ;;  %v7785_v4 = vsub.f32 %v7378_v39, %v949_v58  ;;  %v1108_v45 = vmul.f32 %v7779_v59, %v7779_v59  ;;  %v6423_v39 = vld [vmem:[%s10515_s5 + $0x18] sm:$0xff]  }
 0x189   :  { %v754_v6 = vpop.xlane.xlu1 %753  ;;  %6085 = vmatprep.subr.bf16.mxu1 %v6423_v39 }
 0x18a   :  { %1207 = vadd.xlane.f32.xlu0 %v1206_v15  ;;  %v955_v60 = vmul.f32 0.015625, %v754_v6  ;;  %v1203_v15 = vsel %vm694_vm2, %v1105_v30, 0.0  ;;  %v7790_v35 = vsub.f32 %v7383_v42, %v954_v1  ;;  %v1221_v6 = vsel %vm694_vm2, %v1111_v12, 0.0  ;;  %6086 = vmatpush3.bf16.msra.mxu1 %v6423_v39 }
 0x18b   :  { %v745_v0 = vpop.xlane.xlu0 %744  ;;  %v1109_v42 = vmul.f32 %v7785_v4, %v7785_v4 }
 0x18c   :  { %1210 = vadd.xlane.f32.xlu1 %v1209_v18  ;;  %v1218_v18 = vsel %vm694_vm2, %v1110_v55, 0.0  ;;  %v952_v19 = vmul.f32 0.015625, %v745_v0  ;;  %v7799_v30 = vsub.f32 %v7393_v48, %v955_v60  ;;  %v1114_v12 = vmul.f32 %v7790_v35, %v7790_v35  ;;  %v6424_v48 = vld [vmem:[%s10515_s5 + $0x10] sm:$0xff]  }
 0x18d   :  { %v748_v24 = vpop.xlane.xlu1 %747  ;;  %6087 = vmatprep.subr.bf16.mxu1 %v6424_v48 }
 0x18e   :  { %1201 = vadd.xlane.f32.xlu0 %v1200_v36  ;;  %v953_v58 = vmul.f32 0.015625, %v748_v24  ;;  %v7804_v0 = vsub.f32 %v7390_v47, %v952_v19  ;;  %v1212_v24 = vsel %vm694_vm2, %v1108_v45, 0.0  ;;  %v1215_v47 = vsel %vm694_vm2, %v1109_v42, 0.0  ;;  %6088 = vmatpush3.bf16.msra.mxu1 %v6424_v48 }
 0x18f   :  { %v763_v38 = vpop.xlane.xlu0 %762 }
 0x190   :  { %1204 = vadd.xlane.f32.xlu1 %v1203_v15  ;;  %v958_v1 = vmul.f32 0.015625, %v763_v38  ;;  %v7813_v60 = vsub.f32 %v7398_v51, %v953_v58  ;;  %v1115_v38 = vmul.f32 %v7799_v30, %v7799_v30  ;;  %v1112_v51 = vmul.f32 %v7804_v0, %v7804_v0 }
 0x191   :  { %v766_v62 = vpop.xlane.xlu1 %765 }
 0x192   :  { %1219 = vadd.xlane.f32.xlu0 %v1218_v18  ;;  %v959_v15 = vmul.f32 0.015625, %v766_v62  ;;  %v7819_v19 = vsub.f32 %v7403_v54, %v958_v1  ;;  %v6425_v62 = vld [vmem:[%s10515_s5 + $0x8] sm:$0xff]   ;;  %v1233_v54 = vsel %vm694_vm2, %v1115_v38, 0.0 }
 0x193   :  { %v757_v55 = vpop.xlane.xlu0 %756  ;;  %6089 = vmatprep.subr.bf16.mxu1 %v6425_v62 }
 0x194   :  { %1222 = vadd.xlane.f32.xlu1 %v1221_v6  ;;  %v956_v45 = vmul.f32 0.015625, %v757_v55  ;;  %v1230_v6 = vsel %vm694_vm2, %v1114_v12, 0.0  ;;  %v7828_v58 = vsub.f32 %v7413_v63, %v959_v15  ;;  %v1113_v55 = vmul.f32 %v7813_v60, %v7813_v60  ;;  %6090 = vmatpush3.bf16.msra.mxu1 %v6425_v62 }
 0x195   :  { %v760_v36 = vpop.xlane.xlu1 %759  ;;  %v1118_v63 = vmul.f32 %v7819_v19, %v7819_v19 }
 0x196   :  { %1213 = vadd.xlane.f32.xlu0 %v1212_v24  ;;  %v957_v42 = vmul.f32 0.015625, %v760_v36  ;;  %v7834_v1 = vsub.f32 %v7410_v61, %v956_v45  ;;  %v6426_v36 = vld [vmem:[%s10515_s5] sm:$0xff]   ;;  %v1227_v61 = vsel %vm694_vm2, %v1113_v55, 0.0 }
 0x197   :  { %v775_v18 = vpop.xlane.xlu0 %774  ;;  %6091 = vmatprep.subr.bf16.mxu1 %v6426_v36 }
 0x198   :  { %1216 = vadd.xlane.f32.xlu1 %v1215_v47  ;;  %v962_v12 = vmul.f32 0.015625, %v775_v18  ;;  %v1224_v47 = vsel %vm694_vm2, %v1112_v51, 0.0  ;;  %v7843_v15 = vsub.f32 %v7418_v3, %v957_v42  ;;  %v1119_v18 = vmul.f32 %v7828_v58, %v7828_v58  ;;  %6092 = vmatpush3.bf16.msra.mxu1 %v6426_v36 }
 0x199   :  { %v778_v39 = vpop.xlane.xlu1 %777  ;;  %v1116_v3 = vmul.f32 %v7834_v1, %v7834_v1 }
 0x19a   :  { %1231 = vadd.xlane.f32.xlu0 %v1230_v6  ;;  %v963_v38 = vmul.f32 0.015625, %v778_v39  ;;  %v7849_v45 = vsub.f32 %v7423_v8, %v962_v12  ;;  %v1117_v36 = vmul.f32 %v7843_v15, %v7843_v15 }
 0x19b   :  { %v769_v24 = vpop.xlane.xlu0 %768 }
 0x19c   :  { %1234 = vadd.xlane.f32.xlu1 %v1233_v54  ;;  %v960_v51 = vmul.f32 0.015625, %v769_v24  ;;  %v1242_v54 = vsel %vm694_vm2, %v1118_v63, 0.0  ;;  %v7855_v39 = vsub.f32 %v7433_v17, %v963_v38  ;;  %v1236_v63 = vsel %vm694_vm2, %v1116_v3, 0.0 }
 0x19d   :  { %v772_v48 = vpop.xlane.xlu1 %771 }
 0x19e   :  { %1225 = vadd.xlane.f32.xlu0 %v1224_v47  ;;  %v961_v42 = vmul.f32 0.015625, %v772_v48  ;;  %v1245_v47 = vsel %vm694_vm2, %v1119_v18, 0.0  ;;  %v7861_v8 = vsub.f32 %v7430_v16, %v960_v51  ;;  %v1239_v18 = vsel %vm694_vm2, %v1117_v36, 0.0 }
 0x19f   :  { %v787_v6 = vpop.xlane.xlu0 %786 }
 0x1a0   :  { %1228 = vadd.xlane.f32.xlu1 %v1227_v61  ;;  %v966_v24 = vmul.f32 0.015625, %v787_v6  ;;  %v1122_v61 = vmul.f32 %v7849_v45, %v7849_v45  ;;  %v7867_v17 = vsub.f32 %v7438_v21, %v961_v42 }
 0x1a1   :  { %v790_v62 = vpop.xlane.xlu1 %789 }
 0x1a2   :  { %1243 = vadd.xlane.f32.xlu0 %v1242_v54  ;;  %v967_v48 = vmul.f32 0.015625, %v790_v62  ;;  %v1123_v54 = vmul.f32 %v7855_v39, %v7855_v39  ;;  %v7873_v16 = vsub.f32 %v7443_v26, %v966_v24  ;;  %v1254_v3 = vsel %vm694_vm2, %v1122_v61, 0.0 }
 0x1a3   :  { %v781_v55 = vpop.xlane.xlu0 %780 }
 0x1a4   :  { %1246 = vadd.xlane.f32.xlu1 %v1245_v47  ;;  %v964_v6 = vmul.f32 0.015625, %v781_v55  ;;  %v1120_v47 = vmul.f32 %v7861_v8, %v7861_v8  ;;  %v7879_v21 = vsub.f32 %v7453_v34, %v967_v48  ;;  %v1257_v36 = vsel %vm694_vm2, %v1123_v54, 0.0 }
 0x1a5   :  { %v784_v12 = vpop.xlane.xlu1 %783 }
 0x1a6   :  { %1237 = vadd.xlane.f32.xlu0 %v1236_v63  ;;  %v965_v62 = vmul.f32 0.015625, %v784_v12  ;;  %v1121_v63 = vmul.f32 %v7867_v17, %v7867_v17  ;;  %v7885_v26 = vsub.f32 %v7450_v33, %v964_v6  ;;  %v1248_v61 = vsel %vm694_vm2, %v1120_v47, 0.0 }
 0x1a7   :  { %v799_v38 = vpop.xlane.xlu0 %798 }
 0x1a8   :  { %1240 = vadd.xlane.f32.xlu1 %v1239_v18  ;;  %v970_v55 = vmul.f32 0.015625, %v799_v38  ;;  %v1126_v18 = vmul.f32 %v7873_v16, %v7873_v16  ;;  %v7891_v34 = vsub.f32 %v7458_v40, %v965_v62  ;;  %v1251_v54 = vsel %vm694_vm2, %v1121_v63, 0.0 }
 0x1a9   :  { %v802_v51 = vpop.xlane.xlu1 %801 }
 0x1aa   :  { %1255 = vadd.xlane.f32.xlu0 %v1254_v3  ;;  %v971_v12 = vmul.f32 0.015625, %v802_v51  ;;  %v1127_v3 = vmul.f32 %v7879_v21, %v7879_v21  ;;  %v7897_v33 = vsub.f32 %v7463_v44, %v970_v55  ;;  %v1266_v47 = vsel %vm694_vm2, %v1126_v18, 0.0 }
 0x1ab   :  { %v793_v42 = vpop.xlane.xlu0 %792 }
 0x1ac   :  { %1258 = vadd.xlane.f32.xlu1 %v1257_v36  ;;  %v968_v38 = vmul.f32 0.015625, %v793_v42  ;;  %v1124_v36 = vmul.f32 %v7885_v26, %v7885_v26  ;;  %v7903_v40 = vsub.f32 %v7473_v53, %v971_v12  ;;  %v1269_v63 = vsel %vm694_vm2, %v1127_v3, 0.0 }
 0x1ad   :  { %v796_v24 = vpop.xlane.xlu1 %795 }
 0x1ae   :  { %1249 = vadd.xlane.f32.xlu0 %v1248_v61  ;;  %v969_v51 = vmul.f32 0.015625, %v796_v24  ;;  %v1125_v61 = vmul.f32 %v7891_v34, %v7891_v34  ;;  %v7909_v44 = vsub.f32 %v7470_v52, %v968_v38  ;;  %v1260_v18 = vsel %vm694_vm2, %v1124_v36, 0.0 }
 0x1af   :  { %v811_v48 = vpop.xlane.xlu0 %810 }
 0x1b0   :  { %1252 = vadd.xlane.f32.xlu1 %v1251_v54  ;;  %v974_v42 = vmul.f32 0.015625, %v811_v48  ;;  %v1130_v54 = vmul.f32 %v7897_v33, %v7897_v33  ;;  %v7915_v53 = vsub.f32 %v7478_v57, %v969_v51  ;;  %v1263_v3 = vsel %vm694_vm2, %v1125_v61, 0.0 }
 0x1b1   :  { %v814_v6 = vpop.xlane.xlu1 %813 }
 0x1b2   :  { %1267 = vadd.xlane.f32.xlu0 %v1266_v47  ;;  %v975_v24 = vmul.f32 0.015625, %v814_v6  ;;  %v1131_v47 = vmul.f32 %v7903_v40, %v7903_v40  ;;  %v7921_v52 = vsub.f32 %v7483_v2, %v974_v42  ;;  %v1278_v36 = vsel %vm694_vm2, %v1130_v54, 0.0 }
 0x1b3   :  { %v805_v62 = vpop.xlane.xlu0 %804 }
 0x1b4   :  { %1270 = vadd.xlane.f32.xlu1 %v1269_v63  ;;  %v972_v48 = vmul.f32 0.015625, %v805_v62  ;;  %v1128_v63 = vmul.f32 %v7909_v44, %v7909_v44  ;;  %v7927_v57 = vsub.f32 %v7493_v14, %v975_v24  ;;  %v1281_v61 = vsel %vm694_vm2, %v1131_v47, 0.0 }
 0x1b5   :  { %v808_v55 = vpop.xlane.xlu1 %807  ;;  %v1134_v54 = vmul.f32 %v7921_v52, %v7921_v52 }
 0x1b6   :  { %1261 = vadd.xlane.f32.xlu0 %v1260_v18  ;;  %v973_v6 = vmul.f32 0.015625, %v808_v55  ;;  %v1129_v18 = vmul.f32 %v7915_v53, %v7915_v53  ;;  %v7933_v2 = vsub.f32 %v7490_v13, %v972_v48  ;;  %v1272_v42 = vsel %vm694_vm2, %v1128_v63, 0.0 }
 0x1b7   :  { %v823_v12 = vpop.xlane.xlu0 %822  ;;  %v1290_v48 = vsel %vm694_vm2, %v1134_v54, 0.0 }
 0x1b8   :  { %1264 = vadd.xlane.f32.xlu1 %v1263_v3  ;;  %10516 = vst [vmem:[#allocation36_spill] sm:$0xff] %v7933_v2  ;;  %v7939_v14 = vsub.f32 %v7498_v22, %v973_v6  ;;  %v1275_v24 = vsel %vm694_vm2, %v1129_v18, 0.0  ;;  %v1135_v3 = vmul.f32 %v7927_v57, %v7927_v57  ;;  %v6865_v18 = vld [vmem:[%s10480_s11] ss:$0 sm:$0xff] }
 0x1b9   :  { %v826_v38 = vpop.xlane.xlu1 %825 }
 0x1ba   :  { %1279 = vadd.xlane.f32.xlu0 %v1278_v36  ;;  %10517 = vst [vmem:[#allocation37_spill] sm:$0xff] %v7939_v14  ;;  %v1132_v36 = vmul.f32 %v7933_v2, %v7933_v2  ;;  %v1293_v22 = vsel %vm694_vm2, %v1135_v3, 0.0  ;;  %v1133_v6 = vmul.f32 %v7939_v14, %v7939_v14  ;;  %v7961_v3 = vadd.f32 %v6865_v18, %v7716_v7 }
 0x1bb   :  { %v817_v51 = vpop.xlane.xlu0 %816 }
 0x1bc   :  { %1282 = vadd.xlane.f32.xlu1 %v1281_v61  ;;  %v976_v47 = vmul.f32 0.015625, %v817_v51  ;;  %v7954_v51 = vadd.f32 %v6865_v18, %v7686_v31  ;;  %v1287_v2 = vsel %vm694_vm2, %v1133_v6, 0.0 }
 0x1bd   :  { %v820_v62 = vpop.xlane.xlu1 %819 }
 0x1be   :  { %1273 = vadd.xlane.f32.xlu0 %v1272_v42  ;;  %v977_v63 = vmul.f32 0.015625, %v820_v62  ;;  %v978_v42 = vmul.f32 0.015625, %v823_v12  ;;  %v7957_v54 = vsub.f32 %v7510_v41, %v976_v47  ;;  %v1284_v62 = vsel %vm694_vm2, %v1132_v36, 0.0 }
 0x1bf   :  { %v835_v55 = vpop.xlane.xlu0 %834  ;;  %v929_v47 = vsel %vm694_vm2, %v7954_v51, 0.0 }
 0x1c0   :  { %1276 = vadd.xlane.f32.xlu1 %v1275_v24  ;;  %v7968_v31 = vsub.f32 %v7503_v29, %v978_v42  ;;  %v1136_v7 = vmul.f32 %v7957_v54, %v7957_v54 }
 0x1c1   :  { %v838_v13 = vpop.xlane.xlu1 %837 }
 0x1c2   :  { %1291 = vadd.xlane.f32.xlu0 %v1290_v48  ;;  %v979_v48 = vmul.f32 0.015625, %v826_v38  ;;  %10518 = vst [vmem:[#allocation38_spill] sm:$0xff] %v7968_v31  ;;  %v1296_v18 = vsel %vm694_vm2, %v1136_v7, 0.0  ;;  %v983_v42 = vmul.f32 0.015625, %v838_v13 }
 0x1c3   :  { %v829_v61 = vpop.xlane.xlu0 %828 }
 0x1c4   :  { %1294 = vadd.xlane.f32.xlu1 %v1293_v22  ;;  %v7964_v22 = vsub.f32 %v7518_v49, %v977_v63  ;;  %v980_v41 = vmul.f32 0.015625, %v829_v61  ;;  %v7975_v38 = vsub.f32 %v7513_v43, %v979_v48  ;;  %v982_v63 = vmul.f32 0.015625, %v835_v55 }
 0x1c5   :  { %v832_v24 = vpop.xlane.xlu1 %831  ;;  %v1138_v43 = vmul.f32 %v7968_v31, %v7968_v31 }
 0x1c6   :  { %1285 = vadd.xlane.f32.xlu0 %v1284_v62  ;;  %10519 = vst [vmem:[#allocation39_spill] sm:$0xff] %v7975_v38  ;;  %v981_v49 = vmul.f32 0.015625, %v832_v24  ;;  %v1137_v29 = vmul.f32 %v7964_v22, %v7964_v22  ;;  %v7982_v61 = vsub.f32 %v7530_v9, %v980_v41  ;;  %v1139_v55 = vmul.f32 %v7975_v38, %v7975_v38 }
 0x1c7   :  { %v847_v14 = vpop.xlane.xlu0 %846  ;;  %v7994_v9 = vsub.f32 %v7523_v56, %v982_v63  ;;  %v1302_v7 = vsel %vm694_vm2, %v1138_v43, 0.0 }
 0x1c8   :  { %1288 = vadd.xlane.f32.xlu1 %v1287_v2  ;;  %v932_v2 = vsel %vm694_vm2, %v7961_v3, 0.0  ;;  %10520 = vst [vmem:[#allocation40_spill] sm:$0xff] %v7982_v61  ;;  %v7988_v24 = vsub.f32 %v7538_v25, %v981_v49  ;;  %v1299_v48 = vsel %vm694_vm2, %v1137_v29, 0.0  ;;  %v1140_v13 = vmul.f32 %v7982_v61, %v7982_v61  ;;  %v10523_v25 = vld [vmem:[#allocation2_spill] sm:$0xff] }
 0x1c9   :  { %v850_v12 = vpop.xlane.xlu1 %849  ;;  %10522 = vst [vmem:[#allocation42_spill] sm:$0xff] %v7994_v9  ;;  %v8000_v49 = vsub.f32 %v10523_v25, %v983_v42  ;;  %v986_v56 = vmul.f32 0.015625, %v847_v14 }
 0x1ca   :  { %930 = vadd.xlane.f32.xlu0 %v929_v47  ;;  %10521 = vst [vmem:[#allocation41_spill] sm:$0xff] %v7988_v24  ;;  %v1308_v38 = vsel %vm694_vm2, %v1140_v13, 0.0  ;;  %v987_v42 = vmul.f32 0.015625, %v850_v12 }
 0x1cb   :  { %v841_v36 = vpop.xlane.xlu0 %840  ;;  %10524 = vst [vmem:[#allocation2_spill] sm:$0xff] %v8000_v49  ;;  %v1143_v14 = vmul.f32 %v8000_v49, %v8000_v49 }
 0x1cc   :  { %933 = vadd.xlane.f32.xlu1 %v932_v2  ;;  %v984_v41 = vmul.f32 0.015625, %v841_v36  ;;  %v10525_v36 = vld [vmem:[#allocation4_spill] sm:$0xff] }
 0x1cd   :  { %v844_v6 = vpop.xlane.xlu1 %843 }
 0x1ce   :  { %1297 = vadd.xlane.f32.xlu0 %v1296_v18  ;;  %v985_v2 = vmul.f32 0.015625, %v844_v6  ;;  %v1305_v18 = vsel %vm694_vm2, %v1139_v55, 0.0  ;;  %v8006_v63 = vsub.f32 %v10525_v36, %v984_v41  ;;  %v10527_v6 = vld [vmem:[#allocation6_spill] sm:$0xff]  ;;  %v10529_v41 = vld [vmem:[#allocation3_spill] sm:$0xff] }
 0x1cf   :  { %v859_v62 = vpop.xlane.xlu0 %858 }
 0x1d0   :  { %1300 = vadd.xlane.f32.xlu1 %v1299_v48  ;;  %v1141_v48 = vmul.f32 %v7988_v24, %v7988_v24  ;;  %10526 = vst [vmem:[#allocation4_spill] sm:$0xff] %v8006_v63  ;;  %v8012_v25 = vsub.f32 %v10527_v6, %v985_v2  ;;  %v1144_v12 = vmul.f32 %v8006_v63, %v8006_v63 }
 0x1d1   :  { %v862_v47 = vpop.xlane.xlu1 %861 }
 0x1d2   :  { %1303 = vadd.xlane.f32.xlu0 %v1302_v7  ;;  %v1142_v7 = vmul.f32 %v7994_v9, %v7994_v9  ;;  %10528 = vst [vmem:[#allocation6_spill] sm:$0xff] %v8012_v25  ;;  %v1311_v61 = vsel %vm694_vm2, %v1141_v48, 0.0  ;;  %v1317_v9 = vsel %vm694_vm2, %v1143_v14, 0.0  ;;  %v1320_v49 = vsel %vm694_vm2, %v1144_v12, 0.0 }
 0x1d3   :  { %v853_v29 = vpop.xlane.xlu0 %852 }
 0x1d4   :  { %1306 = vadd.xlane.f32.xlu1 %v1305_v18  ;;  %v8018_v18 = vsub.f32 %v10529_v41, %v986_v56  ;;  %v988_v36 = vmul.f32 0.015625, %v853_v29  ;;  %v1314_v24 = vsel %vm694_vm2, %v1142_v7, 0.0  ;;  %v990_v56 = vmul.f32 0.015625, %v859_v62  ;;  %v10533_v29 = vld [vmem:[#allocation8_spill] sm:$0xff] }
 0x1d5   :  { %v856_v43 = vpop.xlane.xlu1 %855 }
 0x1d6   :  { %1309 = vadd.xlane.f32.xlu0 %v1308_v38  ;;  %10530 = vst [vmem:[#allocation3_spill] sm:$0xff] %v8018_v18  ;;  %v10531_v38 = vld [vmem:[#allocation5_spill] sm:$0xff]  ;;  %v989_v6 = vmul.f32 0.015625, %v856_v43  ;;  %v8030_v41 = vsub.f32 %v10533_v29, %v988_v36  ;;  %v10535_v43 = vld [vmem:[#allocation10_spill] sm:$0xff] }
 0x1d7   :  { %v871_v55 = vpop.xlane.xlu0 %870  ;;  %v8024_v2 = vsub.f32 %v10531_v38, %v987_v42  ;;  %v991_v42 = vmul.f32 0.015625, %v862_v47 }
 0x1d8   :  { %1312 = vadd.xlane.f32.xlu1 %v1311_v61  ;;  %v1145_v61 = vmul.f32 %v8012_v25, %v8012_v25  ;;  %10534 = vst [vmem:[#allocation8_spill] sm:$0xff] %v8030_v41  ;;  %v8036_v38 = vsub.f32 %v10535_v43, %v989_v6  ;;  %v1148_v47 = vmul.f32 %v8030_v41, %v8030_v41 }
 0x1d9   :  { %v874_v13 = vpop.xlane.xlu1 %873  ;;  %10532 = vst [vmem:[#allocation5_spill] sm:$0xff] %v8024_v2  ;;  %v1147_v62 = vmul.f32 %v8024_v2, %v8024_v2 }
 0x1da   :  { %1315 = vadd.xlane.f32.xlu0 %v1314_v24  ;;  %v1146_v24 = vmul.f32 %v8018_v18, %v8018_v18  ;;  %10536 = vst [vmem:[#allocation10_spill] sm:$0xff] %v8036_v38  ;;  %v1323_v63 = vsel %vm694_vm2, %v1145_v61, 0.0  ;;  %v1332_v2 = vsel %vm694_vm2, %v1148_v47, 0.0 }
 0x1db   :  { %v865_v48 = vpop.xlane.xlu0 %864  ;;  %v1329_v18 = vsel %vm694_vm2, %v1147_v62, 0.0 }
 0x1dc   :  { %1318 = vadd.xlane.f32.xlu1 %v1317_v9  ;;  %v10537_v9 = vld [vmem:[#allocation7_spill] sm:$0xff]  ;;  %v992_v29 = vmul.f32 0.015625, %v865_v48  ;;  %v1326_v25 = vsel %vm694_vm2, %v1146_v24, 0.0  ;;  %v10541_v48 = vld [vmem:[#allocation12_spill] sm:$0xff] }
 0x1dd   :  { %v868_v7 = vpop.xlane.xlu1 %867  ;;  %v8042_v36 = vsub.f32 %v10537_v9, %v990_v56  ;;  %v994_v56 = vmul.f32 0.015625, %v871_v55 }
 0x1de   :  { %1321 = vadd.xlane.f32.xlu0 %v1320_v49  ;;  %v10539_v49 = vld [vmem:[#allocation9_spill] sm:$0xff]  ;;  %v993_v43 = vmul.f32 0.015625, %v868_v7  ;;  %v8054_v9 = vsub.f32 %v10541_v48, %v992_v29  ;;  %v10543_v7 = vld [vmem:[#allocation14_spill] sm:$0xff] }
 0x1df   :  { %v883_v14 = vpop.xlane.xlu0 %882  ;;  %10538 = vst [vmem:[#allocation7_spill] sm:$0xff] %v8042_v36  ;;  %v8048_v6 = vsub.f32 %v10539_v49, %v991_v42  ;;  %v995_v42 = vmul.f32 0.015625, %v874_v13 }
 0x1e0   :  { %1324 = vadd.xlane.f32.xlu1 %v1323_v63  ;;  %v1149_v63 = vmul.f32 %v8036_v38, %v8036_v38  ;;  %10542 = vst [vmem:[#allocation12_spill] sm:$0xff] %v8054_v9  ;;  %v8060_v49 = vsub.f32 %v10543_v7, %v993_v43  ;;  %v1152_v13 = vmul.f32 %v8054_v9, %v8054_v9 }
 0x1e1   :  { %v886_v12 = vpop.xlane.xlu1 %885  ;;  %10540 = vst [vmem:[#allocation9_spill] sm:$0xff] %v8048_v6  ;;  %v1151_v55 = vmul.f32 %v8048_v6, %v8048_v6 }
 0x1e2   :  { %1327 = vadd.xlane.f32.xlu0 %v1326_v25  ;;  %v1150_v25 = vmul.f32 %v8042_v36, %v8042_v36  ;;  %10544 = vst [vmem:[#allocation14_spill] sm:$0xff] %v8060_v49  ;;  %v1335_v41 = vsel %vm694_vm2, %v1149_v63, 0.0  ;;  %v1344_v6 = vsel %vm694_vm2, %v1152_v13, 0.0 }
 0x1e3   :  { %v877_v61 = vpop.xlane.xlu0 %876  ;;  %v1341_v36 = vsel %vm694_vm2, %v1151_v55, 0.0 }
 0x1e4   :  { %1330 = vadd.xlane.f32.xlu1 %v1329_v18  ;;  %v10545_v18 = vld [vmem:[#allocation11_spill] sm:$0xff]  ;;  %v996_v48 = vmul.f32 0.015625, %v877_v61  ;;  %v1338_v38 = vsel %vm694_vm2, %v1150_v25, 0.0  ;;  %v10549_v61 = vld [vmem:[#allocation16_spill] sm:$0xff] }
 0x1e5   :  { %v880_v24 = vpop.xlane.xlu1 %879  ;;  %v8066_v29 = vsub.f32 %v10545_v18, %v994_v56  ;;  %v998_v56 = vmul.f32 0.015625, %v883_v14 }
 0x1e6   :  { %1333 = vadd.xlane.f32.xlu0 %v1332_v2  ;;  %v10547_v2 = vld [vmem:[#allocation13_spill] sm:$0xff]  ;;  %v997_v7 = vmul.f32 0.015625, %v880_v24  ;;  %v8078_v18 = vsub.f32 %v10549_v61, %v996_v48  ;;  %v10551_v24 = vld [vmem:[#allocation18_spill] sm:$0xff] }
 0x1e7   :  { %v895_v62 = vpop.xlane.xlu0 %894  ;;  %10546 = vst [vmem:[#allocation11_spill] sm:$0xff] %v8066_v29  ;;  %v8072_v43 = vsub.f32 %v10547_v2, %v995_v42  ;;  %v999_v42 = vmul.f32 0.015625, %v886_v12 }
 0x1e8   :  { %1336 = vadd.xlane.f32.xlu1 %v1335_v41  ;;  %v1153_v41 = vmul.f32 %v8060_v49, %v8060_v49  ;;  %10550 = vst [vmem:[#allocation16_spill] sm:$0xff] %v8078_v18  ;;  %v8084_v2 = vsub.f32 %v10551_v24, %v997_v7  ;;  %v1156_v12 = vmul.f32 %v8078_v18, %v8078_v18 }
 0x1e9   :  { %v898_v47 = vpop.xlane.xlu1 %897  ;;  %10548 = vst [vmem:[#allocation13_spill] sm:$0xff] %v8072_v43  ;;  %v1155_v14 = vmul.f32 %v8072_v43, %v8072_v43 }
 0x1ea   :  { %1339 = vadd.xlane.f32.xlu0 %v1338_v38  ;;  %v1154_v38 = vmul.f32 %v8066_v29, %v8066_v29  ;;  %10552 = vst [vmem:[#allocation18_spill] sm:$0xff] %v8084_v2  ;;  %v1347_v9 = vsel %vm694_vm2, %v1153_v41, 0.0  ;;  %v1356_v43 = vsel %vm694_vm2, %v1156_v12, 0.0 }
 0x1eb   :  { %v889_v63 = vpop.xlane.xlu0 %888  ;;  %v1353_v29 = vsel %vm694_vm2, %v1155_v14, 0.0 }
 0x1ec   :  { %1342 = vadd.xlane.f32.xlu1 %v1341_v36  ;;  %v10553_v36 = vld [vmem:[#allocation15_spill] sm:$0xff]  ;;  %v1000_v61 = vmul.f32 0.015625, %v889_v63  ;;  %v1350_v49 = vsel %vm694_vm2, %v1154_v38, 0.0  ;;  %v10557_v63 = vld [vmem:[#allocation20_spill] sm:$0xff] }
 0x1ed   :  { %v892_v25 = vpop.xlane.xlu1 %891  ;;  %v8090_v48 = vsub.f32 %v10553_v36, %v998_v56  ;;  %v1002_v56 = vmul.f32 0.015625, %v895_v62 }
 0x1ee   :  { %1345 = vadd.xlane.f32.xlu0 %v1344_v6  ;;  %v10555_v6 = vld [vmem:[#allocation17_spill] sm:$0xff]  ;;  %v1001_v24 = vmul.f32 0.015625, %v892_v25  ;;  %v8102_v36 = vsub.f32 %v10557_v63, %v1000_v61  ;;  %v10559_v25 = vld [vmem:[#allocation22_spill] sm:$0xff] }
 0x1ef   :  { %v907_v55 = vpop.xlane.xlu0 %906  ;;  %10554 = vst [vmem:[#allocation15_spill] sm:$0xff] %v8090_v48  ;;  %v8096_v7 = vsub.f32 %v10555_v6, %v999_v42  ;;  %v1003_v42 = vmul.f32 0.015625, %v898_v47 }
 0x1f0   :  { %1348 = vadd.xlane.f32.xlu1 %v1347_v9  ;;  %v1157_v9 = vmul.f32 %v8084_v2, %v8084_v2  ;;  %10558 = vst [vmem:[#allocation20_spill] sm:$0xff] %v8102_v36  ;;  %v8108_v6 = vsub.f32 %v10559_v25, %v1001_v24  ;;  %v1160_v47 = vmul.f32 %v8102_v36, %v8102_v36 }
 0x1f1   :  { %v910_v13 = vpop.xlane.xlu1 %909  ;;  %10556 = vst [vmem:[#allocation17_spill] sm:$0xff] %v8096_v7  ;;  %v1159_v62 = vmul.f32 %v8096_v7, %v8096_v7 }
 0x1f2   :  { %1351 = vadd.xlane.f32.xlu0 %v1350_v49  ;;  %v1158_v49 = vmul.f32 %v8090_v48, %v8090_v48  ;;  %10560 = vst [vmem:[#allocation22_spill] sm:$0xff] %v8108_v6  ;;  %v1359_v18 = vsel %vm694_vm2, %v1157_v9, 0.0  ;;  %v1368_v36 = vsel %vm694_vm2, %v1160_v47, 0.0 }
 0x1f3   :  { %v901_v41 = vpop.xlane.xlu0 %900  ;;  %v1365_v48 = vsel %vm694_vm2, %v1159_v62, 0.0  ;;  %v1007_v62 = vmul.f32 0.015625, %v910_v13 }
 0x1f4   :  { %1354 = vadd.xlane.f32.xlu1 %v1353_v29  ;;  %v10561_v29 = vld [vmem:[#allocation19_spill] sm:$0xff]  ;;  %v1004_v63 = vmul.f32 0.015625, %v901_v41  ;;  %v1362_v2 = vsel %vm694_vm2, %v1158_v49, 0.0  ;;  %v1006_v41 = vmul.f32 0.015625, %v907_v55 }
 0x1f5   :  { %v904_v38 = vpop.xlane.xlu1 %903  ;;  %v8114_v61 = vsub.f32 %v10561_v29, %v1002_v56  ;;  %v10565_v29 = vld [vmem:[#allocation24_spill] sm:$0xff] }
 0x1f6   :  { %1357 = vadd.xlane.f32.xlu0 %v1356_v43  ;;  %v10563_v43 = vld [vmem:[#allocation21_spill] sm:$0xff]  ;;  %v1005_v25 = vmul.f32 0.015625, %v904_v38  ;;  %v8126_v7 = vsub.f32 %v10565_v29, %v1004_v63  ;;  %v10569_v29 = vld [vmem:[#allocation23_spill] sm:$0xff] }
 0x1f7   :  { %v919_v14 = vpop.xlane.xlu0 %918  ;;  %10562 = vst [vmem:[#allocation19_spill] sm:$0xff] %v8114_v61  ;;  %v8120_v24 = vsub.f32 %v10563_v43, %v1003_v42  ;;  %v1162_v42 = vmul.f32 %v8114_v61, %v8114_v61  ;;  %v10567_v43 = vld [vmem:[#allocation26_spill] sm:$0xff]  ;;  %v8138_v47 = vsub.f32 %v10569_v29, %v1006_v41 }
 0x1f8   :  { %1360 = vadd.xlane.f32.xlu1 %v1359_v18  ;;  %v1161_v18 = vmul.f32 %v8108_v6, %v8108_v6  ;;  %10566 = vst [vmem:[#allocation24_spill] sm:$0xff] %v8126_v7  ;;  %v8134_v6 = vsub.f32 %v10567_v43, %v1005_v25  ;;  %v10571_v25 = vld [vmem:[#allocation25_spill] sm:$0xff] }
 0x1f9   :  { %v922_v12 = vpop.xlane.xlu1 %921  ;;  %10564 = vst [vmem:[#allocation21_spill] sm:$0xff] %v8120_v24  ;;  %v1163_v38 = vmul.f32 %v8120_v24, %v8120_v24  ;;  %10570 = vst [vmem:[#allocation23_spill] sm:$0xff] %v8138_v47 }
 0x1fa   :  { %1363 = vadd.xlane.f32.xlu0 %v1362_v2  ;;  %10568 = vst [vmem:[#allocation26_spill] sm:$0xff] %v8134_v6  ;;  %v1371_v63 = vsel %vm694_vm2, %v1161_v18, 0.0  ;;  %v1165_v41 = vmul.f32 %v8134_v6, %v8134_v6 }
 0x1fb   :  { %v1184_v9 = vpop.xlane.xlu0 %1183  ;;  %v1377_v13 = vsel %vm694_vm2, %v1163_v38, 0.0  ;;  %v1166_v38 = vmul.f32 %v8138_v47, %v8138_v47 }
 0x1fc   :  { %v1418_v56 = vmul.f32 0.015625, %v1184_v9  ;;  %1366 = vadd.xlane.f32.xlu1 %v1365_v48 }
 0x1fd   :  { %v1187_v49 = vpop.xlane.xlu1 %1186 }
 0x1fe   :  { %v1419_v2 = vmul.f32 0.015625, %v1187_v49  ;;  %1369 = vadd.xlane.f32.xlu0 %v1368_v36  ;;  %v1498_v48 = vadd.f32 1e-05, %v1418_v56  ;;  %v1374_v36 = vsel %vm694_vm2, %v1162_v42, 0.0  ;;  %v1164_v49 = vmul.f32 %v8126_v7, %v8126_v7 }
 0x1ff   :  { %v913_v55 = vpop.xlane.xlu0 %912  ;;  %v8145_v56 = vsub.f32 %v10571_v25, %v1007_v62 }
 0x200   :  { %v1499_v9 = vadd.f32 1e-05, %v1419_v2  ;;  %1372 = vadd.xlane.f32.xlu1 %v1371_v63  ;;  %v1008_v31 = vmul.f32 0.015625, %v913_v55  ;;  %v1010_v55 = vmul.f32 0.015625, %v919_v14 }
 0x201   :  { %v916_v61 = vpop.xlane.xlu1 %915  ;;  %10572 = vst [vmem:[#allocation25_spill] sm:$0xff] %v8145_v56 }
 0x202   :  { %6457 = vrsqrt.f32 %v1499_v9  ;;  %1375 = vadd.xlane.f32.xlu0 %v1374_v36  ;;  %v1009_v18 = vmul.f32 0.015625, %v916_v61  ;;  %v8150_v42 = vsub.f32 %v7692_v37, %v1008_v31  ;;  %v1380_v9 = vsel %vm694_vm2, %v1164_v49, 0.0  ;;  %v10576_v49 = vld [vmem:[#allocation28_spill] sm:$0xff] }
 0x203   :  { %6459 = vrsqrt.f32 %v1498_v48  ;;  %v1178_v2 = vpop.xlane.xlu0 %1177  ;;  %v1011_v61 = vmul.f32 0.015625, %v922_v12  ;;  %v10574_v48 = vld [vmem:[#allocation33_spill] sm:$0xff]  ;;  %v1167_v37 = vmul.f32 %v8145_v56, %v8145_v56  ;;  %v10588_v56 = vld [vmem:[#allocation34_spill] sm:$0xff] }
 0x204   :  { %v1416_v43 = vmul.f32 0.015625, %v1178_v2  ;;  %1378 = vadd.xlane.f32.xlu1 %v1377_v13  ;;  %10573 = vst [vmem:[#allocation43_spill] sm:$0xff] %v8150_v42  ;;  %v8156_v36 = vsub.f32 %v10574_v48, %v1009_v18  ;;  %v1383_v13 = vsel %vm694_vm2, %v1165_v41, 0.0  ;;  %v8162_v2 = vsub.f32 %v10576_v49, %v1010_v55  ;;  %v10578_v41 = vld [vmem:[#allocation30_spill] sm:$0xff] }
 0x205   :  { %v1181_v63 = vpop.xlane.xlu1 %1180  ;;  %v1168_v12 = vmul.f32 %v8150_v42, %v8150_v42  ;;  %v8168_v48 = vsub.f32 %v10578_v41, %v1011_v61 }
 0x206   :  { %v1496_v62 = vadd.f32 1e-05, %v1416_v43  ;;  %v1417_v29 = vmul.f32 0.015625, %v1181_v63  ;;  %1381 = vadd.xlane.f32.xlu0 %v1380_v9  ;;  %10575 = vst [vmem:[#allocation33_spill] sm:$0xff] %v8156_v36  ;;  %10577 = vst [vmem:[#allocation28_spill] sm:$0xff] %v8162_v2  ;;  %v1386_v63 = vsel %vm694_vm2, %v1166_v38, 0.0  ;;  %v1169_v55 = vmul.f32 %v8156_v36, %v8156_v36 }
 0x207   :  { %v1196_v25 = vpop.xlane.xlu0 %1195  ;;  %10579 = vst [vmem:[#allocation30_spill] sm:$0xff] %v8168_v48  ;;  %v1392_v49 = vsel %vm694_vm2, %v1168_v12, 0.0 }
 0x208   :  { %6461 = vrsqrt.f32 %v1496_v62  ;;  %v1497_v31 = vadd.f32 1e-05, %v1417_v29  ;;  %v1422_v14 = vmul.f32 0.015625, %v1196_v25  ;;  %1384 = vadd.xlane.f32.xlu1 %v1383_v13  ;;  %v1389_v29 = vsel %vm694_vm2, %v1167_v37, 0.0 }
 0x209   :  { %v1199_v43 = vpop.xlane.xlu1 %1198 }
 0x20a   :  { %6463 = vrsqrt.f32 %v1497_v31  ;;  %v1502_v18 = vadd.f32 1e-05, %v1422_v14  ;;  %v1423_v9 = vmul.f32 0.015625, %v1199_v43  ;;  %1387 = vadd.xlane.f32.xlu0 %v1386_v63  ;;  %v1170_v31 = vmul.f32 %v8162_v2, %v8162_v2 }
 0x20b   :  { %v925_v62 = vpop.xlane.xlu0 %924  ;;  %v1395_v63 = vsel %vm694_vm2, %v1169_v55, 0.0 }
 0x20c   :  { %v1503_v25 = vadd.f32 1e-05, %v1423_v9  ;;  %v1012_v13 = vmul.f32 0.015625, %v925_v62  ;;  %1390 = vadd.xlane.f32.xlu1 %v1389_v29  ;;  %6465 = vrsqrt.f32 %v1502_v18  ;;  %v1171_v9 = vmul.f32 %v8168_v48, %v8168_v48 }
 0x20d   :  { %v928_v38 = vpop.xlane.xlu1 %927  ;;  %v1398_v29 = vsel %vm694_vm2, %v1170_v31, 0.0  ;;  %v8196_v31 = vld [vmem:[%s10584_s6] ss:$0 sm:$0xff] }
 0x20e   :  { %6467 = vrsqrt.f32 %v1503_v25  ;;  %v8177_v61 = vsub.f32 %v7728_v46, %v1012_v13  ;;  %v1013_v14 = vmul.f32 0.015625, %v928_v38  ;;  %1393 = vadd.xlane.f32.xlu0 %v1392_v49  ;;  %v10582_v25 = vld [vmem:[#allocation29_spill] sm:$0xff]  ;;  %v1401_v48 = vsel %vm694_vm2, %v1171_v9, 0.0 }
 0x20f   :  { %v6458_v37 = vpop.eup %6457  ;;  %v1190_v43 = vpop.xlane.xlu0 %1189 }
 0x210   :  { %10580 = vst [vmem:[#allocation44_spill] sm:$0xff] %v8177_v61  ;;  %v6460_v18 = vpop.eup %6459  ;;  %v8183_v41 = vsub.f32 %v7735_v50, %v1013_v14  ;;  %v1420_v12 = vmul.f32 0.015625, %v1190_v43  ;;  %1396 = vadd.xlane.f32.xlu1 %v1395_v63  ;;  %v1172_v46 = vmul.f32 %v8177_v61, %v8177_v61  ;;  %v1659_v13 = vmul.f32 %v6458_v37, %v10582_v25  ;;  %v10583_v14 = vld [vmem:[#allocation27_spill] sm:$0xff] }
 0x211   :  { %v1193_v62 = vpop.xlane.xlu1 %1192  ;;  %v1658_v43 = vmul.f32 %v6460_v18, %v10583_v14  ;;  %v10585_v18 = vld [vmem:[#allocation31_spill] sm:$0xff] }
 0x212   :  { %10581 = vst [vmem:[#allocation45_spill] sm:$0xff] %v8183_v41  ;;  %v1500_v38 = vadd.f32 1e-05, %v1420_v12  ;;  %v1421_v49 = vmul.f32 0.015625, %v1193_v62  ;;  %1399 = vadd.xlane.f32.xlu0 %v1398_v29  ;;  %v1173_v50 = vmul.f32 %v8183_v41, %v8183_v41  ;;  %v1404_v62 = vsel %vm694_vm2, %v1172_v46, 0.0 }
 0x213   :  { %v1208_v55 = vpop.xlane.xlu0 %1207  ;;  %v1745_v9 = vmul.f32 %v8196_v31, %v1659_v13  ;;  %v1744_v14 = vmul.f32 %v8196_v31, %v1658_v43  ;;  %v8206_v46 = vld [vmem:[%s10586_s2] ss:$0 sm:$0xff] }
 0x214   :  { %6469 = vrsqrt.f32 %v1500_v38  ;;  %v1501_v63 = vadd.f32 1e-05, %v1421_v49  ;;  %v1426_v2 = vmul.f32 0.015625, %v1208_v55  ;;  %1402 = vadd.xlane.f32.xlu1 %v1401_v48  ;;  %v1407_v48 = vsel %vm694_vm2, %v1173_v50, 0.0 }
 0x215   :  { %v6462_v37 = vpop.eup %6461  ;;  %v1211_v12 = vpop.xlane.xlu1 %1210 }
 0x216   :  { %6471 = vrsqrt.f32 %v1501_v63  ;;  %v1506_v29 = vadd.f32 1e-05, %v1426_v2  ;;  %v1427_v25 = vmul.f32 0.015625, %v1211_v12  ;;  %1405 = vadd.xlane.f32.xlu0 %v1404_v62  ;;  %v1656_v38 = vmul.f32 %v6462_v37, %v10585_v18  ;;  %v10587_v2 = vld [vmem:[#allocation32_spill] sm:$0xff] }
 0x217   :  { %v6464_v49 = vpop.eup %6463  ;;  %v1202_v55 = vpop.xlane.xlu0 %1201  ;;  %v1831_v12 = vadd.f32 %v8206_v46, %v1745_v9 }
 0x218   :  { %6473 = vrsqrt.f32 %v1506_v29  ;;  %v1507_v41 = vadd.f32 1e-05, %v1427_v25  ;;  %v1424_v61 = vmul.f32 0.015625, %v1202_v55  ;;  %1408 = vadd.xlane.f32.xlu1 %v1407_v48  ;;  %v1657_v13 = vmul.f32 %v6464_v49, %v10587_v2 }
 0x219   :  { %v1205_v63 = vpop.xlane.xlu1 %1204  ;;  %v1742_v37 = vmul.f32 %v8196_v31, %v1656_v38  ;;  %v6466_v62 = vpop.eup %6465  ;;  %v1830_v48 = vadd.f32 %v8206_v46, %v1744_v14  ;;  %v1911_v9 = vmax.f32 %v1831_v12, 0.0 }
 0x21a   :  { %6475 = vrsqrt.f32 %v1507_v41  ;;  %v1504_v50 = vadd.f32 1e-05, %v1424_v61  ;;  %v1425_v43 = vmul.f32 0.015625, %v1205_v63  ;;  %v1743_v29 = vmul.f32 %v8196_v31, %v1657_v13  ;;  %v10589_v61 = vld [vmem:[#allocation35_spill] sm:$0xff] }
 0x21b   :  { %v6468_v25 = vpop.eup %6467  ;;  %v1220_v18 = vpop.xlane.xlu0 %1219  ;;  %v1828_v55 = vadd.f32 %v8206_v46, %v1742_v37  ;;  %v1662_v41 = vmul.f32 %v6466_v62, %v10588_v56  ;;  %v1910_v37 = vmax.f32 %v1830_v48, 0.0 }
 0x21c   :  { %6477 = vrsqrt.f32 %v1504_v50  ;;  %v1505_v36 = vadd.f32 1e-05, %v1425_v43  ;;  %v1430_v49 = vmul.f32 0.015625, %v1220_v18  ;;  %v1829_v2 = vadd.f32 %v8206_v46, %v1743_v29 }
 0x21d   :  { %v1223_v38 = vpop.xlane.xlu1 %1222  ;;  %v1908_v42 = vmax.f32 %v1828_v55, 0.0  ;;  %v1663_v63 = vmul.f32 %v6468_v25, %v10589_v61  ;;  %v1997_v55 = vpack.c.bf16 %v1911_v9, %v1910_v37  ;;  %v1748_v12 = vmul.f32 %v8196_v31, %v1662_v41 }
 0x21e   :  { %6479 = vrsqrt.f32 %v1505_v36  ;;  %v1510_v13 = vadd.f32 1e-05, %v1430_v49  ;;  %v1431_v47 = vmul.f32 0.015625, %v1223_v38  ;;  %v1909_v6 = vmax.f32 %v1829_v2, 0.0 }
 0x21f   :  { %v1214_v7 = vpop.xlane.xlu0 %1213  ;;  %v1749_v14 = vmul.f32 %v8196_v31, %v1663_v63 }
 0x220   :  { %6481 = vrsqrt.f32 %v1510_v13  ;;  %v1511_v50 = vadd.f32 1e-05, %v1431_v47  ;;  %v1428_v43 = vmul.f32 0.015625, %v1214_v7  ;;  %v1996_v18 = vpack.c.bf16 %v1909_v6, %v1908_v42 }
 0x221   :  { %v6470_v29 = vpop.eup %6469  ;;  %v1217_v24 = vpop.xlane.xlu1 %1216  ;;  %v1835_v47 = vadd.f32 %v8206_v46, %v1749_v14 }
 0x222   :  { %6483 = vrsqrt.f32 %v1511_v50  ;;  %v1508_v56 = vadd.f32 1e-05, %v1428_v43  ;;  %v1429_v62 = vmul.f32 0.015625, %v1217_v24  ;;  %6093 = vmatprep.mubr.msk.bf16.mxu1 %vm694_vm2, %v1996_v18  ;;  %v1660_v36 = vmul.f32 %v6470_v29, %v7725_v28 }
 0x223   :  { %v6472_v25 = vpop.eup %6471  ;;  %6094 = vmatmul.mubr.msk.bf16.vlgmr.msra.gmra.mxu1 %vm694_vm2, %v1997_v55  ;;  %v1232_v48 = vpop.xlane.xlu0 %1231  ;;  %v1834_v24 = vadd.f32 %v8206_v46, %v1748_v12  ;;  %v1915_v37 = vmax.f32 %v1835_v47, 0.0 }
 0x224   :  { %6485 = vrsqrt.f32 %v1508_v56  ;;  %v1509_v7 = vadd.f32 1e-05, %v1429_v62  ;;  %v1434_v6 = vmul.f32 0.015625, %v1232_v48  ;;  %v1661_v42 = vmul.f32 %v6472_v25, %v7732_v10 }
 0x225   :  { %v6474_v49 = vpop.eup %6473  ;;  %v1235_v2 = vpop.xlane.xlu1 %1234  ;;  %v1746_v38 = vmul.f32 %v8196_v31, %v1660_v36  ;;  %v1914_v12 = vmax.f32 %v1834_v24, 0.0 }
 0x226   :  { %6487 = vrsqrt.f32 %v1509_v7  ;;  %v1514_v9 = vadd.f32 1e-05, %v1434_v6  ;;  %v1435_v28 = vmul.f32 0.015625, %v1235_v2  ;;  %v1747_v41 = vmul.f32 %v8196_v31, %v1661_v42 }
 0x227   :  { %v6476_v61 = vpop.eup %6475  ;;  %v1226_v63 = vpop.xlane.xlu0 %1225  ;;  %v1832_v13 = vadd.f32 %v8206_v46, %v1746_v38  ;;  %v1666_v14 = vmul.f32 %v6474_v49, %v7739_v11  ;;  %v1999_v11 = vpack.c.bf16 %v1915_v37, %v1914_v12 }
 0x228   :  { %6489 = vrsqrt.f32 %v1514_v9  ;;  %v1515_v10 = vadd.f32 1e-05, %v1435_v28  ;;  %v1432_v50 = vmul.f32 0.015625, %v1226_v63  ;;  %v1833_v43 = vadd.f32 %v8206_v46, %v1747_v41 }
 0x229   :  { %v6478_v18 = vpop.eup %6477  ;;  %v1229_v29 = vpop.xlane.xlu1 %1228  ;;  %v1912_v55 = vmax.f32 %v1832_v13, 0.0  ;;  %v1667_v56 = vmul.f32 %v6476_v61, %v7746_v20  ;;  %v1752_v62 = vmul.f32 %v8196_v31, %v1666_v14 }
 0x22a   :  { %6491 = vrsqrt.f32 %v1515_v10  ;;  %v1512_v36 = vadd.f32 1e-05, %v1432_v50  ;;  %v1433_v25 = vmul.f32 0.015625, %v1229_v29  ;;  %v1913_v48 = vmax.f32 %v1833_v43, 0.0 }
 0x22b   :  { %v6480_v47 = vpop.eup %6479  ;;  %v1244_v7 = vpop.xlane.xlu0 %1243  ;;  %v1664_v6 = vmul.f32 %v6478_v18, %v7753_v32  ;;  %v1753_v42 = vmul.f32 %v8196_v31, %v1667_v56  ;;  %v1838_v41 = vadd.f32 %v8206_v46, %v1752_v62 }
 0x22c   :  { %6493 = vrsqrt.f32 %v1512_v36  ;;  %v1513_v49 = vadd.f32 1e-05, %v1433_v25  ;;  %v1438_v2 = vmul.f32 0.015625, %v1244_v7  ;;  %v1998_v38 = vpack.c.bf16 %v1913_v48, %v1912_v55 }
 0x22d   :  { %v6482_v24 = vpop.eup %6481  ;;  %v1247_v9 = vpop.xlane.xlu1 %1246  ;;  %v1665_v20 = vmul.f32 %v6480_v47, %v7759_v5  ;;  %v1750_v28 = vmul.f32 %v8196_v31, %v1664_v6  ;;  %v1839_v61 = vadd.f32 %v8206_v46, %v1753_v42  ;;  %v1918_v62 = vmax.f32 %v1838_v41, 0.0 }
 0x22e   :  { %6495 = vrsqrt.f32 %v1513_v49  ;;  %v1518_v63 = vadd.f32 1e-05, %v1438_v2  ;;  %v1439_v13 = vmul.f32 0.015625, %v1247_v9  ;;  %6097 = vmatprep.mubr.msk.bf16.mxu1 %vm694_vm2, %v1998_v38  ;;  %v1670_v32 = vmul.f32 %v6482_v24, %v7765_v23 }
 0x22f   :  { %v6484_v37 = vpop.eup %6483  ;;  %6098 = vmatmul.mubr.msk.bf16.gmra.mxu1 %vm694_vm2, %v1999_v11  ;;  %v1238_v14 = vpop.xlane.xlu0 %1237  ;;  %v1751_v10 = vmul.f32 %v8196_v31, %v1665_v20  ;;  %v1836_v5 = vadd.f32 %v8206_v46, %v1750_v28  ;;  %v1919_v50 = vmax.f32 %v1839_v61, 0.0 }
 0x230   :  { %6497 = vrsqrt.f32 %v1518_v63  ;;  %v1519_v43 = vadd.f32 1e-05, %v1439_v13  ;;  %v1436_v18 = vmul.f32 0.015625, %v1238_v14  ;;  %v1671_v29 = vmul.f32 %v6484_v37, %v7771_v27 }
 0x231   :  { %v6486_v55 = vpop.eup %6485  ;;  %v1241_v12 = vpop.xlane.xlu1 %1240  ;;  %v1837_v56 = vadd.f32 %v8206_v46, %v1751_v10  ;;  %v1756_v23 = vmul.f32 %v8196_v31, %v1670_v32  ;;  %v1916_v11 = vmax.f32 %v1836_v5, 0.0  ;;  %v2001_v42 = vpack.c.bf16 %v1919_v50, %v1918_v62 }
 0x232   :  { %6499 = vrsqrt.f32 %v1519_v43  ;;  %v1516_v36 = vadd.f32 1e-05, %v1436_v18  ;;  %v1437_v25 = vmul.f32 0.015625, %v1241_v12  ;;  %v1668_v48 = vmul.f32 %v6486_v55, %v7779_v59 }
 0x233   :  { %v6488_v47 = vpop.eup %6487  ;;  %v1256_v7 = vpop.xlane.xlu0 %1255  ;;  %v1917_v6 = vmax.f32 %v1837_v56, 0.0  ;;  %v1757_v49 = vmul.f32 %v8196_v31, %v1671_v29  ;;  %v1842_v41 = vadd.f32 %v8206_v46, %v1756_v23 }
 0x234   :  { %6501 = vrsqrt.f32 %v1516_v36  ;;  %v1517_v27 = vadd.f32 1e-05, %v1437_v25  ;;  %v1442_v2 = vmul.f32 0.015625, %v1256_v7  ;;  %v1669_v38 = vmul.f32 %v6488_v47, %v7785_v4 }
 0x235   :  { %v6490_v24 = vpop.eup %6489  ;;  %v1259_v9 = vpop.xlane.xlu1 %1258  ;;  %v2000_v20 = vpack.c.bf16 %v1917_v6, %v1916_v11  ;;  %v1754_v28 = vmul.f32 %v8196_v31, %v1668_v48  ;;  %v1843_v59 = vadd.f32 %v8206_v46, %v1757_v49  ;;  %v1922_v12 = vmax.f32 %v1842_v41, 0.0 }
 0x236   :  { %6503 = vrsqrt.f32 %v1517_v27  ;;  %v1522_v61 = vadd.f32 1e-05, %v1442_v2  ;;  %v1443_v63 = vmul.f32 0.015625, %v1259_v9  ;;  %v1755_v13 = vmul.f32 %v8196_v31, %v1669_v38 }
 0x237   :  { %v6492_v32 = vpop.eup %6491  ;;  %6101 = vmatprep.mubr.msk.bf16.mxu1 %vm694_vm2, %v2000_v20  ;;  %v1250_v37 = vpop.xlane.xlu0 %1249  ;;  %v1840_v4 = vadd.f32 %v8206_v46, %v1754_v28  ;;  %v1923_v14 = vmax.f32 %v1843_v59, 0.0  ;;  %v1674_v10 = vmul.f32 %v6490_v24, %v7790_v35 }
 0x238   :  { %6505 = vrsqrt.f32 %v1522_v61  ;;  %v1523_v5 = vadd.f32 1e-05, %v1443_v63  ;;  %6102 = vmatmul.mubr.msk.bf16.gmra.mxu1 %vm694_vm2, %v2001_v42  ;;  %v1440_v50 = vmul.f32 0.015625, %v1250_v37  ;;  %v1841_v43 = vadd.f32 %v8206_v46, %v1755_v13 }
 0x239   :  { %v6494_v18 = vpop.eup %6493  ;;  %v1253_v29 = vpop.xlane.xlu1 %1252  ;;  %v1920_v55 = vmax.f32 %v1840_v4, 0.0  ;;  %v1675_v56 = vmul.f32 %v6492_v32, %v7799_v30  ;;  %v1760_v62 = vmul.f32 %v8196_v31, %v1674_v10  ;;  %v2003_v47 = vpack.c.bf16 %v1923_v14, %v1922_v12 }
 0x23a   :  { %6507 = vrsqrt.f32 %v1523_v5  ;;  %v1520_v23 = vadd.f32 1e-05, %v1440_v50  ;;  %v1441_v36 = vmul.f32 0.015625, %v1253_v29  ;;  %v1921_v25 = vmax.f32 %v1841_v43, 0.0 }
 0x23b   :  { %v6496_v35 = vpop.eup %6495  ;;  %v1268_v48 = vpop.xlane.xlu0 %1267  ;;  %v1672_v7 = vmul.f32 %v6494_v18, %v7804_v0  ;;  %v1761_v11 = vmul.f32 %v8196_v31, %v1675_v56  ;;  %v1846_v24 = vadd.f32 %v8206_v46, %v1760_v62 }
 0x23c   :  { %6509 = vrsqrt.f32 %v1520_v23  ;;  %v1521_v6 = vadd.f32 1e-05, %v1441_v36  ;;  %v1446_v42 = vmul.f32 0.015625, %v1268_v48  ;;  %v2002_v49 = vpack.c.bf16 %v1921_v25, %v1920_v55 }
 0x23d   :  { %v6498_v27 = vpop.eup %6497  ;;  %v1271_v2 = vpop.xlane.xlu1 %1270  ;;  %v1673_v30 = vmul.f32 %v6496_v35, %v7813_v60  ;;  %v1758_v38 = vmul.f32 %v8196_v31, %v1672_v7  ;;  %v1847_v9 = vadd.f32 %v8206_v46, %v1761_v11  ;;  %v1926_v5 = vmax.f32 %v1846_v24, 0.0 }
 0x23e   :  { %6511 = vrsqrt.f32 %v1521_v6  ;;  %v1526_v20 = vadd.f32 1e-05, %v1446_v42  ;;  %v1447_v28 = vmul.f32 0.015625, %v1271_v2  ;;  %6105 = vmatprep.mubr.msk.bf16.mxu1 %vm694_vm2, %v2002_v49  ;;  %v1678_v0 = vmul.f32 %v6498_v27, %v7819_v19 }
 0x23f   :  { %v6500_v41 = vpop.eup %6499  ;;  %v1262_v59 = vpop.xlane.xlu0 %1261  ;;  %v1759_v61 = vmul.f32 %v8196_v31, %v1673_v30  ;;  %v1844_v63 = vadd.f32 %v8206_v46, %v1758_v38  ;;  %v1927_v60 = vmax.f32 %v1847_v9, 0.0 }
 0x240   :  { %6513 = vrsqrt.f32 %v1526_v20  ;;  %v1527_v13 = vadd.f32 1e-05, %v1447_v28  ;;  %6106 = vmatmul.mubr.msk.bf16.gmra.mxu1 %vm694_vm2, %v2003_v47  ;;  %v1444_v32 = vmul.f32 0.015625, %v1262_v59  ;;  %v1679_v37 = vmul.f32 %v6500_v41, %v7828_v58 }
 0x241   :  { %v6502_v4 = vpop.eup %6501  ;;  %v1265_v14 = vpop.xlane.xlu1 %1264  ;;  %v1845_v10 = vadd.f32 %v8206_v46, %v1759_v61  ;;  %v1764_v19 = vmul.f32 %v8196_v31, %v1678_v0  ;;  %v1924_v12 = vmax.f32 %v1844_v63, 0.0  ;;  %v2005_v62 = vpack.c.bf16 %v1927_v60, %v1926_v5 }
 0x242   :  { %6515 = vrsqrt.f32 %v1527_v13  ;;  %v1524_v50 = vadd.f32 1e-05, %v1444_v32  ;;  %v1445_v43 = vmul.f32 0.015625, %v1265_v14  ;;  %v1676_v18 = vmul.f32 %v6502_v4, %v7834_v1 }
 0x243   :  { %v6504_v29 = vpop.eup %6503  ;;  %v1280_v55 = vpop.xlane.xlu0 %1279  ;;  %v1925_v56 = vmax.f32 %v1845_v10, 0.0  ;;  %v1765_v23 = vmul.f32 %v8196_v31, %v1679_v37  ;;  %v1850_v11 = vadd.f32 %v8206_v46, %v1764_v19 }
 0x244   :  { %6517 = vrsqrt.f32 %v1524_v50  ;;  %v1525_v58 = vadd.f32 1e-05, %v1445_v43  ;;  %v1450_v36 = vmul.f32 0.015625, %v1280_v55  ;;  %v1677_v25 = vmul.f32 %v6504_v29, %v7843_v15 }
 0x245   :  { %v6506_v35 = vpop.eup %6505  ;;  %v1283_v48 = vpop.xlane.xlu1 %1282  ;;  %v2004_v47 = vpack.c.bf16 %v1925_v56, %v1924_v12  ;;  %v1762_v7 = vmul.f32 %v8196_v31, %v1676_v18  ;;  %v1851_v1 = vadd.f32 %v8206_v46, %v1765_v23  ;;  %v1930_v59 = vmax.f32 %v1850_v11, 0.0 }
 0x246   :  { %6519 = vrsqrt.f32 %v1525_v58  ;;  %v1530_v6 = vadd.f32 1e-05, %v1450_v36  ;;  %v1451_v42 = vmul.f32 0.015625, %v1283_v48  ;;  %v1763_v49 = vmul.f32 %v8196_v31, %v1677_v25 }
 0x247   :  { %v6508_v27 = vpop.eup %6507  ;;  %6109 = vmatprep.mubr.msk.bf16.mxu1 %vm694_vm2, %v2004_v47  ;;  %v1274_v2 = vpop.xlane.xlu0 %1273  ;;  %v1848_v15 = vadd.f32 %v8206_v46, %v1762_v7  ;;  %v1931_v30 = vmax.f32 %v1851_v1, 0.0  ;;  %v1682_v38 = vmul.f32 %v6506_v35, %v7849_v45 }
 0x248   :  { %6521 = vrsqrt.f32 %v1530_v6  ;;  %v1531_v24 = vadd.f32 1e-05, %v1451_v42  ;;  %6110 = vmatmul.mubr.msk.bf16.gmra.mxu1 %vm694_vm2, %v2005_v62  ;;  %v1448_v9 = vmul.f32 0.015625, %v1274_v2  ;;  %v1849_v20 = vadd.f32 %v8206_v46, %v1763_v49 }
 0x249   :  { %v6510_v28 = vpop.eup %6509  ;;  %v1277_v0 = vpop.xlane.xlu1 %1276  ;;  %v1928_v41 = vmax.f32 %v1848_v15, 0.0  ;;  %v1683_v61 = vmul.f32 %v6508_v27, %v7855_v39  ;;  %v1768_v63 = vmul.f32 %v8196_v31, %v1682_v38  ;;  %v2007_v4 = vpack.c.bf16 %v1931_v30, %v1930_v59 }
 0x24a   :  { %6523 = vrsqrt.f32 %v1531_v24  ;;  %v1528_v60 = vadd.f32 1e-05, %v1448_v9  ;;  %v1449_v13 = vmul.f32 0.015625, %v1277_v0  ;;  %v1929_v32 = vmax.f32 %v1849_v20, 0.0 }
 0x24b   :  { %v6512_v45 = vpop.eup %6511  ;;  %v1292_v37 = vpop.xlane.xlu0 %1291  ;;  %v1680_v14 = vmul.f32 %v6510_v28, %v7861_v8  ;;  %v1769_v10 = vmul.f32 %v8196_v31, %v1683_v61  ;;  %v1854_v55 = vadd.f32 %v8206_v46, %v1768_v63 }
 0x24c   :  { %6525 = vrsqrt.f32 %v1528_v60  ;;  %v1529_v5 = vadd.f32 1e-05, %v1449_v13  ;;  %v1454_v19 = vmul.f32 0.015625, %v1292_v37  ;;  %v2006_v50 = vpack.c.bf16 %v1929_v32, %v1928_v41 }
 0x24d   :  { %v6514_v43 = vpop.eup %6513  ;;  %v1295_v18 = vpop.xlane.xlu1 %1294  ;;  %v1681_v39 = vmul.f32 %v6512_v45, %v7867_v17  ;;  %v1766_v29 = vmul.f32 %v8196_v31, %v1680_v14  ;;  %v1855_v12 = vadd.f32 %v8206_v46, %v1769_v10  ;;  %v1934_v1 = vmax.f32 %v1854_v55, 0.0 }
 0x24e   :  { %6527 = vrsqrt.f32 %v1529_v5  ;;  %v1534_v56 = vadd.f32 1e-05, %v1454_v19  ;;  %v1455_v62 = vmul.f32 0.015625, %v1295_v18  ;;  %6113 = vmatprep.mubr.msk.bf16.mxu1 %vm694_vm2, %v2006_v50  ;;  %v1686_v8 = vmul.f32 %v6514_v43, %v7873_v16 }
 0x24f   :  { %v6516_v23 = vpop.eup %6515  ;;  %v1286_v58 = vpop.xlane.xlu0 %1285  ;;  %v1767_v36 = vmul.f32 %v8196_v31, %v1681_v39  ;;  %v1852_v25 = vadd.f32 %v8206_v46, %v1766_v29  ;;  %v1935_v6 = vmax.f32 %v1855_v12, 0.0 }
 0x250   :  { %6529 = vrsqrt.f32 %v1534_v56  ;;  %v1535_v17 = vadd.f32 1e-05, %v1455_v62  ;;  %6114 = vmatmul.mubr.msk.bf16.gmra.mxu1 %vm694_vm2, %v2007_v4  ;;  %v1452_v35 = vmul.f32 0.015625, %v1286_v58  ;;  %v1687_v48 = vmul.f32 %v6516_v23, %v7879_v21 }
 0x251   :  { %v6518_v47 = vpop.eup %6517  ;;  %v1289_v7 = vpop.xlane.xlu1 %1288  ;;  %v1853_v11 = vadd.f32 %v8206_v46, %v1767_v36  ;;  %v1772_v16 = vmul.f32 %v8196_v31, %v1686_v8  ;;  %v1932_v30 = vmax.f32 %v1852_v25, 0.0  ;;  %v2009_v61 = vpack.c.bf16 %v1935_v6, %v1934_v1 }
 0x252   :  { %6531 = vrsqrt.f32 %v1535_v17  ;;  %v1532_v42 = vadd.f32 1e-05, %v1452_v35  ;;  %v1453_v49 = vmul.f32 0.015625, %v1289_v7  ;;  %v1684_v27 = vmul.f32 %v6518_v47, %v7885_v26 }
 0x253   :  { %v6520_v2 = vpop.eup %6519  ;;  %v931_v15 = vpop.xlane.xlu0 %930  ;;  %v1933_v38 = vmax.f32 %v1853_v11, 0.0  ;;  %v1773_v24 = vmul.f32 %v8196_v31, %v1687_v48  ;;  %v1858_v21 = vadd.f32 %v8206_v46, %v1772_v16 }
 0x254   :  { %6533 = vrsqrt.f32 %v1532_v42  ;;  %v1533_v9 = vadd.f32 1e-05, %v1453_v49  ;;  %v1014_v20 = vmul.f32 0.015625, %v931_v15  ;;  %v1685_v28 = vmul.f32 %v6520_v2, %v7891_v34 }
 0x255   :  { %v6522_v0 = vpop.eup %6521  ;;  %v934_v41 = vpop.xlane.xlu1 %933  ;;  %v2008_v59 = vpack.c.bf16 %v1933_v38, %v1932_v30  ;;  %v1770_v63 = vmul.f32 %v8196_v31, %v1684_v27  ;;  %v1859_v26 = vadd.f32 %v8206_v46, %v1773_v24  ;;  %v1938_v4 = vmax.f32 %v1858_v21, 0.0 }
 0x256   :  { %6535 = vrsqrt.f32 %v1533_v9  ;;  %v8309_v60 = vsub.f32 %v7954_v51, %v1014_v20  ;;  %v1015_v13 = vmul.f32 0.015625, %v934_v41  ;;  %v1771_v32 = vmul.f32 %v8196_v31, %v1685_v28 }
 0x257   :  { %v6524_v45 = vpop.eup %6523  ;;  %6117 = vmatprep.mubr.msk.bf16.mxu1 %vm694_vm2, %v2008_v59  ;;  %v1298_v37 = vpop.xlane.xlu0 %1297  ;;  %v1856_v34 = vadd.f32 %v8206_v46, %v1770_v63  ;;  %v1690_v14 = vmul.f32 %v6522_v0, %v7897_v33  ;;  %v1939_v39 = vmax.f32 %v1859_v26, 0.0 }
 0x258   :  { %v8316_v10 = vsub.f32 %v7961_v3, %v1015_v13  ;;  %6118 = vmatmul.mubr.msk.bf16.gmra.mxu1 %vm694_vm2, %v2009_v61  ;;  %v1456_v5 = vmul.f32 0.015625, %v1298_v37  ;;  %v1174_v51 = vmul.f32 %v8309_v60, %v8309_v60  ;;  %v1857_v19 = vadd.f32 %v8206_v46, %v1771_v32  ;;  %v10590_v61 = vld [vmem:[#allocation36_spill] sm:$0xff] }
 0x259   :  { %v6526_v50 = vpop.eup %6525  ;;  %v1301_v43 = vpop.xlane.xlu1 %1300  ;;  %v1936_v18 = vmax.f32 %v1856_v34, 0.0  ;;  %v1691_v29 = vmul.f32 %v6524_v45, %v7903_v40  ;;  %v1776_v55 = vmul.f32 %v8196_v31, %v1690_v14  ;;  %v2011_v42 = vpack.c.bf16 %v1939_v39, %v1938_v4  ;;  %v10591_v4 = vld [vmem:[#allocation37_spill] sm:$0xff] }
 0x25a   :  { %v1536_v33 = vadd.f32 1e-05, %v1456_v5  ;;  %v1457_v12 = vmul.f32 0.015625, %v1301_v43  ;;  %v1410_v3 = vsel %vm694_vm2, %v1174_v51, 0.0  ;;  %v1175_v56 = vmul.f32 %v8316_v10, %v8316_v10 }
 0x25b   :  { %v6528_v62 = vpop.eup %6527  ;;  %1411 = vadd.xlane.f32.xlu0 %v1410_v3  ;;  %v1304_v8 = vpop.xlane.xlu0 %1303  ;;  %v1937_v23 = vmax.f32 %v1857_v19, 0.0  ;;  %v1688_v58 = vmul.f32 %v6526_v50, %v7909_v44  ;;  %v1777_v36 = vmul.f32 %v8196_v31, %v1691_v29  ;;  %v1862_v25 = vadd.f32 %v8206_v46, %v1776_v55 }
 0x25c   :  { %6537 = vrsqrt.f32 %v1536_v33  ;;  %v1537_v40 = vadd.f32 1e-05, %v1457_v12  ;;  %v1458_v17 = vmul.f32 0.015625, %v1304_v8  ;;  %v1413_v35 = vsel %vm694_vm2, %v1175_v56, 0.0 }
 0x25d   :  { %v6530_v48 = vpop.eup %6529  ;;  %1414 = vadd.xlane.f32.xlu1 %v1413_v35  ;;  %v1307_v47 = vpop.xlane.xlu1 %1306  ;;  %v2010_v7 = vpack.c.bf16 %v1937_v23, %v1936_v18  ;;  %v1689_v11 = vmul.f32 %v6528_v62, %v7915_v53  ;;  %v1774_v1 = vmul.f32 %v8196_v31, %v1688_v58  ;;  %v1863_v6 = vadd.f32 %v8206_v46, %v1777_v36 }
 0x25e   :  { %6539 = vrsqrt.f32 %v1537_v40  ;;  %v1538_v44 = vadd.f32 1e-05, %v1458_v17  ;;  %v1459_v16 = vmul.f32 0.015625, %v1307_v47  ;;  %v1694_v30 = vmul.f32 %v6530_v48, %v7921_v52 }
 0x25f   :  { %v6532_v49 = vpop.eup %6531  ;;  %6121 = vmatprep.mubr.msk.bf16.mxu1 %vm694_vm2, %v2010_v7  ;;  %v1310_v27 = vpop.xlane.xlu0 %1309  ;;  %v1775_v2 = vmul.f32 %v8196_v31, %v1689_v11  ;;  %v1860_v15 = vadd.f32 %v8206_v46, %v1774_v1  ;;  %v1942_v28 = vmax.f32 %v1862_v25, 0.0  ;;  %v1943_v0 = vmax.f32 %v1863_v6, 0.0 }
 0x260   :  { %6541 = vrsqrt.f32 %v1538_v44  ;;  %v1539_v53 = vadd.f32 1e-05, %v1459_v16  ;;  %6122 = vmatmul.mubr.msk.bf16.gmra.mxu1 %vm694_vm2, %v2011_v42  ;;  %v1460_v38 = vmul.f32 0.015625, %v1310_v27  ;;  %v1695_v24 = vmul.f32 %v6532_v49, %v7927_v57 }
 0x261   :  { %v6534_v21 = vpop.eup %6533  ;;  %v1313_v9 = vpop.xlane.xlu1 %1312  ;;  %v1861_v20 = vadd.f32 %v8206_v46, %v1775_v2  ;;  %v1940_v13 = vmax.f32 %v1860_v15, 0.0  ;;  %v1780_v45 = vmul.f32 %v8196_v31, %v1694_v30  ;;  %v2013_v19 = vpack.c.bf16 %v1943_v0, %v1942_v28  ;;  %v10592_v30 = vld [vmem:[#allocation38_spill] sm:$0xff] }
 0x262   :  { %6543 = vrsqrt.f32 %v1539_v53  ;;  %v1540_v41 = vadd.f32 1e-05, %v1460_v38  ;;  %v1461_v59 = vmul.f32 0.015625, %v1313_v9  ;;  %v1692_v63 = vmul.f32 %v6534_v21, %v10590_v61 }
 0x263   :  { %v6536_v26 = vpop.eup %6535  ;;  %v1316_v52 = vpop.xlane.xlu0 %1315  ;;  %v1941_v32 = vmax.f32 %v1861_v20, 0.0  ;;  %v1781_v37 = vmul.f32 %v8196_v31, %v1695_v24  ;;  %v1866_v12 = vadd.f32 %v8206_v46, %v1780_v45  ;;  %v10593_v20 = vld [vmem:[#allocation39_spill] sm:$0xff] }
 0x264   :  { %6545 = vrsqrt.f32 %v1540_v41  ;;  %v1541_v57 = vadd.f32 1e-05, %v1461_v59  ;;  %v1462_v34 = vmul.f32 0.015625, %v1316_v52  ;;  %v1693_v14 = vmul.f32 %v6536_v26, %v10591_v4 }
 0x265   :  { %v1319_v5 = vpop.xlane.xlu1 %1318  ;;  %v2012_v51 = vpack.c.bf16 %v1941_v32, %v1940_v13  ;;  %v1778_v50 = vmul.f32 %v8196_v31, %v1692_v63  ;;  %v1867_v43 = vadd.f32 %v8206_v46, %v1781_v37  ;;  %v1946_v47 = vmax.f32 %v1866_v12, 0.0 }
 0x266   :  { %6547 = vrsqrt.f32 %v1541_v57  ;;  %v1542_v18 = vadd.f32 1e-05, %v1462_v34  ;;  %v1463_v39 = vmul.f32 0.015625, %v1319_v5  ;;  %v1779_v29 = vmul.f32 %v8196_v31, %v1693_v14  ;;  %v10594_v34 = vld [vmem:[#allocation40_spill] sm:$0xff] }
 0x267   :  { %6125 = vmatprep.mubr.msk.bf16.mxu1 %vm694_vm2, %v2012_v51  ;;  %v1322_v55 = vpop.xlane.xlu0 %1321  ;;  %v1864_v33 = vadd.f32 %v8206_v46, %v1778_v50  ;;  %v1947_v36 = vmax.f32 %v1867_v43, 0.0 }
 0x268   :  { %6549 = vrsqrt.f32 %v1542_v18  ;;  %v1543_v3 = vadd.f32 1e-05, %v1463_v39  ;;  %6126 = vmatmul.mubr.msk.bf16.gmra.mxu1 %vm694_vm2, %v2013_v19  ;;  %v1464_v56 = vmul.f32 0.015625, %v1322_v55  ;;  %v1865_v62 = vadd.f32 %v8206_v46, %v1779_v29  ;;  %v10595_v39 = vld [vmem:[#allocation41_spill] sm:$0xff] }
 0x269   :  { %v6538_v8 = vpop.eup %6537  ;;  %v1325_v23 = vpop.xlane.xlu1 %1324  ;;  %v1944_v58 = vmax.f32 %v1864_v33, 0.0  ;;  %v2015_v42 = vpack.c.bf16 %v1947_v36, %v1946_v47 }
 0x26a   :  { %6551 = vrsqrt.f32 %v1543_v3  ;;  %v1544_v25 = vadd.f32 1e-05, %v1464_v56  ;;  %v1465_v40 = vmul.f32 0.015625, %v1325_v23  ;;  %v1945_v17 = vmax.f32 %v1865_v62, 0.0 }
 0x26b   :  { %v6540_v35 = vpop.eup %6539  ;;  %v1328_v48 = vpop.xlane.xlu0 %1327  ;;  %v1696_v7 = vmul.f32 %v6538_v8, %v7957_v54 }
 0x26c   :  { %6553 = vrsqrt.f32 %v1544_v25  ;;  %v1545_v11 = vadd.f32 1e-05, %v1465_v40  ;;  %v1466_v1 = vmul.f32 0.015625, %v1328_v48  ;;  %v2014_v6 = vpack.c.bf16 %v1945_v17, %v1944_v58  ;;  %v10596_v58 = vld [vmem:[#allocation42_spill] sm:$0xff] }
 0x26d   :  { %v6542_v44 = vpop.eup %6541  ;;  %v1331_v16 = vpop.xlane.xlu1 %1330  ;;  %v1697_v49 = vmul.f32 %v6540_v35, %v7964_v22  ;;  %v1782_v27 = vmul.f32 %v8196_v31, %v1696_v7  ;;  %v10597_v7 = vld [vmem:[#allocation2_spill] sm:$0xff] }
 0x26e   :  { %6555 = vrsqrt.f32 %v1545_v11  ;;  %v1546_v2 = vadd.f32 1e-05, %v1466_v1  ;;  %v1467_v15 = vmul.f32 0.015625, %v1331_v16  ;;  %6129 = vmatprep.mubr.msk.bf16.mxu1 %vm694_vm2, %v2014_v6  ;;  %v1698_v53 = vmul.f32 %v6542_v44, %v10592_v30  ;;  %v10598_v16 = vld [vmem:[#allocation4_spill] sm:$0xff] }
 0x26f   :  { %v6544_v38 = vpop.eup %6543  ;;  %v1334_v54 = vpop.xlane.xlu0 %1333  ;;  %v1783_v24 = vmul.f32 %v8196_v31, %v1697_v49  ;;  %v1868_v21 = vadd.f32 %v8206_v46, %v1782_v27 }
 0x270   :  { %6557 = vrsqrt.f32 %v1546_v2  ;;  %v1547_v9 = vadd.f32 1e-05, %v1467_v15  ;;  %6130 = vmatmul.mubr.msk.bf16.gmra.mxu1 %vm694_vm2, %v2015_v42  ;;  %v1468_v22 = vmul.f32 0.015625, %v1334_v54  ;;  %v1699_v28 = vmul.f32 %v6544_v38, %v10593_v20 }
 0x271   :  { %v6546_v0 = vpop.eup %6545  ;;  %v1337_v41 = vpop.xlane.xlu1 %1336  ;;  %v1869_v59 = vadd.f32 %v8206_v46, %v1783_v24  ;;  %v1784_v61 = vmul.f32 %v8196_v31, %v1698_v53  ;;  %v1948_v45 = vmax.f32 %v1868_v21, 0.0  ;;  %v10599_v24 = vld [vmem:[#allocation6_spill] sm:$0xff] }
 0x272   :  { %6559 = vrsqrt.f32 %v1547_v9  ;;  %v1548_v63 = vadd.f32 1e-05, %v1468_v22  ;;  %v1469_v26 = vmul.f32 0.015625, %v1337_v41  ;;  %v1785_v52 = vmul.f32 %v8196_v31, %v1699_v28 }
 0x273   :  { %v6548_v13 = vpop.eup %6547  ;;  %v1340_v32 = vpop.xlane.xlu0 %1339  ;;  %v1949_v37 = vmax.f32 %v1869_v59, 0.0  ;;  %v1870_v57 = vadd.f32 %v8206_v46, %v1784_v61  ;;  %v1700_v4 = vmul.f32 %v6546_v0, %v10594_v34 }
 0x274   :  { %6561 = vrsqrt.f32 %v1548_v63  ;;  %v1549_v14 = vadd.f32 1e-05, %v1469_v26  ;;  %v1470_v5 = vmul.f32 0.015625, %v1340_v32  ;;  %v1871_v51 = vadd.f32 %v8206_v46, %v1785_v52 }
 0x275   :  { %v6550_v19 = vpop.eup %6549  ;;  %v1343_v50 = vpop.xlane.xlu1 %1342  ;;  %v2016_v43 = vpack.c.bf16 %v1949_v37, %v1948_v45  ;;  %v1950_v18 = vmax.f32 %v1870_v57, 0.0  ;;  %v1701_v29 = vmul.f32 %v6548_v13, %v10595_v39  ;;  %v1786_v55 = vmul.f32 %v8196_v31, %v1700_v4  ;;  %v10600_v45 = vld [vmem:[#allocation3_spill] sm:$0xff] }
 0x276   :  { %6563 = vrsqrt.f32 %v1549_v14  ;;  %v1550_v33 = vadd.f32 1e-05, %v1470_v5  ;;  %v1471_v12 = vmul.f32 0.015625, %v1343_v50  ;;  %v1951_v3 = vmax.f32 %v1871_v51, 0.0 }
 0x277   :  { %v6552_v56 = vpop.eup %6551  ;;  %6133 = vmatprep.mubr.msk.bf16.mxu1 %vm694_vm2, %v2016_v43  ;;  %v1346_v62 = vpop.xlane.xlu0 %1345  ;;  %v1787_v8 = vmul.f32 %v8196_v31, %v1701_v29  ;;  %v1872_v23 = vadd.f32 %v8206_v46, %v1786_v55  ;;  %v1702_v36 = vmul.f32 %v6550_v19, %v10596_v58  ;;  %v8393_v43 = vld [vmem:[%s10584_s6] ss:$0 sm:$0xff] }
 0x278   :  { %6565 = vrsqrt.f32 %v1550_v33  ;;  %v1551_v25 = vadd.f32 1e-05, %v1471_v12  ;;  %v1472_v40 = vmul.f32 0.015625, %v1346_v62  ;;  %v2017_v17 = vpack.c.bf16 %v1951_v3, %v1950_v18  ;;  %v8401_v3 = vld [vmem:[%s10586_s2] ss:$0 sm:$0xff]  ;;  %v10602_v62 = vld [vmem:[#allocation8_spill] sm:$0xff] }
 0x279   :  { %v6554_v35 = vpop.eup %6553  ;;  %v1349_v48 = vpop.xlane.xlu1 %1348  ;;  %v1873_v47 = vadd.f32 %v8206_v46, %v1787_v8  ;;  %v1703_v11 = vmul.f32 %v6552_v56, %v10597_v7  ;;  %v1788_v1 = vmul.f32 %v8196_v31, %v1702_v36  ;;  %v1952_v2 = vmax.f32 %v1872_v23, 0.0 }
 0x27a   :  { %6567 = vrsqrt.f32 %v1551_v25  ;;  %v1552_v6 = vadd.f32 1e-05, %v1472_v40  ;;  %v1473_v44 = vmul.f32 0.015625, %v1349_v48  ;;  %6134 = vmatmul.mubr.msk.bf16.gmra.mxu1 %vm694_vm2, %v2017_v17  ;;  %v1704_v42 = vmul.f32 %v6554_v35, %v10598_v16  ;;  %v10603_v35 = vld [vmem:[#allocation10_spill] sm:$0xff] }
 0x27b   :  { %v6556_v49 = vpop.eup %6555  ;;  %v1352_v27 = vpop.xlane.xlu0 %1351  ;;  %v1953_v15 = vmax.f32 %v1873_v47, 0.0  ;;  %v1789_v30 = vmul.f32 %v8196_v31, %v1703_v11  ;;  %v1874_v53 = vadd.f32 %v8206_v46, %v1788_v1  ;;  %v10604_v1 = vld [vmem:[#allocation7_spill] sm:$0xff] }
 0x27c   :  { %6569 = vrsqrt.f32 %v1552_v6  ;;  %v1553_v38 = vadd.f32 1e-05, %v1473_v44  ;;  %v1474_v54 = vmul.f32 0.015625, %v1352_v27  ;;  %v1705_v21 = vmul.f32 %v6556_v49, %v10599_v24 }
 0x27d   :  { %v6558_v9 = vpop.eup %6557  ;;  %v1355_v22 = vpop.xlane.xlu1 %1354  ;;  %v2018_v20 = vpack.c.bf16 %v1953_v15, %v1952_v2  ;;  %v1875_v28 = vadd.f32 %v8206_v46, %v1789_v30  ;;  %v1790_v0 = vmul.f32 %v8196_v31, %v1704_v42  ;;  %v1954_v52 = vmax.f32 %v1874_v53, 0.0  ;;  %v10605_v53 = vld [vmem:[#allocation9_spill] sm:$0xff] }
 0x27e   :  { %6571 = vrsqrt.f32 %v1553_v38  ;;  %v1554_v41 = vadd.f32 1e-05, %v1474_v54  ;;  %v1475_v59 = vmul.f32 0.015625, %v1355_v22  ;;  %v1791_v61 = vmul.f32 %v8196_v31, %v1705_v21  ;;  %v10601_v31 = vld [vmem:[#allocation5_spill] sm:$0xff] }
 0x27f   :  { %v6560_v63 = vpop.eup %6559  ;;  %6137 = vmatprep.mubr.msk.bf16.mxu1 %vm694_vm2, %v2018_v20  ;;  %v1358_v26 = vpop.xlane.xlu0 %1357  ;;  %v1955_v13 = vmax.f32 %v1875_v28, 0.0  ;;  %v1876_v32 = vadd.f32 %v8206_v46, %v1790_v0  ;;  %v1706_v37 = vmul.f32 %v6558_v9, %v10600_v45 }
 0x280   :  { %6573 = vrsqrt.f32 %v1554_v41  ;;  %v1555_v57 = vadd.f32 1e-05, %v1475_v59  ;;  %v1476_v34 = vmul.f32 0.015625, %v1358_v26  ;;  %v1877_v4 = vadd.f32 %v8206_v46, %v1791_v61 }
 0x281   :  { %v6562_v14 = vpop.eup %6561  ;;  %v1361_v5 = vpop.xlane.xlu1 %1360  ;;  %v2019_v51 = vpack.c.bf16 %v1955_v13, %v1954_v52  ;;  %v1956_v19 = vmax.f32 %v1876_v32, 0.0  ;;  %v1707_v50 = vmul.f32 %v6560_v63, %v10601_v31  ;;  %v1792_v18 = vmul.f32 %v8393_v43, %v1706_v37  ;;  %v10606_v52 = vld [vmem:[#allocation12_spill] sm:$0xff] }
 0x282   :  { %6575 = vrsqrt.f32 %v1555_v57  ;;  %v1556_v39 = vadd.f32 1e-05, %v1476_v34  ;;  %v1477_v29 = vmul.f32 0.015625, %v1361_v5  ;;  %v1957_v55 = vmax.f32 %v1877_v4, 0.0  ;;  %v10607_v5 = vld [vmem:[#allocation14_spill] sm:$0xff] }
 0x283   :  { %v6564_v33 = vpop.eup %6563  ;;  %6138 = vmatmul.mubr.msk.bf16.gmra.mxu1 %vm694_vm2, %v2019_v51  ;;  %v1364_v46 = vpop.xlane.xlu0 %1363  ;;  %v1793_v12 = vmul.f32 %v8393_v43, %v1707_v50  ;;  %v1878_v56 = vadd.f32 %v8401_v3, %v1792_v18  ;;  %v1708_v8 = vmul.f32 %v6562_v14, %v10602_v62 }
 0x284   :  { %6577 = vrsqrt.f32 %v1556_v39  ;;  %v1557_v23 = vadd.f32 1e-05, %v1477_v29  ;;  %v1478_v58 = vmul.f32 0.015625, %v1364_v46  ;;  %v2020_v36 = vpack.c.bf16 %v1957_v55, %v1956_v19  ;;  %v10608_v46 = vld [vmem:[#allocation11_spill] sm:$0xff] }
 0x285   :  { %v6566_v25 = vpop.eup %6565  ;;  %v1367_v40 = vpop.xlane.xlu1 %1366  ;;  %v1879_v17 = vadd.f32 %v8401_v3, %v1793_v12  ;;  %v1709_v48 = vmul.f32 %v6564_v33, %v10603_v35  ;;  %v1794_v47 = vmul.f32 %v8393_v43, %v1708_v8  ;;  %v1958_v42 = vmax.f32 %v1878_v56, 0.0 }
 0x286   :  { %6579 = vrsqrt.f32 %v1557_v23  ;;  %v1558_v7 = vadd.f32 1e-05, %v1478_v58  ;;  %v1479_v11 = vmul.f32 0.015625, %v1367_v40  ;;  %6141 = vmatprep.mubr.msk.bf16.mxu1 %vm694_vm2, %v2020_v36  ;;  %v1710_v6 = vmul.f32 %v6566_v25, %v10604_v1  ;;  %v10609_v25 = vld [vmem:[#allocation13_spill] sm:$0xff] }
 0x287   :  { %v6568_v44 = vpop.eup %6567  ;;  %v1370_v16 = vpop.xlane.xlu0 %1369  ;;  %v1959_v49 = vmax.f32 %v1879_v17, 0.0  ;;  %v1795_v27 = vmul.f32 %v8393_v43, %v1709_v48  ;;  %v1880_v2 = vadd.f32 %v8401_v3, %v1794_v47  ;;  %v10610_v47 = vld [vmem:[#allocation16_spill] sm:$0xff] }
 0x288   :  { %6581 = vrsqrt.f32 %v1558_v7  ;;  %v1559_v15 = vadd.f32 1e-05, %v1479_v11  ;;  %v1480_v30 = vmul.f32 0.015625, %v1370_v16  ;;  %v1711_v38 = vmul.f32 %v6568_v44, %v10605_v53 }
 0x289   :  { %v6570_v54 = vpop.eup %6569  ;;  %v1373_v24 = vpop.xlane.xlu1 %1372  ;;  %v2021_v21 = vpack.c.bf16 %v1959_v49, %v1958_v42  ;;  %v1881_v9 = vadd.f32 %v8401_v3, %v1795_v27  ;;  %v1796_v22 = vmul.f32 %v8393_v43, %v1710_v6  ;;  %v1960_v61 = vmax.f32 %v1880_v2, 0.0  ;;  %v10611_v2 = vld [vmem:[#allocation18_spill] sm:$0xff] }
 0x28a   :  { %6583 = vrsqrt.f32 %v1559_v15  ;;  %v1560_v20 = vadd.f32 1e-05, %v1480_v30  ;;  %v1481_v28 = vmul.f32 0.015625, %v1373_v24  ;;  %v1797_v0 = vmul.f32 %v8393_v43, %v1711_v38 }
 0x28b   :  { %v6572_v41 = vpop.eup %6571  ;;  %6142 = vmatmul.mubr.msk.bf16.gmra.mxu1 %vm694_vm2, %v2021_v21  ;;  %v1376_v59 = vpop.xlane.xlu0 %1375  ;;  %v1961_v63 = vmax.f32 %v1881_v9, 0.0  ;;  %v1882_v26 = vadd.f32 %v8401_v3, %v1796_v22  ;;  %v1712_v13 = vmul.f32 %v6570_v54, %v10606_v52 }
 0x28c   :  { %6585 = vrsqrt.f32 %v1560_v20  ;;  %v1561_v32 = vadd.f32 1e-05, %v1481_v28  ;;  %v1482_v45 = vmul.f32 0.015625, %v1376_v59  ;;  %v1883_v37 = vadd.f32 %v8401_v3, %v1797_v0 }
 0x28d   :  { %v6574_v57 = vpop.eup %6573  ;;  %v1379_v34 = vpop.xlane.xlu1 %1378  ;;  %v2022_v4 = vpack.c.bf16 %v1961_v63, %v1960_v61  ;;  %v1962_v14 = vmax.f32 %v1882_v26, 0.0  ;;  %v1713_v51 = vmul.f32 %v6572_v41, %v10607_v5  ;;  %v1798_v19 = vmul.f32 %v8393_v43, %v1712_v13  ;;  %v10612_v61 = vld [vmem:[#allocation15_spill] sm:$0xff] }
 0x28e   :  { %6587 = vrsqrt.f32 %v1561_v32  ;;  %v1562_v31 = vadd.f32 1e-05, %v1482_v45  ;;  %v1483_v50 = vmul.f32 0.015625, %v1379_v34  ;;  %v1963_v18 = vmax.f32 %v1883_v37, 0.0  ;;  %v10613_v34 = vld [vmem:[#allocation17_spill] sm:$0xff] }
 0x28f   :  { %v6576_v39 = vpop.eup %6575  ;;  %6145 = vmatprep.mubr.msk.bf16.mxu1 %vm694_vm2, %v2022_v4  ;;  %v1382_v29 = vpop.xlane.xlu0 %1381  ;;  %v1799_v55 = vmul.f32 %v8393_v43, %v1713_v51  ;;  %v1884_v33 = vadd.f32 %v8401_v3, %v1798_v19  ;;  %v1714_v12 = vmul.f32 %v6574_v57, %v10608_v46 }
 0x290   :  { %6589 = vrsqrt.f32 %v1562_v31  ;;  %v1563_v56 = vadd.f32 1e-05, %v1483_v50  ;;  %v1484_v62 = vmul.f32 0.015625, %v1382_v29  ;;  %v2023_v8 = vpack.c.bf16 %v1963_v18, %v1962_v14  ;;  %v10614_v29 = vld [vmem:[#allocation20_spill] sm:$0xff] }
 0x291   :  { %v6578_v23 = vpop.eup %6577  ;;  %v1385_v58 = vpop.xlane.xlu1 %1384  ;;  %v1885_v36 = vadd.f32 %v8401_v3, %v1799_v55  ;;  %v1715_v40 = vmul.f32 %v6576_v39, %v10609_v25  ;;  %v1800_v17 = vmul.f32 %v8393_v43, %v1714_v12  ;;  %v1964_v6 = vmax.f32 %v1884_v33, 0.0 }
 0x292   :  { %6591 = vrsqrt.f32 %v1563_v56  ;;  %v1564_v35 = vadd.f32 1e-05, %v1484_v62  ;;  %v1485_v48 = vmul.f32 0.015625, %v1385_v58  ;;  %v1716_v7 = vmul.f32 %v6578_v23, %v10610_v47  ;;  %v10615_v23 = vld [vmem:[#allocation22_spill] sm:$0xff] }
 0x293   :  { %v6580_v11 = vpop.eup %6579  ;;  %6146 = vmatmul.mubr.msk.bf16.gmra.mxu1 %vm694_vm2, %v2023_v8  ;;  %v1388_v1 = vpop.xlane.xlu0 %1387  ;;  %v1965_v44 = vmax.f32 %v1885_v36, 0.0  ;;  %v1801_v16 = vmul.f32 %v8393_v43, %v1715_v40  ;;  %v1886_v42 = vadd.f32 %v8401_v3, %v1800_v17  ;;  %v10616_v17 = vld [vmem:[#allocation19_spill] sm:$0xff] }
 0x294   :  { %6593 = vrsqrt.f32 %v1564_v35  ;;  %v1565_v49 = vadd.f32 1e-05, %v1485_v48  ;;  %v1486_v27 = vmul.f32 0.015625, %v1388_v1  ;;  %v1717_v15 = vmul.f32 %v6580_v11, %v10611_v2 }
 0x295   :  { %v6582_v30 = vpop.eup %6581  ;;  %v1391_v53 = vpop.xlane.xlu1 %1390  ;;  %v2024_v38 = vpack.c.bf16 %v1965_v44, %v1964_v6  ;;  %v1887_v54 = vadd.f32 %v8401_v3, %v1801_v16  ;;  %v1802_v24 = vmul.f32 %v8393_v43, %v1716_v7  ;;  %v1966_v0 = vmax.f32 %v1886_v42, 0.0  ;;  %v10617_v42 = vld [vmem:[#allocation21_spill] sm:$0xff] }
 0x296   :  { %6595 = vrsqrt.f32 %v1565_v49  ;;  %v1566_v21 = vadd.f32 1e-05, %v1486_v27  ;;  %v1487_v9 = vmul.f32 0.015625, %v1391_v53  ;;  %v1803_v22 = vmul.f32 %v8393_v43, %v1717_v15 }
 0x297   :  { %v6584_v20 = vpop.eup %6583  ;;  %6149 = vmatprep.mubr.msk.bf16.mxu1 %vm694_vm2, %v2024_v38  ;;  %v1394_v28 = vpop.xlane.xlu0 %1393  ;;  %v1967_v41 = vmax.f32 %v1887_v54, 0.0  ;;  %v1888_v59 = vadd.f32 %v8401_v3, %v1802_v24  ;;  %v1718_v63 = vmul.f32 %v6582_v30, %v10612_v61  ;;  %v10619_v61 = vld [vmem:[#allocation26_spill] sm:$0xff] }
 0x298   :  { %6597 = vrsqrt.f32 %v1566_v21  ;;  %v1567_v26 = vadd.f32 1e-05, %v1487_v9  ;;  %v1488_v52 = vmul.f32 0.015625, %v1394_v28  ;;  %v1889_v13 = vadd.f32 %v8401_v3, %v1803_v22  ;;  %v10618_v28 = vld [vmem:[#allocation24_spill] sm:$0xff] }
 0x299   :  { %v6586_v32 = vpop.eup %6585  ;;  %v1397_v45 = vpop.xlane.xlu1 %1396  ;;  %v2025_v37 = vpack.c.bf16 %v1967_v41, %v1966_v0  ;;  %v1968_v57 = vmax.f32 %v1888_v59, 0.0  ;;  %v1719_v4 = vmul.f32 %v6584_v20, %v10613_v34  ;;  %v1804_v14 = vmul.f32 %v8393_v43, %v1718_v63 }
 0x29a   :  { %6599 = vrsqrt.f32 %v1567_v26  ;;  %v1568_v5 = vadd.f32 1e-05, %v1488_v52  ;;  %v1489_v51 = vmul.f32 0.015625, %v1397_v45  ;;  %v1969_v19 = vmax.f32 %v1889_v13, 0.0 }
 0x29b   :  { %v6588_v31 = vpop.eup %6587  ;;  %6150 = vmatmul.mubr.msk.bf16.gmra.mxu1 %vm694_vm2, %v2025_v37  ;;  %v1400_v50 = vpop.xlane.xlu0 %1399  ;;  %v1805_v18 = vmul.f32 %v8393_v43, %v1719_v4  ;;  %v1890_v39 = vadd.f32 %v8401_v3, %v1804_v14  ;;  %v1720_v55 = vmul.f32 %v6586_v32, %v10614_v29 }
 0x29c   :  { %6601 = vrsqrt.f32 %v1568_v5  ;;  %v1569_v33 = vadd.f32 1e-05, %v1489_v51  ;;  %v1490_v46 = vmul.f32 0.015625, %v1400_v50  ;;  %v2026_v12 = vpack.c.bf16 %v1969_v19, %v1968_v57  ;;  %v10620_v57 = vld [vmem:[#allocation23_spill] sm:$0xff]  ;;  %v10621_v19 = vld [vmem:[#allocation25_spill] sm:$0xff] }
 0x29d   :  { %v6590_v56 = vpop.eup %6589  ;;  %v1403_v62 = vpop.xlane.xlu1 %1402  ;;  %v1891_v8 = vadd.f32 %v8401_v3, %v1805_v18  ;;  %v1721_v58 = vmul.f32 %v6588_v31, %v10615_v23  ;;  %v1806_v36 = vmul.f32 %v8393_v43, %v1720_v55  ;;  %v1970_v7 = vmax.f32 %v1890_v39, 0.0  ;;  %v10623_v23 = vld [vmem:[#allocation33_spill] sm:$0xff] }
 0x29e   :  { %6603 = vrsqrt.f32 %v1569_v33  ;;  %v1570_v25 = vadd.f32 1e-05, %v1490_v46  ;;  %v1491_v40 = vmul.f32 0.015625, %v1403_v62  ;;  %6153 = vmatprep.mubr.msk.bf16.mxu1 %vm694_vm2, %v2026_v12  ;;  %v1722_v35 = vmul.f32 %v6590_v56, %v10616_v17  ;;  %v10622_v46 = vld [vmem:[#allocation43_spill] sm:$0xff] }
 0x29f   :  { %v6592_v48 = vpop.eup %6591  ;;  %v1406_v47 = vpop.xlane.xlu0 %1405  ;;  %v1971_v11 = vmax.f32 %v1891_v8, 0.0  ;;  %v1807_v1 = vmul.f32 %v8393_v43, %v1721_v58  ;;  %v1892_v6 = vadd.f32 %v8401_v3, %v1806_v36 }
 0x2a0   :  { %6605 = vrsqrt.f32 %v1570_v25  ;;  %v1571_v44 = vadd.f32 1e-05, %v1491_v40  ;;  %v1492_v16 = vmul.f32 0.015625, %v1406_v47  ;;  %v1723_v49 = vmul.f32 %v6592_v48, %v10617_v42  ;;  %v10624_v48 = vld [vmem:[#allocation28_spill] sm:$0xff] }
 0x2a1   :  { %v6594_v27 = vpop.eup %6593  ;;  %v1409_v2 = vpop.xlane.xlu1 %1408  ;;  %v2027_v15 = vpack.c.bf16 %v1971_v11, %v1970_v7  ;;  %v1893_v30 = vadd.f32 %v8401_v3, %v1807_v1  ;;  %v1808_v53 = vmul.f32 %v8393_v43, %v1722_v35  ;;  %v1972_v9 = vmax.f32 %v1892_v6, 0.0 }
 0x2a2   :  { %6607 = vrsqrt.f32 %v1571_v44  ;;  %v1572_v38 = vadd.f32 1e-05, %v1492_v16  ;;  %v1493_v54 = vmul.f32 0.015625, %v1409_v2  ;;  %v1809_v24 = vmul.f32 %v8393_v43, %v1723_v49  ;;  %v10625_v44 = vld [vmem:[#allocation30_spill] sm:$0xff] }
 0x2a3   :  { %v6596_v21 = vpop.eup %6595  ;;  %6154 = vmatmul.mubr.msk.bf16.gmra.mxu1 %vm694_vm2, %v2027_v15  ;;  %v1973_v22 = vmax.f32 %v1893_v30, 0.0  ;;  %v1894_v20 = vadd.f32 %v8401_v3, %v1808_v53  ;;  %v1724_v0 = vmul.f32 %v6594_v27, %v10618_v28  ;;  %v10626_v53 = vld [vmem:[#allocation44_spill] sm:$0xff] }
 0x2a4   :  { %6609 = vrsqrt.f32 %v1572_v38  ;;  %v1573_v41 = vadd.f32 1e-05, %v1493_v54  ;;  %v1895_v59 = vadd.f32 %v8401_v3, %v1809_v24  ;;  %v1725_v63 = vmul.f32 %v6596_v21, %v10619_v61 }
 0x2a5   :  { %v6598_v26 = vpop.eup %6597  ;;  %v2028_v52 = vpack.c.bf16 %v1973_v22, %v1972_v9  ;;  %v1974_v13 = vmax.f32 %v1894_v20, 0.0  ;;  %v1810_v32 = vmul.f32 %v8393_v43, %v1724_v0  ;;  %v10627_v9 = vld [vmem:[#allocation45_spill] sm:$0xff] }
 0x2a6   :  { %6611 = vrsqrt.f32 %v1573_v41  ;;  %v1975_v45 = vmax.f32 %v1895_v59, 0.0  ;;  %v1811_v37 = vmul.f32 %v8393_v43, %v1725_v63  ;;  %v1726_v34 = vmul.f32 %v6598_v26, %v10620_v57 }
 0x2a7   :  { %v6600_v4 = vpop.eup %6599  ;;  %6157 = vmatprep.mubr.msk.bf16.mxu1 %vm694_vm2, %v2028_v52  ;;  %v1896_v14 = vadd.f32 %v8401_v3, %v1810_v32  ;;  %v8501_v32 = vld [vmem:[%s10628_s28] ss:$0 sm:$0xff] }
 0x2a8   :  { %v2029_v5 = vpack.c.bf16 %v1975_v45, %v1974_v13  ;;  %v1897_v51 = vadd.f32 %v8401_v3, %v1811_v37  ;;  %v1727_v31 = vmul.f32 %v6600_v4, %v10621_v19  ;;  %v1812_v50 = vmul.f32 %v8393_v43, %v1726_v34 }
 0x2a9   :  { %v6602_v18 = vpop.eup %6601  ;;  %v1976_v39 = vmax.f32 %v1896_v14, 0.0 }
 0x2aa   :  { %v1977_v29 = vmax.f32 %v1897_v51, 0.0  ;;  %v1813_v55 = vmul.f32 %v8393_v43, %v1727_v31  ;;  %v1898_v33 = vadd.f32 %v8401_v3, %v1812_v50  ;;  %v1728_v12 = vmul.f32 %v6602_v18, %v10622_v46 }
 0x2ab   :  { %v6604_v56 = vpop.eup %6603  ;;  %6158 = vmatmul.mubr.msk.bf16.gmra.mxu1 %vm694_vm2, %v2029_v5 }
 0x2ac   :  { %v2030_v62 = vpack.c.bf16 %v1977_v29, %v1976_v39  ;;  %v1899_v8 = vadd.f32 %v8401_v3, %v1813_v55  ;;  %v1729_v58 = vmul.f32 %v6604_v56, %v10623_v23  ;;  %v1814_v25 = vmul.f32 %v8393_v43, %v1728_v12 }
 0x2ad   :  { %v6606_v36 = vpop.eup %6605  ;;  %v1978_v40 = vmax.f32 %v1898_v33, 0.0 }
 0x2ae   :  { %6161 = vmatprep.mubr.msk.bf16.mxu1 %vm694_vm2, %v2030_v62  ;;  %v1979_v17 = vmax.f32 %v1899_v8, 0.0  ;;  %v1815_v35 = vmul.f32 %v8393_v43, %v1729_v58  ;;  %v1730_v47 = vmul.f32 %v6606_v36, %v10624_v48  ;;  %v1900_v11 = vadd.f32 %v8401_v3, %v1814_v25 }
 0x2af   :  { %v6608_v7 = vpop.eup %6607 }
 0x2b0   :  { %v2031_v1 = vpack.c.bf16 %v1979_v17, %v1978_v40  ;;  %v1901_v6 = vadd.f32 %v8401_v3, %v1815_v35  ;;  %v1731_v16 = vmul.f32 %v6608_v7, %v10625_v44  ;;  %v1816_v42 = vmul.f32 %v8393_v43, %v1730_v47 }
 0x2b1   :  { %v6610_v49 = vpop.eup %6609  ;;  %v1980_v27 = vmax.f32 %v1900_v11, 0.0 }
 0x2b2   :  { %v1981_v2 = vmax.f32 %v1901_v6, 0.0  ;;  %v1817_v15 = vmul.f32 %v8393_v43, %v1731_v16  ;;  %v1902_v30 = vadd.f32 %v8401_v3, %v1816_v42  ;;  %v1732_v38 = vmul.f32 %v6610_v49, %v10626_v53 }
 0x2b3   :  { %v6612_v54 = vpop.eup %6611  ;;  %6162 = vmatmul.mubr.msk.bf16.gmra.mxu1 %vm694_vm2, %v2031_v1 }
 0x2b4   :  { %v2032_v24 = vpack.c.bf16 %v1981_v2, %v1980_v27  ;;  %v1903_v21 = vadd.f32 %v8401_v3, %v1817_v15  ;;  %v1733_v22 = vmul.f32 %v6612_v54, %v10627_v9  ;;  %v1818_v20 = vmul.f32 %v8393_v43, %v1732_v38 }
 0x2b5   :  { %v1982_v28 = vmax.f32 %v1902_v30, 0.0 }
 0x2b6   :  { %6165 = vmatprep.mubr.msk.bf16.mxu1 %vm694_vm2, %v2032_v24  ;;  %v1983_v0 = vmax.f32 %v1903_v21, 0.0  ;;  %v1819_v41 = vmul.f32 %v8393_v43, %v1733_v22  ;;  %v1904_v59 = vadd.f32 %v8401_v3, %v1818_v20 }
 0x2b8   :  { %v2033_v61 = vpack.c.bf16 %v1983_v0, %v1982_v28  ;;  %v1905_v63 = vadd.f32 %v8401_v3, %v1819_v41  ;;  %v1984_v26 = vmax.f32 %v1904_v59, 0.0 }
 0x2ba   :  { %v1985_v52 = vmax.f32 %v1905_v63, 0.0 }
 0x2bb   :  { %6166 = vmatmul.mubr.msk.bf16.gmra.mxu1 %vm694_vm2, %v2033_v61 }
 0x2bc   :  { %v2034_v13 = vpack.c.bf16 %v1985_v52, %v1984_v26 }
 0x2be   :  { %6169 = vmatprep.mubr.msk.bf16.mxu1 %vm694_vm2, %v2034_v13 }
 0x2e3   :  { %v6095_v45 = vpop.f32.mrf.mxu1 }
 0x2e4   :  { %v8504_v37 = vadd.f32 %v6095_v45, %v8501_v32  ;;  %v1412_v57 = vpop.xlane.xlu0 %1411 }
 0x2e5   :  { %v1494_v34 = vmul.f32 0.015625, %v1412_v57  ;;  %v2221_v4 = vpop.f32.mrf.mxu1 }
 0x2e6   :  { %v1415_v14 = vpop.xlane.xlu1 %1414  ;;  %2546 = vadd.xlane.f32.xlu0 %v8504_v37  ;;  %v8508_v31 = vadd.f32 %v8501_v32, %v2221_v4 }
 0x2e7   :  { %v1574_v5 = vadd.f32 1e-05, %v1494_v34  ;;  %v1495_v51 = vmul.f32 0.015625, %v1415_v14  ;;  %v6096_v19 = vpop.f32.mrf.mxu1 }
 0x2e8   :  { %v8511_v50 = vadd.f32 %v6096_v19, %v8501_v32 }
 0x2e9   :  { %6613 = vrsqrt.f32 %v1574_v5  ;;  %v1575_v18 = vadd.f32 1e-05, %v1495_v51  ;;  %v2224_v39 = vpop.f32.mrf.mxu1 }
 0x2ea   :  { %2548 = vadd.xlane.f32.xlu1 %v8511_v50  ;;  %2542 = vadd.xlane.f32.xlu0 %v8508_v31  ;;  %v8516_v29 = vadd.f32 %v8501_v32, %v2224_v39 }
 0x2eb   :  { %6615 = vrsqrt.f32 %v1575_v18 }
 0x2ee   :  { %2544 = vadd.xlane.f32.xlu1 %v8516_v29 }
 0x2ef   :  { %v6099_v55 = vpop.f32.mrf.mxu1 }
 0x2f0   :  { %v8520_v33 = vadd.f32 %v6099_v55, %v8501_v32 }
 0x2f1   :  { %v2237_v46 = vpop.f32.mrf.mxu1 }
 0x2f2   :  { %2554 = vadd.xlane.f32.xlu0 %v8520_v33  ;;  %v8524_v56 = vadd.f32 %v8501_v32, %v2237_v46 }
 0x2f3   :  { %v6100_v12 = vpop.f32.mrf.mxu1 }
 0x2f4   :  { %v8527_v62 = vadd.f32 %v6100_v12, %v8501_v32 }
 0x2f5   :  { %v2240_v8 = vpop.f32.mrf.mxu1 }
 0x2f6   :  { %v6614_v23 = vpop.eup %6613  ;;  %2556 = vadd.xlane.f32.xlu1 %v8527_v62  ;;  %2550 = vadd.xlane.f32.xlu0 %v8524_v56  ;;  %v8533_v25 = vadd.f32 %v8501_v32, %v2240_v8 }
 0x2f7   :  { %v1734_v58 = vmul.f32 %v6614_v23, %v8309_v60 }
 0x2f8   :  { %v6616_v36 = vpop.eup %6615  ;;  %v6103_v40 = vpop.f32.mrf.mxu1 }
 0x2f9   :  { %v8536_v17 = vadd.f32 %v6103_v40, %v8501_v32  ;;  %v1735_v35 = vmul.f32 %v6616_v36, %v8316_v10  ;;  %v1820_v48 = vmul.f32 %v8393_v43, %v1734_v58 }
 0x2fa   :  { %v2253_v47 = vpop.f32.mrf.mxu1  ;;  %2552 = vadd.xlane.f32.xlu1 %v8533_v25 }
 0x2fb   :  { %2562 = vadd.xlane.f32.xlu0 %v8536_v17  ;;  %v1821_v7 = vmul.f32 %v8393_v43, %v1735_v35  ;;  %v1906_v60 = vadd.f32 %v8401_v3, %v1820_v48  ;;  %v8545_v1 = vadd.f32 %v8501_v32, %v2253_v47 }
 0x2fc   :  { %v6104_v11 = vpop.f32.mrf.mxu1 }
 0x2fd   :  { %v8548_v6 = vadd.f32 %v6104_v11, %v8501_v32  ;;  %v1907_v10 = vadd.f32 %v8401_v3, %v1821_v7  ;;  %v1986_v16 = vmax.f32 %v1906_v60, 0.0 }
 0x2fe   :  { %v2256_v44 = vpop.f32.mrf.mxu1 }
 0x2ff   :  { %2564 = vadd.xlane.f32.xlu1 %v8548_v6  ;;  %2558 = vadd.xlane.f32.xlu0 %v8545_v1  ;;  %v1987_v42 = vmax.f32 %v1907_v10, 0.0  ;;  %v8554_v43 = vadd.f32 %v8501_v32, %v2256_v44 }
 0x300   :  { %v6107_v49 = vpop.f32.mrf.mxu1 }
 0x301   :  { %v8557_v27 = vadd.f32 %v6107_v49, %v8501_v32  ;;  %v2035_v2 = vpack.c.bf16 %v1987_v42, %v1986_v16 }
 0x302   :  { %v2269_v15 = vpop.f32.mrf.mxu1 }
 0x303   :  { %2560 = vadd.xlane.f32.xlu1 %v8554_v43  ;;  %2570 = vadd.xlane.f32.xlu0 %v8557_v27  ;;  %v8563_v30 = vadd.f32 %v8501_v32, %v2269_v15 }
 0x304   :  { %v6108_v3 = vpop.f32.mrf.mxu1  ;;  %6170 = vmatmul.mubr.msk.bf16.gmra.mxu1 %vm694_vm2, %v2035_v2 }
 0x305   :  { %v8566_v53 = vadd.f32 %v6108_v3, %v8501_v32 }
 0x306   :  { %v2272_v38 = vpop.f32.mrf.mxu1 }
 0x307   :  { %2572 = vadd.xlane.f32.xlu1 %v8566_v53  ;;  %2566 = vadd.xlane.f32.xlu0 %v8563_v30  ;;  %v8571_v24 = vadd.f32 %v8501_v32, %v2272_v38 }
 0x308   :  { %v6111_v54 = vpop.f32.mrf.mxu1 }
 0x309   :  { %v8574_v21 = vadd.f32 %v6111_v54, %v8501_v32 }
 0x30a   :  { %v2285_v9 = vpop.f32.mrf.mxu1 }
 0x30b   :  { %2568 = vadd.xlane.f32.xlu1 %v8571_v24  ;;  %2578 = vadd.xlane.f32.xlu0 %v8574_v21  ;;  %v8579_v20 = vadd.f32 %v8501_v32, %v2285_v9 }
 0x30c   :  { %v6112_v22 = vpop.f32.mrf.mxu1 }
 0x30d   :  { %v8582_v28 = vadd.f32 %v6112_v22, %v8501_v32 }
 0x30e   :  { %v2288_v0 = vpop.f32.mrf.mxu1 }
 0x30f   :  { %2580 = vadd.xlane.f32.xlu1 %v8582_v28  ;;  %2574 = vadd.xlane.f32.xlu0 %v8579_v20  ;;  %v8587_v59 = vadd.f32 %v8501_v32, %v2288_v0 }
 0x310   :  { %v6115_v41 = vpop.f32.mrf.mxu1 }
 0x311   :  { %v8590_v61 = vadd.f32 %v6115_v41, %v8501_v32 }
 0x312   :  { %v2301_v63 = vpop.f32.mrf.mxu1 }
 0x313   :  { %2576 = vadd.xlane.f32.xlu1 %v8587_v59  ;;  %2586 = vadd.xlane.f32.xlu0 %v8590_v61  ;;  %v8595_v52 = vadd.f32 %v8501_v32, %v2301_v63 }
 0x314   :  { %v6116_v26 = vpop.f32.mrf.mxu1 }
 0x315   :  { %v8598_v13 = vadd.f32 %v6116_v26, %v8501_v32 }
 0x316   :  { %v2304_v45 = vpop.f32.mrf.mxu1 }
 0x317   :  { %2588 = vadd.xlane.f32.xlu1 %v8598_v13  ;;  %2582 = vadd.xlane.f32.xlu0 %v8595_v52  ;;  %v8603_v34 = vadd.f32 %v8501_v32, %v2304_v45 }
 0x318   :  { %v6119_v57 = vpop.f32.mrf.mxu1 }
 0x319   :  { %v8606_v4 = vadd.f32 %v6119_v57, %v8501_v32 }
 0x31a   :  { %v2317_v14 = vpop.f32.mrf.mxu1 }
 0x31b   :  { %2584 = vadd.xlane.f32.xlu1 %v8603_v34  ;;  %2594 = vadd.xlane.f32.xlu0 %v8606_v4  ;;  %v8611_v51 = vadd.f32 %v8501_v32, %v2317_v14 }
 0x31c   :  { %v6120_v5 = vpop.f32.mrf.mxu1 }
 0x31d   :  { %v8614_v19 = vadd.f32 %v6120_v5, %v8501_v32 }
 0x31e   :  { %v2320_v18 = vpop.f32.mrf.mxu1 }
 0x31f   :  { %2596 = vadd.xlane.f32.xlu1 %v8614_v19  ;;  %2590 = vadd.xlane.f32.xlu0 %v8611_v51  ;;  %v8619_v55 = vadd.f32 %v8501_v32, %v2320_v18 }
 0x320   :  { %v6123_v39 = vpop.f32.mrf.mxu1 }
 0x321   :  { %v8622_v46 = vadd.f32 %v6123_v39, %v8501_v32 }
 0x322   :  { %v2333_v12 = vpop.f32.mrf.mxu1 }
 0x323   :  { %2592 = vadd.xlane.f32.xlu1 %v8619_v55  ;;  %2602 = vadd.xlane.f32.xlu0 %v8622_v46  ;;  %v8627_v23 = vadd.f32 %v8501_v32, %v2333_v12 }
 0x324   :  { %v6124_v8 = vpop.f32.mrf.mxu1 }
 0x325   :  { %v8630_v58 = vadd.f32 %v6124_v8, %v8501_v32 }
 0x326   :  { %v2336_v36 = vpop.f32.mrf.mxu1 }
 0x327   :  { %2604 = vadd.xlane.f32.xlu1 %v8630_v58  ;;  %2598 = vadd.xlane.f32.xlu0 %v8627_v23  ;;  %v8635_v35 = vadd.f32 %v8501_v32, %v2336_v36 }
 0x328   :  { %v6127_v40 = vpop.f32.mrf.mxu1 }
 0x329   :  { %v8638_v48 = vadd.f32 %v6127_v40, %v8501_v32 }
 0x32a   :  { %v2349_v47 = vpop.f32.mrf.mxu1 }
 0x32b   :  { %2600 = vadd.xlane.f32.xlu1 %v8635_v35  ;;  %2610 = vadd.xlane.f32.xlu0 %v8638_v48  ;;  %v8643_v60 = vadd.f32 %v8501_v32, %v2349_v47 }
 0x32c   :  { %v6128_v7 = vpop.f32.mrf.mxu1 }
 0x32d   :  { %10629 = vst [vmem:[#allocation29_spill] sm:$0xff] %v8643_v60  ;;  %v8646_v11 = vadd.f32 %v6128_v7, %v8501_v32 }
 0x32e   :  { %v2352_v10 = vpop.f32.mrf.mxu1 }
 0x32f   :  { %10630 = vst [vmem:[#allocation27_spill] sm:$0xff] %v8646_v11  ;;  %2612 = vadd.xlane.f32.xlu1 %v8646_v11  ;;  %2606 = vadd.xlane.f32.xlu0 %v8643_v60  ;;  %v8651_v16 = vadd.f32 %v8501_v32, %v2352_v10 }
 0x330   :  { %v6131_v44 = vpop.f32.mrf.mxu1 }
 0x331   :  { %10631 = vst [vmem:[#allocation31_spill] sm:$0xff] %v8651_v16  ;;  %v8654_v42 = vadd.f32 %v6131_v44, %v8501_v32 }
 0x332   :  { %v2365_v49 = vpop.f32.mrf.mxu1 }
 0x333   :  { %10632 = vst [vmem:[#allocation32_spill] sm:$0xff] %v8654_v42  ;;  %2608 = vadd.xlane.f32.xlu1 %v8651_v16  ;;  %2618 = vadd.xlane.f32.xlu0 %v8654_v42  ;;  %v8659_v15 = vadd.f32 %v8501_v32, %v2365_v49 }
 0x334   :  { %v6132_v2 = vpop.f32.mrf.mxu1 }
 0x335   :  { %10633 = vst [vmem:[#allocation34_spill] sm:$0xff] %v8659_v15  ;;  %v8662_v3 = vadd.f32 %v6132_v2, %v8501_v32 }
 0x336   :  { %v2368_v38 = vpop.f32.mrf.mxu1 }
 0x337   :  { %10634 = vst [vmem:[#allocation35_spill] sm:$0xff] %v8662_v3  ;;  %2620 = vadd.xlane.f32.xlu1 %v8662_v3  ;;  %2614 = vadd.xlane.f32.xlu0 %v8659_v15  ;;  %v8667_v54 = vadd.f32 %v8501_v32, %v2368_v38 }
 0x339   :  { %10635 = vst [vmem:[#allocation36_spill] sm:$0xff] %v8667_v54 }
 0x33a   :  { %v6135_v9 = vpop.f32.mrf.mxu1 }
 0x33b   :  { %2616 = vadd.xlane.f32.xlu1 %v8667_v54  ;;  %v8671_v22 = vadd.f32 %v6135_v9, %v8501_v32 }
 0x33c   :  { %v2381_v0 = vpop.f32.mrf.mxu1 }
 0x33d   :  { %10636 = vst [vmem:[#allocation37_spill] sm:$0xff] %v8671_v22  ;;  %2626 = vadd.xlane.f32.xlu0 %v8671_v22  ;;  %v8675_v63 = vadd.f32 %v8501_v32, %v2381_v0 }
 0x33e   :  { %v6136_v41 = vpop.f32.mrf.mxu1 }
 0x33f   :  { %10637 = vst [vmem:[#allocation38_spill] sm:$0xff] %v8675_v63  ;;  %v8678_v26 = vadd.f32 %v6136_v41, %v8501_v32 }
 0x340   :  { %v2384_v45 = vpop.f32.mrf.mxu1 }
 0x341   :  { %10638 = vst [vmem:[#allocation39_spill] sm:$0xff] %v8678_v26  ;;  %2628 = vadd.xlane.f32.xlu1 %v8678_v26  ;;  %2622 = vadd.xlane.f32.xlu0 %v8675_v63  ;;  %v8683_v57 = vadd.f32 %v8501_v32, %v2384_v45 }
 0x343   :  { %10639 = vst [vmem:[#allocation40_spill] sm:$0xff] %v8683_v57  ;;  %v6139_v14 = vpop.f32.mrf.mxu1 }
 0x344   :  { %v8686_v5 = vadd.f32 %v6139_v14, %v8501_v32 }
 0x345   :  { %v2397_v18 = vpop.f32.mrf.mxu1  ;;  %2624 = vadd.xlane.f32.xlu1 %v8683_v57 }
 0x346   :  { %10640 = vst [vmem:[#allocation41_spill] sm:$0xff] %v8686_v5  ;;  %2634 = vadd.xlane.f32.xlu0 %v8686_v5  ;;  %v8691_v12 = vadd.f32 %v8501_v32, %v2397_v18 }
 0x347   :  { %v6140_v39 = vpop.f32.mrf.mxu1 }
 0x348   :  { %10641 = vst [vmem:[#allocation42_spill] sm:$0xff] %v8691_v12  ;;  %v8694_v8 = vadd.f32 %v6140_v39, %v8501_v32 }
 0x349   :  { %v2400_v36 = vpop.f32.mrf.mxu1 }
 0x34a   :  { %10642 = vst [vmem:[#allocation2_spill] sm:$0xff] %v8694_v8  ;;  %2636 = vadd.xlane.f32.xlu1 %v8694_v8  ;;  %2630 = vadd.xlane.f32.xlu0 %v8691_v12  ;;  %v8699_v47 = vadd.f32 %v8501_v32, %v2400_v36 }
 0x34b   :  { %v6143_v40 = vpop.f32.mrf.mxu1 }
 0x34c   :  { %10643 = vst [vmem:[#allocation4_spill] sm:$0xff] %v8699_v47  ;;  %v8702_v7 = vadd.f32 %v6143_v40, %v8501_v32 }
 0x34d   :  { %v2413_v10 = vpop.f32.mrf.mxu1 }
 0x34e   :  { %10644 = vst [vmem:[#allocation6_spill] sm:$0xff] %v8702_v7  ;;  %2632 = vadd.xlane.f32.xlu1 %v8699_v47  ;;  %2642 = vadd.xlane.f32.xlu0 %v8702_v7  ;;  %v8707_v49 = vadd.f32 %v8501_v32, %v2413_v10 }
 0x34f   :  { %v6144_v44 = vpop.f32.mrf.mxu1 }
 0x350   :  { %10645 = vst [vmem:[#allocation3_spill] sm:$0xff] %v8707_v49  ;;  %v8710_v2 = vadd.f32 %v6144_v44, %v8501_v32 }
 0x351   :  { %v2416_v38 = vpop.f32.mrf.mxu1 }
 0x352   :  { %10646 = vst [vmem:[#allocation5_spill] sm:$0xff] %v8710_v2  ;;  %2644 = vadd.xlane.f32.xlu1 %v8710_v2  ;;  %2638 = vadd.xlane.f32.xlu0 %v8707_v49  ;;  %v8715_v0 = vadd.f32 %v8501_v32, %v2416_v38 }
 0x353   :  { %v6147_v9 = vpop.f32.mrf.mxu1 }
 0x354   :  { %10647 = vst [vmem:[#allocation8_spill] sm:$0xff] %v8715_v0  ;;  %v8718_v41 = vadd.f32 %v6147_v9, %v8501_v32 }
 0x355   :  { %v2429_v45 = vpop.f32.mrf.mxu1 }
 0x356   :  { %10648 = vst [vmem:[#allocation10_spill] sm:$0xff] %v8718_v41  ;;  %2640 = vadd.xlane.f32.xlu1 %v8715_v0  ;;  %2650 = vadd.xlane.f32.xlu0 %v8718_v41  ;;  %v8723_v18 = vadd.f32 %v8501_v32, %v2429_v45 }
 0x357   :  { %v6148_v14 = vpop.f32.mrf.mxu1 }
 0x358   :  { %10649 = vst [vmem:[#allocation7_spill] sm:$0xff] %v8723_v18  ;;  %v8726_v39 = vadd.f32 %v6148_v14, %v8501_v32 }
 0x359   :  { %v2432_v36 = vpop.f32.mrf.mxu1 }
 0x35a   :  { %10650 = vst [vmem:[#allocation9_spill] sm:$0xff] %v8726_v39  ;;  %2652 = vadd.xlane.f32.xlu1 %v8726_v39  ;;  %2646 = vadd.xlane.f32.xlu0 %v8723_v18  ;;  %v8731_v10 = vadd.f32 %v8501_v32, %v2432_v36 }
 0x35b   :  { %v6151_v40 = vpop.f32.mrf.mxu1 }
 0x35c   :  { %10651 = vst [vmem:[#allocation12_spill] sm:$0xff] %v8731_v10  ;;  %v8734_v44 = vadd.f32 %v6151_v40, %v8501_v32 }
 0x35d   :  { %v2445_v38 = vpop.f32.mrf.mxu1 }
 0x35e   :  { %10652 = vst [vmem:[#allocation14_spill] sm:$0xff] %v8734_v44  ;;  %2648 = vadd.xlane.f32.xlu1 %v8731_v10  ;;  %2658 = vadd.xlane.f32.xlu0 %v8734_v44  ;;  %v8739_v45 = vadd.f32 %v8501_v32, %v2445_v38 }
 0x35f   :  { %v6152_v9 = vpop.f32.mrf.mxu1 }
 0x360   :  { %10653 = vst [vmem:[#allocation11_spill] sm:$0xff] %v8739_v45  ;;  %v8742_v14 = vadd.f32 %v6152_v9, %v8501_v32 }
 0x361   :  { %v2448_v39 = vpop.f32.mrf.mxu1 }
 0x362   :  { %10654 = vst [vmem:[#allocation13_spill] sm:$0xff] %v8742_v14  ;;  %2660 = vadd.xlane.f32.xlu1 %v8742_v14  ;;  %2654 = vadd.xlane.f32.xlu0 %v8739_v45  ;;  %v8747_v40 = vadd.f32 %v8501_v32, %v2448_v39 }
 0x363   :  { %v6155_v36 = vpop.f32.mrf.mxu1 }
 0x364   :  { %10655 = vst [vmem:[#allocation16_spill] sm:$0xff] %v8747_v40  ;;  %v8750_v10 = vadd.f32 %v6155_v36, %v8501_v32 }
 0x365   :  { %v2461_v44 = vpop.f32.mrf.mxu1 }
 0x366   :  { %10656 = vst [vmem:[#allocation18_spill] sm:$0xff] %v8750_v10  ;;  %2656 = vadd.xlane.f32.xlu1 %v8747_v40  ;;  %2666 = vadd.xlane.f32.xlu0 %v8750_v10  ;;  %v8755_v9 = vadd.f32 %v8501_v32, %v2461_v44 }
 0x367   :  { %v6156_v38 = vpop.f32.mrf.mxu1 }
 0x368   :  { %10657 = vst [vmem:[#allocation15_spill] sm:$0xff] %v8755_v9  ;;  %v8758_v14 = vadd.f32 %v6156_v38, %v8501_v32 }
 0x369   :  { %v2464_v45 = vpop.f32.mrf.mxu1 }
 0x36a   :  { %10658 = vst [vmem:[#allocation17_spill] sm:$0xff] %v8758_v14  ;;  %2668 = vadd.xlane.f32.xlu1 %v8758_v14  ;;  %2662 = vadd.xlane.f32.xlu0 %v8755_v9  ;;  %v8763_v36 = vadd.f32 %v8501_v32, %v2464_v45 }
 0x36b   :  { %v6159_v39 = vpop.f32.mrf.mxu1 }
 0x36c   :  { %10659 = vst [vmem:[#allocation20_spill] sm:$0xff] %v8763_v36  ;;  %v8766_v40 = vadd.f32 %v6159_v39, %v8501_v32 }
 0x36d   :  { %v2477_v10 = vpop.f32.mrf.mxu1 }
 0x36e   :  { %10660 = vst [vmem:[#allocation22_spill] sm:$0xff] %v8766_v40  ;;  %2664 = vadd.xlane.f32.xlu1 %v8763_v36  ;;  %2674 = vadd.xlane.f32.xlu0 %v8766_v40  ;;  %v8771_v38 = vadd.f32 %v8501_v32, %v2477_v10 }
 0x36f   :  { %v6160_v44 = vpop.f32.mrf.mxu1  ;;  %v2547_v9 = vpop.xlane.xlu0 %2546 }
 0x370   :  { %10661 = vst [vmem:[#allocation19_spill] sm:$0xff] %v8771_v38  ;;  %v8774_v14 = vadd.f32 %v6160_v44, %v8501_v32  ;;  %v2705_v39 = vmul.f32 0.0078125, %v2547_v9 }
 0x371   :  { %v2480_v41 = vpop.f32.mrf.mxu1 }
 0x372   :  { %10662 = vst [vmem:[#allocation21_spill] sm:$0xff] %v8774_v14  ;;  %2676 = vadd.xlane.f32.xlu1 %v8774_v14  ;;  %2670 = vadd.xlane.f32.xlu0 %v8771_v38  ;;  %v8779_v18 = vadd.f32 %v8501_v32, %v2480_v41  ;;  %v8787_v14 = vsub.f32 %v8504_v37, %v2705_v39 }
 0x373   :  { %v6163_v45 = vpop.f32.mrf.mxu1  ;;  %v2549_v36 = vpop.xlane.xlu1 %2548 }
 0x374   :  { %10663 = vst [vmem:[#allocation24_spill] sm:$0xff] %v8779_v18  ;;  %v8782_v40 = vadd.f32 %v6163_v45, %v8501_v32  ;;  %v2543_v44 = vpop.xlane.xlu0 %2542  ;;  %10665 = vst [vmem:[#allocation23_spill] sm:$0xff] %v8787_v14  ;;  %v2706_v38 = vmul.f32 0.0078125, %v2549_v36  ;;  %v2865_v39 = vmul.f32 %v8787_v14, %v8787_v14 }
 0x375   :  { %v2493_v10 = vpop.f32.mrf.mxu1  ;;  %v2703_v37 = vmul.f32 0.0078125, %v2543_v44 }
 0x376   :  { %10664 = vst [vmem:[#allocation26_spill] sm:$0xff] %v8782_v40  ;;  %2672 = vadd.xlane.f32.xlu1 %v8779_v18  ;;  %2682 = vadd.xlane.f32.xlu0 %v8782_v40  ;;  %v8790_v9 = vadd.f32 %v8501_v32, %v2493_v10  ;;  %v8798_v7 = vsub.f32 %v8511_v50, %v2706_v38 }
 0x377   :  { %v6164_v2 = vpop.f32.mrf.mxu1  ;;  %v2545_v0 = vpop.xlane.xlu1 %2544 }
 0x378   :  { %10666 = vst [vmem:[#allocation25_spill] sm:$0xff] %v8790_v9  ;;  %v8793_v41 = vadd.f32 %v6164_v2, %v8501_v32  ;;  %10668 = vst [vmem:[#allocation33_spill] sm:$0xff] %v8798_v7  ;;  %v2866_v38 = vmul.f32 %v8798_v7, %v8798_v7  ;;  %v6434_v7 = vld [vmem:[%s10680_s29] sm:$0xff]  }
 0x379   :  { %v2496_v45 = vpop.f32.mrf.mxu1 }
 0x37a   :  { %10667 = vst [vmem:[#allocation43_spill] sm:$0xff] %v8793_v41  ;;  %2684 = vadd.xlane.f32.xlu1 %v8793_v41  ;;  %2678 = vadd.xlane.f32.xlu0 %v8790_v9  ;;  %v8801_v36 = vadd.f32 %v8501_v32, %v2496_v45  ;;  %v8807_v41 = vsub.f32 %v8508_v31, %v2703_v37  ;;  %v2704_v9 = vmul.f32 0.0078125, %v2545_v0 }
 0x37b   :  { %v6167_v18 = vpop.f32.mrf.mxu1  ;;  %v2555_v40 = vpop.xlane.xlu0 %2554 }
 0x37c   :  { %10669 = vst [vmem:[#allocation28_spill] sm:$0xff] %v8801_v36  ;;  %10670 = vst [vmem:[#allocation30_spill] sm:$0xff] %v8807_v41  ;;  %v8810_v49 = vadd.f32 %v6167_v18, %v8501_v32  ;;  %v2709_v45 = vmul.f32 0.0078125, %v2555_v40  ;;  %v2863_v18 = vmul.f32 %v8807_v41, %v8807_v41 }
 0x37d   :  { %v2509_v2 = vpop.f32.mrf.mxu1 }
 0x37e   :  { %2680 = vadd.xlane.f32.xlu1 %v8801_v36  ;;  %2947 = vadd.xlane.f32.xlu0 %v2865_v39  ;;  %10671 = vst [vmem:[#allocation44_spill] sm:$0xff] %v8810_v49  ;;  %v8816_v39 = vsub.f32 %v8516_v29, %v2704_v9  ;;  %v8827_v37 = vsub.f32 %v8520_v33, %v2709_v45 }
 0x37f   :  { %v2557_v10 = vpop.xlane.xlu1 %2556  ;;  %v2551_v50 = vpop.xlane.xlu0 %2550  ;;  %v8830_v40 = vadd.f32 %v8501_v32, %v2509_v2 }
 0x380   :  { %v6168_v44 = vpop.f32.mrf.mxu1  ;;  %10672 = vst [vmem:[#allocation45_spill] sm:$0xff] %v8816_v39  ;;  %10674 = vst [vmem:[#allocation47_spill] sm:$0xff] %v8827_v37  ;;  %v2707_v29 = vmul.f32 0.0078125, %v2551_v50  ;;  %v2869_v33 = vmul.f32 %v8827_v37, %v8827_v37 }
 0x381   :  { %v8819_v31 = vadd.f32 %v6168_v44, %v8501_v32  ;;  %10675 = vst [vmem:[#allocation48_spill] sm:$0xff] %v8830_v40 }
 0x382   :  { %2949 = vadd.xlane.f32.xlu1 %v2866_v38  ;;  %2690 = vadd.xlane.f32.xlu0 %v8810_v49  ;;  %v2710_v38 = vmul.f32 0.0078125, %v2557_v10  ;;  %v2864_v49 = vmul.f32 %v8816_v39, %v8816_v39  ;;  %v2512_v36 = vpop.f32.mrf.mxu1  ;;  %v8845_v2 = vsub.f32 %v8524_v56, %v2707_v29  ;;  %v6433_v39 = vld [vmem:[%s10680_s29 + $0x8] sm:$0xff]  }
 0x383   :  { %v2553_v14 = vpop.xlane.xlu1 %2552  ;;  %10673 = vst [vmem:[#allocation46_spill] sm:$0xff] %v8819_v31  ;;  %v8848_v10 = vadd.f32 %v8501_v32, %v2512_v36  ;;  %v6427_v36 = vld [vmem:[%s10680_s29 + $0x38] sm:$0xff]  }
 0x384   :  { %v8821_v0 = vpop.xlane.xlu0 %2562  ;;  %v8842_v45 = vsub.f32 %v8527_v62, %v2710_v38  ;;  %10677 = vst [vmem:[#allocation50_spill] sm:$0xff] %v8845_v2  ;;  %v2708_v50 = vmul.f32 0.0078125, %v2553_v14  ;;  %v2867_v14 = vmul.f32 %v8845_v2, %v8845_v2  ;;  %6173 = vmatprep.subr.bf16.mxu0 %v6427_v36 }
 0x385   :  { %10678 = vst [vmem:[#allocation51_spill] sm:$0xff] %v8848_v10  ;;  %6174 = vmatpush3.bf16.msra.mxu0 %v6427_v36  ;;  %v6430_v36 = vld [vmem:[%s10680_s29 + $0x20] sm:$0xff]   ;;  %v2713_v15 = vmul.f32 0.0078125, %v8821_v0 }
 0x386   :  { %2692 = vadd.xlane.f32.xlu1 %v8819_v31  ;;  %2943 = vadd.xlane.f32.xlu0 %v2863_v18  ;;  %10676 = vst [vmem:[#allocation49_spill] sm:$0xff] %v8842_v45  ;;  %v2870_v56 = vmul.f32 %v8842_v45, %v8842_v45 }
 0x387   :  { %v8949_v11 = vsub.f32 %v8536_v17, %v2713_v15 }
 0x388   :  { %v8832_v9 = vpop.xlane.xlu1 %2564  ;;  %v8834_v44 = vpop.xlane.xlu0 %2558 }
 0x389   :  { %v2714_v42 = vmul.f32 0.0078125, %v8832_v9 }
 0x38a   :  { %2945 = vadd.xlane.f32.xlu1 %v2864_v49  ;;  %2686 = vadd.xlane.f32.xlu0 %v8830_v40  ;;  %v8856_v49 = vsub.f32 %v8533_v25, %v2708_v50 }
 0x38b   :  { %v8959_v0 = vsub.f32 %v8548_v6, %v2714_v42 }
 0x38c   :  { %v8850_v18 = vpop.xlane.xlu1 %2560  ;;  %v8852_v31 = vpop.xlane.xlu0 %2570  ;;  %10679 = vst [vmem:[#allocation52_spill] sm:$0xff] %v8856_v49  ;;  %v2868_v29 = vmul.f32 %v8856_v49, %v8856_v49 }
 0x38d   :  { %v2712_v9 = vmul.f32 0.0078125, %v8850_v18  ;;  %v2717_v15 = vmul.f32 0.0078125, %v8852_v31 }
 0x38e   :  { %2688 = vadd.xlane.f32.xlu1 %v8848_v10  ;;  %2955 = vadd.xlane.f32.xlu0 %v2869_v33  ;;  %v6428_v33 = vld [vmem:[%s10680_s29 + $0x30] sm:$0xff]  }
 0x38f   :  { %6175 = vmatprep.subr.bf16.mxu0 %v6428_v33  ;;  %v8977_v6 = vsub.f32 %v8554_v43, %v2712_v9 }
 0x390   :  { %v8858_v40 = vpop.xlane.xlu1 %2572  ;;  %v8860_v62 = vpop.xlane.xlu0 %2566  ;;  %6176 = vmatpush3.bf16.msra.mxu0 %v6428_v33  ;;  %v6431_v33 = vld [vmem:[%s10680_s29 + $0x18] sm:$0xff]  }
 0x391   :  { %v2872_v18 = vmul.f32 %v8977_v6, %v8977_v6 }
 0x392   :  { %2957 = vadd.xlane.f32.xlu1 %v2870_v56  ;;  %2951 = vadd.xlane.f32.xlu0 %v2867_v14  ;;  %v6429_v56 = vld [vmem:[%s10680_s29 + $0x28] sm:$0xff]  }
 0x393   :  { %6177 = vmatprep.subr.bf16.mxu0 %v6429_v56 }
 0x394   :  { %v8869_v38 = vpop.xlane.xlu1 %2568  ;;  %v8871_v25 = vpop.xlane.xlu0 %2578  ;;  %6178 = vmatpush3.bf16.msra.mxu0 %v6429_v56  ;;  %v6432_v56 = vld [vmem:[%s10680_s29 + $0x10] sm:$0xff]  }
 0x395   :  { %6179 = vmatprep.subr.bf16.mxu0 %v6430_v36  ;;  %v2716_v43 = vmul.f32 0.0078125, %v8869_v38 }
 0x396   :  { %2953 = vadd.xlane.f32.xlu1 %v2868_v29 }
 0x397   :  { %v9009_v38 = vsub.f32 %v8571_v24, %v2716_v43 }
 0x398   :  { %v8878_v50 = vpop.xlane.xlu1 %2580  ;;  %v8880_v10 = vpop.xlane.xlu0 %2574  ;;  %6180 = vmatpush3.bf16.msra.mxu0 %v6430_v36 }
 0x399   :  { %6181 = vmatprep.subr.bf16.mxu0 %v6431_v33 }
 0x39c   :  { %v8885_v14 = vpop.xlane.xlu1 %2576  ;;  %v8887_v49 = vpop.xlane.xlu0 %2586  ;;  %6182 = vmatpush3.bf16.msra.mxu0 %v6431_v33 }
 0x39d   :  { %6183 = vmatprep.subr.bf16.mxu0 %v6432_v56  ;;  %v2725_v43 = vmul.f32 0.0078125, %v8887_v49 }
 0x3a0   :  { %v8892_v29 = vpop.xlane.xlu1 %2588  ;;  %v8894_v2 = vpop.xlane.xlu0 %2582  ;;  %6184 = vmatpush3.bf16.msra.mxu0 %v6432_v56 }
 0x3a1   :  { %6185 = vmatprep.subr.bf16.mxu0 %v6433_v39  ;;  %v2723_v49 = vmul.f32 0.0078125, %v8894_v2 }
 0x3a4   :  { %v8899_v45 = vpop.xlane.xlu1 %2584  ;;  %v8901_v37 = vpop.xlane.xlu0 %2594  ;;  %6186 = vmatpush3.bf16.msra.mxu0 %v6433_v39 }
 0x3a5   :  { %6187 = vmatprep.subr.bf16.mxu0 %v6434_v7 }
 0x3a8   :  { %v8909_v36 = vpop.xlane.xlu1 %2596  ;;  %v8911_v41 = vpop.xlane.xlu0 %2590  ;;  %6188 = vmatpush3.bf16.msra.mxu0 %v6434_v7 }
 0x3ac   :  { %v8916_v33 = vpop.xlane.xlu1 %2592  ;;  %v8918_v8 = vpop.xlane.xlu0 %2602 }
 0x3b0   :  { %v8920_v47 = vpop.xlane.xlu1 %2604  ;;  %v8922_v5 = vpop.xlane.xlu0 %2598 }
 0x3b4   :  { %v8924_v12 = vpop.xlane.xlu1 %2600  ;;  %v8926_v26 = vpop.xlane.xlu0 %2610 }
 0x3b8   :  { %v8928_v56 = vpop.xlane.xlu1 %2612  ;;  %v8930_v57 = vpop.xlane.xlu0 %2606 }
 0x3bc   :  { %v8932_v22 = vpop.xlane.xlu1 %2608  ;;  %v8934_v63 = vpop.xlane.xlu0 %2618 }
 0x3bd   :  { %10681 = vst [vmem:[#allocation53_spill] sm:$0xff] %v8934_v63  ;;  %v2711_v63 = vmul.f32 0.0078125, %v8834_v44 }
 0x3bf   :  { %v8965_v17 = vsub.f32 %v8545_v1, %v2711_v63  ;;  %v2874_v1 = vmul.f32 %v8959_v0, %v8959_v0  ;;  %v8984_v63 = vsub.f32 %v8557_v27, %v2717_v15 }
 0x3c0   :  { %v8936_v54 = vpop.xlane.xlu1 %2620  ;;  %v8938_v39 = vpop.xlane.xlu0 %2614 }
 0x3c1   :  { %10682 = vst [vmem:[#allocation54_spill] sm:$0xff] %v8936_v54  ;;  %10683 = vst [vmem:[#allocation55_spill] sm:$0xff] %v8938_v39 }
 0x3c4   :  { %v8941_v3 = vpop.f32.mrf.mxu1  ;;  %v8943_v7 = vpop.xlane.xlu1 %2616 }
 0x3c5   :  { %10684 = vst [vmem:[#allocation56_spill] sm:$0xff] %v8941_v3  ;;  %10685 = vst [vmem:[#allocation57_spill] sm:$0xff] %v8943_v7 }
 0x3c6   :  { %v2525_v16 = vpop.f32.mrf.mxu1  ;;  %v8946_v60 = vpop.xlane.xlu0 %2626 }
 0x3c7   :  { %v8953_v54 = vadd.f32 %v8501_v32, %v2525_v16 }
 0x3c8   :  { %v8955_v39 = vpop.f32.mrf.mxu1 }
 0x3c9   :  { %10686 = vst [vmem:[#allocation58_spill] sm:$0xff] %v8953_v54  ;;  %2694 = vadd.xlane.f32.xlu0 %v8953_v54  ;;  %v2873_v54 = vmul.f32 %v8949_v11, %v8949_v11 }
 0x3ca   :  { %v2528_v3 = vpop.f32.mrf.mxu1  ;;  %v8962_v7 = vpop.xlane.xlu1 %2628 }
 0x3cb   :  { %v8969_v16 = vadd.f32 %v8501_v32, %v2528_v3  ;;  %v8971_v44 = vpop.xlane.xlu0 %2622  ;;  %v2718_v32 = vmul.f32 0.0078125, %v8858_v40  ;;  %v2715_v3 = vmul.f32 0.0078125, %v8860_v62  ;;  %v2721_v40 = vmul.f32 0.0078125, %v8871_v25 }
 0x3cd   :  { %2696 = vadd.xlane.f32.xlu1 %v8969_v16  ;;  %2963 = vadd.xlane.f32.xlu0 %v2873_v54  ;;  %v2871_v54 = vmul.f32 %v8965_v17, %v8965_v17  ;;  %v8996_v9 = vsub.f32 %v8566_v53, %v2718_v32  ;;  %v8999_v27 = vsub.f32 %v8563_v30, %v2715_v3  ;;  %v2722_v53 = vmul.f32 0.0078125, %v8878_v50 }
 0x3ce   :  { %v8979_v42 = vpop.xlane.xlu1 %2624  ;;  %v9013_v32 = vsub.f32 %v8574_v21, %v2721_v40  ;;  %v2719_v30 = vmul.f32 0.0078125, %v8880_v10  ;;  %v2876_v21 = vmul.f32 %v9009_v38, %v9009_v38  ;;  %v2720_v50 = vmul.f32 0.0078125, %v8885_v14 }
 0x3cf   :  { %v8988_v31 = vpop.xlane.xlu0 %2634  ;;  %v9025_v24 = vsub.f32 %v8582_v28, %v2722_v53  ;;  %v2726_v28 = vmul.f32 0.0078125, %v8892_v29  ;;  %v9047_v14 = vsub.f32 %v8590_v61, %v2725_v43  ;;  %v2729_v61 = vmul.f32 0.0078125, %v8901_v37 }
 0x3d0   :  { %v9030_v10 = vsub.f32 %v8579_v20, %v2719_v30  ;;  %v9044_v20 = vsub.f32 %v8587_v59, %v2720_v50  ;;  %v2724_v59 = vmul.f32 0.0078125, %v8899_v45  ;;  %v9061_v50 = vsub.f32 %v8595_v52, %v2723_v49 }
 0x3d1   :  { %2965 = vadd.xlane.f32.xlu1 %v2874_v1  ;;  %2959 = vadd.xlane.f32.xlu0 %v2871_v54  ;;  %v2877_v1 = vmul.f32 %v8984_v63, %v8984_v63  ;;  %v2878_v54 = vmul.f32 %v8996_v9, %v8996_v9  ;;  %v2882_v53 = vmul.f32 %v9025_v24, %v9025_v24  ;;  %v2730_v45 = vmul.f32 0.0078125, %v8909_v36 }
 0x3d2   :  { %v9057_v29 = vsub.f32 %v8598_v13, %v2726_v28  ;;  %10688 = vst [vmem:[#allocation60_spill] sm:$0xff] %v9061_v50  ;;  %v9073_v13 = vsub.f32 %v8603_v34, %v2724_v59  ;;  %v9078_v37 = vsub.f32 %v8606_v4, %v2729_v61  ;;  %v2727_v28 = vmul.f32 0.0078125, %v8911_v41 }
 0x3d3   :  { %v9002_v62 = vpop.xlane.xlu1 %2636  ;;  %v9004_v15 = vpop.xlane.xlu0 %2630  ;;  %v2728_v34 = vmul.f32 0.0078125, %v8916_v33  ;;  %v9092_v4 = vsub.f32 %v8614_v19, %v2730_v45  ;;  %v2733_v41 = vmul.f32 0.0078125, %v8918_v8  ;;  %v2734_v19 = vmul.f32 0.0078125, %v8920_v47 }
 0x3d4   :  { %10687 = vst [vmem:[#allocation59_spill] sm:$0xff] %v9057_v29  ;;  %10689 = vst [vmem:[#allocation61_spill] sm:$0xff] %v9073_v13  ;;  %v2886_v52 = vmul.f32 %v9057_v29, %v9057_v29  ;;  %v2884_v59 = vmul.f32 %v9073_v13, %v9073_v13  ;;  %v9095_v36 = vsub.f32 %v8611_v51, %v2727_v28  ;;  %v2731_v51 = vmul.f32 0.0078125, %v8922_v5 }
 0x3d5   :  { %2961 = vadd.xlane.f32.xlu1 %v2872_v18  ;;  %2971 = vadd.xlane.f32.xlu0 %v2877_v1  ;;  %v2875_v18 = vmul.f32 %v8999_v27, %v8999_v27  ;;  %10690 = vst [vmem:[#allocation62_spill] sm:$0xff] %v9078_v37  ;;  %10691 = vst [vmem:[#allocation63_spill] sm:$0xff] %v9092_v4  ;;  %v9105_v33 = vsub.f32 %v8619_v55, %v2728_v34  ;;  %v2732_v47 = vmul.f32 0.0078125, %v8924_v12 }
 0x3d6   :  { %10692 = vst [vmem:[#allocation64_spill] sm:$0xff] %v9095_v36  ;;  %v9109_v45 = vsub.f32 %v8622_v46, %v2733_v41  ;;  %v9121_v55 = vsub.f32 %v8630_v58, %v2734_v19  ;;  %v9126_v5 = vsub.f32 %v8627_v23, %v2731_v51  ;;  %v2737_v34 = vmul.f32 0.0078125, %v8926_v26 }
 0x3d7   :  { %v9016_v25 = vpop.xlane.xlu1 %2632  ;;  %v9018_v3 = vpop.xlane.xlu0 %2642  ;;  %10693 = vst [vmem:[#allocation65_spill] sm:$0xff] %v9105_v33  ;;  %v2888_v46 = vmul.f32 %v9105_v33, %v9105_v33  ;;  %v2738_v58 = vmul.f32 0.0078125, %v8928_v56  ;;  %v9140_v23 = vsub.f32 %v8635_v35, %v2732_v47  ;;  %v2735_v26 = vmul.f32 0.0078125, %v8930_v57  ;;  %v10699_v56 = vld [vmem:[#allocation27_spill] sm:$0xff]  ;;  %v10701_v47 = vld [vmem:[#allocation29_spill] sm:$0xff] }
 0x3d8   :  { %10694 = vst [vmem:[#allocation66_spill] sm:$0xff] %v9109_v45  ;;  %10695 = vst [vmem:[#allocation67_spill] sm:$0xff] %v9121_v55  ;;  %v2894_v19 = vmul.f32 %v9121_v55, %v9121_v55  ;;  %v9143_v12 = vsub.f32 %v8638_v48, %v2737_v34  ;;  %v2736_v35 = vmul.f32 0.0078125, %v8932_v22  ;;  %v10703_v48 = vld [vmem:[#allocation53_spill] sm:$0xff]  ;;  %v2747_v29 = vmul.f32 0.0078125, %v9004_v15 }
 0x3d9   :  { %2973 = vadd.xlane.f32.xlu1 %v2878_v54  ;;  %2967 = vadd.xlane.f32.xlu0 %v2875_v18  ;;  %v2881_v54 = vmul.f32 %v9013_v32, %v9013_v32  ;;  %10696 = vst [vmem:[#allocation68_spill] sm:$0xff] %v9126_v5  ;;  %10697 = vst [vmem:[#allocation69_spill] sm:$0xff] %v9140_v23  ;;  %v9157_v55 = vsub.f32 %v10701_v47, %v2735_v26  ;;  %v2741_v34 = vmul.f32 0.0078125, %v10703_v48  ;;  %v10706_v26 = vld [vmem:[#allocation32_spill] sm:$0xff]  ;;  %v10708_v47 = vld [vmem:[#allocation54_spill] sm:$0xff] }
 0x3da   :  { %10698 = vst [vmem:[#allocation70_spill] sm:$0xff] %v9143_v12  ;;  %v2892_v33 = vmul.f32 %v9140_v23, %v9140_v23  ;;  %v2742_v48 = vmul.f32 0.0078125, %v10708_v47  ;;  %v10714_v47 = vld [vmem:[#allocation57_spill] sm:$0xff] }
 0x3db   :  { %v9034_v40 = vpop.xlane.xlu1 %2644  ;;  %v9036_v1 = vpop.xlane.xlu0 %2638  ;;  %10702 = vst [vmem:[#allocation29_spill] sm:$0xff] %v9157_v55 }
 0x3dd   :  { %2969 = vadd.xlane.f32.xlu1 %v2876_v21  ;;  %2979 = vadd.xlane.f32.xlu0 %v2881_v54  ;;  %v2879_v21 = vmul.f32 %v9030_v10, %v9030_v10  ;;  %v2880_v54 = vmul.f32 %v9044_v20, %v9044_v20 }
 0x3df   :  { %v9050_v30 = vpop.xlane.xlu1 %2640  ;;  %v9052_v18 = vpop.xlane.xlu0 %2650 }
 0x3e1   :  { %2981 = vadd.xlane.f32.xlu1 %v2882_v53  ;;  %2975 = vadd.xlane.f32.xlu0 %v2879_v21  ;;  %v2885_v53 = vmul.f32 %v9047_v14, %v9047_v14 }
 0x3e3   :  { %v9064_v2 = vpop.xlane.xlu1 %2652  ;;  %v9066_v43 = vpop.xlane.xlu0 %2646 }
 0x3e5   :  { %2977 = vadd.xlane.f32.xlu1 %v2880_v54  ;;  %2987 = vadd.xlane.f32.xlu0 %v2885_v53  ;;  %v2883_v54 = vmul.f32 %v9061_v50, %v9061_v50 }
 0x3e7   :  { %v9082_v49 = vpop.xlane.xlu1 %2648  ;;  %v9084_v21 = vpop.xlane.xlu0 %2658 }
 0x3e9   :  { %2989 = vadd.xlane.f32.xlu1 %v2886_v52  ;;  %2983 = vadd.xlane.f32.xlu0 %v2883_v54  ;;  %v2889_v52 = vmul.f32 %v9078_v37, %v9078_v37  ;;  %v2890_v54 = vmul.f32 %v9092_v4, %v9092_v4 }
 0x3eb   :  { %v9098_v61 = vpop.xlane.xlu1 %2660  ;;  %v9100_v53 = vpop.xlane.xlu0 %2654 }
 0x3ed   :  { %2985 = vadd.xlane.f32.xlu1 %v2884_v59  ;;  %2995 = vadd.xlane.f32.xlu0 %v2889_v52  ;;  %v2887_v59 = vmul.f32 %v9095_v36, %v9095_v36 }
 0x3ef   :  { %v9112_v8 = vpop.xlane.xlu1 %2656  ;;  %v9114_v28 = vpop.xlane.xlu0 %2666 }
 0x3f1   :  { %2997 = vadd.xlane.f32.xlu1 %v2890_v54  ;;  %2991 = vadd.xlane.f32.xlu0 %v2887_v59  ;;  %v2893_v54 = vmul.f32 %v9109_v45, %v9109_v45 }
 0x3f3   :  { %v9130_v41 = vpop.xlane.xlu1 %2668  ;;  %v9132_v52 = vpop.xlane.xlu0 %2662 }
 0x3f5   :  { %2993 = vadd.xlane.f32.xlu1 %v2888_v46  ;;  %3003 = vadd.xlane.f32.xlu0 %v2893_v54  ;;  %v2891_v46 = vmul.f32 %v9126_v5, %v9126_v5  ;;  %v9153_v54 = vsub.f32 %v10699_v56, %v2738_v58  ;;  %v10704_v58 = vld [vmem:[#allocation31_spill] sm:$0xff]  ;;  %v9174_v56 = vsub.f32 %v10706_v26, %v2741_v34  ;;  %v10712_v34 = vld [vmem:[#allocation34_spill] sm:$0xff] }
 0x3f6   :  { %v10709_v5 = vld [vmem:[#allocation55_spill] sm:$0xff] }
 0x3f7   :  { %v9146_v51 = vpop.xlane.xlu1 %2664  ;;  %v9148_v59 = vpop.xlane.xlu0 %2674  ;;  %10700 = vst [vmem:[#allocation27_spill] sm:$0xff] %v9153_v54  ;;  %v2898_v22 = vmul.f32 %v9153_v54, %v9153_v54  ;;  %10707 = vst [vmem:[#allocation31_spill] sm:$0xff] %v9174_v56  ;;  %v2739_v36 = vmul.f32 0.0078125, %v10709_v5  ;;  %v2740_v5 = vmul.f32 0.0078125, %v10714_v47 }
 0x3f9   :  { %3005 = vadd.xlane.f32.xlu1 %v2894_v19  ;;  %2999 = vadd.xlane.f32.xlu0 %v2891_v46  ;;  %v2897_v19 = vmul.f32 %v9143_v12, %v9143_v12  ;;  %v9169_v46 = vsub.f32 %v10704_v58, %v2736_v35  ;;  %v9190_v26 = vsub.f32 %v10712_v34, %v2739_v36 }
 0x3fb   :  { %v9160_v57 = vpop.xlane.xlu1 %2676  ;;  %v9162_v45 = vpop.xlane.xlu0 %2670  ;;  %10705 = vst [vmem:[#allocation53_spill] sm:$0xff] %v9169_v46  ;;  %v2896_v35 = vmul.f32 %v9169_v46, %v9169_v46  ;;  %10713 = vst [vmem:[#allocation54_spill] sm:$0xff] %v9190_v26  ;;  %v2899_v47 = vmul.f32 %v9190_v26, %v9190_v26 }
 0x3fd   :  { %3001 = vadd.xlane.f32.xlu1 %v2892_v33  ;;  %3011 = vadd.xlane.f32.xlu0 %v2897_v19  ;;  %v2895_v33 = vmul.f32 %v9157_v55, %v9157_v55  ;;  %v10710_v19 = vld [vmem:[#allocation35_spill] sm:$0xff]  ;;  %v2901_v55 = vmul.f32 %v9174_v56, %v9174_v56  ;;  %v2745_v56 = vmul.f32 0.0078125, %v8946_v60 }
 0x3fe   :  { %v9187_v58 = vsub.f32 %v10710_v19, %v2742_v48  ;;  %v2743_v48 = vmul.f32 0.0078125, %v8971_v44 }
 0x3ff   :  { %v9178_v4 = vpop.xlane.xlu1 %2672  ;;  %v9180_v23 = vpop.xlane.xlu0 %2682 }
 0x400   :  { %10711 = vst [vmem:[#allocation32_spill] sm:$0xff] %v9187_v58  ;;  %v2902_v34 = vmul.f32 %v9187_v58, %v9187_v58  ;;  %v2744_v58 = vmul.f32 0.0078125, %v8979_v42  ;;  %v10721_v42 = vld [vmem:[#allocation40_spill] sm:$0xff] }
 0x401   :  { %3013 = vadd.xlane.f32.xlu1 %v2898_v22  ;;  %3007 = vadd.xlane.f32.xlu0 %v2895_v33  ;;  %v10715_v22 = vld [vmem:[#allocation36_spill] sm:$0xff] }
 0x402   :  { %v9200_v33 = vsub.f32 %v10715_v22, %v2740_v5  ;;  %v10717_v5 = vld [vmem:[#allocation56_spill] sm:$0xff]  ;;  %v10718_v22 = vld [vmem:[#allocation38_spill] sm:$0xff]  ;;  %v9233_v50 = vsub.f32 %v10721_v42, %v2744_v58 }
 0x403   :  { %v9193_v54 = vpop.xlane.xlu1 %2684  ;;  %v9195_v12 = vpop.xlane.xlu0 %2678  ;;  %v9217_v46 = vsub.f32 %v10718_v22, %v2743_v48 }
 0x404   :  { %10716 = vst [vmem:[#allocation55_spill] sm:$0xff] %v9200_v33  ;;  %10722 = vst [vmem:[#allocation34_spill] sm:$0xff] %v9233_v50 }
 0x405   :  { %3009 = vadd.xlane.f32.xlu1 %v2896_v35  ;;  %3019 = vadd.xlane.f32.xlu0 %v2901_v55  ;;  %v6868_v55 = vld [vmem:[%s10628_s28] ss:$0 sm:$0xff]  ;;  %s10809_s28 = sld [smem:[#allocation82_spill]] }
 0x406   :  { %v9214_v44 = vadd.f32 %v6868_v55, %v10717_v5  ;;  %v2746_v5 = vmul.f32 0.0078125, %v8962_v7  ;;  %v9230_v22 = vadd.f32 %v6868_v55, %v8955_v39  ;;  %v10723_v7 = vld [vmem:[#allocation39_spill] sm:$0xff]  ;;  %v2749_v39 = vmul.f32 0.0078125, %v8988_v31  ;;  %v10725_v55 = vld [vmem:[#allocation42_spill] sm:$0xff]  ;;  %v10727_v31 = vld [vmem:[#allocation41_spill] sm:$0xff] }
 0x407   :  { %v9203_v19 = vpop.xlane.xlu1 %2680  ;;  %v2948_v36 = vpop.xlane.xlu0 %2947  ;;  %v9246_v15 = vsub.f32 %v10725_v55, %v2747_v29  ;;  %v2751_v55 = vmul.f32 0.0078125, %v9036_v1  ;;  %v10733_v1 = vld [vmem:[#allocation3_spill] sm:$0xff] }
 0x408   :  { %v3105_v35 = vmul.f32 0.0078125, %v2948_v36  ;;  %v10719_v36 = vld [vmem:[#allocation37_spill] sm:$0xff] }
 0x409   :  { %3021 = vadd.xlane.f32.xlu1 %v2902_v34  ;;  %3015 = vadd.xlane.f32.xlu0 %v2899_v47  ;;  %v2900_v34 = vmul.f32 %v9200_v33, %v9200_v33  ;;  %v9226_v47 = vsub.f32 %v10719_v36, %v2745_v56  ;;  %10726 = vst [vmem:[#allocation36_spill] sm:$0xff] %v9246_v15 }
 0x40a   :  { %v3185_v26 = vadd.f32 1e-05, %v3105_v35  ;;  %v9242_v35 = vsub.f32 %v10723_v7, %v2746_v5 }
 0x40b   :  { %v2950_v37 = vpop.xlane.xlu1 %2949  ;;  %v9220_v13 = vpop.xlane.xlu0 %2690  ;;  %10720 = vst [vmem:[#allocation35_spill] sm:$0xff] %v9226_v47 }
 0x40c   :  { %v3106_v60 = vmul.f32 0.0078125, %v2950_v37  ;;  %10724 = vst [vmem:[#allocation57_spill] sm:$0xff] %v9242_v35 }
 0x40d   :  { %3017 = vadd.xlane.f32.xlu1 %v2900_v34  ;;  %2698 = vadd.xlane.f32.xlu0 %v9214_v44  ;;  %v2903_v34 = vmul.f32 %v9217_v46, %v9217_v46 }
 0x40e   :  { %v3186_v48 = vadd.f32 1e-05, %v3106_v60  ;;  %v2748_v60 = vmul.f32 0.0078125, %v9016_v25  ;;  %v2906_v25 = vmul.f32 %v9242_v35, %v9242_v35 }
 0x40f   :  { %v9236_v33 = vpop.xlane.xlu1 %2692  ;;  %v2944_v37 = vpop.xlane.xlu0 %2943 }
 0x410   :  { %6617 = vrsqrt.f32 %v3186_v48  ;;  %v3103_v56 = vmul.f32 0.0078125, %v2944_v37  ;;  %v2904_v48 = vmul.f32 %v9233_v50, %v9233_v50  ;;  %v2905_v37 = vmul.f32 %v9226_v47, %v9226_v47 }
 0x411   :  { %2700 = vadd.xlane.f32.xlu1 %v9230_v22  ;;  %3023 = vadd.xlane.f32.xlu0 %v2903_v34  ;;  %6619 = vrsqrt.f32 %v3185_v26  ;;  %v9256_v26 = vsub.f32 %v10727_v31, %v2749_v39  ;;  %v2750_v34 = vmul.f32 0.0078125, %v9002_v62  ;;  %v9276_v31 = vsub.f32 %v10733_v1, %v2751_v55 }
 0x412   :  { %v3183_v58 = vadd.f32 1e-05, %v3103_v56  ;;  %v10729_v56 = vld [vmem:[#allocation4_spill] sm:$0xff]  ;;  %v2755_v47 = vmul.f32 0.0078125, %v9066_v43 }
 0x413   :  { %v2946_v36 = vpop.xlane.xlu1 %2945  ;;  %v9249_v42 = vpop.xlane.xlu0 %2686  ;;  %10728 = vst [vmem:[#allocation56_spill] sm:$0xff] %v9256_v26  ;;  %v9262_v7 = vsub.f32 %v10729_v56, %v2748_v60  ;;  %v2909_v62 = vmul.f32 %v9256_v26, %v9256_v26  ;;  %v10731_v60 = vld [vmem:[#allocation2_spill] sm:$0xff]  ;;  %10734 = vst [vmem:[#allocation40_spill] sm:$0xff] %v9276_v31  ;;  %v2752_v56 = vmul.f32 0.0078125, %v9050_v30  ;;  %v10736_v30 = vld [vmem:[#allocation8_spill] sm:$0xff] }
 0x414   :  { %6621 = vrsqrt.f32 %v3183_v58  ;;  %v3104_v5 = vmul.f32 0.0078125, %v2946_v36  ;;  %v2907_v36 = vmul.f32 %v9246_v15, %v9246_v15 }
 0x415   :  { %3025 = vadd.xlane.f32.xlu1 %v2904_v48  ;;  %3027 = vadd.xlane.f32.xlu0 %v2905_v37  ;;  %10730 = vst [vmem:[#allocation38_spill] sm:$0xff] %v9262_v7  ;;  %v2753_v48 = vmul.f32 0.0078125, %v9018_v3  ;;  %v9286_v26 = vsub.f32 %v10736_v30, %v2752_v56  ;;  %v10740_v30 = vld [vmem:[#allocation30_spill] sm:$0xff] }
 0x416   :  { %v3184_v29 = vadd.f32 1e-05, %v3104_v5  ;;  %v9273_v5 = vsub.f32 %v10731_v60, %v2750_v34  ;;  %v2754_v34 = vmul.f32 0.0078125, %v9034_v40 }
 0x417   :  { %v9265_v50 = vpop.xlane.xlu1 %2688  ;;  %v2956_v58 = vpop.xlane.xlu0 %2955 }
 0x418   :  { %6623 = vrsqrt.f32 %v3184_v29  ;;  %v3109_v39 = vmul.f32 0.0078125, %v2956_v58  ;;  %10732 = vst [vmem:[#allocation37_spill] sm:$0xff] %v9273_v5  ;;  %v2908_v29 = vmul.f32 %v9262_v7, %v9262_v7 }
 0x419   :  { %3029 = vadd.xlane.f32.xlu1 %v2906_v25  ;;  %3031 = vadd.xlane.f32.xlu0 %v2907_v36  ;;  %v10735_v36 = vld [vmem:[#allocation6_spill] sm:$0xff] }
 0x41a   :  { %v3189_v37 = vadd.f32 1e-05, %v3109_v39  ;;  %v9282_v39 = vsub.f32 %v10735_v36, %v2753_v48  ;;  %v10737_v48 = vld [vmem:[#allocation33_spill] sm:$0xff] }
 0x41b   :  { %v2958_v35 = vpop.xlane.xlu1 %2957  ;;  %v2952_v15 = vpop.xlane.xlu0 %2951 }
 0x41c   :  { %v3110_v3 = vmul.f32 0.0078125, %v2958_v35  ;;  %v3107_v25 = vmul.f32 0.0078125, %v2952_v15  ;;  %6625 = vrsqrt.f32 %v3189_v37  ;;  %v2910_v35 = vmul.f32 %v9273_v5, %v9273_v5 }
 0x41d   :  { %v6618_v58 = vpop.eup %6617  ;;  %3033 = vadd.xlane.f32.xlu1 %v2908_v29  ;;  %3035 = vadd.xlane.f32.xlu0 %v2909_v62  ;;  %v2911_v15 = vmul.f32 %v9276_v31, %v9276_v31  ;;  %v2913_v56 = vmul.f32 %v9282_v39, %v9282_v39  ;;  %v10738_v29 = vld [vmem:[#allocation5_spill] sm:$0xff]  ;;  %v2757_v31 = vmul.f32 0.0078125, %v9052_v18  ;;  %v2758_v18 = vmul.f32 0.0078125, %v9064_v2 }
 0x41e   :  { %v3190_v55 = vadd.f32 1e-05, %v3110_v3  ;;  %v3187_v60 = vadd.f32 1e-05, %v3107_v25  ;;  %v6620_v1 = vpop.eup %6619  ;;  %v3346_v62 = vmul.f32 %v6618_v58, %v10737_v48  ;;  %v9297_v43 = vsub.f32 %v10738_v29, %v2754_v34  ;;  %v10739_v3 = vld [vmem:[#allocation23_spill] sm:$0xff] }
 0x41f   :  { %v2954_v7 = vpop.xlane.xlu1 %2953  ;;  %v3345_v25 = vmul.f32 %v6620_v1, %v10739_v3  ;;  %v10741_v58 = vld [vmem:[#allocation7_spill] sm:$0xff]  ;;  %v9311_v34 = vld [vmem:[%s10743_s4] ss:$0 sm:$0xff]  ;;  %v10747_v3 = vld [vmem:[#allocation12_spill] sm:$0xff] }
 0x420   :  { %6627 = vrsqrt.f32 %v3190_v55  ;;  %v3108_v40 = vmul.f32 0.0078125, %v2954_v7  ;;  %v9303_v55 = vsub.f32 %v10741_v58, %v2755_v47  ;;  %v2756_v7 = vmul.f32 0.0078125, %v9082_v49  ;;  %v10744_v47 = vld [vmem:[#allocation45_spill] sm:$0xff] }
 0x421   :  { %v6622_v37 = vpop.eup %6621  ;;  %6629 = vrsqrt.f32 %v3187_v60  ;;  %3037 = vadd.xlane.f32.xlu1 %v2910_v35  ;;  %3039 = vadd.xlane.f32.xlu0 %v2911_v15  ;;  %v2912_v60 = vmul.f32 %v9286_v26, %v9286_v26  ;;  %v3432_v35 = vmul.f32 %v9311_v34, %v3346_v62  ;;  %v2914_v49 = vmul.f32 %v9297_v43, %v9297_v43  ;;  %v9332_v62 = vld [vmem:[%s10749_s9] ss:$0 sm:$0xff] }
 0x422   :  { %v3188_v36 = vadd.f32 1e-05, %v3108_v40  ;;  %v3343_v5 = vmul.f32 %v6622_v37, %v10740_v30  ;;  %10742 = vst [vmem:[#allocation39_spill] sm:$0xff] %v9303_v55  ;;  %v3431_v40 = vmul.f32 %v9311_v34, %v3345_v25  ;;  %v10745_v37 = vld [vmem:[#allocation10_spill] sm:$0xff]  ;;  %v2915_v2 = vmul.f32 %v9303_v55, %v9303_v55  ;;  %v10750_v30 = vld [vmem:[#allocation9_spill] sm:$0xff] }
 0x423   :  { %v9321_v29 = vsub.f32 %v10745_v37, %v2757_v31  ;;  %v3518_v31 = vadd.f32 %v9332_v62, %v3432_v35  ;;  %v9338_v58 = vsub.f32 %v10750_v30, %v2758_v18 }
 0x424   :  { %6631 = vrsqrt.f32 %v3188_v36  ;;  %v3429_v1 = vmul.f32 %v9311_v34, %v3343_v5  ;;  %v9324_v36 = vsub.f32 %v10747_v3, %v2756_v7  ;;  %v2759_v5 = vmul.f32 0.0078125, %v9100_v53 }
 0x425   :  { %v6624_v15 = vpop.eup %6623  ;;  %3041 = vadd.xlane.f32.xlu1 %v2912_v60  ;;  %3043 = vadd.xlane.f32.xlu0 %v2913_v56  ;;  %10746 = vst [vmem:[#allocation42_spill] sm:$0xff] %v9321_v29  ;;  %10751 = vst [vmem:[#allocation4_spill] sm:$0xff] %v9338_v58  ;;  %v2761_v7 = vmul.f32 0.0078125, %v9084_v21  ;;  %v3517_v60 = vadd.f32 %v9332_v62, %v3431_v40  ;;  %v2917_v35 = vmul.f32 %v9321_v29, %v9321_v29  ;;  %v10755_v29 = vld [vmem:[#allocation49_spill] sm:$0xff] }
 0x426   :  { %v3344_v48 = vmul.f32 %v6624_v15, %v10744_v47  ;;  %10748 = vst [vmem:[#allocation41_spill] sm:$0xff] %v9324_v36  ;;  %v3515_v25 = vadd.f32 %v9332_v62, %v3429_v1  ;;  %v10752_v47 = vld [vmem:[#allocation11_spill] sm:$0xff]  ;;  %v2916_v1 = vmul.f32 %v9324_v36, %v9324_v36  ;;  %v2762_v40 = vmul.f32 0.0078125, %v9098_v61 }
 0x427   :  { %v9344_v37 = vsub.f32 %v10752_v47, %v2759_v5  ;;  %v3597_v47 = vmax.f32 %v3517_v60, 0.0  ;;  %v10754_v36 = vld [vmem:[#allocation47_spill] sm:$0xff] }
 0x428   :  { %v3430_v56 = vmul.f32 %v9311_v34, %v3344_v48  ;;  %v2760_v48 = vmul.f32 0.0078125, %v9112_v8  ;;  %v3595_v18 = vmax.f32 %v3515_v25, 0.0  ;;  %v2918_v8 = vmul.f32 %v9338_v58, %v9338_v58 }
 0x429   :  { %3045 = vadd.xlane.f32.xlu1 %v2914_v49  ;;  %3047 = vadd.xlane.f32.xlu0 %v2915_v2  ;;  %v6626_v15 = vpop.eup %6625  ;;  %v3598_v49 = vmax.f32 %v3518_v31, 0.0  ;;  %v10753_v2 = vld [vmem:[#allocation14_spill] sm:$0xff]  ;;  %v2919_v61 = vmul.f32 %v9344_v37, %v9344_v37 }
 0x42a   :  { %v3516_v53 = vadd.f32 %v9332_v62, %v3430_v56  ;;  %v9352_v56 = vsub.f32 %v10753_v2, %v2761_v7  ;;  %v3349_v55 = vmul.f32 %v6626_v15, %v10754_v36  ;;  %v2763_v7 = vmul.f32 0.0078125, %v9132_v52  ;;  %v10759_v15 = vld [vmem:[#allocation52_spill] sm:$0xff] }
 0x42b   :  { %v3692_v2 = vpack.c.bf16 %v3598_v49, %v3597_v47  ;;  %v2765_v49 = vmul.f32 0.0078125, %v9114_v28 }
 0x42c   :  { %v3596_v21 = vmax.f32 %v3516_v53, 0.0  ;;  %v10756_v53 = vld [vmem:[#allocation16_spill] sm:$0xff]  ;;  %v2921_v52 = vmul.f32 %v9352_v56, %v9352_v56 }
 0x42d   :  { %v6628_v3 = vpop.eup %6627  ;;  %3049 = vadd.xlane.f32.xlu1 %v2916_v1  ;;  %3051 = vadd.xlane.f32.xlu0 %v2917_v35  ;;  %v9360_v31 = vsub.f32 %v10756_v53, %v2760_v48  ;;  %v10757_v1 = vld [vmem:[#allocation50_spill] sm:$0xff] }
 0x42e   :  { %v6630_v5 = vpop.eup %6629  ;;  %v3691_v30 = vpack.c.bf16 %v3596_v21, %v3595_v18  ;;  %v3350_v25 = vmul.f32 %v6628_v3, %v10755_v29  ;;  %v10758_v29 = vld [vmem:[#allocation13_spill] sm:$0xff]  ;;  %v3435_v21 = vmul.f32 %v9311_v34, %v3349_v55  ;;  %v10760_v3 = vld [vmem:[#allocation15_spill] sm:$0xff]  ;;  %v2766_v55 = vmul.f32 0.0078125, %v9130_v41 }
 0x42f   :  { %v3347_v35 = vmul.f32 %v6630_v5, %v10757_v1  ;;  %v9369_v60 = vsub.f32 %v10758_v29, %v2762_v40  ;;  %v9377_v5 = vsub.f32 %v10760_v3, %v2763_v7  ;;  %v10761_v7 = vld [vmem:[#allocation18_spill] sm:$0xff]  ;;  %v10762_v1 = vld [vmem:[#allocation20_spill] sm:$0xff]  ;;  %v10763_v29 = vld [vmem:[#allocation17_spill] sm:$0xff] }
 0x430   :  { %6189 = vmatprep.mubr.bf16.mxu0 %v3691_v30  ;;  %v3436_v58 = vmul.f32 %v9311_v34, %v3350_v25  ;;  %v2920_v30 = vmul.f32 %v9360_v31, %v9360_v31 }
 0x431   :  { %v6632_v18 = vpop.eup %6631  ;;  %3053 = vadd.xlane.f32.xlu1 %v2918_v8  ;;  %3055 = vadd.xlane.f32.xlu0 %v2919_v61  ;;  %v3433_v36 = vmul.f32 %v9311_v34, %v3347_v35  ;;  %v2764_v8 = vmul.f32 0.0078125, %v9146_v51  ;;  %v2922_v28 = vmul.f32 %v9369_v60, %v9369_v60  ;;  %v3521_v51 = vadd.f32 %v9332_v62, %v3435_v21 }
 0x432   :  { %6190 = vmatmul.mubr.bf16.vlgmr.msra.gmra.mxu0 %v3692_v2  ;;  %v3348_v48 = vmul.f32 %v6632_v18, %v10759_v15  ;;  %v3522_v25 = vadd.f32 %v9332_v62, %v3436_v58  ;;  %v9391_v61 = vsub.f32 %v10761_v7, %v2765_v49  ;;  %v2767_v2 = vmul.f32 0.0078125, %v9162_v45  ;;  %v10764_v49 = vld [vmem:[#allocation19_spill] sm:$0xff] }
 0x433   :  { %v3519_v47 = vadd.f32 %v9332_v62, %v3433_v36  ;;  %v9394_v35 = vsub.f32 %v10762_v1, %v2764_v8  ;;  %v2923_v58 = vmul.f32 %v9377_v5, %v9377_v5  ;;  %v2769_v15 = vmul.f32 0.0078125, %v9148_v59 }
 0x434   :  { %v3434_v40 = vmul.f32 %v9311_v34, %v3348_v48  ;;  %v3602_v36 = vmax.f32 %v3522_v25, 0.0  ;;  %v3601_v21 = vmax.f32 %v3521_v51, 0.0  ;;  %v9404_v3 = vsub.f32 %v10764_v49, %v2767_v2  ;;  %v10767_v2 = vld [vmem:[#allocation21_spill] sm:$0xff] }
 0x435   :  { %3057 = vadd.xlane.f32.xlu1 %v2920_v30  ;;  %3059 = vadd.xlane.f32.xlu0 %v2921_v52  ;;  %v3599_v18 = vmax.f32 %v3519_v47, 0.0  ;;  %v9400_v52 = vsub.f32 %v10763_v29, %v2766_v55  ;;  %v2768_v45 = vmul.f32 0.0078125, %v9178_v4  ;;  %v2924_v8 = vmul.f32 %v9394_v35, %v9394_v35  ;;  %v10765_v47 = vld [vmem:[#allocation22_spill] sm:$0xff]  ;;  %v10766_v4 = vld [vmem:[#allocation24_spill] sm:$0xff] }
 0x436   :  { %v3520_v53 = vadd.f32 %v9332_v62, %v3434_v40  ;;  %v2925_v30 = vmul.f32 %v9391_v61, %v9391_v61  ;;  %v3694_v40 = vpack.c.bf16 %v3602_v36, %v3601_v21  ;;  %v9412_v25 = vsub.f32 %v10765_v47, %v2769_v15  ;;  %v10769_v36 = vld [vmem:[#allocation26_spill] sm:$0xff]  ;;  %v10770_v15 = vld [vmem:[#allocation28_spill] sm:$0xff] }
 0x437   :  { %v2926_v59 = vmul.f32 %v9400_v52, %v9400_v52  ;;  %v2770_v55 = vmul.f32 0.0078125, %v9160_v57  ;;  %v2927_v51 = vmul.f32 %v9404_v3, %v9404_v3  ;;  %v2773_v7 = vmul.f32 0.0078125, %v9180_v23 }
 0x438   :  { %v3600_v41 = vmax.f32 %v3520_v53, 0.0  ;;  %v2771_v53 = vmul.f32 0.0078125, %v9195_v12  ;;  %v2929_v1 = vmul.f32 %v9412_v25, %v9412_v25  ;;  %v2774_v23 = vmul.f32 0.0078125, %v9193_v54 }
 0x439   :  { %3061 = vadd.xlane.f32.xlu1 %v2922_v28  ;;  %3063 = vadd.xlane.f32.xlu0 %v2923_v58  ;;  %v9418_v28 = vsub.f32 %v10766_v4, %v2768_v45  ;;  %v9427_v58 = vsub.f32 %v10767_v2, %v2770_v55  ;;  %v9436_v29 = vsub.f32 %v10769_v36, %v2773_v7  ;;  %v2775_v21 = vmul.f32 0.0078125, %v9249_v42  ;;  %v10771_v45 = vld [vmem:[#allocation43_spill] sm:$0xff]  ;;  %v10773_v4 = vld [vmem:[#allocation44_spill] sm:$0xff]  ;;  %v10775_v2 = vld [vmem:[#allocation46_spill] sm:$0xff] }
 0x43a   :  { %v3693_v48 = vpack.c.bf16 %v3600_v41, %v3599_v18  ;;  %v10768_v18 = vld [vmem:[#allocation25_spill] sm:$0xff]  ;;  %v2772_v41 = vmul.f32 0.0078125, %v9203_v19  ;;  %v2777_v54 = vmul.f32 0.0078125, %v9220_v13  ;;  %v2776_v42 = vmul.f32 0.0078125, %v9265_v50  ;;  %v10774_v7 = vld [vmem:[#allocation51_spill] sm:$0xff] }
 0x43b   :  { %v9430_v57 = vsub.f32 %v10768_v18, %v2771_v53  ;;  %v2928_v12 = vmul.f32 %v9418_v28, %v9418_v28  ;;  %v2930_v49 = vmul.f32 %v9427_v58, %v9427_v58 }
 0x43c   :  { %6193 = vmatprep.mubr.bf16.mxu0 %v3693_v48  ;;  %v9440_v48 = vsub.f32 %v10770_v15, %v2772_v41  ;;  %v9462_v53 = vsub.f32 %v10773_v4, %v2777_v54  ;;  %v9466_v13 = vsub.f32 %v10774_v7, %v2776_v42 }
 0x43d   :  { %3065 = vadd.xlane.f32.xlu1 %v2924_v8  ;;  %3067 = vadd.xlane.f32.xlu0 %v2925_v30  ;;  %v2931_v19 = vmul.f32 %v9430_v57, %v9430_v57  ;;  %v9448_v8 = vsub.f32 %v10771_v45, %v2774_v23  ;;  %v2933_v30 = vmul.f32 %v9436_v29, %v9436_v29 }
 0x43e   :  { %6194 = vmatmul.mubr.bf16.gmra.mxu0 %v3694_v40  ;;  %v10772_v40 = vld [vmem:[#allocation48_spill] sm:$0xff]  ;;  %v2937_v36 = vmul.f32 %v9462_v53, %v9462_v53 }
 0x43f   :  { %v9454_v47 = vsub.f32 %v10772_v40, %v2775_v21  ;;  %v2934_v55 = vmul.f32 %v9448_v8, %v9448_v8 }
 0x441   :  { %3069 = vadd.xlane.f32.xlu1 %v2926_v59  ;;  %3071 = vadd.xlane.f32.xlu0 %v2927_v51  ;;  %v2932_v59 = vmul.f32 %v9440_v48, %v9440_v48  ;;  %v2778_v51 = vmul.f32 0.0078125, %v9236_v33  ;;  %v10776_v33 = vld [vmem:[#allocation58_spill] sm:$0xff] }
 0x443   :  { %v9471_v18 = vsub.f32 %v10775_v2, %v2778_v51 }
 0x445   :  { %3073 = vadd.xlane.f32.xlu1 %v2928_v12  ;;  %3075 = vadd.xlane.f32.xlu0 %v2929_v1  ;;  %v2935_v1 = vmul.f32 %v9454_v47, %v9454_v47  ;;  %v2936_v12 = vmul.f32 %v9466_v13, %v9466_v13  ;;  %v2938_v45 = vmul.f32 %v9471_v18, %v9471_v18 }
 0x449   :  { %3077 = vadd.xlane.f32.xlu1 %v2930_v49  ;;  %3079 = vadd.xlane.f32.xlu0 %v2931_v19 }
 0x44d   :  { %3081 = vadd.xlane.f32.xlu1 %v2932_v59  ;;  %3083 = vadd.xlane.f32.xlu0 %v2933_v30 }
 0x451   :  { %3085 = vadd.xlane.f32.xlu1 %v2934_v55  ;;  %3087 = vadd.xlane.f32.xlu0 %v2935_v1 }
 0x452   :  { %v2695_v50 = vpop.xlane.xlu0 %2694 }
 0x453   :  { %v2779_v41 = vmul.f32 0.0078125, %v2695_v50 }
 0x455   :  { %v9478_v23 = vsub.f32 %v10776_v33, %v2779_v41  ;;  %3089 = vadd.xlane.f32.xlu1 %v2936_v12  ;;  %3091 = vadd.xlane.f32.xlu0 %v2937_v36 }
 0x456   :  { %v2697_v15 = vpop.xlane.xlu1 %2696  ;;  %v2964_v21 = vpop.xlane.xlu0 %2963 }
 0x457   :  { %v2780_v49 = vmul.f32 0.0078125, %v2697_v15  ;;  %v3113_v19 = vmul.f32 0.0078125, %v2964_v21  ;;  %v2939_v30 = vmul.f32 %v9478_v23, %v9478_v23 }
 0x459   :  { %v9485_v54 = vsub.f32 %v8969_v16, %v2780_v49  ;;  %v3193_v40 = vadd.f32 1e-05, %v3113_v19  ;;  %3093 = vadd.xlane.f32.xlu1 %v2938_v45  ;;  %3095 = vadd.xlane.f32.xlu0 %v2939_v30 }
 0x45a   :  { %v2966_v42 = vpop.xlane.xlu1 %2965  ;;  %v2960_v59 = vpop.xlane.xlu0 %2959 }
 0x45b   :  { %v3114_v55 = vmul.f32 0.0078125, %v2966_v42  ;;  %v3111_v4 = vmul.f32 0.0078125, %v2960_v59  ;;  %v2940_v51 = vmul.f32 %v9485_v54, %v9485_v54  ;;  %6633 = vrsqrt.f32 %v3193_v40 }
 0x45d   :  { %v3194_v7 = vadd.f32 1e-05, %v3114_v55  ;;  %v3191_v1 = vadd.f32 1e-05, %v3111_v4  ;;  %3097 = vadd.xlane.f32.xlu1 %v2940_v51 }
 0x45e   :  { %v2962_v50 = vpop.xlane.xlu1 %2961  ;;  %v2972_v2 = vpop.xlane.xlu0 %2971 }
 0x45f   :  { %6635 = vrsqrt.f32 %v3194_v7  ;;  %v3112_v41 = vmul.f32 0.0078125, %v2962_v50  ;;  %v3117_v16 = vmul.f32 0.0078125, %v2972_v2 }
 0x460   :  { %6637 = vrsqrt.f32 %v3191_v1 }
 0x461   :  { %v3192_v12 = vadd.f32 1e-05, %v3112_v41  ;;  %v3197_v36 = vadd.f32 1e-05, %v3117_v16 }
 0x462   :  { %v2974_v33 = vpop.xlane.xlu1 %2973  ;;  %v2968_v15 = vpop.xlane.xlu0 %2967 }
 0x463   :  { %6639 = vrsqrt.f32 %v3192_v12  ;;  %v3118_v21 = vmul.f32 0.0078125, %v2974_v33  ;;  %v3115_v49 = vmul.f32 0.0078125, %v2968_v15 }
 0x464   :  { %6641 = vrsqrt.f32 %v3197_v36 }
 0x465   :  { %v3198_v19 = vadd.f32 1e-05, %v3118_v21  ;;  %v3195_v45 = vadd.f32 1e-05, %v3115_v49 }
 0x466   :  { %v2970_v30 = vpop.xlane.xlu1 %2969  ;;  %v2980_v40 = vpop.xlane.xlu0 %2979 }
 0x467   :  { %6643 = vrsqrt.f32 %v3198_v19  ;;  %v3116_v42 = vmul.f32 0.0078125, %v2970_v30  ;;  %v3121_v59 = vmul.f32 0.0078125, %v2980_v40 }
 0x468   :  { %6645 = vrsqrt.f32 %v3195_v45  ;;  %v6634_v55 = vpop.eup %6633 }
 0x469   :  { %v3196_v4 = vadd.f32 1e-05, %v3116_v42  ;;  %v3201_v51 = vadd.f32 1e-05, %v3121_v59  ;;  %v3353_v16 = vmul.f32 %v6634_v55, %v8949_v11 }
 0x46a   :  { %v2982_v7 = vpop.xlane.xlu1 %2981  ;;  %v2976_v1 = vpop.xlane.xlu0 %2975 }
 0x46b   :  { %6647 = vrsqrt.f32 %v3196_v4  ;;  %v3122_v50 = vmul.f32 0.0078125, %v2982_v7  ;;  %v3119_v2 = vmul.f32 0.0078125, %v2976_v1  ;;  %v3439_v11 = vmul.f32 %v9311_v34, %v3353_v16 }
 0x46c   :  { %v6636_v41 = vpop.eup %6635  ;;  %6649 = vrsqrt.f32 %v3201_v51 }
 0x46d   :  { %v6638_v12 = vpop.eup %6637  ;;  %v3202_v36 = vadd.f32 1e-05, %v3122_v50  ;;  %v3199_v33 = vadd.f32 1e-05, %v3119_v2  ;;  %v3354_v15 = vmul.f32 %v6636_v41, %v8959_v0  ;;  %v3525_v16 = vadd.f32 %v9332_v62, %v3439_v11 }
 0x46e   :  { %v2978_v21 = vpop.xlane.xlu1 %2977  ;;  %v2988_v49 = vpop.xlane.xlu0 %2987  ;;  %v3351_v19 = vmul.f32 %v6638_v12, %v8965_v17 }
 0x46f   :  { %6651 = vrsqrt.f32 %v3202_v36  ;;  %v3120_v45 = vmul.f32 0.0078125, %v2978_v21  ;;  %v3125_v30 = vmul.f32 0.0078125, %v2988_v49  ;;  %v3440_v40 = vmul.f32 %v9311_v34, %v3354_v15 }
 0x470   :  { %v6640_v42 = vpop.eup %6639  ;;  %6653 = vrsqrt.f32 %v3199_v33  ;;  %v3437_v59 = vmul.f32 %v9311_v34, %v3351_v19 }
 0x471   :  { %v6642_v55 = vpop.eup %6641  ;;  %v3200_v4 = vadd.f32 1e-05, %v3120_v45  ;;  %v3205_v51 = vadd.f32 1e-05, %v3125_v30  ;;  %v3352_v0 = vmul.f32 %v6640_v42, %v8977_v6  ;;  %v3526_v50 = vadd.f32 %v9332_v62, %v3440_v40 }
 0x472   :  { %v2990_v7 = vpop.xlane.xlu1 %2989  ;;  %v2984_v1 = vpop.xlane.xlu0 %2983  ;;  %v3523_v17 = vadd.f32 %v9332_v62, %v3437_v59  ;;  %v3357_v2 = vmul.f32 %v6642_v55, %v8984_v63 }
 0x473   :  { %6655 = vrsqrt.f32 %v3200_v4  ;;  %v3126_v41 = vmul.f32 0.0078125, %v2990_v7  ;;  %v3123_v12 = vmul.f32 0.0078125, %v2984_v1  ;;  %v3438_v36 = vmul.f32 %v9311_v34, %v3352_v0 }
 0x474   :  { %v6644_v33 = vpop.eup %6643  ;;  %6657 = vrsqrt.f32 %v3205_v51  ;;  %v3603_v40 = vmax.f32 %v3523_v17, 0.0  ;;  %v3606_v63 = vmax.f32 %v3526_v50, 0.0  ;;  %v3443_v59 = vmul.f32 %v9311_v34, %v3357_v2 }
 0x475   :  { %v6646_v15 = vpop.eup %6645  ;;  %v3206_v21 = vadd.f32 1e-05, %v3126_v41  ;;  %v3203_v6 = vadd.f32 1e-05, %v3123_v12  ;;  %v3524_v49 = vadd.f32 %v9332_v62, %v3438_v36  ;;  %v3358_v19 = vmul.f32 %v6644_v33, %v8996_v9 }
 0x476   :  { %v2986_v45 = vpop.xlane.xlu1 %2985  ;;  %v2996_v30 = vpop.xlane.xlu0 %2995  ;;  %v3355_v42 = vmul.f32 %v6646_v15, %v8999_v27  ;;  %v3605_v0 = vmax.f32 %v3525_v16, 0.0  ;;  %v3529_v15 = vadd.f32 %v9332_v62, %v3443_v59 }
 0x477   :  { %6659 = vrsqrt.f32 %v3206_v21  ;;  %v3124_v55 = vmul.f32 0.0078125, %v2986_v45  ;;  %v3129_v4 = vmul.f32 0.0078125, %v2996_v30  ;;  %v3604_v51 = vmax.f32 %v3524_v49, 0.0 }
 0x478   :  { %v6648_v11 = vpop.eup %6647  ;;  %6661 = vrsqrt.f32 %v3203_v6  ;;  %v3441_v7 = vmul.f32 %v9311_v34, %v3355_v42  ;;  %v3444_v1 = vmul.f32 %v9311_v34, %v3358_v19  ;;  %v3696_v2 = vpack.c.bf16 %v3606_v63, %v3605_v0 }
 0x479   :  { %v6650_v9 = vpop.eup %6649  ;;  %v3204_v41 = vadd.f32 1e-05, %v3124_v55  ;;  %v3209_v12 = vadd.f32 1e-05, %v3129_v4  ;;  %v3695_v17 = vpack.c.bf16 %v3604_v51, %v3603_v40  ;;  %v3356_v50 = vmul.f32 %v6648_v11, %v9009_v38 }
 0x47a   :  { %v2998_v27 = vpop.xlane.xlu1 %2997  ;;  %v2992_v36 = vpop.xlane.xlu0 %2991  ;;  %v3527_v33 = vadd.f32 %v9332_v62, %v3441_v7  ;;  %v3530_v21 = vadd.f32 %v9332_v62, %v3444_v1  ;;  %v3361_v38 = vmul.f32 %v6650_v9, %v9013_v32  ;;  %v3609_v51 = vmax.f32 %v3529_v15, 0.0 }
 0x47b   :  { %6663 = vrsqrt.f32 %v3204_v41  ;;  %v3130_v16 = vmul.f32 0.0078125, %v2998_v27  ;;  %v3127_v6 = vmul.f32 0.0078125, %v2992_v36  ;;  %6197 = vmatprep.mubr.bf16.mxu0 %v3695_v17  ;;  %v3442_v49 = vmul.f32 %v9311_v34, %v3356_v50 }
 0x47c   :  { %v6652_v19 = vpop.eup %6651  ;;  %6665 = vrsqrt.f32 %v3209_v12  ;;  %6198 = vmatmul.mubr.bf16.gmra.mxu0 %v3696_v2  ;;  %v3607_v4 = vmax.f32 %v3527_v33, 0.0  ;;  %v3610_v11 = vmax.f32 %v3530_v21, 0.0  ;;  %v3447_v9 = vmul.f32 %v9311_v34, %v3361_v38 }
 0x47d   :  { %v6654_v45 = vpop.eup %6653  ;;  %v3210_v30 = vadd.f32 1e-05, %v3130_v16  ;;  %v3207_v40 = vadd.f32 1e-05, %v3127_v6  ;;  %v3528_v63 = vadd.f32 %v9332_v62, %v3442_v49  ;;  %v3362_v42 = vmul.f32 %v6652_v19, %v9025_v24 }
 0x47e   :  { %v2994_v59 = vpop.xlane.xlu1 %2993  ;;  %v3004_v55 = vpop.xlane.xlu0 %3003  ;;  %v3359_v0 = vmul.f32 %v6654_v45, %v9030_v10  ;;  %v3698_v15 = vpack.c.bf16 %v3610_v11, %v3609_v51 }
 0x47f   :  { %6667 = vrsqrt.f32 %v3210_v30  ;;  %v3128_v7 = vmul.f32 0.0078125, %v2994_v59  ;;  %v3133_v1 = vmul.f32 0.0078125, %v3004_v55  ;;  %v3608_v41 = vmax.f32 %v3528_v63, 0.0  ;;  %v10777_v59 = vld [vmem:[#allocation59_spill] sm:$0xff] }
 0x480   :  { %v6656_v12 = vpop.eup %6655  ;;  %6669 = vrsqrt.f32 %v3207_v40  ;;  %v3445_v32 = vmul.f32 %v9311_v34, %v3359_v0  ;;  %v3448_v17 = vmul.f32 %v9311_v34, %v3362_v42  ;;  %v10778_v0 = vld [vmem:[#allocation60_spill] sm:$0xff] }
 0x481   :  { %v6658_v24 = vpop.eup %6657  ;;  %v3208_v50 = vadd.f32 1e-05, %v3128_v7  ;;  %v3213_v27 = vadd.f32 1e-05, %v3133_v1  ;;  %v3697_v36 = vpack.c.bf16 %v3608_v41, %v3607_v4  ;;  %v3360_v2 = vmul.f32 %v6656_v12, %v9044_v20 }
 0x482   :  { %v3006_v33 = vpop.xlane.xlu1 %3005  ;;  %v3000_v10 = vpop.xlane.xlu0 %2999  ;;  %v3531_v21 = vadd.f32 %v9332_v62, %v3445_v32  ;;  %v3534_v16 = vadd.f32 %v9332_v62, %v3448_v17  ;;  %v3365_v6 = vmul.f32 %v6658_v24, %v9047_v14  ;;  %v3533_v20 = vadd.f32 %v9332_v62, %v3447_v9 }
 0x483   :  { %6671 = vrsqrt.f32 %v3208_v50  ;;  %v3134_v49 = vmul.f32 0.0078125, %v3006_v33  ;;  %v3131_v19 = vmul.f32 0.0078125, %v3000_v10  ;;  %6201 = vmatprep.mubr.bf16.mxu0 %v3697_v36  ;;  %v3446_v38 = vmul.f32 %v9311_v34, %v3360_v2  ;;  %v10779_v10 = vld [vmem:[#allocation61_spill] sm:$0xff] }
 0x484   :  { %v6660_v45 = vpop.eup %6659  ;;  %6673 = vrsqrt.f32 %v3213_v27  ;;  %6202 = vmatmul.mubr.bf16.gmra.mxu0 %v3698_v15  ;;  %v3611_v51 = vmax.f32 %v3531_v21, 0.0  ;;  %v3614_v11 = vmax.f32 %v3534_v16, 0.0  ;;  %v3451_v1 = vmul.f32 %v9311_v34, %v3365_v6 }
 0x485   :  { %v6662_v30 = vpop.eup %6661  ;;  %v3214_v40 = vadd.f32 1e-05, %v3134_v49  ;;  %v3211_v63 = vadd.f32 1e-05, %v3131_v19  ;;  %v3532_v42 = vadd.f32 %v9332_v62, %v3446_v38  ;;  %v3366_v55 = vmul.f32 %v6660_v45, %v10777_v59 }
 0x486   :  { %v3002_v4 = vpop.xlane.xlu1 %3001  ;;  %v3012_v14 = vpop.xlane.xlu0 %3011  ;;  %v3363_v7 = vmul.f32 %v6662_v30, %v10778_v0  ;;  %v3613_v17 = vmax.f32 %v3533_v20, 0.0  ;;  %v3537_v19 = vadd.f32 %v9332_v62, %v3451_v1 }
 0x487   :  { %6675 = vrsqrt.f32 %v3214_v40  ;;  %v3132_v41 = vmul.f32 0.0078125, %v3002_v4  ;;  %v3137_v12 = vmul.f32 0.0078125, %v3012_v14  ;;  %v3612_v32 = vmax.f32 %v3532_v42, 0.0 }
 0x488   :  { %v6664_v9 = vpop.eup %6663  ;;  %6677 = vrsqrt.f32 %v3211_v63  ;;  %v3449_v24 = vmul.f32 %v9311_v34, %v3363_v7  ;;  %v3452_v50 = vmul.f32 %v9311_v34, %v3366_v55  ;;  %v3700_v6 = vpack.c.bf16 %v3614_v11, %v3613_v17  ;;  %v10780_v63 = vld [vmem:[#allocation62_spill] sm:$0xff] }
 0x489   :  { %v6666_v27 = vpop.eup %6665  ;;  %v3212_v36 = vadd.f32 1e-05, %v3132_v41  ;;  %v3217_v2 = vadd.f32 1e-05, %v3137_v12  ;;  %v3699_v33 = vpack.c.bf16 %v3612_v32, %v3611_v51  ;;  %v3364_v15 = vmul.f32 %v6664_v9, %v10779_v10  ;;  %v10781_v51 = vld [vmem:[#allocation63_spill] sm:$0xff]  ;;  %v10782_v32 = vld [vmem:[#allocation64_spill] sm:$0xff] }
 0x48a   :  { %v3014_v21 = vpop.xlane.xlu1 %3013  ;;  %v3008_v16 = vpop.xlane.xlu0 %3007  ;;  %v3535_v49 = vadd.f32 %v9332_v62, %v3449_v24  ;;  %v3538_v38 = vadd.f32 %v9332_v62, %v3452_v50  ;;  %v3369_v42 = vmul.f32 %v6666_v27, %v10780_v63  ;;  %v3617_v41 = vmax.f32 %v3537_v19, 0.0 }
 0x48b   :  { %6679 = vrsqrt.f32 %v3212_v36  ;;  %v3138_v45 = vmul.f32 0.0078125, %v3014_v21  ;;  %v3135_v20 = vmul.f32 0.0078125, %v3008_v16  ;;  %6205 = vmatprep.mubr.bf16.mxu0 %v3699_v33  ;;  %v3450_v30 = vmul.f32 %v9311_v34, %v3364_v15 }
 0x48c   :  { %v6668_v40 = vpop.eup %6667  ;;  %6681 = vrsqrt.f32 %v3217_v2  ;;  %6206 = vmatmul.mubr.bf16.gmra.mxu0 %v3700_v6  ;;  %v3615_v1 = vmax.f32 %v3535_v49, 0.0  ;;  %v3618_v12 = vmax.f32 %v3538_v38, 0.0  ;;  %v3455_v2 = vmul.f32 %v9311_v34, %v3369_v42  ;;  %v10783_v6 = vld [vmem:[#allocation65_spill] sm:$0xff] }
 0x48d   :  { %v6670_v59 = vpop.eup %6669  ;;  %v3218_v55 = vadd.f32 1e-05, %v3138_v45  ;;  %v3215_v4 = vadd.f32 1e-05, %v3135_v20  ;;  %v3536_v14 = vadd.f32 %v9332_v62, %v3450_v30  ;;  %v3370_v11 = vmul.f32 %v6668_v40, %v10781_v51  ;;  %v10784_v40 = vld [vmem:[#allocation66_spill] sm:$0xff] }
 0x48e   :  { %v3010_v0 = vpop.xlane.xlu1 %3009  ;;  %v3020_v7 = vpop.xlane.xlu0 %3019  ;;  %v3367_v9 = vmul.f32 %v6670_v59, %v10782_v32  ;;  %v3702_v45 = vpack.c.bf16 %v3618_v12, %v3617_v41 }
 0x48f   :  { %6683 = vrsqrt.f32 %v3218_v55  ;;  %v3136_v17 = vmul.f32 0.0078125, %v3010_v0  ;;  %v3141_v24 = vmul.f32 0.0078125, %v3020_v7  ;;  %v3616_v50 = vmax.f32 %v3536_v14, 0.0 }
 0x490   :  { %v6672_v36 = vpop.eup %6671  ;;  %6685 = vrsqrt.f32 %v3215_v4  ;;  %v3453_v27 = vmul.f32 %v9311_v34, %v3367_v9  ;;  %v3456_v33 = vmul.f32 %v9311_v34, %v3370_v11  ;;  %v3541_v14 = vadd.f32 %v9332_v62, %v3455_v2 }
 0x491   :  { %v6674_v10 = vpop.eup %6673  ;;  %v3216_v15 = vadd.f32 1e-05, %v3136_v17  ;;  %v3221_v21 = vadd.f32 1e-05, %v3141_v24  ;;  %v3701_v16 = vpack.c.bf16 %v3616_v50, %v3615_v1  ;;  %v3368_v49 = vmul.f32 %v6672_v36, %v10783_v6  ;;  %v10785_v1 = vld [vmem:[#allocation67_spill] sm:$0xff]  ;;  %v10786_v24 = vld [vmem:[#allocation68_spill] sm:$0xff] }
 0x492   :  { %v3022_v19 = vpop.xlane.xlu1 %3021  ;;  %v3016_v38 = vpop.xlane.xlu0 %3015  ;;  %v3539_v20 = vadd.f32 %v9332_v62, %v3453_v27  ;;  %v3542_v30 = vadd.f32 %v9332_v62, %v3456_v33  ;;  %v3373_v63 = vmul.f32 %v6674_v10, %v10784_v40 }
 0x493   :  { %6687 = vrsqrt.f32 %v3216_v15  ;;  %v3142_v59 = vmul.f32 0.0078125, %v3022_v19  ;;  %v3139_v42 = vmul.f32 0.0078125, %v3016_v38  ;;  %6209 = vmatprep.mubr.bf16.mxu0 %v3701_v16  ;;  %v3454_v55 = vmul.f32 %v9311_v34, %v3368_v49 }
 0x494   :  { %v6676_v4 = vpop.eup %6675  ;;  %6689 = vrsqrt.f32 %v3221_v21  ;;  %6210 = vmatmul.mubr.bf16.gmra.mxu0 %v3702_v45  ;;  %v3619_v9 = vmax.f32 %v3539_v20, 0.0  ;;  %v3622_v17 = vmax.f32 %v3542_v30, 0.0  ;;  %v3459_v36 = vmul.f32 %v9311_v34, %v3373_v63  ;;  %v10787_v45 = vld [vmem:[#allocation69_spill] sm:$0xff] }
 0x495   :  { %v6678_v51 = vpop.eup %6677  ;;  %v3222_v11 = vadd.f32 1e-05, %v3142_v59  ;;  %v3219_v0 = vadd.f32 1e-05, %v3139_v42  ;;  %v3540_v7 = vadd.f32 %v9332_v62, %v3454_v55  ;;  %v3374_v41 = vmul.f32 %v6676_v4, %v10785_v1  ;;  %v10788_v55 = vld [vmem:[#allocation70_spill] sm:$0xff] }
 0x496   :  { %v3018_v12 = vpop.xlane.xlu1 %3017  ;;  %v2699_v32 = vpop.xlane.xlu0 %2698  ;;  %v3371_v50 = vmul.f32 %v6678_v51, %v10786_v24  ;;  %v3621_v15 = vmax.f32 %v3541_v14, 0.0  ;;  %v3545_v59 = vadd.f32 %v9332_v62, %v3459_v36 }
 0x497   :  { %6691 = vrsqrt.f32 %v3222_v11  ;;  %v3140_v27 = vmul.f32 0.0078125, %v3018_v12  ;;  %v2781_v33 = vmul.f32 0.0078125, %v2699_v32  ;;  %v3620_v10 = vmax.f32 %v3540_v7, 0.0 }
 0x498   :  { %v6680_v2 = vpop.eup %6679  ;;  %6693 = vrsqrt.f32 %v3219_v0  ;;  %v3457_v21 = vmul.f32 %v9311_v34, %v3371_v50  ;;  %v3460_v16 = vmul.f32 %v9311_v34, %v3374_v41  ;;  %v3704_v63 = vpack.c.bf16 %v3622_v17, %v3621_v15 }
 0x499   :  { %v6682_v6 = vpop.eup %6681  ;;  %v3220_v49 = vadd.f32 1e-05, %v3140_v27  ;;  %v9556_v19 = vsub.f32 %v9214_v44, %v2781_v33  ;;  %v3703_v38 = vpack.c.bf16 %v3620_v10, %v3619_v9  ;;  %v3372_v20 = vmul.f32 %v6680_v2, %v10787_v45  ;;  %v10789_v9 = vld [vmem:[#allocation27_spill] sm:$0xff]  ;;  %v10790_v33 = vld [vmem:[#allocation29_spill] sm:$0xff] }
 0x49a   :  { %v2701_v30 = vpop.xlane.xlu1 %2700  ;;  %v3024_v40 = vpop.xlane.xlu0 %3023  ;;  %v3546_v42 = vadd.f32 %v9332_v62, %v3460_v16  ;;  %v3377_v4 = vmul.f32 %v6682_v6, %v10788_v55  ;;  %v3543_v7 = vadd.f32 %v9332_v62, %v3457_v21  ;;  %v3625_v27 = vmax.f32 %v3545_v59, 0.0  ;;  %v10791_v59 = vld [vmem:[#allocation53_spill] sm:$0xff] }
 0x49b   :  { %6695 = vrsqrt.f32 %v3220_v49  ;;  %v2782_v14 = vmul.f32 0.0078125, %v2701_v30  ;;  %v3143_v51 = vmul.f32 0.0078125, %v3024_v40  ;;  %6213 = vmatprep.mubr.bf16.mxu0 %v3703_v38  ;;  %v2941_v44 = vmul.f32 %v9556_v19, %v9556_v19 }
 0x49c   :  { %v6684_v11 = vpop.eup %6683  ;;  %6214 = vmatmul.mubr.bf16.gmra.mxu0 %v3704_v63  ;;  %v3458_v0 = vmul.f32 %v9311_v34, %v3372_v20  ;;  %v3626_v32 = vmax.f32 %v3546_v42, 0.0  ;;  %v3463_v2 = vmul.f32 %v9311_v34, %v3377_v4  ;;  %v3623_v6 = vmax.f32 %v3543_v7, 0.0 }
 0x49d   :  { %v6686_v1 = vpop.eup %6685  ;;  %v9567_v41 = vsub.f32 %v9230_v22, %v2782_v14  ;;  %v3223_v12 = vadd.f32 1e-05, %v3143_v51  ;;  %3099 = vadd.xlane.f32.xlu0 %v2941_v44  ;;  %v3378_v17 = vmul.f32 %v6684_v11, %v10789_v9 }
 0x49e   :  { %v3026_v24 = vpop.xlane.xlu1 %3025  ;;  %v3028_v50 = vpop.xlane.xlu0 %3027  ;;  %v3544_v36 = vadd.f32 %v9332_v62, %v3458_v0  ;;  %v3375_v10 = vmul.f32 %v6686_v1, %v10790_v33  ;;  %v3706_v63 = vpack.c.bf16 %v3626_v32, %v3625_v27  ;;  %v3549_v44 = vadd.f32 %v9332_v62, %v3463_v2  ;;  %v10792_v32 = vld [vmem:[#allocation31_spill] sm:$0xff]  ;;  %v10793_v27 = vld [vmem:[#allocation32_spill] sm:$0xff] }
 0x49f   :  { %6697 = vrsqrt.f32 %v3223_v12  ;;  %v3144_v15 = vmul.f32 0.0078125, %v3026_v24  ;;  %v3145_v21 = vmul.f32 0.0078125, %v3028_v50  ;;  %v2942_v22 = vmul.f32 %v9567_v41, %v9567_v41 }
 0x4a0   :  { %v6688_v16 = vpop.eup %6687  ;;  %v3624_v49 = vmax.f32 %v3544_v36, 0.0  ;;  %v3461_v38 = vmul.f32 %v9311_v34, %v3375_v10  ;;  %v3464_v45 = vmul.f32 %v9311_v34, %v3378_v17 }
 0x4a1   :  { %v6690_v20 = vpop.eup %6689  ;;  %v3224_v30 = vadd.f32 1e-05, %v3144_v15  ;;  %v3225_v40 = vadd.f32 1e-05, %v3145_v21  ;;  %3101 = vadd.xlane.f32.xlu1 %v2942_v22  ;;  %v3376_v42 = vmul.f32 %v6688_v16, %v10791_v59  ;;  %v3629_v21 = vmax.f32 %v3549_v44, 0.0  ;;  %v10794_v16 = vld [vmem:[#allocation54_spill] sm:$0xff] }
 0x4a2   :  { %v3030_v55 = vpop.xlane.xlu1 %3029  ;;  %v3032_v4 = vpop.xlane.xlu0 %3031  ;;  %v3705_v14 = vpack.c.bf16 %v3624_v49, %v3623_v6  ;;  %v3547_v51 = vadd.f32 %v9332_v62, %v3461_v38  ;;  %v3550_v11 = vadd.f32 %v9332_v62, %v3464_v45  ;;  %v3381_v9 = vmul.f32 %v6690_v20, %v10792_v32 }
 0x4a3   :  { %6699 = vrsqrt.f32 %v3224_v30  ;;  %v3146_v0 = vmul.f32 0.0078125, %v3030_v55  ;;  %v3147_v7 = vmul.f32 0.0078125, %v3032_v4  ;;  %v3462_v1 = vmul.f32 %v9311_v34, %v3376_v42  ;;  %v10795_v4 = vld [vmem:[#allocation55_spill] sm:$0xff] }
 0x4a4   :  { %v6692_v12 = vpop.eup %6691  ;;  %6701 = vrsqrt.f32 %v3225_v40  ;;  %6217 = vmatprep.mubr.bf16.mxu0 %v3705_v14  ;;  %v3627_v15 = vmax.f32 %v3547_v51, 0.0  ;;  %v3630_v22 = vmax.f32 %v3550_v11, 0.0  ;;  %v3467_v40 = vmul.f32 %v9311_v34, %v3381_v9 }
 0x4a5   :  { %v6694_v17 = vpop.eup %6693  ;;  %v3226_v24 = vadd.f32 1e-05, %v3146_v0  ;;  %v3227_v50 = vadd.f32 1e-05, %v3147_v7  ;;  %6218 = vmatmul.mubr.bf16.gmra.mxu0 %v3706_v63  ;;  %v3548_v36 = vadd.f32 %v9332_v62, %v3462_v1  ;;  %v3382_v33 = vmul.f32 %v6692_v12, %v10793_v27 }
 0x4a6   :  { %v3034_v10 = vpop.xlane.xlu1 %3033  ;;  %v3036_v2 = vpop.xlane.xlu0 %3035  ;;  %v3379_v6 = vmul.f32 %v6694_v17, %v10794_v16  ;;  %v3708_v11 = vpack.c.bf16 %v3630_v22, %v3629_v21  ;;  %v3553_v17 = vadd.f32 %v9332_v62, %v3467_v40 }
 0x4a7   :  { %6703 = vrsqrt.f32 %v3226_v24  ;;  %v3148_v49 = vmul.f32 0.0078125, %v3034_v10  ;;  %v3149_v38 = vmul.f32 0.0078125, %v3036_v2  ;;  %v3628_v45 = vmax.f32 %v3548_v36, 0.0 }
 0x4a8   :  { %v6696_v20 = vpop.eup %6695  ;;  %6705 = vrsqrt.f32 %v3227_v50  ;;  %v3465_v30 = vmul.f32 %v9311_v34, %v3379_v6  ;;  %v3468_v63 = vmul.f32 %v9311_v34, %v3382_v33  ;;  %v3633_v6 = vmax.f32 %v3553_v17, 0.0 }
 0x4a9   :  { %v3228_v59 = vadd.f32 1e-05, %v3148_v49  ;;  %v3229_v42 = vadd.f32 1e-05, %v3149_v38  ;;  %v3707_v55 = vpack.c.bf16 %v3628_v45, %v3627_v15  ;;  %v3380_v14 = vmul.f32 %v6696_v20, %v10795_v4  ;;  %v9599_v49 = vld [vmem:[%s10743_s4] ss:$0 sm:$0xff] }
 0x4aa   :  { %v3038_v51 = vpop.xlane.xlu1 %3037  ;;  %v3040_v44 = vpop.xlane.xlu0 %3039  ;;  %v3551_v0 = vadd.f32 %v9332_v62, %v3465_v30  ;;  %v3554_v7 = vadd.f32 %v9332_v62, %v3468_v63  ;;  %v10796_v30 = vld [vmem:[#allocation34_spill] sm:$0xff] }
 0x4ab   :  { %6707 = vrsqrt.f32 %v3228_v59  ;;  %v3150_v1 = vmul.f32 0.0078125, %v3038_v51  ;;  %v3151_v12 = vmul.f32 0.0078125, %v3040_v44  ;;  %6221 = vmatprep.mubr.bf16.mxu0 %v3707_v55  ;;  %v3466_v32 = vmul.f32 %v9311_v34, %v3380_v14  ;;  %v9606_v55 = vld [vmem:[%s10749_s9] ss:$0 sm:$0xff]  ;;  %v10797_v14 = vld [vmem:[#allocation35_spill] sm:$0xff] }
 0x4ac   :  { %v6698_v9 = vpop.eup %6697  ;;  %6709 = vrsqrt.f32 %v3229_v42  ;;  %v3631_v2 = vmax.f32 %v3551_v0, 0.0  ;;  %v3634_v15 = vmax.f32 %v3554_v7, 0.0 }
 0x4ad   :  { %v3230_v24 = vadd.f32 1e-05, %v3150_v1  ;;  %v3231_v50 = vadd.f32 1e-05, %v3151_v12  ;;  %6222 = vmatmul.mubr.bf16.gmra.mxu0 %v3708_v11  ;;  %v3552_v36 = vadd.f32 %v9332_v62, %v3466_v32  ;;  %v3383_v27 = vmul.f32 %v6698_v9, %v9217_v46 }
 0x4ae   :  { %v3042_v33 = vpop.xlane.xlu1 %3041  ;;  %v3044_v10 = vpop.xlane.xlu0 %3043  ;;  %v3710_v42 = vpack.c.bf16 %v3634_v15, %v3633_v6 }
 0x4af   :  { %6711 = vrsqrt.f32 %v3230_v24  ;;  %v3152_v21 = vmul.f32 0.0078125, %v3042_v33  ;;  %v3153_v22 = vmul.f32 0.0078125, %v3044_v10  ;;  %v3632_v16 = vmax.f32 %v3552_v36, 0.0  ;;  %v10798_v24 = vld [vmem:[#allocation57_spill] sm:$0xff]  ;;  %v10799_v10 = vld [vmem:[#allocation36_spill] sm:$0xff] }
 0x4b0   :  { %v6700_v34 = vpop.eup %6699  ;;  %6713 = vrsqrt.f32 %v3231_v50  ;;  %v3469_v62 = vmul.f32 %v9599_v49, %v3383_v27 }
 0x4b1   :  { %v6702_v38 = vpop.eup %6701  ;;  %v3232_v46 = vadd.f32 1e-05, %v3152_v21  ;;  %v3233_v45 = vadd.f32 1e-05, %v3153_v22  ;;  %v3709_v20 = vpack.c.bf16 %v3632_v16, %v3631_v2  ;;  %v3384_v40 = vmul.f32 %v6700_v34, %v10796_v30  ;;  %v10800_v30 = vld [vmem:[#allocation38_spill] sm:$0xff] }
 0x4b2   :  { %v3046_v63 = vpop.xlane.xlu1 %3045  ;;  %v3048_v59 = vpop.xlane.xlu0 %3047  ;;  %v3555_v4 = vadd.f32 %v9606_v55, %v3469_v62  ;;  %v3385_v51 = vmul.f32 %v6702_v38, %v10797_v14  ;;  %v10801_v14 = vld [vmem:[#allocation56_spill] sm:$0xff] }
 0x4b3   :  { %6715 = vrsqrt.f32 %v3232_v46  ;;  %v3154_v44 = vmul.f32 0.0078125, %v3046_v63  ;;  %v3155_v11 = vmul.f32 0.0078125, %v3048_v59  ;;  %6225 = vmatprep.mubr.bf16.mxu0 %v3709_v20  ;;  %v3470_v0 = vmul.f32 %v9599_v49, %v3384_v40 }
 0x4b4   :  { %v6704_v7 = vpop.eup %6703  ;;  %6717 = vrsqrt.f32 %v3233_v45  ;;  %v3471_v1 = vmul.f32 %v9599_v49, %v3385_v51  ;;  %v3635_v33 = vmax.f32 %v3555_v4, 0.0 }
 0x4b5   :  { %v6706_v12 = vpop.eup %6705  ;;  %v3234_v32 = vadd.f32 1e-05, %v3154_v44  ;;  %v3235_v9 = vadd.f32 1e-05, %v3155_v11  ;;  %6226 = vmatmul.mubr.bf16.gmra.mxu0 %v3710_v42  ;;  %v3556_v17 = vadd.f32 %v9606_v55, %v3470_v0  ;;  %v3386_v50 = vmul.f32 %v6704_v7, %v10798_v24 }
 0x4b6   :  { %v3050_v36 = vpop.xlane.xlu1 %3049  ;;  %v3052_v27 = vpop.xlane.xlu0 %3051  ;;  %v3387_v2 = vmul.f32 %v6706_v12, %v10799_v10  ;;  %v3557_v6 = vadd.f32 %v9606_v55, %v3471_v1 }
 0x4b7   :  { %6719 = vrsqrt.f32 %v3234_v32  ;;  %v3156_v15 = vmul.f32 0.0078125, %v3050_v36  ;;  %v3157_v21 = vmul.f32 0.0078125, %v3052_v27  ;;  %v3636_v22 = vmax.f32 %v3556_v17, 0.0  ;;  %v10802_v36 = vld [vmem:[#allocation37_spill] sm:$0xff] }
 0x4b8   :  { %v6708_v16 = vpop.eup %6707  ;;  %6721 = vrsqrt.f32 %v3235_v9  ;;  %v3472_v34 = vmul.f32 %v9599_v49, %v3386_v50  ;;  %v3473_v62 = vmul.f32 %v9599_v49, %v3387_v2  ;;  %v3637_v1 = vmax.f32 %v3557_v6, 0.0 }
 0x4b9   :  { %v6710_v38 = vpop.eup %6709  ;;  %v3236_v46 = vadd.f32 1e-05, %v3156_v15  ;;  %v3237_v45 = vadd.f32 1e-05, %v3157_v21  ;;  %v3711_v20 = vpack.c.bf16 %v3636_v22, %v3635_v33  ;;  %v3388_v40 = vmul.f32 %v6708_v16, %v10800_v30  ;;  %v10803_v21 = vld [vmem:[#allocation40_spill] sm:$0xff] }
 0x4ba   :  { %v3054_v63 = vpop.xlane.xlu1 %3053  ;;  %v3056_v59 = vpop.xlane.xlu0 %3055  ;;  %v3558_v42 = vadd.f32 %v9606_v55, %v3472_v34  ;;  %v3559_v4 = vadd.f32 %v9606_v55, %v3473_v62  ;;  %v3389_v51 = vmul.f32 %v6710_v38, %v10801_v14 }
 0x4bb   :  { %6723 = vrsqrt.f32 %v3236_v46  ;;  %v3158_v44 = vmul.f32 0.0078125, %v3054_v63  ;;  %v3159_v11 = vmul.f32 0.0078125, %v3056_v59  ;;  %6229 = vmatprep.mubr.bf16.mxu0 %v3711_v20  ;;  %v3474_v0 = vmul.f32 %v9599_v49, %v3388_v40 }
 0x4bc   :  { %v6712_v7 = vpop.eup %6711  ;;  %6725 = vrsqrt.f32 %v3237_v45  ;;  %v3638_v12 = vmax.f32 %v3558_v42, 0.0  ;;  %v3475_v32 = vmul.f32 %v9599_v49, %v3389_v51  ;;  %v3639_v15 = vmax.f32 %v3559_v4, 0.0 }
 0x4bd   :  { %v6714_v9 = vpop.eup %6713  ;;  %v3238_v17 = vadd.f32 1e-05, %v3158_v44  ;;  %v3239_v24 = vadd.f32 1e-05, %v3159_v11  ;;  %v3560_v50 = vadd.f32 %v9606_v55, %v3474_v0  ;;  %v3390_v27 = vmul.f32 %v6712_v7, %v10802_v36 }
 0x4be   :  { %v3058_v33 = vpop.xlane.xlu1 %3057  ;;  %v3060_v10 = vpop.xlane.xlu0 %3059  ;;  %v3712_v2 = vpack.c.bf16 %v3638_v12, %v3637_v1  ;;  %v3391_v22 = vmul.f32 %v6714_v9, %v10803_v21  ;;  %v3561_v46 = vadd.f32 %v9606_v55, %v3475_v32 }
 0x4bf   :  { %6727 = vrsqrt.f32 %v3238_v17  ;;  %v3160_v16 = vmul.f32 0.0078125, %v3058_v33  ;;  %v3161_v34 = vmul.f32 0.0078125, %v3060_v10  ;;  %v3640_v6 = vmax.f32 %v3560_v50, 0.0 }
 0x4c0   :  { %v6716_v62 = vpop.eup %6715  ;;  %6729 = vrsqrt.f32 %v3239_v24  ;;  %6230 = vmatmul.mubr.bf16.gmra.mxu0 %v3712_v2  ;;  %v3476_v38 = vmul.f32 %v9599_v49, %v3390_v27  ;;  %v3477_v45 = vmul.f32 %v9599_v49, %v3391_v22  ;;  %v3641_v12 = vmax.f32 %v3561_v46, 0.0  ;;  %v10804_v2 = vld [vmem:[#allocation39_spill] sm:$0xff] }
 0x4c1   :  { %v6718_v20 = vpop.eup %6717  ;;  %v3240_v30 = vadd.f32 1e-05, %v3160_v16  ;;  %v3241_v40 = vadd.f32 1e-05, %v3161_v34  ;;  %v3713_v63 = vpack.c.bf16 %v3640_v6, %v3639_v15  ;;  %v3392_v59 = vmul.f32 %v6716_v62, %v9286_v26 }
 0x4c2   :  { %v3062_v42 = vpop.xlane.xlu1 %3061  ;;  %v3064_v4 = vpop.xlane.xlu0 %3063  ;;  %v3562_v14 = vadd.f32 %v9606_v55, %v3476_v38  ;;  %v3563_v51 = vadd.f32 %v9606_v55, %v3477_v45  ;;  %v3393_v44 = vmul.f32 %v6718_v20, %v9282_v39 }
 0x4c3   :  { %6731 = vrsqrt.f32 %v3240_v30  ;;  %v3162_v11 = vmul.f32 0.0078125, %v3062_v42  ;;  %v3163_v0 = vmul.f32 0.0078125, %v3064_v4  ;;  %6233 = vmatprep.mubr.bf16.mxu0 %v3713_v63  ;;  %v3478_v7 = vmul.f32 %v9599_v49, %v3392_v59  ;;  %v10805_v30 = vld [vmem:[#allocation41_spill] sm:$0xff] }
 0x4c4   :  { %v6720_v1 = vpop.eup %6719  ;;  %6733 = vrsqrt.f32 %v3241_v40  ;;  %v3642_v32 = vmax.f32 %v3562_v14, 0.0  ;;  %v3479_v26 = vmul.f32 %v9599_v49, %v3393_v44  ;;  %v3643_v10 = vmax.f32 %v3563_v51, 0.0  ;;  %v10806_v14 = vld [vmem:[#allocation42_spill] sm:$0xff] }
 0x4c5   :  { %v6722_v9 = vpop.eup %6721  ;;  %v3242_v17 = vadd.f32 1e-05, %v3162_v11  ;;  %v3243_v24 = vadd.f32 1e-05, %v3163_v0  ;;  %v3564_v50 = vadd.f32 %v9606_v55, %v3478_v7  ;;  %v3394_v36 = vmul.f32 %v6720_v1, %v9297_v43 }
 0x4c6   :  { %v3066_v39 = vpop.xlane.xlu1 %3065  ;;  %v3068_v27 = vpop.xlane.xlu0 %3067  ;;  %v3714_v33 = vpack.c.bf16 %v3642_v32, %v3641_v12  ;;  %v3395_v15 = vmul.f32 %v6722_v9, %v10804_v2  ;;  %v3565_v62 = vadd.f32 %v9606_v55, %v3479_v26 }
 0x4c7   :  { %6735 = vrsqrt.f32 %v3242_v17  ;;  %v3164_v21 = vmul.f32 0.0078125, %v3066_v39  ;;  %v3165_v22 = vmul.f32 0.0078125, %v3068_v27  ;;  %v3644_v16 = vmax.f32 %v3564_v50, 0.0  ;;  %v10807_v50 = vld [vmem:[#allocation4_spill] sm:$0xff] }
 0x4c8   :  { %v6724_v34 = vpop.eup %6723  ;;  %6737 = vrsqrt.f32 %v3243_v24  ;;  %6234 = vmatmul.mubr.bf16.gmra.mxu0 %v3714_v33  ;;  %v3480_v6 = vmul.f32 %v9599_v49, %v3394_v36  ;;  %v3481_v38 = vmul.f32 %v9599_v49, %v3395_v15  ;;  %v3645_v1 = vmax.f32 %v3565_v62, 0.0 }
 0x4c9   :  { %v6726_v43 = vpop.eup %6725  ;;  %v3244_v46 = vadd.f32 1e-05, %v3164_v21  ;;  %v3245_v45 = vadd.f32 1e-05, %v3165_v22  ;;  %v3715_v20 = vpack.c.bf16 %v3644_v16, %v3643_v10  ;;  %v3396_v40 = vmul.f32 %v6724_v34, %v10805_v30 }
 0x4ca   :  { %v3070_v63 = vpop.xlane.xlu1 %3069  ;;  %v3072_v59 = vpop.xlane.xlu0 %3071  ;;  %v3566_v42 = vadd.f32 %v9606_v55, %v3480_v6  ;;  %v3567_v4 = vadd.f32 %v9606_v55, %v3481_v38  ;;  %v3397_v51 = vmul.f32 %v6726_v43, %v10806_v14 }
 0x4cb   :  { %6739 = vrsqrt.f32 %v3244_v46  ;;  %v3166_v44 = vmul.f32 0.0078125, %v3070_v63  ;;  %v3167_v11 = vmul.f32 0.0078125, %v3072_v59  ;;  %6237 = vmatprep.mubr.bf16.mxu0 %v3715_v20  ;;  %v3482_v0 = vmul.f32 %v9599_v49, %v3396_v40 }
 0x4cc   :  { %v6728_v7 = vpop.eup %6727  ;;  %6741 = vrsqrt.f32 %v3245_v45  ;;  %v3646_v12 = vmax.f32 %v3566_v42, 0.0  ;;  %v3483_v32 = vmul.f32 %v9599_v49, %v3397_v51  ;;  %v3647_v10 = vmax.f32 %v3567_v4, 0.0 }
 0x4cd   :  { %v6730_v26 = vpop.eup %6729  ;;  %v3246_v9 = vadd.f32 1e-05, %v3166_v44  ;;  %v3247_v17 = vadd.f32 1e-05, %v3167_v11  ;;  %v3568_v24 = vadd.f32 %v9606_v55, %v3482_v0  ;;  %v3398_v36 = vmul.f32 %v6728_v7, %v10807_v50 }
 0x4ce   :  { %v3074_v39 = vpop.xlane.xlu1 %3073  ;;  %v3076_v27 = vpop.xlane.xlu0 %3075  ;;  %v3716_v33 = vpack.c.bf16 %v3646_v12, %v3645_v1  ;;  %v3399_v2 = vmul.f32 %v6730_v26, %v9344_v37  ;;  %v3569_v6 = vadd.f32 %v9606_v55, %v3483_v32 }
 0x4cf   :  { %6743 = vrsqrt.f32 %v3246_v9  ;;  %v3168_v15 = vmul.f32 0.0078125, %v3074_v39  ;;  %v3169_v21 = vmul.f32 0.0078125, %v3076_v27  ;;  %v3648_v22 = vmax.f32 %v3568_v24, 0.0 }
 0x4d0   :  { %v6732_v16 = vpop.eup %6731  ;;  %6745 = vrsqrt.f32 %v3247_v17  ;;  %6238 = vmatmul.mubr.bf16.gmra.mxu0 %v3716_v33  ;;  %v3484_v34 = vmul.f32 %v9599_v49, %v3398_v36  ;;  %v3485_v62 = vmul.f32 %v9599_v49, %v3399_v2  ;;  %v3649_v44 = vmax.f32 %v3569_v6, 0.0 }
 0x4d1   :  { %v6734_v38 = vpop.eup %6733  ;;  %v3248_v43 = vadd.f32 1e-05, %v3168_v15  ;;  %v3249_v46 = vadd.f32 1e-05, %v3169_v21  ;;  %v3717_v45 = vpack.c.bf16 %v3648_v22, %v3647_v10  ;;  %v3400_v20 = vmul.f32 %v6732_v16, %v9360_v31 }
 0x4d2   :  { %v3078_v37 = vpop.xlane.xlu1 %3077  ;;  %v3080_v30 = vpop.xlane.xlu0 %3079  ;;  %v3570_v40 = vadd.f32 %v9606_v55, %v3484_v34  ;;  %v3571_v63 = vadd.f32 %v9606_v55, %v3485_v62  ;;  %v3401_v59 = vmul.f32 %v6734_v38, %v9352_v56 }
 0x4d3   :  { %6747 = vrsqrt.f32 %v3248_v43  ;;  %v3170_v42 = vmul.f32 0.0078125, %v3078_v37  ;;  %v3171_v4 = vmul.f32 0.0078125, %v3080_v30  ;;  %6241 = vmatprep.mubr.bf16.mxu0 %v3717_v45  ;;  %v3486_v14 = vmul.f32 %v9599_v49, %v3400_v20 }
 0x4d4   :  { %v6736_v51 = vpop.eup %6735  ;;  %6749 = vrsqrt.f32 %v3249_v46  ;;  %v3650_v11 = vmax.f32 %v3570_v40, 0.0  ;;  %v3487_v31 = vmul.f32 %v9599_v49, %v3401_v59  ;;  %v3651_v17 = vmax.f32 %v3571_v63, 0.0 }
 0x4d5   :  { %v6738_v0 = vpop.eup %6737  ;;  %v3250_v7 = vadd.f32 1e-05, %v3170_v42  ;;  %v3251_v1 = vadd.f32 1e-05, %v3171_v4  ;;  %v3572_v12 = vadd.f32 %v9606_v55, %v3486_v14  ;;  %v3402_v32 = vmul.f32 %v6736_v51, %v9369_v60 }
 0x4d6   :  { %v3082_v56 = vpop.xlane.xlu1 %3081  ;;  %v3084_v26 = vpop.xlane.xlu0 %3083  ;;  %v3718_v9 = vpack.c.bf16 %v3650_v11, %v3649_v44  ;;  %v3403_v24 = vmul.f32 %v6738_v0, %v9377_v5  ;;  %v3573_v10 = vadd.f32 %v9606_v55, %v3487_v31 }
 0x4d7   :  { %6751 = vrsqrt.f32 %v3250_v7  ;;  %v3172_v50 = vmul.f32 0.0078125, %v3082_v56  ;;  %v3173_v36 = vmul.f32 0.0078125, %v3084_v26  ;;  %v3652_v39 = vmax.f32 %v3572_v12, 0.0 }
 0x4d8   :  { %v6740_v27 = vpop.eup %6739  ;;  %6753 = vrsqrt.f32 %v3251_v1  ;;  %6242 = vmatmul.mubr.bf16.gmra.mxu0 %v3718_v9  ;;  %v3488_v33 = vmul.f32 %v9599_v49, %v3402_v32  ;;  %v3489_v2 = vmul.f32 %v9599_v49, %v3403_v24  ;;  %v3653_v37 = vmax.f32 %v3573_v10, 0.0 }
 0x4d9   :  { %v6742_v60 = vpop.eup %6741  ;;  %v3252_v15 = vadd.f32 1e-05, %v3172_v50  ;;  %v3253_v21 = vadd.f32 1e-05, %v3173_v36  ;;  %v3719_v22 = vpack.c.bf16 %v3652_v39, %v3651_v17  ;;  %v3404_v16 = vmul.f32 %v6740_v27, %v9394_v35 }
 0x4da   :  { %v3086_v5 = vpop.xlane.xlu1 %3085  ;;  %v3088_v34 = vpop.xlane.xlu0 %3087  ;;  %v3574_v6 = vadd.f32 %v9606_v55, %v3488_v33  ;;  %v3575_v62 = vadd.f32 %v9606_v55, %v3489_v2  ;;  %v3405_v38 = vmul.f32 %v6742_v60, %v9391_v61 }
 0x4db   :  { %6755 = vrsqrt.f32 %v3252_v15  ;;  %v3174_v43 = vmul.f32 0.0078125, %v3086_v5  ;;  %v3175_v46 = vmul.f32 0.0078125, %v3088_v34  ;;  %6245 = vmatprep.mubr.bf16.mxu0 %v3719_v22  ;;  %v3490_v45 = vmul.f32 %v9599_v49, %v3404_v16 }
 0x4dc   :  { %v6744_v20 = vpop.eup %6743  ;;  %6757 = vrsqrt.f32 %v3253_v21  ;;  %v3654_v30 = vmax.f32 %v3574_v6, 0.0  ;;  %v3491_v35 = vmul.f32 %v9599_v49, %v3405_v38  ;;  %v3655_v44 = vmax.f32 %v3575_v62, 0.0 }
 0x4dd   :  { %v6746_v40 = vpop.eup %6745  ;;  %v3254_v63 = vadd.f32 1e-05, %v3174_v43  ;;  %v3255_v59 = vadd.f32 1e-05, %v3175_v46  ;;  %v3576_v42 = vadd.f32 %v9606_v55, %v3490_v45  ;;  %v3406_v4 = vmul.f32 %v6744_v20, %v9400_v52 }
 0x4de   :  { %v3090_v61 = vpop.xlane.xlu1 %3089  ;;  %v3092_v14 = vpop.xlane.xlu0 %3091  ;;  %v3720_v51 = vpack.c.bf16 %v3654_v30, %v3653_v37  ;;  %v3407_v11 = vmul.f32 %v6746_v40, %v9404_v3  ;;  %v3577_v32 = vadd.f32 %v9606_v55, %v3491_v35 }
 0x4df   :  { %6759 = vrsqrt.f32 %v3254_v63  ;;  %v3176_v31 = vmul.f32 0.0078125, %v3090_v61  ;;  %v3177_v0 = vmul.f32 0.0078125, %v3092_v14  ;;  %v3656_v7 = vmax.f32 %v3576_v42, 0.0 }
 0x4e0   :  { %v6748_v1 = vpop.eup %6747  ;;  %6761 = vrsqrt.f32 %v3255_v59  ;;  %6246 = vmatmul.mubr.bf16.gmra.mxu0 %v3720_v51  ;;  %v3492_v12 = vmul.f32 %v9599_v49, %v3406_v4  ;;  %v3493_v56 = vmul.f32 %v9599_v49, %v3407_v11  ;;  %v3657_v15 = vmax.f32 %v3577_v32, 0.0 }
 0x4e1   :  { %v6750_v52 = vpop.eup %6749  ;;  %v3256_v26 = vadd.f32 1e-05, %v3176_v31  ;;  %v3257_v9 = vadd.f32 1e-05, %v3177_v0  ;;  %v3721_v17 = vpack.c.bf16 %v3656_v7, %v3655_v44  ;;  %v3408_v24 = vmul.f32 %v6748_v1, %v9418_v28 }
 0x4e2   :  { %v3094_v3 = vpop.xlane.xlu1 %3093  ;;  %v3096_v50 = vpop.xlane.xlu0 %3095  ;;  %v3578_v36 = vadd.f32 %v9606_v55, %v3492_v12  ;;  %v3579_v39 = vadd.f32 %v9606_v55, %v3493_v56  ;;  %v3409_v27 = vmul.f32 %v6750_v52, %v9412_v25 }
 0x4e3   :  { %6763 = vrsqrt.f32 %v3256_v26  ;;  %v3178_v33 = vmul.f32 0.0078125, %v3094_v3  ;;  %v3179_v10 = vmul.f32 0.0078125, %v3096_v50  ;;  %6249 = vmatprep.mubr.bf16.mxu0 %v3721_v17  ;;  %v3494_v2 = vmul.f32 %v9599_v49, %v3408_v24 }
 0x4e4   :  { %v6752_v60 = vpop.eup %6751  ;;  %6765 = vrsqrt.f32 %v3257_v9  ;;  %v3658_v21 = vmax.f32 %v3578_v36, 0.0  ;;  %v3495_v28 = vmul.f32 %v9599_v49, %v3409_v27  ;;  %v3659_v38 = vmax.f32 %v3579_v39, 0.0 }
 0x4e5   :  { %v6754_v22 = vpop.eup %6753  ;;  %v3258_v16 = vadd.f32 1e-05, %v3178_v33  ;;  %v3259_v5 = vadd.f32 1e-05, %v3179_v10  ;;  %v3580_v34 = vadd.f32 %v9606_v55, %v3494_v2  ;;  %v3410_v6 = vmul.f32 %v6752_v60, %v9427_v58 }
 0x4e6   :  { %v3098_v25 = vpop.xlane.xlu1 %3097  ;;  %v3722_v62 = vpack.c.bf16 %v3658_v21, %v3657_v15  ;;  %v3581_v43 = vadd.f32 %v9606_v55, %v3495_v28  ;;  %v3411_v46 = vmul.f32 %v6754_v22, %v9430_v57  ;;  %v9711_v15 = vld [vmem:[%s10808_s1] ss:$0 sm:$0xff] }
 0x4e7   :  { %6767 = vrsqrt.f32 %v3258_v16  ;;  %v3180_v45 = vmul.f32 0.0078125, %v3098_v25  ;;  %v3660_v20 = vmax.f32 %v3580_v34, 0.0  ;;  %v3496_v37 = vmul.f32 %v9599_v49, %v3410_v6 }
 0x4e8   :  { %v6756_v30 = vpop.eup %6755  ;;  %6769 = vrsqrt.f32 %v3259_v5  ;;  %6250 = vmatmul.mubr.bf16.gmra.mxu0 %v3722_v62  ;;  %v3497_v35 = vmul.f32 %v9599_v49, %v3411_v46  ;;  %v3661_v4 = vmax.f32 %v3581_v43, 0.0 }
 0x4e9   :  { %v6758_v40 = vpop.eup %6757  ;;  %v3260_v63 = vadd.f32 1e-05, %v3180_v45  ;;  %v3723_v58 = vpack.c.bf16 %v3660_v20, %v3659_v38  ;;  %v3582_v59 = vadd.f32 %v9606_v55, %v3496_v37  ;;  %v3412_v42 = vmul.f32 %v6756_v30, %v9440_v48 }
 0x4ea   :  { %v3413_v57 = vmul.f32 %v6758_v40, %v9436_v29  ;;  %v3583_v51 = vadd.f32 %v9606_v55, %v3497_v35 }
 0x4eb   :  { %6771 = vrsqrt.f32 %v3260_v63  ;;  %6253 = vmatprep.mubr.bf16.mxu0 %v3723_v58  ;;  %v3662_v61 = vmax.f32 %v3582_v59, 0.0  ;;  %v3498_v14 = vmul.f32 %v9599_v49, %v3412_v42 }
 0x4ec   :  { %v6760_v44 = vpop.eup %6759  ;;  %v3499_v11 = vmul.f32 %v9599_v49, %v3413_v57  ;;  %v3663_v12 = vmax.f32 %v3583_v51, 0.0 }
 0x4ed   :  { %v6762_v31 = vpop.eup %6761  ;;  %v3724_v0 = vpack.c.bf16 %v3662_v61, %v3661_v4  ;;  %v3584_v7 = vadd.f32 %v9606_v55, %v3498_v14  ;;  %v3414_v1 = vmul.f32 %v6760_v44, %v9448_v8 }
 0x4ee   :  { %v3415_v48 = vmul.f32 %v6762_v31, %v9454_v47  ;;  %v3585_v56 = vadd.f32 %v9606_v55, %v3499_v11 }
 0x4ef   :  { %v3664_v29 = vmax.f32 %v3584_v7, 0.0  ;;  %v3500_v32 = vmul.f32 %v9599_v49, %v3414_v1 }
 0x4f0   :  { %v6764_v52 = vpop.eup %6763  ;;  %6254 = vmatmul.mubr.bf16.gmra.mxu0 %v3724_v0  ;;  %v3501_v26 = vmul.f32 %v9599_v49, %v3415_v48  ;;  %v3665_v47 = vmax.f32 %v3585_v56, 0.0 }
 0x4f1   :  { %v6766_v9 = vpop.eup %6765  ;;  %v3725_v17 = vpack.c.bf16 %v3664_v29, %v3663_v12  ;;  %v3586_v24 = vadd.f32 %v9606_v55, %v3500_v32  ;;  %v3416_v3 = vmul.f32 %v6764_v52, %v9466_v13 }
 0x4f2   :  { %v6191_v50 = vpop.f32.mrf.mxu0  ;;  %v3417_v8 = vmul.f32 %v6766_v9, %v9462_v53  ;;  %v3587_v27 = vadd.f32 %v9606_v55, %v3501_v26 }
 0x4f3   :  { %6257 = vmatprep.mubr.bf16.mxu0 %v3725_v17  ;;  %v3666_v36 = vmax.f32 %v3586_v24, 0.0  ;;  %v3502_v39 = vmul.f32 %v9599_v49, %v3416_v3  ;;  %v3829_v46 = vadd.f32 %v6191_v50, %v9711_v15 }
 0x4f4   :  { %v6768_v33 = vpop.eup %6767  ;;  %v3820_v10 = vpop.f32.mrf.mxu0  ;;  %v3503_v2 = vmul.f32 %v9599_v49, %v3417_v8  ;;  %v3667_v5 = vmax.f32 %v3587_v27, 0.0 }
 0x4f5   :  { %v6770_v60 = vpop.eup %6769  ;;  %v3726_v13 = vpack.c.bf16 %v3666_v36, %v3665_v47  ;;  %v3588_v53 = vadd.f32 %v9606_v55, %v3502_v39  ;;  %v3821_v21 = vadd.f32 %v9711_v15, %v3820_v10  ;;  %v3418_v22 = vmul.f32 %v6768_v33, %v9471_v18  ;;  %v6435_v36 = vld [vmem:[%s10809_s28 + $0x8] sm:$0xff]  }
 0x4f6   :  { %v6192_v28 = vpop.f32.mrf.mxu0  ;;  %v3419_v16 = vmul.f32 %v6770_v60, %v9478_v23  ;;  %v3589_v38 = vadd.f32 %v9606_v55, %v3503_v2  ;;  %v4143_v4 = vsel %vm4139_vm3, %v3829_v46, 0.0  ;;  %v6871_v47 = vmov 0.0  }
 0x4f7   :  { %v3668_v34 = vmax.f32 %v3588_v53, 0.0  ;;  %v3504_v62 = vmul.f32 %v9599_v49, %v3418_v22  ;;  %v4140_v23 = vsel %vm4139_vm3, %v3821_v21, 0.0  ;;  %v3832_v30 = vadd.f32 %v6192_v28, %v9711_v15  ;;  %6269 = vmatprep.subr.bf16.mxu1 %v6871_v47  ;;  %6385 = vmatprep.subr.bf16.mxu0 %v6871_v47 }
 0x4f8   :  { %v6772_v6 = vpop.eup %6771  ;;  %v3823_v25 = vpop.f32.mrf.mxu0  ;;  %6258 = vmatmul.mubr.bf16.gmra.mxu0 %v3726_v13  ;;  %v3505_v43 = vmul.f32 %v9599_v49, %v3419_v16  ;;  %v3669_v59 = vmax.f32 %v3589_v38, 0.0  ;;  %6270 = vmatpush3.bf16.msra.mxu1 %v6435_v36 }
 0x4f9   :  { %v3824_v45 = vadd.f32 %v9711_v15, %v3823_v25  ;;  %v3727_v20 = vpack.c.bf16 %v3668_v34, %v3667_v5  ;;  %v3420_v18 = vmul.f32 %v6772_v6, %v9485_v54  ;;  %v3590_v37 = vadd.f32 %v9606_v55, %v3504_v62  ;;  %6271 = vmatprep.subr.bf16.mxu1 %v6871_v47 }
 0x4fa   :  { %v3591_v63 = vadd.f32 %v9606_v55, %v3505_v43  ;;  %v4145_v51 = vsel %vm4139_vm3, %v3832_v30, 0.0  ;;  %6273 = vmatprep.mubr.msk.bf16.mxu1 %vm6872_vm6, %v6871_v47 }
 0x4fb   :  { %v4141_v35 = vsel %vm4139_vm3, %v3824_v45, 0.0  ;;  %6261 = vmatprep.mubr.bf16.mxu0 %v3727_v20  ;;  %v3506_v40 = vmul.f32 %v9599_v49, %v3420_v18  ;;  %v3670_v42 = vmax.f32 %v3590_v37, 0.0 }
 0x4fc   :  { %v4142_v58 = vadd.f32 %v4141_v35, %v4140_v23  ;;  %v3671_v44 = vmax.f32 %v3591_v63, 0.0 }
 0x4fd   :  { %v3592_v54 = vadd.f32 %v9606_v55, %v3506_v40  ;;  %v3728_v14 = vpack.c.bf16 %v3670_v42, %v3669_v59 }
 0x4fe   :  { %v4144_v57 = vadd.f32 %v4143_v4, %v4142_v58  ;;  %v6195_v61 = vpop.f32.mrf.mxu0 }
 0x4ff   :  { %v3672_v11 = vmax.f32 %v3592_v54, 0.0  ;;  %v3845_v56 = vadd.f32 %v6195_v61, %v9711_v15 }
 0x500   :  { %v3836_v31 = vpop.f32.mrf.mxu0  ;;  %v4146_v0 = vadd.f32 %v4145_v51, %v4144_v57  ;;  %6262 = vmatmul.mubr.bf16.gmra.mxu0 %v3728_v14 }
 0x501   :  { %v3837_v7 = vadd.f32 %v9711_v15, %v3836_v31  ;;  %v3729_v1 = vpack.c.bf16 %v3672_v11, %v3671_v44  ;;  %v4151_v24 = vsel %vm4139_vm3, %v3845_v56, 0.0 }
 0x502   :  { %v6196_v48 = vpop.f32.mrf.mxu0 }
 0x503   :  { %v4147_v12 = vsel %vm4139_vm3, %v3837_v7, 0.0  ;;  %6265 = vmatprep.mubr.bf16.mxu0 %v3729_v1  ;;  %v3848_v26 = vadd.f32 %v6196_v48, %v9711_v15 }
 0x504   :  { %v4148_v29 = vadd.f32 %v4147_v12, %v4146_v0  ;;  %v3839_v32 = vpop.f32.mrf.mxu0 }
 0x505   :  { %v3840_v52 = vadd.f32 %v9711_v15, %v3839_v32  ;;  %v4153_v50 = vsel %vm4139_vm3, %v3848_v26, 0.0 }
 0x507   :  { %v4149_v9 = vsel %vm4139_vm3, %v3840_v52, 0.0 }
 0x508   :  { %v4150_v17 = vadd.f32 %v4149_v9, %v4148_v29 }
 0x50a   :  { %v4152_v3 = vadd.f32 %v4151_v24, %v4150_v17  ;;  %v6436_v17 = vld [vmem:[%s10809_s28] sm:$0xff]  }
 0x50b   :  { %6272 = vmatpush3.bf16.msra.mxu1 %v6436_v17 }
 0x50c   :  { %v9740_v8 = vadd.f32 %v4153_v50, %v4152_v3  ;;  %6277 = vmatprep.subr.bf16.mxu1 %v6871_v47 }
 0x526   :  { %v3100_v39 = vpop.xlane.xlu0 %3099 }
 0x527   :  { %v3181_v27 = vmul.f32 0.0078125, %v3100_v39 }
 0x529   :  { %v3261_v33 = vadd.f32 1e-05, %v3181_v27 }
 0x52a   :  { %v3102_v10 = vpop.xlane.xlu1 %3101 }
 0x52b   :  { %6773 = vrsqrt.f32 %v3261_v33  ;;  %v3182_v2 = vmul.f32 0.0078125, %v3102_v10 }
 0x52d   :  { %v3262_v60 = vadd.f32 1e-05, %v3182_v2 }
 0x52f   :  { %6775 = vrsqrt.f32 %v3262_v60 }
 0x538   :  { %v6774_v13 = vpop.eup %6773 }
 0x539   :  { %v3421_v53 = vmul.f32 %v6774_v13, %v9556_v19 }
 0x53b   :  { %v3507_v21 = vmul.f32 %v9599_v49, %v3421_v53 }
 0x53c   :  { %v6776_v28 = vpop.eup %6775  ;;  %v6199_v22 = vpop.f32.mrf.mxu0 }
 0x53d   :  { %v3422_v16 = vmul.f32 %v6776_v28, %v9567_v41  ;;  %v3593_v6 = vadd.f32 %v9606_v55, %v3507_v21  ;;  %v3861_v46 = vadd.f32 %v6199_v22, %v9711_v15 }
 0x53e   :  { %v3852_v5 = vpop.f32.mrf.mxu0 }
 0x53f   :  { %v3508_v34 = vmul.f32 %v9599_v49, %v3422_v16  ;;  %v3853_v62 = vadd.f32 %v9711_v15, %v3852_v5  ;;  %v3673_v45 = vmax.f32 %v3593_v6, 0.0  ;;  %v4187_v40 = vsel %vm4139_vm3, %v3861_v46, 0.0 }
 0x540   :  { %v6200_v25 = vpop.f32.mrf.mxu0 }
 0x541   :  { %v3594_v38 = vadd.f32 %v9606_v55, %v3508_v34  ;;  %v4184_v41 = vsel %vm4139_vm3, %v3853_v62, 0.0  ;;  %v3864_v23 = vadd.f32 %v6200_v25, %v9711_v15 }
 0x542   :  { %v3855_v43 = vpop.f32.mrf.mxu0 }
 0x543   :  { %v3856_v19 = vadd.f32 %v9711_v15, %v3855_v43  ;;  %v3674_v20 = vmax.f32 %v3594_v38, 0.0  ;;  %v4189_v59 = vsel %vm4139_vm3, %v3864_v23, 0.0 }
 0x544   :  { %v6203_v18 = vpop.f32.mrf.mxu0 }
 0x545   :  { %v4185_v49 = vsel %vm4139_vm3, %v3856_v19, 0.0  ;;  %v3730_v37 = vpack.c.bf16 %v3674_v20, %v3673_v45  ;;  %v3877_v54 = vadd.f32 %v6203_v18, %v9711_v15 }
 0x546   :  { %v4186_v30 = vadd.f32 %v4185_v49, %v4184_v41  ;;  %v3868_v35 = vpop.f32.mrf.mxu0 }
 0x547   :  { %v3869_v55 = vadd.f32 %v9711_v15, %v3868_v35  ;;  %6266 = vmatmul.mubr.bf16.gmra.mxu0 %v3730_v37  ;;  %v4195_v7 = vsel %vm4139_vm3, %v3877_v54, 0.0 }
 0x548   :  { %v4188_v63 = vadd.f32 %v4187_v40, %v4186_v30  ;;  %v6204_v58 = vpop.f32.mrf.mxu0  ;;  %6401 = vmatprep.mubr.msk.bf16.mxu0 %vm6872_vm6, %v6871_v47 }
 0x549   :  { %v4191_v57 = vsel %vm4139_vm3, %v3869_v55, 0.0  ;;  %v3880_v44 = vadd.f32 %v6204_v58, %v9711_v15 }
 0x54a   :  { %v4190_v42 = vadd.f32 %v4189_v59, %v4188_v63  ;;  %v3871_v4 = vpop.f32.mrf.mxu0 }
 0x54b   :  { %v3872_v61 = vadd.f32 %v9711_v15, %v3871_v4  ;;  %v4197_v12 = vsel %vm4139_vm3, %v3880_v44, 0.0 }
 0x54c   :  { %v4192_v14 = vadd.f32 %v4191_v57, %v4190_v42  ;;  %v6207_v51 = vpop.f32.mrf.mxu0 }
 0x54d   :  { %v4193_v11 = vsel %vm4139_vm3, %v3872_v61, 0.0  ;;  %v3893_v52 = vadd.f32 %v6207_v51, %v9711_v15 }
 0x54e   :  { %v4194_v31 = vadd.f32 %v4193_v11, %v4192_v14  ;;  %v3884_v0 = vpop.f32.mrf.mxu0 }
 0x54f   :  { %v3885_v29 = vadd.f32 %v9711_v15, %v3884_v0  ;;  %v4231_v27 = vsel %vm4139_vm3, %v3893_v52, 0.0 }
 0x550   :  { %v4196_v1 = vadd.f32 %v4195_v7, %v4194_v31  ;;  %v6208_v48 = vpop.f32.mrf.mxu0 }
 0x551   :  { %v4228_v24 = vsel %vm4139_vm3, %v3885_v29, 0.0  ;;  %v3896_v3 = vadd.f32 %v6208_v48, %v9711_v15 }
 0x552   :  { %v9771_v32 = vadd.f32 %v4197_v12, %v4196_v1  ;;  %v3887_v56 = vpop.f32.mrf.mxu0 }
 0x553   :  { %v3888_v26 = vadd.f32 %v9711_v15, %v3887_v56  ;;  %v4233_v60 = vsel %vm4139_vm3, %v3896_v3, 0.0 }
 0x554   :  { %v6211_v9 = vpop.f32.mrf.mxu0 }
 0x555   :  { %v4229_v50 = vsel %vm4139_vm3, %v3888_v26, 0.0  ;;  %v3909_v21 = vadd.f32 %v6211_v9, %v9711_v15 }
 0x556   :  { %v4230_v36 = vadd.f32 %v4229_v50, %v4228_v24  ;;  %v3900_v39 = vpop.f32.mrf.mxu0 }
 0x557   :  { %v3901_v33 = vadd.f32 %v9711_v15, %v3900_v39  ;;  %v4239_v38 = vsel %vm4139_vm3, %v3909_v21, 0.0 }
 0x558   :  { %v4232_v10 = vadd.f32 %v4231_v27, %v4230_v36  ;;  %v6212_v2 = vpop.f32.mrf.mxu0 }
 0x559   :  { %v4235_v28 = vsel %vm4139_vm3, %v3901_v33, 0.0  ;;  %v3912_v34 = vadd.f32 %v6212_v2, %v9711_v15 }
 0x55a   :  { %v4234_v13 = vadd.f32 %v4233_v60, %v4232_v10  ;;  %v3903_v53 = vpop.f32.mrf.mxu0 }
 0x55b   :  { %v3904_v22 = vadd.f32 %v9711_v15, %v3903_v53  ;;  %v4241_v19 = vsel %vm4139_vm3, %v3912_v34, 0.0 }
 0x55c   :  { %v4236_v16 = vadd.f32 %v4235_v28, %v4234_v13  ;;  %v6215_v5 = vpop.f32.mrf.mxu0 }
 0x55d   :  { %v4237_v6 = vsel %vm4139_vm3, %v3904_v22, 0.0  ;;  %v3925_v41 = vadd.f32 %v6215_v5, %v9711_v15 }
 0x55e   :  { %v4238_v25 = vadd.f32 %v4237_v6, %v4236_v16  ;;  %v3916_v62 = vpop.f32.mrf.mxu0 }
 0x55f   :  { %v3917_v45 = vadd.f32 %v9711_v15, %v3916_v62  ;;  %v4275_v55 = vsel %vm4139_vm3, %v3925_v41, 0.0 }
 0x560   :  { %v4240_v43 = vadd.f32 %v4239_v38, %v4238_v25  ;;  %v6216_v46 = vpop.f32.mrf.mxu0 }
 0x561   :  { %v4272_v49 = vsel %vm4139_vm3, %v3917_v45, 0.0  ;;  %v3928_v37 = vadd.f32 %v6216_v46, %v9711_v15 }
 0x562   :  { %v9793_v20 = vadd.f32 %v4241_v19, %v4240_v43  ;;  %v3919_v18 = vpop.f32.mrf.mxu0 }
 0x563   :  { %v3920_v23 = vadd.f32 %v9711_v15, %v3919_v18  ;;  %v4277_v42 = vsel %vm4139_vm3, %v3928_v37, 0.0 }
 0x565   :  { %v4273_v30 = vsel %vm4139_vm3, %v3920_v23, 0.0  ;;  %v6219_v35 = vpop.f32.mrf.mxu0 }
 0x566   :  { %v4274_v40 = vadd.f32 %v4273_v30, %v4272_v49  ;;  %v3941_v14 = vadd.f32 %v6219_v35, %v9711_v15 }
 0x567   :  { %v3932_v63 = vpop.f32.mrf.mxu0 }
 0x568   :  { %v4276_v58 = vadd.f32 %v4275_v55, %v4274_v40  ;;  %v3933_v59 = vadd.f32 %v9711_v15, %v3932_v63  ;;  %v4283_v48 = vsel %vm4139_vm3, %v3941_v14, 0.0  ;;  %v4199_v14 = vrot.slane %v9771_v32, 4 }
 0x569   :  { %v6220_v4 = vpop.f32.mrf.mxu0 }
 0x56a   :  { %v4278_v54 = vadd.f32 %v4277_v42, %v4276_v58  ;;  %v4279_v57 = vsel %vm4139_vm3, %v3933_v59, 0.0  ;;  %v3944_v31 = vadd.f32 %v6220_v4, %v9711_v15 }
 0x56b   :  { %v3935_v61 = vpop.f32.mrf.mxu0 }
 0x56c   :  { %v4280_v51 = vadd.f32 %v4279_v57, %v4278_v54  ;;  %v3936_v44 = vadd.f32 %v9711_v15, %v3935_v61  ;;  %v4285_v56 = vsel %vm4139_vm3, %v3944_v31, 0.0  ;;  %v4155_v54 = vrot.slane %v9740_v8, 4 }
 0x56d   :  { %v6223_v11 = vpop.f32.mrf.mxu0 }
 0x56e   :  { %v4281_v0 = vsel %vm4139_vm3, %v3936_v44, 0.0  ;;  %v3957_v17 = vadd.f32 %v6223_v11, %v9711_v15 }
 0x56f   :  { %v4282_v7 = vadd.f32 %v4281_v0, %v4280_v51  ;;  %v3948_v1 = vpop.f32.mrf.mxu0 }
 0x570   :  { %v3949_v52 = vadd.f32 %v9711_v15, %v3948_v1  ;;  %v4319_v10 = vsel %vm4139_vm3, %v3957_v17, 0.0  ;;  %v4156_v1 = vadd.f32 %v4155_v54, %v9740_v8 }
 0x571   :  { %v4284_v12 = vadd.f32 %v4283_v48, %v4282_v7  ;;  %v6224_v29 = vpop.f32.mrf.mxu0 }
 0x572   :  { %v4316_v50 = vsel %vm4139_vm3, %v3949_v52, 0.0  ;;  %v3960_v36 = vadd.f32 %v6224_v29, %v9711_v15  ;;  %v4200_v29 = vadd.f32 %v4199_v14, %v9771_v32 }
 0x573   :  { %v9811_v26 = vadd.f32 %v4285_v56, %v4284_v12  ;;  %v3951_v9 = vpop.f32.mrf.mxu0 }
 0x574   :  { %v3952_v24 = vadd.f32 %v9711_v15, %v3951_v9  ;;  %v4321_v53 = vsel %vm4139_vm3, %v3960_v36, 0.0 }
 0x575   :  { %v6227_v3 = vpop.f32.mrf.mxu0 }
 0x576   :  { %v4317_v39 = vsel %vm4139_vm3, %v3952_v24, 0.0  ;;  %v3973_v22 = vadd.f32 %v6227_v3, %v9711_v15  ;;  %v4157_v3 = vrot.slane %v4156_v1, 2 }
 0x577   :  { %v4318_v27 = vadd.f32 %v4317_v39, %v4316_v50  ;;  %v3964_v33 = vpop.f32.mrf.mxu0  ;;  %v4201_v39 = vrot.slane %v4200_v29, 2 }
 0x578   :  { %v3965_v2 = vadd.f32 %v9711_v15, %v3964_v33  ;;  %v4327_v38 = vsel %vm4139_vm3, %v3973_v22, 0.0 }
 0x579   :  { %v4320_v60 = vadd.f32 %v4319_v10, %v4318_v27  ;;  %v6228_v13 = vpop.f32.mrf.mxu0 }
 0x57a   :  { %v4323_v16 = vsel %vm4139_vm3, %v3965_v2, 0.0  ;;  %v3976_v6 = vadd.f32 %v6228_v13, %v9711_v15 }
 0x57b   :  { %v4322_v21 = vadd.f32 %v4321_v53, %v4320_v60  ;;  %v3967_v28 = vpop.f32.mrf.mxu0  ;;  %v4158_v60 = vadd.f32 %v4157_v3, %v4156_v1 }
 0x57c   :  { %v3968_v5 = vadd.f32 %v9711_v15, %v3967_v28  ;;  %v4329_v19 = vsel %vm4139_vm3, %v3976_v6, 0.0 }
 0x57d   :  { %v4324_v34 = vadd.f32 %v4323_v16, %v4322_v21  ;;  %v4202_v21 = vadd.f32 %v4201_v39, %v4200_v29 }
 0x57e   :  { %v4325_v25 = vsel %vm4139_vm3, %v3968_v5, 0.0 }
 0x57f   :  { %v4326_v62 = vadd.f32 %v4325_v25, %v4324_v34 }
 0x580   :  { %v6231_v43 = vpop.f32.mrf.mxu0 }
 0x581   :  { %v4328_v46 = vadd.f32 %v4327_v38, %v4326_v62  ;;  %v3989_v37 = vadd.f32 %v6231_v43, %v9711_v15  ;;  %v4159_v38 = vrot.slane %v4158_v60, 1 }
 0x582   :  { %v3980_v45 = vpop.f32.mrf.mxu0 }
 0x583   :  { %v9828_v18 = vadd.f32 %v4329_v19, %v4328_v46  ;;  %v3981_v23 = vadd.f32 %v9711_v15, %v3980_v45  ;;  %v4165_v42 = vsel %vm4139_vm3, %v3989_v37, 0.0  ;;  %v4203_v45 = vrot.slane %v4202_v21, 1 }
 0x584   :  { %v6232_v41 = vpop.f32.mrf.mxu0 }
 0x585   :  { %v4162_v40 = vsel %vm4139_vm3, %v3981_v23, 0.0  ;;  %v3992_v55 = vadd.f32 %v6232_v41, %v9711_v15  ;;  %v4243_v41 = vrot.slane %v9793_v20, 4 }
 0x586   :  { %v3983_v49 = vpop.f32.mrf.mxu0 }
 0x587   :  { %v3984_v30 = vadd.f32 %v9711_v15, %v3983_v49  ;;  %v4167_v51 = vsel %vm4139_vm3, %v3992_v55, 0.0  ;;  %v4244_v54 = vadd.f32 %v4243_v41, %v9793_v20 }
 0x588   :  { %v6235_v35 = vpop.f32.mrf.mxu0 }
 0x589   :  { %v4163_v63 = vsel %vm4139_vm3, %v3984_v30, 0.0  ;;  %v4005_v31 = vadd.f32 %v6235_v35, %v9711_v15 }
 0x58a   :  { %v4164_v58 = vadd.f32 %v4163_v63, %v4162_v40  ;;  %v3996_v59 = vpop.f32.mrf.mxu0  ;;  %v4160_v63 = vadd.f32 %v4159_v38, %v4158_v60 }
 0x58b   :  { %v3997_v4 = vadd.f32 %v9711_v15, %v3996_v59  ;;  %v4173_v24 = vsel %vm4139_vm3, %v4005_v31, 0.0 }
 0x58c   :  { %v4166_v57 = vadd.f32 %v4165_v42, %v4164_v58  ;;  %v6236_v61 = vpop.f32.mrf.mxu0  ;;  %v4161_v31 = vmul.f32 0.015625, %v4160_v63 }
 0x58d   :  { %v4169_v0 = vsel %vm4139_vm3, %v3997_v4, 0.0  ;;  %v4008_v56 = vadd.f32 %v6236_v61, %v9711_v15  ;;  %v4204_v4 = vadd.f32 %v4203_v45, %v4202_v21 }
 0x58e   :  { %v4168_v44 = vadd.f32 %v4167_v51, %v4166_v57  ;;  %v3999_v11 = vpop.f32.mrf.mxu0 }
 0x58f   :  { %v4000_v7 = vadd.f32 %v9711_v15, %v3999_v11  ;;  %v4175_v27 = vsel %vm4139_vm3, %v4008_v56, 0.0  ;;  %v4205_v20 = vmul.f32 0.015625, %v4204_v4 }
 0x590   :  { %v4170_v48 = vadd.f32 %v4169_v0, %v4168_v44  ;;  %v6239_v12 = vpop.f32.mrf.mxu0 }
 0x591   :  { %v4171_v52 = vsel %vm4139_vm3, %v4000_v7, 0.0  ;;  %v4021_v32 = vadd.f32 %v6239_v12, %v9711_v15 }
 0x592   :  { %v4172_v9 = vadd.f32 %v4171_v52, %v4170_v48  ;;  %v4012_v17 = vpop.f32.mrf.mxu0  ;;  %v4245_v48 = vrot.slane %v4244_v54, 2 }
 0x593   :  { %v4013_v8 = vadd.f32 %v9711_v15, %v4012_v17  ;;  %v4209_v25 = vsel %vm4139_vm3, %v4021_v32, 0.0 }
 0x594   :  { %v4174_v50 = vadd.f32 %v4173_v24, %v4172_v9  ;;  %v6240_v36 = vpop.f32.mrf.mxu0  ;;  %v4246_v39 = vadd.f32 %v4245_v48, %v4244_v54 }
 0x595   :  { %v4206_v28 = vsel %vm4139_vm3, %v4013_v8, 0.0  ;;  %v4024_v22 = vadd.f32 %v6240_v36, %v9711_v15 }
 0x596   :  { %v4176_v33 = vadd.f32 %v4175_v27, %v4174_v50  ;;  %v4015_v10 = vpop.f32.mrf.mxu0 }
 0x597   :  { %v4016_v2 = vadd.f32 %v9711_v15, %v4015_v10  ;;  %v4211_v23 = vsel %vm4139_vm3, %v4024_v22, 0.0  ;;  %v4247_v22 = vrot.slane %v4246_v39, 1 }
 0x598   :  { %v4177_v13 = vrot.slane %v4176_v33, 4  ;;  %v6243_v53 = vpop.f32.mrf.mxu0 }
 0x599   :  { %v4207_v16 = vsel %vm4139_vm3, %v4016_v2, 0.0  ;;  %v4037_v35 = vadd.f32 %v6243_v53, %v9711_v15  ;;  %v4248_v45 = vadd.f32 %v4247_v22, %v4246_v39 }
 0x59a   :  { %v4178_v5 = vadd.f32 %v4177_v13, %v4176_v33  ;;  %v4208_v34 = vadd.f32 %v4207_v16, %v4206_v28  ;;  %v4028_v6 = vpop.f32.mrf.mxu0  ;;  %v4287_v16 = vrot.slane %v9811_v26, 4 }
 0x59b   :  { %v4029_v62 = vadd.f32 %v9711_v15, %v4028_v6  ;;  %v4217_v11 = vsel %vm4139_vm3, %v4037_v35, 0.0  ;;  %v4249_v63 = vmul.f32 0.015625, %v4248_v45 }
 0x59c   :  { %v4179_v43 = vrot.slane %v4178_v5, 2  ;;  %v4210_v46 = vadd.f32 %v4209_v25, %v4208_v34  ;;  %v6244_v19 = vpop.f32.mrf.mxu0  ;;  %v4288_v41 = vadd.f32 %v4287_v16, %v9811_v26 }
 0x59d   :  { %v4213_v40 = vsel %vm4139_vm3, %v4029_v62, 0.0  ;;  %v4040_v57 = vadd.f32 %v6244_v19, %v9711_v15 }
 0x59e   :  { %v4180_v49 = vadd.f32 %v4179_v43, %v4178_v5  ;;  %v4212_v37 = vadd.f32 %v4211_v23, %v4210_v46  ;;  %v4031_v30 = vpop.f32.mrf.mxu0 }
 0x59f   :  { %v4032_v55 = vadd.f32 %v9711_v15, %v4031_v30  ;;  %v4219_v12 = vsel %vm4139_vm3, %v4040_v57, 0.0 }
 0x5a0   :  { %v4181_v58 = vrot.slane %v4180_v49, 1  ;;  %v4214_v59 = vadd.f32 %v4213_v40, %v4212_v37  ;;  %v6247_v42 = vpop.f32.mrf.mxu0 }
 0x5a1   :  { %v4215_v61 = vsel %vm4139_vm3, %v4032_v55, 0.0  ;;  %v4053_v24 = vadd.f32 %v6247_v42, %v9711_v15 }
 0x5a2   :  { %v4182_v14 = vadd.f32 %v4181_v58, %v4180_v49  ;;  %v4216_v51 = vadd.f32 %v4215_v61, %v4214_v59  ;;  %v4044_v44 = vpop.f32.mrf.mxu0  ;;  %v4289_v58 = vrot.slane %v4288_v41, 2 }
 0x5a3   :  { %v4045_v29 = vadd.f32 %v9711_v15, %v4044_v44  ;;  %v4253_v60 = vsel %vm4139_vm3, %v4053_v24, 0.0 }
 0x5a4   :  { %v4183_v0 = vmul.f32 0.015625, %v4182_v14  ;;  %v4218_v7 = vadd.f32 %v4217_v11, %v4216_v51  ;;  %v6248_v1 = vpop.f32.mrf.mxu0  ;;  %v4290_v57 = vadd.f32 %v4289_v58, %v4288_v41 }
 0x5a5   :  { %v4250_v27 = vsel %vm4139_vm3, %v4045_v29, 0.0  ;;  %v4056_v8 = vadd.f32 %v6248_v1, %v9711_v15 }
 0x5a6   :  { %v4361_v56 = vsel %vm4360_vm4, %v4161_v31, %v4183_v0  ;;  %v4220_v52 = vadd.f32 %v4219_v12, %v4218_v7  ;;  %v4047_v9 = vpop.f32.mrf.mxu0  ;;  %v4291_v51 = vrot.slane %v4290_v57, 1 }
 0x5a7   :  { %v4363_v17 = vsel %vm4362_vm5, %v4361_v56, %v4205_v20  ;;  %v4048_v3 = vadd.f32 %v9711_v15, %v4047_v9  ;;  %v4255_v5 = vsel %vm4139_vm3, %v4056_v8, 0.0 }
 0x5a8   :  { %v4221_v50 = vrot.slane %v4220_v52, 4  ;;  %v6251_v36 = vpop.f32.mrf.mxu0  ;;  %v4292_v31 = vadd.f32 %v4291_v51, %v4290_v57 }
 0x5a9   :  { %v4251_v33 = vsel %vm4139_vm3, %v4048_v3, 0.0  ;;  %v4069_v62 = vadd.f32 %v6251_v36, %v9711_v15 }
 0x5aa   :  { %v4222_v10 = vadd.f32 %v4221_v50, %v4220_v52  ;;  %v4252_v32 = vadd.f32 %v4251_v33, %v4250_v27  ;;  %v4060_v2 = vpop.f32.mrf.mxu0  ;;  %v4293_v1 = vmul.f32 0.015625, %v4292_v31 }
 0x5ab   :  { %v4061_v13 = vadd.f32 %v9711_v15, %v4060_v2  ;;  %v4261_v35 = vsel %vm4139_vm3, %v4069_v62, 0.0 }
 0x5ac   :  { %v4223_v53 = vrot.slane %v4222_v10, 2  ;;  %v4254_v21 = vadd.f32 %v4253_v60, %v4252_v32  ;;  %v6252_v28 = vpop.f32.mrf.mxu0 }
 0x5ad   :  { %v4257_v38 = vsel %vm4139_vm3, %v4061_v13, 0.0  ;;  %v4072_v23 = vadd.f32 %v6252_v28, %v9711_v15 }
 0x5ae   :  { %v4224_v34 = vadd.f32 %v4223_v53, %v4222_v10  ;;  %v4256_v6 = vadd.f32 %v4255_v5, %v4254_v21  ;;  %v4063_v25 = vpop.f32.mrf.mxu0 }
 0x5af   :  { %v4064_v43 = vadd.f32 %v9711_v15, %v4063_v25  ;;  %v4263_v59 = vsel %vm4139_vm3, %v4072_v23, 0.0 }
 0x5b0   :  { %v4225_v46 = vrot.slane %v4224_v34, 1  ;;  %v4258_v19 = vadd.f32 %v4257_v38, %v4256_v6  ;;  %v6255_v12 = vpop.f32.mrf.mxu0 }
 0x5b1   :  { %v4259_v49 = vsel %vm4139_vm3, %v4064_v43, 0.0  ;;  %v4085_v27 = vadd.f32 %v6255_v12, %v9711_v15 }
 0x5b2   :  { %v4226_v37 = vadd.f32 %v4225_v46, %v4224_v34  ;;  %v4260_v30 = vadd.f32 %v4259_v49, %v4258_v19  ;;  %v4076_v29 = vpop.f32.mrf.mxu0 }
 0x5b3   :  { %v4077_v50 = vadd.f32 %v9711_v15, %v4076_v29  ;;  %v4297_v32 = vsel %vm4139_vm3, %v4085_v27, 0.0 }
 0x5b4   :  { %v4227_v40 = vmul.f32 0.015625, %v4226_v37  ;;  %v4262_v55 = vadd.f32 %v4261_v35, %v4260_v30  ;;  %v6256_v56 = vpop.f32.mrf.mxu0 }
 0x5b5   :  { %v4294_v8 = vsel %vm4139_vm3, %v4077_v50, 0.0  ;;  %v4088_v2 = vadd.f32 %v6256_v56, %v9711_v15 }
 0x5b6   :  { %v4365_v42 = vsel %vm4364_vm7, %v4363_v17, %v4227_v40  ;;  %v4264_v4 = vadd.f32 %v4263_v59, %v4262_v55  ;;  %v4079_v52 = vpop.f32.mrf.mxu0 }
 0x5b7   :  { %v4366_v54 = vsel %vm335_vm0, %v4365_v42, %v4249_v63  ;;  %v4080_v24 = vadd.f32 %v9711_v15, %v4079_v52  ;;  %v4299_v53 = vsel %vm4139_vm3, %v4088_v2, 0.0 }
 0x5b8   :  { %v4265_v26 = vrot.slane %v4264_v4, 4  ;;  %v6259_v9 = vpop.f32.mrf.mxu0 }
 0x5b9   :  { %v4295_v36 = vsel %vm4139_vm3, %v4080_v24, 0.0  ;;  %v4101_v62 = vadd.f32 %v6259_v9, %v9711_v15 }
 0x5ba   :  { %v4266_v61 = vadd.f32 %v4265_v26, %v4264_v4  ;;  %v4092_v17 = vpop.f32.mrf.mxu0  ;;  %v4296_v33 = vadd.f32 %v4295_v36, %v4294_v8  ;;  %v4331_v26 = vrot.slane %v9828_v18, 4 }
 0x5bb   :  { %v4093_v21 = vadd.f32 %v9711_v15, %v4092_v17  ;;  %v4305_v46 = vsel %vm4139_vm3, %v4101_v62, 0.0  ;;  %v5757_v62 = vld [vmem:[%s10286_s13] ss:$0 sm:$0xff]  ;;  %s6875_s13 = smov 32  }
 0x5bc   :  { %v4267_v14 = vrot.slane %v4266_v61, 2  ;;  %v6260_v3 = vpop.f32.mrf.mxu0  ;;  %v4298_v60 = vadd.f32 %v4297_v32, %v4296_v33 }
 0x5bd   :  { %v4301_v5 = vsel %vm4139_vm3, %v4093_v21, 0.0  ;;  %v4104_v19 = vadd.f32 %v6260_v3, %v9711_v15 }
 0x5be   :  { %v4268_v44 = vadd.f32 %v4267_v14, %v4266_v61  ;;  %v4095_v39 = vpop.f32.mrf.mxu0  ;;  %v4300_v28 = vadd.f32 %v4299_v53, %v4298_v60 }
 0x5bf   :  { %v4096_v22 = vadd.f32 %v9711_v15, %v4095_v39  ;;  %v4307_v49 = vsel %vm4139_vm3, %v4104_v19, 0.0 }
 0x5c0   :  { %v4269_v11 = vrot.slane %v4268_v44, 1  ;;  %v6263_v10 = vpop.f32.mrf.mxu0  ;;  %v4302_v34 = vadd.f32 %v4301_v5, %v4300_v28 }
 0x5c1   :  { %v4303_v6 = vsel %vm4139_vm3, %v4096_v22, 0.0  ;;  %v4117_v37 = vadd.f32 %v6263_v10, %v9711_v15 }
 0x5c2   :  { %v4270_v0 = vadd.f32 %v4269_v11, %v4268_v44  ;;  %v4108_v13 = vpop.f32.mrf.mxu0  ;;  %v4304_v38 = vadd.f32 %v4303_v6, %v4302_v34  ;;  %v9942_v34 = vld [vmem:[%s10285_s12] sm:$0xff]  }
 0x5c3   :  { %v4109_v45 = vadd.f32 %v9711_v15, %v4108_v13  ;;  %v4341_v63 = vsel %vm4139_vm3, %v4117_v37, 0.0 }
 0x5c4   :  { %v4271_v7 = vmul.f32 0.015625, %v4270_v0  ;;  %v6264_v16 = vpop.f32.mrf.mxu0  ;;  %v4306_v41 = vadd.f32 %v4305_v46, %v4304_v38 }
 0x5c5   :  { %v4338_v30 = vsel %vm4139_vm3, %v4109_v45, 0.0  ;;  %v4120_v58 = vadd.f32 %v6264_v16, %v9711_v15  ;;  %v9935_v16 = vld [vmem:[%s10285_s12 + $0x8] sm:$0xff]   ;;  %s6874_s12 = smov 64  }
 0x5c6   :  { %v4368_v20 = vsel %vm4367_vm8, %v4366_v54, %v4271_v7  ;;  %v4111_v25 = vpop.f32.mrf.mxu0  ;;  %v4308_v35 = vadd.f32 %v4307_v49, %v4306_v41  ;;  %v4332_v7 = vadd.f32 %v4331_v26, %v9828_v18  ;;  %v9967_v26 = vld [vmem:[%s10287_s14 + $0x18] sm:$0xff]  }
 0x5c7   :  { %v9894_v48 = vsel %vm4369_vm9, %v4368_v20, %v4293_v1  ;;  %v4112_v43 = vadd.f32 %v9711_v15, %v4111_v25  ;;  %v4343_v61 = vsel %vm4139_vm3, %v4120_v58, 0.0 }
 0x5c8   :  { %v4309_v59 = vrot.slane %v4308_v35, 4  ;;  %v4333_v9 = vrot.slane %v4332_v7, 2 }
 0x5c9   :  { %v4339_v23 = vsel %vm4139_vm3, %v4112_v43, 0.0 }
 0x5ca   :  { %v4340_v40 = vadd.f32 %v4339_v23, %v4338_v30  ;;  %v4310_v51 = vadd.f32 %v4309_v59, %v4308_v35  ;;  %v4334_v36 = vadd.f32 %v4333_v9, %v4332_v7 }
 0x5cc   :  { %v4342_v42 = vadd.f32 %v4341_v63, %v4340_v40  ;;  %v4311_v29 = vrot.slane %v4310_v51, 2  ;;  %v4335_v18 = vrot.slane %v4334_v36, 1 }
 0x5ce   :  { %v4344_v44 = vadd.f32 %v4343_v61, %v4342_v42  ;;  %v4312_v3 = vadd.f32 %v4311_v29, %v4310_v51  ;;  %v4336_v32 = vadd.f32 %v4335_v18, %v4334_v36  ;;  %v9980_v61 = vld [vmem:[%s10287_s14 + $0x8] sm:$0xff]   ;;  %v9988_v51 = vld [vmem:[%s10287_s14] sm:$0xff]  }
 0x5d0   :  { %v4313_v27 = vrot.slane %v4312_v3, 1  ;;  %v4337_v53 = vmul.f32 0.015625, %v4336_v32 }
 0x5d2   :  { %v4314_v10 = vadd.f32 %v4313_v27, %v4312_v3 }
 0x5d4   :  { %v4315_v60 = vmul.f32 0.015625, %v4314_v10 }
 0x5d6   :  { %v4372_v28 = vsel %vm4371_vm10, %v9894_v48, %v4315_v60  ;;  %v6873_v48 = vmov 0  }
 0x607   :  { %v6267_v55 = vpop.f32.mrf.mxu0 }
 0x608   :  { %v4133_v31 = vadd.f32 %v6267_v55, %v9711_v15 }
 0x609   :  { %v4124_v4 = vpop.f32.mrf.mxu0 }
 0x60a   :  { %v4125_v54 = vadd.f32 %v9711_v15, %v4124_v4  ;;  %v4349_v52 = vsel %vm4139_vm3, %v4133_v31, 0.0 }
 0x60b   :  { %v6268_v57 = vpop.f32.mrf.mxu0 }
 0x60c   :  { %v4345_v14 = vsel %vm4139_vm3, %v4125_v54, 0.0  ;;  %v4136_v20 = vadd.f32 %v6268_v57, %v9711_v15  ;;  %v9973_v57 = vld [vmem:[%s10287_s14 + $0x10] sm:$0xff]  }
 0x60d   :  { %v4127_v11 = vpop.f32.mrf.mxu0  ;;  %v4346_v1 = vadd.f32 %v4345_v14, %v4344_v44 }
 0x60e   :  { %v4128_v0 = vadd.f32 %v9711_v15, %v4127_v11  ;;  %v4351_v24 = vsel %vm4139_vm3, %v4136_v20, 0.0 }
 0x610   :  { %v4347_v12 = vsel %vm4139_vm3, %v4128_v0, 0.0 }
 0x611   :  { %v4348_v56 = vadd.f32 %v4347_v12, %v4346_v1  ;;  %v10017_v12 = vld [vmem:[%s10288_s15] ss:$0 sm:$0xff] }
 0x613   :  { %v4350_v17 = vadd.f32 %v4349_v52, %v4348_v56 }
 0x615   :  { %v4352_v50 = vadd.f32 %v4351_v24, %v4350_v17 }
 0x617   :  { %v4353_v39 = vrot.slane %v4352_v50, 4 }
 0x619   :  { %v4354_v8 = vadd.f32 %v4353_v39, %v4352_v50 }
 0x61b   :  { %v4355_v33 = vrot.slane %v4354_v8, 2 }
 0x61d   :  { %v4356_v15 = vadd.f32 %v4355_v33, %v4354_v8 }
 0x61f   :  { %v4357_v2 = vrot.slane %v4356_v15, 1 }
 0x621   :  { %v4358_v13 = vadd.f32 %v4357_v2, %v4356_v15 }
 0x623   :  { %v4359_v21 = vmul.f32 0.015625, %v4358_v13 }
 0x625   :  { %v4373_v22 = vsel %vm4360_vm4, %v4337_v53, %v4359_v21 }
 0x626   :  { %v4390_v5 = vpack.c.bf16 %v4373_v22, %v4372_v28 }
 0x628   :  { %6274 = vmatmul.mubr.msk.bf16.vlgmr.msra.gmra.mxu1 %vm4139_vm3, %v4390_v5 }
 0x629   :  { %6278 = vmatpush3.bf16.msra.mxu1 %v9935_v16  ;;  %6281 = vmatprep.mubr.msk.bf16.mxu1 %vm6872_vm6, %v6871_v47 }
 0x62a   :  { %6279 = vmatprep.subr.bf16.mxu1 %v6871_v47 }
 0x62d   :  { %6280 = vmatpush3.bf16.msra.mxu1 %v9942_v34 }
 0x62e   :  { %6285 = vmatprep.subr.bf16.mxu1 %v6871_v47 }
 0x630   :  { %6282 = vmatmul.mubr.bf16.vlgmr.msra.gmra.mxu1 %v6873_v48 }
 0x631   :  { %6293 = vmatprep.mubr.msk.bf16.mxu1 %vm6872_vm6, %v6871_v47  ;;  %6286 = vmatpush3.bf16.msra.mxu1 %v9967_v26 }
 0x632   :  { %6287 = vmatprep.subr.bf16.mxu1 %v6871_v47 }
 0x635   :  { %6288 = vmatpush3.bf16.msra.mxu1 %v9973_v57 }
 0x636   :  { %6289 = vmatprep.subr.bf16.mxu1 %v6871_v47 }
 0x639   :  { %6290 = vmatpush3.bf16.msra.mxu1 %v9980_v61 }
 0x63a   :  { %6291 = vmatprep.subr.bf16.mxu1 %v6871_v47 }
 0x63d   :  { %6292 = vmatpush3.bf16.msra.mxu1 %v9988_v51 }
 0x63e   :  { %6297 = vmatprep.subr.bf16.mxu1 %v6871_v47 }
 0x6e8   :  { %v4447_v6 = vpop.f32.mrf.mxu1 }
 0x6e9   :  { %v9956_v19 = vadd.f32 %v5757_v62, %v4447_v6 }
 0x6ea   :  { %v6275_v25 = vpop.f32.mrf.mxu1 }
 0x6ec   :  { %v4450_v38 = vpop.f32.mrf.mxu1 }
 0x6ed   :  { %v9954_v43 = vadd.f32 %v5757_v62, %v4450_v38 }
 0x6ee   :  { %v6276_v46 = vpop.f32.mrf.mxu1 }
 0x6f0   :  { %v4510_v45 = vpop.f32.mrf.mxu1 }
 0x6f1   :  { %v4516_v41 = vadd.f32 %v4510_v45, %v9956_v19 }
 0x6f2   :  { %v6283_v23 = vpop.f32.mrf.mxu1 }
 0x6f3   :  { %6777 = vtanh.f32 %v4516_v41  ;;  %v5764_v35 = vmul.f32 -1.442695, %v4516_v41 }
 0x6f4   :  { %v4513_v49 = vpop.f32.mrf.mxu1 }
 0x6f5   :  { %6779 = vpow2.f32 %v5764_v35 }
 0x6f6   :  { %v6284_v37 = vpop.f32.mrf.mxu1 }
 0x700   :  { %v6778_v30 = vpop.eup %6777 }
 0x701   :  { %4526 = vrot.lane.b32.xlu0 %v6778_v30, %s6874_s12 }
 0x702   :  { %v6780_v40 = vpop.eup %6779 }
 0x703   :  { %v4520_v55 = vadd.f32 1.0, %v6780_v40 }
 0x705   :  { %6781 = vrcp.f32 %v4520_v55 }
 0x712   :  { %v6782_v63 = vpop.eup %6781 }
 0x713   :  { %v4524_v42 = vmul.f32 0.0, %v6782_v63 }
 0x773   :  { %v4527_v58 = vpop.permute.xlu0 %4526 }
 0x774   :  { %v4529_v59 = vmul.f32 %v6782_v63, %v4527_v58 }
 0x776   :  { %4531 = vrot.lane.b32.xlu1 %v4529_v59, %s6875_s13 }
 0x7e8   :  { %v4532_v4 = vpop.permute.xlu1 %4531 }
 0x7e9   :  { %v9961_v54 = vadd.f32 %v4532_v4, %v4524_v42 }
 0x7eb   :  { %6783 = vtanh.f32 %v9961_v54  ;;  %v4697_v62 = vrot.slane %v9961_v54, 6 }
 0x7f8   :  { %v6784_v14 = vpop.eup %6783 }
 0x7f9   :  { %4537 = vrot.lane.b32.xlu1 %v6784_v14, %s6874_s12 }
 0x86b   :  { %v4538_v44 = vpop.permute.xlu1 %4537 }
 0x86c   :  { %v4540_v11 = vmul.f32 %v6782_v63, %v4538_v44 }
 0x86e   :  { %v4638_v31 = vpack.c.bf16 %v4540_v11, %v4540_v11  ;;  %4542 = vrot.lane.b32.xlu1 %v4540_v11, %s6875_s13 }
 0x870   :  { %4640 = vrot.lane.b32.xlu0 %v4638_v31, %s6875_s13 }
 0x8e0   :  { %v4543_v0 = vpop.permute.xlu1 %4542 }
 0x8e1   :  { %v4545_v7 = vsel %vm4139_vm3, %v4543_v0, 0.0 }
 0x8e2   :  { %v4546_v1 = vpack.c.bf16 %v4545_v7, %v4545_v7  ;;  %v4641_v20 = vpop.permute.xlu0 %4640 }
 0x8e4   :  { %6294 = vmatmul.mubr.msk.bf16.vlgmr.msra.gmra.mxu1 %vm694_vm2, %v4546_v1 }
 0x8e5   :  { %6298 = vmatpush3.bf16.msra.mxu1 %v9935_v16  ;;  %6301 = vmatprep.mubr.msk.bf16.mxu1 %vm6872_vm6, %v6871_v47 }
 0x8e6   :  { %6299 = vmatprep.subr.bf16.mxu1 %v6871_v47 }
 0x8e9   :  { %6300 = vmatpush3.bf16.msra.mxu1 %v9942_v34 }
 0x8ea   :  { %6305 = vmatprep.subr.bf16.mxu1 %v6871_v47 }
 0x8ec   :  { %6302 = vmatmul.mubr.msk.bf16.vlgmr.msra.gmra.mxu1 %vm4139_vm3, %v4641_v20 }
 0x8ed   :  { %6306 = vmatpush3.bf16.msra.mxu1 %v9967_v26  ;;  %6313 = vmatprep.mubr.msk.bf16.mxu1 %vm6872_vm6, %v6871_v47 }
 0x8ee   :  { %6307 = vmatprep.subr.bf16.mxu1 %v6871_v47 }
 0x8f1   :  { %6308 = vmatpush3.bf16.msra.mxu1 %v9973_v57 }
 0x8f2   :  { %6309 = vmatprep.subr.bf16.mxu1 %v6871_v47 }
 0x8f5   :  { %6310 = vmatpush3.bf16.msra.mxu1 %v9980_v61 }
 0x8f6   :  { %6311 = vmatprep.subr.bf16.mxu1 %v6871_v47 }
 0x8f9   :  { %6312 = vmatpush3.bf16.msra.mxu1 %v9988_v51 }
 0x8fa   :  { %6317 = vmatprep.subr.bf16.mxu1 %v6871_v47 }
 0x9a4   :  { %v4608_v29 = vpop.f32.mrf.mxu1 }
 0x9a5   :  { %v4609_v56 = vadd.f32 %v10017_v12, %v4608_v29 }
 0x9a6   :  { %v6295_v52 = vpop.f32.mrf.mxu1 }
 0x9a7   :  { %6785 = vtanh.f32 %v4609_v56  ;;  %v5770_v33 = vmul.f32 -1.442695, %v4609_v56 }
 0x9a8   :  { %v4611_v9 = vpop.f32.mrf.mxu1 }
 0x9aa   :  { %v6296_v17 = vpop.f32.mrf.mxu1 }
 0x9ac   :  { %v4679_v24 = vpop.f32.mrf.mxu1 }
 0x9ad   :  { %v4686_v3 = vrot.slane %v4679_v24, 6 }
 0x9ae   :  { %v6303_v50 = vpop.f32.mrf.mxu1 }
 0x9af   :  { %v4688_v36 = vadd.f32 %v4686_v3, %v9956_v19 }
 0x9b0   :  { %v4682_v39 = vpop.f32.mrf.mxu1 }
 0x9b1   :  { %6787 = vtanh.f32 %v4688_v36  ;;  %v5772_v10 = vmul.f32 -1.442695, %v4688_v36 }
 0x9b2   :  { %v6304_v27 = vpop.f32.mrf.mxu1  ;;  %6789 = vpow2.f32 %v5770_v33 }
 0x9b3   :  { %6791 = vpow2.f32 %v5772_v10 }
 0x9b4   :  { %v6786_v8 = vpop.eup %6785 }
 0x9b5   :  { %4623 = vrot.lane.b32.xlu1 %v6786_v8, %s6874_s12 }
 0x9be   :  { %v6788_v18 = vpop.eup %6787 }
 0x9bf   :  { %4701 = vrot.lane.b32.xlu0 %v6788_v18, %s6874_s12  ;;  %v6790_v15 = vpop.eup %6789 }
 0x9c0   :  { %v4617_v32 = vadd.f32 1.0, %v6790_v15  ;;  %v6792_v2 = vpop.eup %6791 }
 0x9c1   :  { %v4692_v60 = vadd.f32 1.0, %v6792_v2 }
 0x9c2   :  { %6793 = vrcp.f32 %v4617_v32 }
 0x9c3   :  { %6795 = vrcp.f32 %v4692_v60 }
 0x9cf   :  { %v6794_v13 = vpop.eup %6793 }
 0x9d0   :  { %v6796_v28 = vpop.eup %6795  ;;  %v4621_v48 = vmul.f32 0.0, %v6794_v13 }
 0x9d1   :  { %v4699_v38 = vmul.f32 %v6796_v28, %v4697_v62 }
 0xa27   :  { %v4624_v53 = vpop.permute.xlu1 %4623 }
 0xa28   :  { %v4626_v21 = vmul.f32 %v6794_v13, %v4624_v53 }
 0xa2a   :  { %4628 = vrot.lane.b32.xlu1 %v4626_v21, %s6875_s13 }
 0xa31   :  { %v4702_v22 = vpop.permute.xlu0 %4701 }
 0xa32   :  { %v4704_v5 = vmul.f32 %v6796_v28, %v4702_v22 }
 0xa34   :  { %4706 = vrot.lane.b32.xlu0 %v4704_v5, %s6875_s13 }
 0xa9c   :  { %v4629_v6 = vpop.permute.xlu1 %4628 }
 0xa9d   :  { %v10025_v25 = vadd.f32 %v4629_v6, %v4621_v48 }
 0xa9f   :  { %6797 = vtanh.f32 %v10025_v25 }
 0xaa6   :  { %v4707_v46 = vpop.permute.xlu0 %4706 }
 0xaa7   :  { %v10029_v45 = vadd.f32 %v4707_v46, %v4699_v38 }
 0xaa9   :  { %6799 = vtanh.f32 %v10029_v45  ;;  %v4856_v21 = vrot.slane %v10029_v45, 6 }
 0xaac   :  { %v6798_v41 = vpop.eup %6797 }
 0xaad   :  { %4634 = vrot.lane.b32.xlu1 %v6798_v41, %s6874_s12 }
 0xab6   :  { %v6800_v23 = vpop.eup %6799 }
 0xab7   :  { %4712 = vrot.lane.b32.xlu0 %v6800_v23, %s6874_s12 }
 0xb1f   :  { %v4635_v49 = vpop.permute.xlu1 %4634 }
 0xb20   :  { %v10034_v37 = vmul.f32 %v6794_v13, %v4635_v49 }
 0xb22   :  { %v4721_v30 = vrot.slane %v10034_v37, 6 }
 0xb24   :  { %4722 = vrot.lane.b32.xlu0 %v4721_v30, %s6874_s12 }
 0xb29   :  { %v4713_v35 = vpop.permute.xlu0 %4712 }
 0xb2a   :  { %v4715_v40 = vmul.f32 %v6796_v28, %v4713_v35 }
 0xb2c   :  { %v4796_v55 = vpack.c.bf16 %v4715_v40, %v4715_v40  ;;  %4717 = vrot.lane.b32.xlu1 %v4715_v40, %s6875_s13 }
 0xb2e   :  { %v4798_v63 = vrot.slane %v4796_v55, 1 }
 0xb30   :  { %4799 = vrot.lane.b32.xlu1 %v4798_v63, %s6875_s13 }
 0xb96   :  { %v4723_v58 = vpop.permute.xlu0 %4722 }
 0xb9e   :  { %v4718_v59 = vpop.permute.xlu1 %4717 }
 0xb9f   :  { %v4725_v42 = vsel %vm4139_vm3, %v4718_v59, %v4723_v58 }
 0xba0   :  { %v4726_v4 = vpack.c.bf16 %v4725_v42, %v4725_v42 }
 0xba2   :  { %v4728_v54 = vrot.slane %v4726_v4, 1  ;;  %v4800_v14 = vpop.permute.xlu1 %4799 }
 0xba4   :  { %6314 = vmatmul.mubr.msk.bf16.vlgmr.msra.gmra.mxu1 %vm694_vm2, %v4728_v54 }
 0xba5   :  { %6318 = vmatpush3.bf16.msra.mxu1 %v9935_v16  ;;  %6321 = vmatprep.mubr.msk.bf16.mxu1 %vm6872_vm6, %v6871_v47 }
 0xba6   :  { %6319 = vmatprep.subr.bf16.mxu1 %v6871_v47 }
 0xba9   :  { %6320 = vmatpush3.bf16.msra.mxu1 %v9942_v34 }
 0xbaa   :  { %6325 = vmatprep.subr.bf16.mxu1 %v6871_v47 }
 0xbac   :  { %6322 = vmatmul.mubr.msk.bf16.vlgmr.msra.gmra.mxu1 %vm4139_vm3, %v4800_v14 }
 0xbad   :  { %6326 = vmatpush3.bf16.msra.mxu1 %v9967_v26  ;;  %6333 = vmatprep.mubr.msk.bf16.mxu1 %vm6872_vm6, %v6871_v47 }
 0xbae   :  { %6327 = vmatprep.subr.bf16.mxu1 %v6871_v47 }
 0xbb1   :  { %6328 = vmatpush3.bf16.msra.mxu1 %v9973_v57 }
 0xbb2   :  { %6329 = vmatprep.subr.bf16.mxu1 %v6871_v47 }
 0xbb5   :  { %6330 = vmatpush3.bf16.msra.mxu1 %v9980_v61 }
 0xbb6   :  { %6331 = vmatprep.subr.bf16.mxu1 %v6871_v47 }
 0xbb9   :  { %6332 = vmatpush3.bf16.msra.mxu1 %v9988_v51 }
 0xbba   :  { %6337 = vmatprep.subr.bf16.mxu1 %v6871_v47 }
 0xc64   :  { %v4766_v44 = vpop.f32.mrf.mxu1 }
 0xc65   :  { %v4767_v11 = vadd.f32 %v10017_v12, %v4766_v44 }
 0xc66   :  { %v6315_v31 = vpop.f32.mrf.mxu1 }
 0xc67   :  { %6801 = vtanh.f32 %v4767_v11  ;;  %v5774_v3 = vmul.f32 -1.442695, %v4767_v11 }
 0xc68   :  { %v4769_v0 = vpop.f32.mrf.mxu1 }
 0xc6a   :  { %v6316_v7 = vpop.f32.mrf.mxu1 }
 0xc6c   :  { %v4838_v1 = vpop.f32.mrf.mxu1 }
 0xc6d   :  { %v4845_v20 = vrot.slane %v4838_v1, 4 }
 0xc6e   :  { %v6323_v29 = vpop.f32.mrf.mxu1 }
 0xc6f   :  { %v4847_v56 = vadd.f32 %v4845_v20, %v9956_v19 }
 0xc70   :  { %v4841_v52 = vpop.f32.mrf.mxu1 }
 0xc71   :  { %6803 = vtanh.f32 %v4847_v56  ;;  %v5776_v50 = vmul.f32 -1.442695, %v4847_v56 }
 0xc72   :  { %v6324_v9 = vpop.f32.mrf.mxu1  ;;  %6805 = vpow2.f32 %v5774_v3 }
 0xc73   :  { %6807 = vpow2.f32 %v5776_v50 }
 0xc74   :  { %v6802_v17 = vpop.eup %6801 }
 0xc75   :  { %4781 = vrot.lane.b32.xlu0 %v6802_v17, %s6874_s12 }
 0xc7e   :  { %v6804_v24 = vpop.eup %6803 }
 0xc7f   :  { %4860 = vrot.lane.b32.xlu1 %v6804_v24, %s6874_s12  ;;  %v6806_v36 = vpop.eup %6805 }
 0xc80   :  { %v4775_v39 = vadd.f32 1.0, %v6806_v36  ;;  %v6808_v27 = vpop.eup %6807 }
 0xc81   :  { %v4851_v8 = vadd.f32 1.0, %v6808_v27 }
 0xc82   :  { %6809 = vrcp.f32 %v4775_v39 }
 0xc83   :  { %6811 = vrcp.f32 %v4851_v8 }
 0xc8f   :  { %v6810_v18 = vpop.eup %6809 }
 0xc90   :  { %v6812_v15 = vpop.eup %6811  ;;  %v4779_v60 = vmul.f32 %v6810_v18, %v10025_v25 }
 0xc91   :  { %v4858_v28 = vmul.f32 %v6812_v15, %v4856_v21 }
 0xce7   :  { %v4782_v33 = vpop.permute.xlu0 %4781 }
 0xce8   :  { %v4784_v10 = vmul.f32 %v6810_v18, %v4782_v33 }
 0xcea   :  { %4786 = vrot.lane.b32.xlu0 %v4784_v10, %s6875_s13 }
 0xcf1   :  { %v4861_v32 = vpop.permute.xlu1 %4860 }
 0xcf2   :  { %v4863_v2 = vmul.f32 %v6812_v15, %v4861_v32 }
 0xcf4   :  { %4865 = vrot.lane.b32.xlu1 %v4863_v2, %s6875_s13 }
 0xd5c   :  { %v4787_v13 = vpop.permute.xlu0 %4786 }
 0xd5d   :  { %v10066_v53 = vadd.f32 %v4787_v13, %v4779_v60 }
 0xd5f   :  { %6813 = vtanh.f32 %v10066_v53 }
 0xd66   :  { %v4866_v22 = vpop.permute.xlu1 %4865 }
 0xd67   :  { %v10070_v5 = vadd.f32 %v4866_v22, %v4858_v28 }
 0xd69   :  { %6815 = vtanh.f32 %v10070_v5  ;;  %v5015_v10 = vrot.slane %v10070_v5, 6 }
 0xd6c   :  { %v6814_v48 = vpop.eup %6813 }
 0xd6d   :  { %4792 = vrot.lane.b32.xlu0 %v6814_v48, %s6874_s12 }
 0xd76   :  { %v6816_v6 = vpop.eup %6815 }
 0xd77   :  { %4871 = vrot.lane.b32.xlu1 %v6816_v6, %s6874_s12 }
 0xddf   :  { %v4793_v25 = vpop.permute.xlu0 %4792 }
 0xde0   :  { %v10075_v62 = vmul.f32 %v6810_v18, %v4793_v25 }
 0xde2   :  { %v4880_v38 = vrot.slane %v10075_v62, 4 }
 0xde4   :  { %4881 = vrot.lane.b32.xlu1 %v4880_v38, %s6874_s12 }
 0xde9   :  { %v4872_v46 = vpop.permute.xlu1 %4871 }
 0xdea   :  { %v4874_v45 = vmul.f32 %v6812_v15, %v4872_v46 }
 0xdec   :  { %v4955_v41 = vpack.c.bf16 %v4874_v45, %v4874_v45  ;;  %4876 = vrot.lane.b32.xlu0 %v4874_v45, %s6875_s13 }
 0xdee   :  { %v4957_v23 = vrot.slane %v4955_v41, 2 }
 0xdf0   :  { %4958 = vrot.lane.b32.xlu0 %v4957_v23, %s6875_s13 }
 0xe56   :  { %v4882_v49 = vpop.permute.xlu1 %4881 }
 0xe5e   :  { %v4877_v30 = vpop.permute.xlu0 %4876 }
 0xe5f   :  { %v4884_v35 = vsel %vm4139_vm3, %v4877_v30, %v4882_v49 }
 0xe60   :  { %v4885_v40 = vpack.c.bf16 %v4884_v35, %v4884_v35 }
 0xe62   :  { %v4887_v55 = vrot.slane %v4885_v40, 2  ;;  %v4959_v63 = vpop.permute.xlu0 %4958 }
 0xe64   :  { %6334 = vmatmul.mubr.msk.bf16.vlgmr.msra.gmra.mxu1 %vm694_vm2, %v4887_v55 }
 0xe65   :  { %6338 = vmatpush3.bf16.msra.mxu1 %v9935_v16  ;;  %6341 = vmatprep.mubr.msk.bf16.mxu1 %vm6872_vm6, %v6871_v47 }
 0xe66   :  { %6339 = vmatprep.subr.bf16.mxu1 %v6871_v47 }
 0xe69   :  { %6340 = vmatpush3.bf16.msra.mxu1 %v9942_v34 }
 0xe6a   :  { %6345 = vmatprep.subr.bf16.mxu1 %v6871_v47 }
 0xe6c   :  { %6342 = vmatmul.mubr.msk.bf16.vlgmr.msra.gmra.mxu1 %vm4139_vm3, %v4959_v63 }
 0xe6d   :  { %6346 = vmatpush3.bf16.msra.mxu1 %v9967_v26  ;;  %6353 = vmatprep.mubr.msk.bf16.mxu1 %vm6872_vm6, %v6871_v47 }
 0xe6e   :  { %6347 = vmatprep.subr.bf16.mxu1 %v6871_v47 }
 0xe71   :  { %6348 = vmatpush3.bf16.msra.mxu1 %v9973_v57 }
 0xe72   :  { %6349 = vmatprep.subr.bf16.mxu1 %v6871_v47 }
 0xe75   :  { %6350 = vmatpush3.bf16.msra.mxu1 %v9980_v61 }
 0xe76   :  { %6351 = vmatprep.subr.bf16.mxu1 %v6871_v47 }
 0xe79   :  { %6352 = vmatpush3.bf16.msra.mxu1 %v9988_v51 }
 0xe7a   :  { %6357 = vmatprep.subr.bf16.mxu1 %v6871_v47 }
 0xf24   :  { %v4925_v58 = vpop.f32.mrf.mxu1 }
 0xf25   :  { %v4926_v59 = vadd.f32 %v10017_v12, %v4925_v58 }
 0xf26   :  { %v6335_v42 = vpop.f32.mrf.mxu1 }
 0xf27   :  { %6817 = vtanh.f32 %v4926_v59  ;;  %v5778_v29 = vmul.f32 -1.442695, %v4926_v59 }
 0xf28   :  { %v4928_v4 = vpop.f32.mrf.mxu1 }
 0xf2a   :  { %v6336_v54 = vpop.f32.mrf.mxu1 }
 0xf2c   :  { %v4997_v14 = vpop.f32.mrf.mxu1 }
 0xf2d   :  { %v5004_v44 = vrot.slane %v4997_v14, 2 }
 0xf2e   :  { %v6343_v11 = vpop.f32.mrf.mxu1 }
 0xf2f   :  { %v5006_v31 = vadd.f32 %v5004_v44, %v9956_v19 }
 0xf30   :  { %v5000_v0 = vpop.f32.mrf.mxu1 }
 0xf31   :  { %6819 = vtanh.f32 %v5006_v31  ;;  %v5780_v56 = vmul.f32 -1.442695, %v5006_v31 }
 0xf32   :  { %v6344_v7 = vpop.f32.mrf.mxu1  ;;  %6821 = vpow2.f32 %v5778_v29 }
 0xf33   :  { %6823 = vpow2.f32 %v5780_v56 }
 0xf34   :  { %v6818_v1 = vpop.eup %6817 }
 0xf35   :  { %4940 = vrot.lane.b32.xlu1 %v6818_v1, %s6874_s12 }
 0xf3e   :  { %v6820_v20 = vpop.eup %6819 }
 0xf3f   :  { %5019 = vrot.lane.b32.xlu0 %v6820_v20, %s6874_s12  ;;  %v6822_v52 = vpop.eup %6821 }
 0xf40   :  { %v4934_v9 = vadd.f32 1.0, %v6822_v52  ;;  %v6824_v17 = vpop.eup %6823 }
 0xf41   :  { %v5010_v24 = vadd.f32 1.0, %v6824_v17 }
 0xf42   :  { %6825 = vrcp.f32 %v4934_v9 }
 0xf43   :  { %6827 = vrcp.f32 %v5010_v24 }
 0xf4f   :  { %v6826_v19 = vpop.eup %6825 }
 0xf50   :  { %v6828_v36 = vpop.eup %6827  ;;  %v4938_v8 = vmul.f32 %v6826_v19, %v10066_v53  ;;  %v5267_v53 = vrot.slane %v10075_v62, 6 }
 0xf51   :  { %v5017_v15 = vmul.f32 %v6828_v36, %v5015_v10 }
 0xf52   :  { %v5273_v5 = vsel %vm4362_vm5, %v10034_v37, %v5267_v53 }
 0xfa7   :  { %v4941_v3 = vpop.permute.xlu1 %4940 }
 0xfa8   :  { %v4943_v50 = vmul.f32 %v6826_v19, %v4941_v3 }
 0xfaa   :  { %4945 = vrot.lane.b32.xlu1 %v4943_v50, %s6875_s13 }
 0xfb1   :  { %v5020_v39 = vpop.permute.xlu0 %5019 }
 0xfb2   :  { %v5022_v27 = vmul.f32 %v6828_v36, %v5020_v39 }
 0xfb4   :  { %5024 = vrot.lane.b32.xlu0 %v5022_v27, %s6875_s13 }
0x101c   :  { %v4946_v18 = vpop.permute.xlu1 %4945 }
0x101d   :  { %v10107_v33 = vadd.f32 %v4946_v18, %v4938_v8 }
0x101f   :  { %6829 = vtanh.f32 %v10107_v33 }
0x1026   :  { %v5025_v32 = vpop.permute.xlu0 %5024 }
0x1027   :  { %v10111_v2 = vadd.f32 %v5025_v32, %v5017_v15 }
0x1029   :  { %6831 = vtanh.f32 %v10111_v2  ;;  %v5171_v9 = vrot.slane %v10111_v2, 6 }
0x102c   :  { %v6830_v60 = vpop.eup %6829 }
0x102d   :  { %4951 = vrot.lane.b32.xlu1 %v6830_v60, %s6874_s12 }
0x1036   :  { %v6832_v13 = vpop.eup %6831 }
0x1037   :  { %5030 = vrot.lane.b32.xlu0 %v6832_v13, %s6874_s12 }
0x109f   :  { %v4952_v21 = vpop.permute.xlu1 %4951 }
0x10a0   :  { %v4954_v28 = vmul.f32 %v6826_v19, %v4952_v21 }
0x10a2   :  { %v5039_v22 = vrot.slane %v4954_v28, 2  ;;  %v5269_v48 = vrot.slane %v4954_v28, 4 }
0x10a4   :  { %5040 = vrot.lane.b32.xlu0 %v5039_v22, %s6874_s12  ;;  %v10121_v6 = vsel %vm335_vm0, %v5273_v5, %v5269_v48 }
0x10a9   :  { %v5031_v25 = vpop.permute.xlu0 %5030 }
0x10aa   :  { %v5033_v38 = vmul.f32 %v6828_v36, %v5031_v25 }
0x10ac   :  { %v5114_v46 = vpack.c.bf16 %v5033_v38, %v5033_v38  ;;  %5035 = vrot.lane.b32.xlu1 %v5033_v38, %s6875_s13 }
0x10ae   :  { %v5116_v45 = vrot.slane %v5114_v46, 3 }
0x10b0   :  { %5117 = vrot.lane.b32.xlu1 %v5116_v45, %s6875_s13 }
0x1116   :  { %v5041_v62 = vpop.permute.xlu0 %5040 }
0x111e   :  { %v5036_v41 = vpop.permute.xlu1 %5035 }
0x111f   :  { %v5043_v23 = vsel %vm4139_vm3, %v5036_v41, %v5041_v62  ;;  %v6443_v41 = vld [vmem:[%s10289_s16 + $0x8] sm:$0xff]  }
0x1120   :  { %v5044_v49 = vpack.c.bf16 %v5043_v23, %v5043_v23  ;;  %v6444_v23 = vld [vmem:[%s10289_s16] sm:$0xff]  }
0x1122   :  { %v5046_v30 = vrot.slane %v5044_v49, 3  ;;  %v5118_v37 = vpop.permute.xlu1 %5117 }
0x1124   :  { %6354 = vmatmul.mubr.msk.bf16.vlgmr.msra.gmra.mxu1 %vm694_vm2, %v5046_v30 }
0x1125   :  { %6358 = vmatpush3.bf16.msra.mxu1 %v9935_v16  ;;  %6361 = vmatprep.mubr.msk.bf16.mxu1 %vm6872_vm6, %v6871_v47 }
0x1126   :  { %6359 = vmatprep.subr.bf16.mxu1 %v6871_v47 }
0x1129   :  { %6360 = vmatpush3.bf16.msra.mxu1 %v9942_v34 }
0x112a   :  { %6365 = vmatprep.subr.bf16.mxu1 %v6871_v47 }
0x112c   :  { %6362 = vmatmul.mubr.msk.bf16.vlgmr.msra.gmra.mxu1 %vm4139_vm3, %v5118_v37 }
0x112d   :  { %6366 = vmatpush3.bf16.msra.mxu1 %v9967_v26  ;;  %6373 = vmatprep.mubr.msk.bf16.mxu1 %vm6872_vm6, %v6871_v47 }
0x112e   :  { %6367 = vmatprep.subr.bf16.mxu1 %v6871_v47 }
0x1131   :  { %6368 = vmatpush3.bf16.msra.mxu1 %v9973_v57 }
0x1132   :  { %6369 = vmatprep.subr.bf16.mxu1 %v6871_v47 }
0x1135   :  { %6370 = vmatpush3.bf16.msra.mxu1 %v9980_v61 }
0x1136   :  { %6371 = vmatprep.subr.bf16.mxu1 %v6871_v47 }
0x1139   :  { %6372 = vmatpush3.bf16.msra.mxu1 %v9988_v51 }
0x113a   :  { %6377 = vmatprep.subr.bf16.mxu1 %v6871_v47 }
0x11e4   :  { %v5084_v16 = vpop.f32.mrf.mxu1 }
0x11e5   :  { %v5085_v34 = vadd.f32 %v10017_v12, %v5084_v16 }
0x11e6   :  { %v6355_v26 = vpop.f32.mrf.mxu1 }
0x11e7   :  { %6833 = vtanh.f32 %v5085_v34  ;;  %v5782_v42 = vmul.f32 -1.442695, %v5085_v34  ;;  %v5787_v26 = vld [vmem:[%s10290_s17] ss:$0 sm:$0xff] }
0x11e8   :  { %v5087_v35 = vpop.f32.mrf.mxu1 }
0x11ea   :  { %v6356_v40 = vpop.f32.mrf.mxu1 }
0x11ec   :  { %v5156_v55 = vpop.f32.mrf.mxu1 }
0x11ed   :  { %v5162_v57 = vadd.f32 %v5156_v55, %v9954_v43 }
0x11ee   :  { %v6363_v63 = vpop.f32.mrf.mxu1 }
0x11ef   :  { %6835 = vtanh.f32 %v5162_v57  ;;  %v5784_v4 = vmul.f32 -1.442695, %v5162_v57 }
0x11f0   :  { %v5159_v58 = vpop.f32.mrf.mxu1  ;;  %6837 = vpow2.f32 %v5782_v42  ;;  %v6447_v42 = vld [vmem:[%s10291_s20 + $0x28] sm:$0xff]  }
0x11f1   :  { %6839 = vpow2.f32 %v5784_v4  ;;  %v6448_v4 = vld [vmem:[%s10291_s20 + $0x20] sm:$0xff]  }
0x11f2   :  { %v6364_v61 = vpop.f32.mrf.mxu1 }
0x11f4   :  { %v6834_v59 = vpop.eup %6833 }
0x11f5   :  { %5099 = vrot.lane.b32.xlu0 %v6834_v59, %s6874_s12  ;;  %v6445_v59 = vld [vmem:[%s10291_s20 + $0x38] sm:$0xff]  }
0x11f6   :  { %6386 = vmatpush3.bf16.msra.mxu0 %v6445_v59 }
0x11f7   :  { %6387 = vmatprep.subr.bf16.mxu0 %v6871_v47 }
0x11fc   :  { %v6836_v51 = vpop.eup %6835 }
0x11fd   :  { %5175 = vrot.lane.b32.xlu1 %v6836_v51, %s6874_s12  ;;  %v6838_v54 = vpop.eup %6837  ;;  %v6446_v51 = vld [vmem:[%s10291_s20 + $0x30] sm:$0xff]  }
0x11fe   :  { %v5093_v14 = vadd.f32 1.0, %v6838_v54  ;;  %v6840_v44 = vpop.eup %6839  ;;  %6388 = vmatpush3.bf16.msra.mxu0 %v6446_v51  ;;  %v6449_v54 = vld [vmem:[%s10291_s20 + $0x18] sm:$0xff]  }
0x11ff   :  { %v5166_v11 = vadd.f32 1.0, %v6840_v44  ;;  %6389 = vmatprep.subr.bf16.mxu0 %v6871_v47  ;;  %v6451_v44 = vld [vmem:[%s10291_s20 + $0x8] sm:$0xff]  }
0x1200   :  { %6841 = vrcp.f32 %v5093_v14  ;;  %v6450_v14 = vld [vmem:[%s10291_s20 + $0x10] sm:$0xff]  }
0x1201   :  { %6843 = vrcp.f32 %v5166_v11 }
0x1202   :  { %6390 = vmatpush3.bf16.msra.mxu0 %v6447_v42 }
0x1203   :  { %6391 = vmatprep.subr.bf16.mxu0 %v6871_v47 }
0x1206   :  { %6392 = vmatpush3.bf16.msra.mxu0 %v6448_v4 }
0x1207   :  { %6393 = vmatprep.subr.bf16.mxu0 %v6871_v47 }
0x120a   :  { %6394 = vmatpush3.bf16.msra.mxu0 %v6449_v54  ;;  %v5802_v54 = vld [vmem:[%s10297_s22] ss:$0 sm:$0xff] }
0x120b   :  { %6395 = vmatprep.subr.bf16.mxu0 %v6871_v47 }
0x120d   :  { %v6842_v43 = vpop.eup %6841 }
0x120e   :  { %v6844_v7 = vpop.eup %6843  ;;  %v5097_v29 = vmul.f32 %v6842_v43, %v10107_v33  ;;  %6396 = vmatpush3.bf16.msra.mxu0 %v6450_v14 }
0x120f   :  { %v5173_v17 = vmul.f32 %v6844_v7, %v5171_v9  ;;  %6397 = vmatprep.subr.bf16.mxu0 %v6871_v47 }
0x1212   :  { %6398 = vmatpush3.bf16.msra.mxu0 %v6451_v44 }
0x1213   :  { %6399 = vmatprep.subr.bf16.mxu0 %v6871_v47 }
0x1267   :  { %v5100_v31 = vpop.permute.xlu0 %5099 }
0x1268   :  { %v5102_v0 = vmul.f32 %v6842_v43, %v5100_v31 }
0x126a   :  { %5104 = vrot.lane.b32.xlu0 %v5102_v0, %s6875_s13 }
0x126f   :  { %v5176_v1 = vpop.permute.xlu1 %5175 }
0x1270   :  { %v5178_v20 = vmul.f32 %v6844_v7, %v5176_v1 }
0x1272   :  { %5180 = vrot.lane.b32.xlu1 %v5178_v20, %s6875_s13 }
0x12dc   :  { %v5105_v56 = vpop.permute.xlu0 %5104 }
0x12dd   :  { %v5107_v52 = vadd.f32 %v5105_v56, %v5097_v29 }
0x12df   :  { %6845 = vtanh.f32 %v5107_v52 }
0x12e4   :  { %v5181_v24 = vpop.permute.xlu1 %5180 }
0x12e5   :  { %v5183_v19 = vadd.f32 %v5181_v24, %v5173_v17 }
0x12e7   :  { %6847 = vtanh.f32 %v5183_v19 }
0x12ec   :  { %v6846_v3 = vpop.eup %6845 }
0x12ed   :  { %5110 = vrot.lane.b32.xlu0 %v6846_v3, %s6874_s12 }
0x12f4   :  { %v6848_v50 = vpop.eup %6847 }
0x12f5   :  { %5186 = vrot.lane.b32.xlu1 %v6848_v50, %s6874_s12 }
0x135f   :  { %v5111_v36 = vpop.permute.xlu0 %5110 }
0x1360   :  { %v5113_v39 = vmul.f32 %v6842_v43, %v5111_v36 }
0x1362   :  { %v5271_v27 = vrot.slane %v5113_v39, 2  ;;  %5195 = vrot.lane.b32.xlu1 %v5113_v39, %s6874_s12 }
0x1364   :  { %v10157_v8 = vsel %vm4369_vm9, %v10121_v6, %v5271_v27  ;;  %v5791_v27 = vld [vmem:[%s10292_s18] ss:$0 sm:$0xff] }
0x1367   :  { %v5187_v18 = vpop.permute.xlu1 %5186 }
0x1368   :  { %v5189_v33 = vmul.f32 %v6844_v7, %v5187_v18 }
0x136a   :  { %5191 = vrot.lane.b32.xlu0 %v5189_v33, %s6875_s13 }
0x13d4   :  { %v5196_v10 = vpop.permute.xlu1 %5195 }
0x13dc   :  { %v5192_v15 = vpop.permute.xlu0 %5191 }
0x13dd   :  { %v5198_v32 = vsel %vm4139_vm3, %v5192_v15, %v5196_v10  ;;  %v5792_v10 = vld [vmem:[%s10293_s19] ss:$0 sm:$0xff] }
0x13de   :  { %v5199_v2 = vpack.c.bf16 %v5198_v32, %v5198_v32 }
0x13e0   :  { %6374 = vmatmul.mubr.msk.bf16.vlgmr.msra.gmra.mxu1 %vm694_vm2, %v5199_v2 }
0x13e1   :  { %6381 = vmatprep.mubr.msk.bf16.mxu1 %vm6872_vm6, %v6871_v47  ;;  %6378 = vmatpush3.bf16.msra.mxu1 %v6443_v41 }
0x13e2   :  { %6379 = vmatprep.subr.bf16.mxu1 %v6871_v47 }
0x13e5   :  { %6380 = vmatpush3.bf16.msra.mxu1 %v6444_v23 }
0x13e6   :  { %6405 = vmatprep.subr.bf16.mxu1 %v6871_v47 }
0x14a0   :  { %v5237_v60 = vpop.f32.mrf.mxu1 }
0x14a1   :  { %v5238_v13 = vadd.f32 %v10017_v12, %v5237_v60 }
0x14a2   :  { %v6375_v53 = vpop.f32.mrf.mxu1 }
0x14a3   :  { %6849 = vtanh.f32 %v5238_v13  ;;  %v5786_v48 = vmul.f32 -1.442695, %v5238_v13 }
0x14a4   :  { %v5240_v21 = vpop.f32.mrf.mxu1 }
0x14a5   :  { %6851 = vpow2.f32 %v5786_v48 }
0x14a6   :  { %v6376_v28 = vpop.f32.mrf.mxu1 }
0x14a7   :  { %v5793_v28 = vld [vmem:[%s10294_s21] ss:$0 sm:$0xff] }
0x14b0   :  { %v6850_v22 = vpop.eup %6849 }
0x14b1   :  { %5252 = vrot.lane.b32.xlu0 %v6850_v22, %s6874_s12 }
0x14b2   :  { %v6852_v5 = vpop.eup %6851 }
0x14b3   :  { %v5246_v6 = vadd.f32 1.0, %v6852_v5 }
0x14b5   :  { %6853 = vrcp.f32 %v5246_v6 }
0x14c2   :  { %v6854_v25 = vpop.eup %6853 }
0x14c3   :  { %v5250_v45 = vmul.f32 %v6854_v25, %v5107_v52  ;;  %v6452_v52 = vld [vmem:[%s10291_s20] sm:$0xff]  }
0x14c4   :  { %6400 = vmatpush3.bf16.msra.mxu0 %v6452_v52  ;;  %v5804_v52 = vld [vmem:[%s10299_s25] ss:$0 sm:$0xff] }
0x1523   :  { %v5253_v38 = vpop.permute.xlu0 %5252 }
0x1524   :  { %v5255_v46 = vmul.f32 %v6854_v25, %v5253_v38 }
0x1526   :  { %5257 = vrot.lane.b32.xlu1 %v5255_v46, %s6875_s13 }
0x1598   :  { %v5258_v62 = vpop.permute.xlu1 %5257 }
0x1599   :  { %v5260_v12 = vadd.f32 %v5258_v62, %v5250_v45 }
0x159b   :  { %6855 = vtanh.f32 %v5260_v12 }
0x15a8   :  { %v6856_v49 = vpop.eup %6855 }
0x15a9   :  { %5263 = vrot.lane.b32.xlu0 %v6856_v49, %s6874_s12 }
0x161b   :  { %v5264_v30 = vpop.permute.xlu0 %5263 }
0x161c   :  { %v10176_v37 = vmul.f32 %v6854_v25, %v5264_v30 }
0x161e   :  { %v5291_v16 = vpack.c.bf16 %v10176_v37, %v10157_v8 }
0x1620   :  { %5300 = vrot.lane.b32.xlu1 %v5291_v16, %s6875_s13 }
0x1692   :  { %v5301_v34 = vpop.permute.xlu1 %5300 }
0x1693   :  { %6382 = vmatmul.mubr.msk.bf16.vlgmr.msra.gmra.mxu1 %vm4139_vm3, %v5301_v34 }
0x1694   :  { %6413 = vmatprep.mubr.msk.bf16.mxu1 %vm6872_vm6, %v6871_v47 }
0x1753   :  { %v5351_v35 = vpop.f32.mrf.mxu1 }
0x1754   :  { %v5352_v40 = vadd.f32 %v5787_v26, %v5351_v35 }
0x1755   :  { %v6383_v55 = vpop.f32.mrf.mxu1 }
0x1756   :  { %5360 = vadd.xlane.f32.xlu1 %v5352_v40  ;;  %v6454_v55 = vld [vmem:[%s10295_s24 + $0x10] sm:$0xff]  }
0x1757   :  { %v5354_v57 = vpop.f32.mrf.mxu1 }
0x1758   :  { %v5355_v63 = vadd.f32 %v5787_v26, %v5354_v57 }
0x1759   :  { %v6384_v58 = vpop.f32.mrf.mxu1 }
0x175a   :  { %v5362_v61 = vsel %vm4362_vm5, %v5355_v63, 0.0 }
0x175b   :  { %5363 = vadd.xlane.f32.xlu0 %v5362_v61 }
0x17df   :  { %v5361_v11 = vpop.xlane.xlu1 %5360 }
0x17e0   :  { %v5365_v43 = vmul.f32 0.0078125, %v5361_v11 }
0x17e2   :  { %v5367_v31 = vsub.f32 %v5352_v40, %v5365_v43  ;;  %v6453_v40 = vld [vmem:[%s10295_s24 + $0x18] sm:$0xff]   ;;  %v5803_v43 = vld [vmem:[%s10298_s23] ss:$0 sm:$0xff] }
0x17e3   :  { %6406 = vmatpush3.bf16.msra.mxu1 %v6453_v40 }
0x17e4   :  { %v5364_v0 = vpop.xlane.xlu0 %5363  ;;  %v5369_v7 = vmul.f32 %v5367_v31, %v5367_v31  ;;  %6407 = vmatprep.subr.bf16.mxu1 %v6871_v47 }
0x17e5   :  { %v5366_v1 = vmul.f32 0.0078125, %v5364_v0 }
0x17e6   :  { %5371 = vadd.xlane.f32.xlu0 %v5369_v7 }
0x17e7   :  { %v5368_v20 = vsub.f32 %v5355_v63, %v5366_v1  ;;  %6408 = vmatpush3.bf16.msra.mxu1 %v6454_v55 }
0x17e8   :  { %6409 = vmatprep.subr.bf16.mxu1 %v6871_v47 }
0x17e9   :  { %v5370_v29 = vmul.f32 %v5368_v20, %v5368_v20 }
0x17eb   :  { %v5373_v56 = vsel %vm4362_vm5, %v5370_v29, 0.0 }
0x17ec   :  { %5374 = vadd.xlane.f32.xlu0 %v5373_v56 }
0x186f   :  { %v5372_v9 = vpop.xlane.xlu0 %5371 }
0x1870   :  { %v5376_v17 = vmul.f32 0.0078125, %v5372_v9 }
0x1872   :  { %v5378_v24 = vadd.f32 1e-05, %v5376_v17 }
0x1874   :  { %6857 = vrsqrt.f32 %v5378_v24 }
0x1875   :  { %v5375_v19 = vpop.xlane.xlu0 %5374 }
0x1876   :  { %v5377_v3 = vmul.f32 0.0078125, %v5375_v19 }
0x1878   :  { %v5379_v50 = vadd.f32 1e-05, %v5377_v3 }
0x187a   :  { %6859 = vrsqrt.f32 %v5379_v50 }
0x1881   :  { %v6858_v36 = vpop.eup %6857 }
0x1882   :  { %v5382_v39 = vmul.f32 %v6858_v36, %v5367_v31 }
0x1884   :  { %v5390_v18 = vmul.f32 %v5791_v27, %v5382_v39 }
0x1886   :  { %v5398_v32 = vadd.f32 %v5792_v10, %v5390_v18 }
0x1887   :  { %v6860_v33 = vpop.eup %6859 }
0x1888   :  { %v5383_v15 = vmul.f32 %v6860_v33, %v5368_v20  ;;  %v5400_v13 = vmax.f32 %v5398_v32, 0.0 }
0x188a   :  { %v5391_v2 = vmul.f32 %v5791_v27, %v5383_v15 }
0x188c   :  { %v5399_v60 = vadd.f32 %v5792_v10, %v5391_v2 }
0x188e   :  { %v5401_v53 = vmax.f32 %v5399_v60, 0.0 }
0x1890   :  { %v5418_v21 = vpack.c.bf16 %v5401_v53, %v5400_v13 }
0x1892   :  { %6402 = vmatmul.mubr.bf16.vlgmr.msra.gmra.mxu0 %v5418_v21 }
0x1952   :  { %v5508_v22 = vpop.f32.mrf.mxu0 }
0x1953   :  { %v5509_v48 = vadd.f32 %v5793_v28, %v5508_v22 }
0x1954   :  { %v6403_v5 = vpop.f32.mrf.mxu0 }
0x1955   :  { %v5517_v6 = vsel %vm694_vm2, %v5509_v48, 0.0 }
0x1956   :  { %5518 = vadd.xlane.f32.xlu0 %v5517_v6  ;;  %v5511_v25 = vpop.f32.mrf.mxu0 }
0x1957   :  { %v5512_v38 = vadd.f32 %v5793_v28, %v5511_v25 }
0x1958   :  { %v6404_v46 = vpop.f32.mrf.mxu0 }
0x1959   :  { %v5521_v45 = vsel %vm5520_vm11, %v5512_v38, 0.0 }
0x195a   :  { %5522 = vadd.xlane.f32.xlu1 %v5521_v45 }
0x19df   :  { %v5519_v62 = vpop.xlane.xlu0 %5518 }
0x19e0   :  { %v5524_v12 = vmul.f32 0.015625, %v5519_v62 }
0x19e2   :  { %v5526_v41 = vsub.f32 %v5509_v48, %v5524_v12 }
0x19e3   :  { %v5523_v23 = vpop.xlane.xlu1 %5522 }
0x19e4   :  { %v5525_v49 = vmul.f32 0.015625, %v5523_v23  ;;  %v5528_v30 = vmul.f32 %v5526_v41, %v5526_v41 }
0x19e6   :  { %v5527_v16 = vsub.f32 %v5512_v38, %v5525_v49  ;;  %v5530_v34 = vsel %vm694_vm2, %v5528_v30, 0.0 }
0x19e7   :  { %5531 = vadd.xlane.f32.xlu0 %v5530_v34 }
0x19e8   :  { %v5529_v26 = vmul.f32 %v5527_v16, %v5527_v16 }
0x19ea   :  { %v5533_v35 = vsel %vm5520_vm11, %v5529_v26, 0.0 }
0x19eb   :  { %5534 = vadd.xlane.f32.xlu1 %v5533_v35 }
0x19fc   :  { %5280 = vrot.lane.b32.xlu1 %v10176_v37, %s6875_s13  ;;  %v6455_v37 = vld [vmem:[%s10295_s24 + $0x8] sm:$0xff]  }
0x19fd   :  { %5278 = vrot.lane.b32.xlu0 %v10157_v8, %s6875_s13  ;;  %6410 = vmatpush3.bf16.msra.mxu1 %v6455_v37  ;;  %v6456_v8 = vld [vmem:[%s10295_s24] sm:$0xff]  }
0x19fe   :  { %6411 = vmatprep.subr.bf16.mxu1 %v6871_v47 }
0x1a01   :  { %6412 = vmatpush3.bf16.msra.mxu1 %v6456_v8 }
0x1a70   :  { %v5532_v57 = vpop.xlane.xlu0 %5531 }
0x1a71   :  { %v5536_v63 = vmul.f32 0.015625, %v5532_v57 }
0x1a73   :  { %v5538_v58 = vadd.f32 1e-05, %v5536_v63 }
0x1a74   :  { %v5279_v61 = vpop.permute.xlu0 %5278  ;;  %v5535_v59 = vpop.xlane.xlu1 %5534 }
0x1a75   :  { %6861 = vrsqrt.f32 %v5538_v58  ;;  %5284 = vst.msk [vmem:[%s10296_s26] sm:$0xff] %vm4139_vm3, %v5279_v61  ;;  %v5537_v51 = vmul.f32 0.015625, %v5535_v59 }
0x1a77   :  { %v5539_v42 = vadd.f32 1e-05, %v5537_v51 }
0x1a78   :  { %v5281_v4 = vpop.permute.xlu1 %5280 }
0x1a79   :  { %6863 = vrsqrt.f32 %v5539_v42  ;;  %5286 = vst.msk [vmem:[%s10296_s26 + $0x8] sm:$0x3] %vm5285_vm12, %v5281_v4 }
0x1a82   :  { %v6862_v47 = vpop.eup %6861 }
0x1a83   :  { %v5542_v14 = vmul.f32 %v6862_v47, %v5526_v41 }
0x1a85   :  { %v5550_v44 = vmul.f32 %v5802_v54, %v5542_v14 }
0x1a86   :  { %v6864_v11 = vpop.eup %6863 }
0x1a87   :  { %v5543_v31 = vmul.f32 %v6864_v11, %v5527_v16  ;;  %v5558_v0 = vadd.f32 %v5803_v43, %v5550_v44 }
0x1a89   :  { %v5551_v7 = vmul.f32 %v5802_v54, %v5543_v31  ;;  %v5560_v20 = vmax.f32 %v5558_v0, 0.0 }
0x1a8b   :  { %v5559_v1 = vadd.f32 %v5803_v43, %v5551_v7 }
0x1a8d   :  { %v5561_v29 = vmax.f32 %v5559_v1, 0.0 }
0x1a8f   :  { %v5570_v56 = vpack.c.bf16 %v5561_v29, %v5560_v20 }
0x1a91   :  { %6414 = vmatmul.mubr.msk.bf16.vlgmr.msra.gmra.mxu1 %vm694_vm2, %v5570_v56 }
0x1b51   :  { %v5639_v9 = vpop.f32.mrf.mxu1 }
0x1b52   :  { %v5640_v17 = vadd.f32 %v5804_v52, %v5639_v9 }
0x1b53   :  { %v6415_v24 = vpop.f32.mrf.mxu1 }
0x1b54   :  { %5647 = vst.msk [vmem:[%s10300_s27] sm:$0xff] %vm5646_vm13, %v5640_v17 }
0x1b55   :  { %v5642_v19 = vpop.f32.mrf.mxu1 }
0x1b56   :  { %v5643_v3 = vadd.f32 %v5804_v52, %v5642_v19 }
0x1b57   :  { %v6416_v50 = vpop.f32.mrf.mxu1 }
0x1b58   :  { %5649 = vst.msk [vmem:[%s10300_s27 + $0x8] sm:$0x3] %vm5648_vm14, %v5643_v3 }

</bundles_post_ra>
